<compile_context>
chip_gen: v5e
topology: v5e:2x2
jax: 0.10.0
libtpu: 0.0.40
codegen_flags: <defaults>
</compile_context>

<pallas_src>
import functools
import math
import numpy as np
import jax
import jax.numpy as jnp
from jax.experimental import pallas as pl
from jax.experimental.pallas import tpu as pltpu


# -----------------------------------------------------------------------------
# Fused kernel: one grid step = one full batch row (encoder + decoder + proj).
# -----------------------------------------------------------------------------
def _make_kernel(T, horizon, K, N, C, H, O):
    def kernel(x_ref, g_ref,
               wzx_ref, wzh_ref, wrx_ref, wrh_ref,
               wux_ref, wuh_ref,
               bz_ref, br_ref, bu_ref,
               wp_ref, bp_ref,
               o_ref):
        f32 = jnp.float32

        # Chebyshev supports, resident in VMEM, hoisted once per batch row.
        G = [g_ref[k] for k in range(K)]                      # K x [N, N]

        def cell(x, h, p):
            """One GRU cell step.  p (static 0/1) selects encoder/decoder weights."""
            # Support matmuls; G[k]@x is shared by the gate and update GCNs.
            gx = [jnp.dot(G[k], x, preferred_element_type=f32) for k in range(K)]   # [N, C]
            gh = [jnp.dot(G[k], h, preferred_element_type=f32) for k in range(K)]   # [N, H]

            # Gate GCN as per-k accumulation (no lane concats, no gate slice).
            z_pre = bz_ref[p]                                   # [1, H]
            r_pre = br_ref[p]
            for k in range(K):
                z_pre = z_pre \
                    + jnp.dot(gx[k], wzx_ref[p, k], preferred_element_type=f32) \
                    + jnp.dot(gh[k], wzh_ref[p, k], preferred_element_type=f32)
                r_pre = r_pre \
                    + jnp.dot(gx[k], wrx_ref[p, k], preferred_element_type=f32) \
                    + jnp.dot(gh[k], wrh_ref[p, k], preferred_element_type=f32)
            z = jax.nn.sigmoid(z_pre)                           # [N, H]
            r = jax.nn.sigmoid(r_pre)                           # [N, H]

            # Update GCN (reuses gx; only the h-side support uses r*h).
            rh = r * h
            u_pre = bu_ref[p]
            for k in range(K):
                grh = jnp.dot(G[k], rh, preferred_element_type=f32)                 # [N, H]
                u_pre = u_pre \
                    + jnp.dot(gx[k], wux_ref[p, k], preferred_element_type=f32) \
                    + jnp.dot(grh, wuh_ref[p, k], preferred_element_type=f32)
            hc = jnp.tanh(u_pre)                                # [N, H]
            return (1.0 - z) * h + z * hc

        # ---------------- encoder: T steps over the resident input block --------
        def enc_body(t, h):
            return cell(x_ref[t], h, 0)

        h = jax.lax.fori_loop(0, T, enc_body,
                              jnp.zeros((N, H), f32), unroll=True)

        # ---------------- decoder: `horizon` steps + fused projection -----------
        def dec_body(t, carry):
            h, go = carry
            h = cell(go, h, 1)
            go = jnp.dot(h, wp_ref[...], preferred_element_type=f32) + bp_ref[...]  # [N, O]
            o_ref[t] = go
            return (h, go)

        jax.lax.fori_loop(0, horizon, dec_body,
                          (h, jnp.zeros((N, C), f32)), unroll=True)

    return kernel


# -----------------------------------------------------------------------------
# Wrapper: one pallas_call, grid over batch only.
# -----------------------------------------------------------------------------
def gcn_gru_forward(P, x_seq, enc_params, dec_params, proj_W, proj_b, horizon):
    """P: [K,N,N]; x_seq: [B,T,N,C]; enc/dec params: dict(Wg,bg,Wu,bu) raw layout."""
    B, T, N, C = x_seq.shape
    K = P.shape[0]
    H = enc_params["Wu"].shape[-1]
    O = proj_W.shape[-1]
    # TODO(synk): like the PyTorch module, the decoder cell input dim equals
    # input_dim while its feedback is the projection output (width output_dim);
    # this (and the original model) only supports output_dim == input_dim.
    assert C == O, "decoder feedback requires output_dim == input_dim"
    # TODO(synk): num_layers > 1 would need one hidden-state carry per layer.

    # Host-side weight re-layout: [K*(C+H), dout] -> per-k x-part / h-part, with
    # the gate weight additionally split into z / r halves (torch.split order).
    def split(raw):
        Wg = raw["Wg"].reshape(K, C + H, 2 * H)
        Wu = raw["Wu"].reshape(K, C + H, H)
        return dict(
            Wzx=Wg[:, :C, :H], Wzh=Wg[:, C:, :H],
            Wrx=Wg[:, :C, H:], Wrh=Wg[:, C:, H:],
            Wux=Wu[:, :C, :], Wuh=Wu[:, C:, :],
            bz=raw["bg"][:H].reshape(1, H),
            br=raw["bg"][H:].reshape(1, H),
            bu=raw["bu"].reshape(1, H),
        )

    e, d = split(enc_params), split(dec_params)
    stk = lambda name: jnp.stack([e[name], d[name]], axis=0)   # [2(enc/dec), ...]
    Wzx, Wzh = stk("Wzx"), stk("Wzh")
    Wrx, Wrh = stk("Wrx"), stk("Wrh")
    Wux, Wuh = stk("Wux"), stk("Wuh")
    bz, br, bu = stk("bz"), stk("br"), stk("bu")
    bp = proj_b.reshape(1, O)

    def resident(shape):                     # grid-invariant, VMEM-resident block
        return pl.BlockSpec(shape, lambda b: (0,) * len(shape))

    out = pl.pallas_call(
        _make_kernel(T, horizon, K, N, C, H, O),
        out_shape=jax.ShapeDtypeStruct((B, horizon, N, O), jnp.float32),
        grid=(B,),
        in_specs=[
            pl.BlockSpec((None, T, N, C), lambda b: (b, 0, 0, 0)),  # x[b] (resident)
            resident((K, N, N)),        # Chebyshev supports G
            resident((2, K, C, H)),     # Wzx  (enc/dec stacked)
            resident((2, K, H, H)),     # Wzh
            resident((2, K, C, H)),     # Wrx
            resident((2, K, H, H)),     # Wrh
            resident((2, K, C, H)),     # Wux
            resident((2, K, H, H)),     # Wuh
            resident((2, 1, H)),        # bz
            resident((2, 1, H)),        # br
            resident((2, 1, H)),        # bu
            resident((H, O)),           # projection weight
            resident((1, O)),           # projection bias
        ],
        out_specs=pl.BlockSpec((None, horizon, N, O), lambda b: (b, 0, 0, 0)),
        compiler_params=pltpu.CompilerParams(
            dimension_semantics=("parallel",),
            vmem_limit_bytes=32 * 1024 * 1024),
    )(x_seq, P, Wzx, Wzh, Wrx, Wrh, Wux, Wuh, bz, br, bu, proj_W, bp)

    return out                                                  # [B, horizon, N, O]


# -----------------------------------------------------------------------------
# Parameter setup (mirrors the PyTorch __init__ shapes)
# -----------------------------------------------------------------------------
def xavier_normal(key, shape):
    fan_out, fan_in = shape[0], shape[1]     # torch convention for 2-D Parameter
    std = math.sqrt(2.0 / (fan_in + fan_out))
    return std * jax.random.normal(key, shape, jnp.float32)


def init_gru_cell_raw(key, K, dim_in, dim_hidden):
    kg, ku = jax.random.split(key)
    return dict(
        Wg=xavier_normal(kg, (K * (dim_in + dim_hidden), 2 * dim_hidden)),
        bg=jnp.zeros((2 * dim_hidden,), jnp.float32),
        Wu=xavier_normal(ku, (K * (dim_in + dim_hidden), dim_hidden)),
        bu=jnp.zeros((dim_hidden,), jnp.float32),
    )


def compute_cheby_poly(adj_list, K):
    P_k = []
    for a in adj_list:
        p = jnp.asarray(a, jnp.float32).T
        T_k = [jnp.eye(p.shape[0], dtype=jnp.float32), p]
        for _ in range(2, K):
            T_k.append(2.0 * (p @ T_k[-1]) - T_k[-2])
        P_k += T_k
    return jnp.stack(P_k, axis=0)            # [K * len(adj_list), N, N]


# -----------------------------------------------------------------------------
# Pure-JAX reference (mirrors the PyTorch code structure, HIGHEST precision)
# -----------------------------------------------------------------------------
def _gcn_ref(G, x, W, b, K):
    hp = jax.lax.Precision.HIGHEST
    supports = [jnp.einsum('ij,bjp->bip', G[k], x, precision=hp) for k in range(K)]
    sc = jnp.concatenate(supports, axis=-1)
    return jnp.einsum('bip,pq->biq', sc, W, precision=hp) + b


def _gru_cell_ref(G, x, state, raw, K, H):
    combined = jnp.concatenate([x, state], axis=-1)
    cc = jax.nn.sigmoid(_gcn_ref(G, combined, raw["Wg"], raw["bg"], K))
    z, r = cc[..., :H], cc[..., H:]
    cand = jnp.concatenate([x, r * state], axis=-1)
    hc = jnp.tanh(_gcn_ref(G, cand, raw["Wu"], raw["bu"], K))
    return (1.0 - z) * state + z * hc


def gcn_gru_forward_ref(P, x_seq, enc_raw, dec_raw, proj_W, proj_b, horizon, K, H):
    B, T, N, C = x_seq.shape
    h = jnp.zeros((B, N, H), jnp.float32)
    for t in range(T):
        h = _gru_cell_ref(P, x_seq[:, t], h, enc_raw, K, H)
    go = jnp.zeros((B, N, C), jnp.float32)
    outs = []
    for _ in range(horizon):
        h = _gru_cell_ref(P, go, h, dec_raw, K, H)
        go = jnp.einsum('bnh,ho->bno', h, proj_W,
                        precision=jax.lax.Precision.HIGHEST) + proj_b
        outs.append(go)
    return jnp.stack(outs, axis=1)


# -----------------------------------------------------------------------------
if __name__ == "__main__":
    B, T, N = 2, 8, 16
    input_dim = output_dim = 4
    H = 32            # rnn_units (= decoder_dim)
    K = 3
    horizon = 3

    key = jax.random.PRNGKey(0)
    k_adj, k_x, k_enc, k_dec, k_pw, k_pb = jax.random.split(key, 6)

    # Random row-normalized adjacency -> Chebyshev supports P: [K, N, N]
    A = jax.random.uniform(k_adj, (N, N), jnp.float32)
    A = A / jnp.sum(A, axis=1, keepdims=True)
    P = compute_cheby_poly([A], K)

    x_seq = jax.random.normal(k_x, (B, T, N, input_dim), jnp.float32)

    enc_raw = init_gru_cell_raw(k_enc, K, input_dim, H)
    dec_raw = init_gru_cell_raw(k_dec, K, input_dim, H)

    bound = 1.0 / math.sqrt(H)
    proj_W = jax.random.uniform(k_pw, (H, output_dim), jnp.float32, -bound, bound)
    proj_b = jax.random.uniform(k_pb, (1, output_dim), jnp.float32, -bound, bound)

    fwd = jax.jit(functools.partial(gcn_gru_forward, horizon=horizon))
    out = fwd(P, x_seq, enc_raw, dec_raw, proj_W, proj_b)
    out = jax.block_until_ready(out)
    assert out.shape == (B, horizon, N, output_dim)

    ref = gcn_gru_forward_ref(P, x_seq, enc_raw, dec_raw, proj_W, proj_b,
                              horizon, K, H)
    np.testing.assert_allclose(np.asarray(out), np.asarray(ref), rtol=2e-2, atol=2e-2)

    print("KERNEL_OK")
</pallas_src>

<mosaic_0001>
module attributes {stable_mosaic.version = 11 : i64} {
  func.func @kernel(%arg0: i32, %arg1: memref<1x8x16x4xf32, #tpu.memory_space<vmem>>, %arg2: memref<3x16x16xf32, #tpu.memory_space<vmem>>, %arg3: memref<2x3x4x32xf32, #tpu.memory_space<vmem>>, %arg4: memref<2x3x32x32xf32, #tpu.memory_space<vmem>>, %arg5: memref<2x3x4x32xf32, #tpu.memory_space<vmem>>, %arg6: memref<2x3x32x32xf32, #tpu.memory_space<vmem>>, %arg7: memref<2x3x4x32xf32, #tpu.memory_space<vmem>>, %arg8: memref<2x3x32x32xf32, #tpu.memory_space<vmem>>, %arg9: memref<2x1x32xf32, #tpu.memory_space<vmem>>, %arg10: memref<2x1x32xf32, #tpu.memory_space<vmem>>, %arg11: memref<2x1x32xf32, #tpu.memory_space<vmem>>, %arg12: memref<32x4xf32, #tpu.memory_space<vmem>>, %arg13: memref<1x4xf32, #tpu.memory_space<vmem>>, %arg14: memref<1x3x16x4xf32, #tpu.memory_space<vmem>>) attributes {dimension_semantics = [#tpu.dimension_semantics<parallel>], iteration_bounds = array<i64: 2>, scalar_prefetch = 0 : i64, scratch_operands = 0 : i64, tpu.core_type = #tpu.core_type<tc>, window_params = [{transform_indices = @transform_0, window_bounds = array<i64: 1, 8, 16, 4>}, {pipeline_mode = #tpu.pipeline_mode<synchronous>, transform_indices = @transform_1, window_bounds = array<i64: 3, 16, 16>}, {pipeline_mode = #tpu.pipeline_mode<synchronous>, transform_indices = @transform_2, window_bounds = array<i64: 2, 3, 4, 32>}, {pipeline_mode = #tpu.pipeline_mode<synchronous>, transform_indices = @transform_3, window_bounds = array<i64: 2, 3, 32, 32>}, {pipeline_mode = #tpu.pipeline_mode<synchronous>, transform_indices = @transform_4, window_bounds = array<i64: 2, 3, 4, 32>}, {pipeline_mode = #tpu.pipeline_mode<synchronous>, transform_indices = @transform_5, window_bounds = array<i64: 2, 3, 32, 32>}, {pipeline_mode = #tpu.pipeline_mode<synchronous>, transform_indices = @transform_6, window_bounds = array<i64: 2, 3, 4, 32>}, {pipeline_mode = #tpu.pipeline_mode<synchronous>, transform_indices = @transform_7, window_bounds = array<i64: 2, 3, 32, 32>}, {pipeline_mode = #tpu.pipeline_mode<synchronous>, transform_indices = @transform_8, window_bounds = array<i64: 2, 1, 32>}, {pipeline_mode = #tpu.pipeline_mode<synchronous>, transform_indices = @transform_9, window_bounds = array<i64: 2, 1, 32>}, {pipeline_mode = #tpu.pipeline_mode<synchronous>, transform_indices = @transform_10, window_bounds = array<i64: 2, 1, 32>}, {pipeline_mode = #tpu.pipeline_mode<synchronous>, transform_indices = @transform_11, window_bounds = array<i64: 32, 4>}, {pipeline_mode = #tpu.pipeline_mode<synchronous>, transform_indices = @transform_12, window_bounds = array<i64: 1, 4>}, {transform_indices = @transform_13, window_bounds = array<i64: 1, 3, 16, 4>}]} {
    %c0 = arith.constant 0 : index
    %c0_0 = arith.constant 0 : index
    %c0_1 = arith.constant 0 : index
    %0 = vector.load %arg2[%c0, %c0_0, %c0_1] : memref<3x16x16xf32, #tpu.memory_space<vmem>>, vector<1x16x16xf32>
    %1 = vector.shape_cast %0 : vector<1x16x16xf32> to vector<16x16xf32>
    %c1 = arith.constant 1 : index
    %c0_2 = arith.constant 0 : index
    %c0_3 = arith.constant 0 : index
    %2 = vector.load %arg2[%c1, %c0_2, %c0_3] : memref<3x16x16xf32, #tpu.memory_space<vmem>>, vector<1x16x16xf32>
    %3 = vector.shape_cast %2 : vector<1x16x16xf32> to vector<16x16xf32>
    %c2 = arith.constant 2 : index
    %c0_4 = arith.constant 0 : index
    %c0_5 = arith.constant 0 : index
    %4 = vector.load %arg2[%c2, %c0_4, %c0_5] : memref<3x16x16xf32, #tpu.memory_space<vmem>>, vector<1x16x16xf32>
    %5 = vector.shape_cast %4 : vector<1x16x16xf32> to vector<16x16xf32>
    %cst = arith.constant 0.000000e+00 : f32
    %6 = vector.broadcast %cst : f32 to vector<16x32xf32>
    %c0_i32 = arith.constant 0 : i32
    %c0_6 = arith.constant 0 : index
    %7 = arith.index_cast %c0_i32 : i32 to index
    %c0_7 = arith.constant 0 : index
    %c0_8 = arith.constant 0 : index
    %8 = vector.load %arg1[%c0_6, %7, %c0_7, %c0_8] : memref<1x8x16x4xf32, #tpu.memory_space<vmem>>, vector<1x1x16x4xf32>
    %9 = vector.shape_cast %8 : vector<1x1x16x4xf32> to vector<16x4xf32>
    %cst_9 = arith.constant dense<0.000000e+00> : vector<16x4xf32>
    %10 = tpu.matmul %1, %9, %cst_9 {dimension_numbers = #tpu.dot_dimension_numbers<[1], [0], [0], [1], [0, 0, 1, 1], [], []>} : vector<16x16xf32>, vector<16x4xf32>, vector<16x4xf32> -> vector<16x4xf32>
    %cst_10 = arith.constant dense<0.000000e+00> : vector<16x4xf32>
    %11 = tpu.matmul %3, %9, %cst_10 {dimension_numbers = #tpu.dot_dimension_numbers<[1], [0], [0], [1], [0, 0, 1, 1], [], []>} : vector<16x16xf32>, vector<16x4xf32>, vector<16x4xf32> -> vector<16x4xf32>
    %cst_11 = arith.constant dense<0.000000e+00> : vector<16x4xf32>
    %12 = tpu.matmul %5, %9, %cst_11 {dimension_numbers = #tpu.dot_dimension_numbers<[1], [0], [0], [1], [0, 0, 1, 1], [], []>} : vector<16x16xf32>, vector<16x4xf32>, vector<16x4xf32> -> vector<16x4xf32>
    %cst_12 = arith.constant dense<0.000000e+00> : vector<16x32xf32>
    %13 = tpu.matmul %1, %6, %cst_12 {dimension_numbers = #tpu.dot_dimension_numbers<[1], [0], [0], [1], [0, 0, 1, 1], [], []>} : vector<16x16xf32>, vector<16x32xf32>, vector<16x32xf32> -> vector<16x32xf32>
    %cst_13 = arith.constant dense<0.000000e+00> : vector<16x32xf32>
    %14 = tpu.matmul %3, %6, %cst_13 {dimension_numbers = #tpu.dot_dimension_numbers<[1], [0], [0], [1], [0, 0, 1, 1], [], []>} : vector<16x16xf32>, vector<16x32xf32>, vector<16x32xf32> -> vector<16x32xf32>
    %cst_14 = arith.constant dense<0.000000e+00> : vector<16x32xf32>
    %15 = tpu.matmul %5, %6, %cst_14 {dimension_numbers = #tpu.dot_dimension_numbers<[1], [0], [0], [1], [0, 0, 1, 1], [], []>} : vector<16x16xf32>, vector<16x32xf32>, vector<16x32xf32> -> vector<16x32xf32>
    %c0_15 = arith.constant 0 : index
    %c0_16 = arith.constant 0 : index
    %c0_17 = arith.constant 0 : index
    %16 = vector.load %arg9[%c0_15, %c0_16, %c0_17] : memref<2x1x32xf32, #tpu.memory_space<vmem>>, vector<1x1x32xf32>
    %17 = vector.shape_cast %16 : vector<1x1x32xf32> to vector<1x32xf32>
    %c0_18 = arith.constant 0 : index
    %c0_19 = arith.constant 0 : index
    %c0_20 = arith.constant 0 : index
    %18 = vector.load %arg10[%c0_18, %c0_19, %c0_20] : memref<2x1x32xf32, #tpu.memory_space<vmem>>, vector<1x1x32xf32>
    %19 = vector.shape_cast %18 : vector<1x1x32xf32> to vector<1x32xf32>
    %c0_21 = arith.constant 0 : index
    %c0_22 = arith.constant 0 : index
    %c0_23 = arith.constant 0 : index
    %c0_24 = arith.constant 0 : index
    %20 = vector.load %arg3[%c0_21, %c0_22, %c0_23, %c0_24] : memref<2x3x4x32xf32, #tpu.memory_space<vmem>>, vector<1x1x4x32xf32>
    %21 = vector.shape_cast %20 : vector<1x1x4x32xf32> to vector<4x32xf32>
    %cst_25 = arith.constant dense<0.000000e+00> : vector<16x32xf32>
    %22 = tpu.matmul %10, %21, %cst_25 {dimension_numbers = #tpu.dot_dimension_numbers<[1], [0], [0], [1], [0, 0, 1, 1], [], []>} : vector<16x4xf32>, vector<4x32xf32>, vector<16x32xf32> -> vector<16x32xf32>
    %23 = vector.broadcast %17 : vector<1x32xf32> to vector<16x32xf32>
    %24 = arith.addf %23, %22 : vector<16x32xf32>
    %c0_26 = arith.constant 0 : index
    %c0_27 = arith.constant 0 : index
    %c0_28 = arith.constant 0 : index
    %c0_29 = arith.constant 0 : index
    %25 = vector.load %arg4[%c0_26, %c0_27, %c0_28, %c0_29] : memref<2x3x32x32xf32, #tpu.memory_space<vmem>>, vector<1x1x32x32xf32>
    %26 = vector.shape_cast %25 : vector<1x1x32x32xf32> to vector<32x32xf32>
    %cst_30 = arith.constant dense<0.000000e+00> : vector<16x32xf32>
    %27 = tpu.matmul %13, %26, %cst_30 {dimension_numbers = #tpu.dot_dimension_numbers<[1], [0], [0], [1], [0, 0, 1, 1], [], []>} : vector<16x32xf32>, vector<32x32xf32>, vector<16x32xf32> -> vector<16x32xf32>
    %28 = arith.addf %24, %27 : vector<16x32xf32>
    %c0_31 = arith.constant 0 : index
    %c0_32 = arith.constant 0 : index
    %c0_33 = arith.constant 0 : index
    %c0_34 = arith.constant 0 : index
    %29 = vector.load %arg5[%c0_31, %c0_32, %c0_33, %c0_34] : memref<2x3x4x32xf32, #tpu.memory_space<vmem>>, vector<1x1x4x32xf32>
    %30 = vector.shape_cast %29 : vector<1x1x4x32xf32> to vector<4x32xf32>
    %cst_35 = arith.constant dense<0.000000e+00> : vector<16x32xf32>
    %31 = tpu.matmul %10, %30, %cst_35 {dimension_numbers = #tpu.dot_dimension_numbers<[1], [0], [0], [1], [0, 0, 1, 1], [], []>} : vector<16x4xf32>, vector<4x32xf32>, vector<16x32xf32> -> vector<16x32xf32>
    %32 = vector.broadcast %19 : vector<1x32xf32> to vector<16x32xf32>
    %33 = arith.addf %32, %31 : vector<16x32xf32>
    %c0_36 = arith.constant 0 : index
    %c0_37 = arith.constant 0 : index
    %c0_38 = arith.constant 0 : index
    %c0_39 = arith.constant 0 : index
    %34 = vector.load %arg6[%c0_36, %c0_37, %c0_38, %c0_39] : memref<2x3x32x32xf32, #tpu.memory_space<vmem>>, vector<1x1x32x32xf32>
    %35 = vector.shape_cast %34 : vector<1x1x32x32xf32> to vector<32x32xf32>
    %cst_40 = arith.constant dense<0.000000e+00> : vector<16x32xf32>
    %36 = tpu.matmul %13, %35, %cst_40 {dimension_numbers = #tpu.dot_dimension_numbers<[1], [0], [0], [1], [0, 0, 1, 1], [], []>} : vector<16x32xf32>, vector<32x32xf32>, vector<16x32xf32> -> vector<16x32xf32>
    %37 = arith.addf %33, %36 : vector<16x32xf32>
    %c0_41 = arith.constant 0 : index
    %c1_42 = arith.constant 1 : index
    %c0_43 = arith.constant 0 : index
    %c0_44 = arith.constant 0 : index
    %38 = vector.load %arg3[%c0_41, %c1_42, %c0_43, %c0_44] : memref<2x3x4x32xf32, #tpu.memory_space<vmem>>, vector<1x1x4x32xf32>
    %39 = vector.shape_cast %38 : vector<1x1x4x32xf32> to vector<4x32xf32>
    %cst_45 = arith.constant dense<0.000000e+00> : vector<16x32xf32>
    %40 = tpu.matmul %11, %39, %cst_45 {dimension_numbers = #tpu.dot_dimension_numbers<[1], [0], [0], [1], [0, 0, 1, 1], [], []>} : vector<16x4xf32>, vector<4x32xf32>, vector<16x32xf32> -> vector<16x32xf32>
    %41 = arith.addf %28, %40 : vector<16x32xf32>
    %c0_46 = arith.constant 0 : index
    %c1_47 = arith.constant 1 : index
    %c0_48 = arith.constant 0 : index
    %c0_49 = arith.constant 0 : index
    %42 = vector.load %arg4[%c0_46, %c1_47, %c0_48, %c0_49] : memref<2x3x32x32xf32, #tpu.memory_space<vmem>>, vector<1x1x32x32xf32>
    %43 = vector.shape_cast %42 : vector<1x1x32x32xf32> to vector<32x32xf32>
    %cst_50 = arith.constant dense<0.000000e+00> : vector<16x32xf32>
    %44 = tpu.matmul %14, %43, %cst_50 {dimension_numbers = #tpu.dot_dimension_numbers<[1], [0], [0], [1], [0, 0, 1, 1], [], []>} : vector<16x32xf32>, vector<32x32xf32>, vector<16x32xf32> -> vector<16x32xf32>
    %45 = arith.addf %41, %44 : vector<16x32xf32>
    %c0_51 = arith.constant 0 : index
    %c1_52 = arith.constant 1 : index
    %c0_53 = arith.constant 0 : index
    %c0_54 = arith.constant 0 : index
    %46 = vector.load %arg5[%c0_51, %c1_52, %c0_53, %c0_54] : memref<2x3x4x32xf32, #tpu.memory_space<vmem>>, vector<1x1x4x32xf32>
    %47 = vector.shape_cast %46 : vector<1x1x4x32xf32> to vector<4x32xf32>
    %cst_55 = arith.constant dense<0.000000e+00> : vector<16x32xf32>
    %48 = tpu.matmul %11, %47, %cst_55 {dimension_numbers = #tpu.dot_dimension_numbers<[1], [0], [0], [1], [0, 0, 1, 1], [], []>} : vector<16x4xf32>, vector<4x32xf32>, vector<16x32xf32> -> vector<16x32xf32>
    %49 = arith.addf %37, %48 : vector<16x32xf32>
    %c0_56 = arith.constant 0 : index
    %c1_57 = arith.constant 1 : index
    %c0_58 = arith.constant 0 : index
    %c0_59 = arith.constant 0 : index
    %50 = vector.load %arg6[%c0_56, %c1_57, %c0_58, %c0_59] : memref<2x3x32x32xf32, #tpu.memory_space<vmem>>, vector<1x1x32x32xf32>
    %51 = vector.shape_cast %50 : vector<1x1x32x32xf32> to vector<32x32xf32>
    %cst_60 = arith.constant dense<0.000000e+00> : vector<16x32xf32>
    %52 = tpu.matmul %14, %51, %cst_60 {dimension_numbers = #tpu.dot_dimension_numbers<[1], [0], [0], [1], [0, 0, 1, 1], [], []>} : vector<16x32xf32>, vector<32x32xf32>, vector<16x32xf32> -> vector<16x32xf32>
    %53 = arith.addf %49, %52 : vector<16x32xf32>
    %c0_61 = arith.constant 0 : index
    %c2_62 = arith.constant 2 : index
    %c0_63 = arith.constant 0 : index
    %c0_64 = arith.constant 0 : index
    %54 = vector.load %arg3[%c0_61, %c2_62, %c0_63, %c0_64] : memref<2x3x4x32xf32, #tpu.memory_space<vmem>>, vector<1x1x4x32xf32>
    %55 = vector.shape_cast %54 : vector<1x1x4x32xf32> to vector<4x32xf32>
    %cst_65 = arith.constant dense<0.000000e+00> : vector<16x32xf32>
    %56 = tpu.matmul %12, %55, %cst_65 {dimension_numbers = #tpu.dot_dimension_numbers<[1], [0], [0], [1], [0, 0, 1, 1], [], []>} : vector<16x4xf32>, vector<4x32xf32>, vector<16x32xf32> -> vector<16x32xf32>
    %57 = arith.addf %45, %56 : vector<16x32xf32>
    %c0_66 = arith.constant 0 : index
    %c2_67 = arith.constant 2 : index
    %c0_68 = arith.constant 0 : index
    %c0_69 = arith.constant 0 : index
    %58 = vector.load %arg4[%c0_66, %c2_67, %c0_68, %c0_69] : memref<2x3x32x32xf32, #tpu.memory_space<vmem>>, vector<1x1x32x32xf32>
    %59 = vector.shape_cast %58 : vector<1x1x32x32xf32> to vector<32x32xf32>
    %cst_70 = arith.constant dense<0.000000e+00> : vector<16x32xf32>
    %60 = tpu.matmul %15, %59, %cst_70 {dimension_numbers = #tpu.dot_dimension_numbers<[1], [0], [0], [1], [0, 0, 1, 1], [], []>} : vector<16x32xf32>, vector<32x32xf32>, vector<16x32xf32> -> vector<16x32xf32>
    %61 = arith.addf %57, %60 : vector<16x32xf32>
    %c0_71 = arith.constant 0 : index
    %c2_72 = arith.constant 2 : index
    %c0_73 = arith.constant 0 : index
    %c0_74 = arith.constant 0 : index
    %62 = vector.load %arg5[%c0_71, %c2_72, %c0_73, %c0_74] : memref<2x3x4x32xf32, #tpu.memory_space<vmem>>, vector<1x1x4x32xf32>
    %63 = vector.shape_cast %62 : vector<1x1x4x32xf32> to vector<4x32xf32>
    %cst_75 = arith.constant dense<0.000000e+00> : vector<16x32xf32>
    %64 = tpu.matmul %12, %63, %cst_75 {dimension_numbers = #tpu.dot_dimension_numbers<[1], [0], [0], [1], [0, 0, 1, 1], [], []>} : vector<16x4xf32>, vector<4x32xf32>, vector<16x32xf32> -> vector<16x32xf32>
    %65 = arith.addf %53, %64 : vector<16x32xf32>
    %c0_76 = arith.constant 0 : index
    %c2_77 = arith.constant 2 : index
    %c0_78 = arith.constant 0 : index
    %c0_79 = arith.constant 0 : index
    %66 = vector.load %arg6[%c0_76, %c2_77, %c0_78, %c0_79] : memref<2x3x32x32xf32, #tpu.memory_space<vmem>>, vector<1x1x32x32xf32>
    %67 = vector.shape_cast %66 : vector<1x1x32x32xf32> to vector<32x32xf32>
    %cst_80 = arith.constant dense<0.000000e+00> : vector<16x32xf32>
    %68 = tpu.matmul %15, %67, %cst_80 {dimension_numbers = #tpu.dot_dimension_numbers<[1], [0], [0], [1], [0, 0, 1, 1], [], []>} : vector<16x32xf32>, vector<32x32xf32>, vector<16x32xf32> -> vector<16x32xf32>
    %69 = arith.addf %65, %68 : vector<16x32xf32>
    %70 = arith.negf %61 : vector<16x32xf32>
    %71 = math.exp %70 : vector<16x32xf32>
    %cst_81 = arith.constant 1.000000e+00 : f32
    %72 = vector.broadcast %cst_81 : f32 to vector<16x32xf32>
    %73 = arith.addf %72, %71 : vector<16x32xf32>
    %74 = arith.divf %72, %73 : vector<16x32xf32>
    %75 = arith.negf %69 : vector<16x32xf32>
    %76 = math.exp %75 : vector<16x32xf32>
    %cst_82 = arith.constant 1.000000e+00 : f32
    %77 = vector.broadcast %cst_82 : f32 to vector<16x32xf32>
    %78 = arith.addf %77, %76 : vector<16x32xf32>
    %79 = arith.divf %77, %78 : vector<16x32xf32>
    %80 = arith.mulf %79, %6 : vector<16x32xf32>
    %c0_83 = arith.constant 0 : index
    %c0_84 = arith.constant 0 : index
    %c0_85 = arith.constant 0 : index
    %81 = vector.load %arg11[%c0_83, %c0_84, %c0_85] : memref<2x1x32xf32, #tpu.memory_space<vmem>>, vector<1x1x32xf32>
    %82 = vector.shape_cast %81 : vector<1x1x32xf32> to vector<1x32xf32>
    %cst_86 = arith.constant dense<0.000000e+00> : vector<16x32xf32>
    %83 = tpu.matmul %1, %80, %cst_86 {dimension_numbers = #tpu.dot_dimension_numbers<[1], [0], [0], [1], [0, 0, 1, 1], [], []>} : vector<16x16xf32>, vector<16x32xf32>, vector<16x32xf32> -> vector<16x32xf32>
    %c0_87 = arith.constant 0 : index
    %c0_88 = arith.constant 0 : index
    %c0_89 = arith.constant 0 : index
    %c0_90 = arith.constant 0 : index
    %84 = vector.load %arg7[%c0_87, %c0_88, %c0_89, %c0_90] : memref<2x3x4x32xf32, #tpu.memory_space<vmem>>, vector<1x1x4x32xf32>
    %85 = vector.shape_cast %84 : vector<1x1x4x32xf32> to vector<4x32xf32>
    %cst_91 = arith.constant dense<0.000000e+00> : vector<16x32xf32>
    %86 = tpu.matmul %10, %85, %cst_91 {dimension_numbers = #tpu.dot_dimension_numbers<[1], [0], [0], [1], [0, 0, 1, 1], [], []>} : vector<16x4xf32>, vector<4x32xf32>, vector<16x32xf32> -> vector<16x32xf32>
    %87 = vector.broadcast %82 : vector<1x32xf32> to vector<16x32xf32>
    %88 = arith.addf %87, %86 : vector<16x32xf32>
    %c0_92 = arith.constant 0 : index
    %c0_93 = arith.constant 0 : index
    %c0_94 = arith.constant 0 : index
    %c0_95 = arith.constant 0 : index
    %89 = vector.load %arg8[%c0_92, %c0_93, %c0_94, %c0_95] : memref<2x3x32x32xf32, #tpu.memory_space<vmem>>, vector<1x1x32x32xf32>
    %90 = vector.shape_cast %89 : vector<1x1x32x32xf32> to vector<32x32xf32>
    %cst_96 = arith.constant dense<0.000000e+00> : vector<16x32xf32>
    %91 = tpu.matmul %83, %90, %cst_96 {dimension_numbers = #tpu.dot_dimension_numbers<[1], [0], [0], [1], [0, 0, 1, 1], [], []>} : vector<16x32xf32>, vector<32x32xf32>, vector<16x32xf32> -> vector<16x32xf32>
    %92 = arith.addf %88, %91 : vector<16x32xf32>
    %cst_97 = arith.constant dense<0.000000e+00> : vector<16x32xf32>
    %93 = tpu.matmul %3, %80, %cst_97 {dimension_numbers = #tpu.dot_dimension_numbers<[1], [0], [0], [1], [0, 0, 1, 1], [], []>} : vector<16x16xf32>, vector<16x32xf32>, vector<16x32xf32> -> vector<16x32xf32>
    %c0_98 = arith.constant 0 : index
    %c1_99 = arith.constant 1 : index
    %c0_100 = arith.constant 0 : index
    %c0_101 = arith.constant 0 : index
    %94 = vector.load %arg7[%c0_98, %c1_99, %c0_100, %c0_101] : memref<2x3x4x32xf32, #tpu.memory_space<vmem>>, vector<1x1x4x32xf32>
    %95 = vector.shape_cast %94 : vector<1x1x4x32xf32> to vector<4x32xf32>
    %cst_102 = arith.constant dense<0.000000e+00> : vector<16x32xf32>
    %96 = tpu.matmul %11, %95, %cst_102 {dimension_numbers = #tpu.dot_dimension_numbers<[1], [0], [0], [1], [0, 0, 1, 1], [], []>} : vector<16x4xf32>, vector<4x32xf32>, vector<16x32xf32> -> vector<16x32xf32>
    %97 = arith.addf %92, %96 : vector<16x32xf32>
    %c0_103 = arith.constant 0 : index
    %c1_104 = arith.constant 1 : index
    %c0_105 = arith.constant 0 : index
    %c0_106 = arith.constant 0 : index
    %98 = vector.load %arg8[%c0_103, %c1_104, %c0_105, %c0_106] : memref<2x3x32x32xf32, #tpu.memory_space<vmem>>, vector<1x1x32x32xf32>
    %99 = vector.shape_cast %98 : vector<1x1x32x32xf32> to vector<32x32xf32>
    %cst_107 = arith.constant dense<0.000000e+00> : vector<16x32xf32>
    %100 = tpu.matmul %93, %99, %cst_107 {dimension_numbers = #tpu.dot_dimension_numbers<[1], [0], [0], [1], [0, 0, 1, 1], [], []>} : vector<16x32xf32>, vector<32x32xf32>, vector<16x32xf32> -> vector<16x32xf32>
    %101 = arith.addf %97, %100 : vector<16x32xf32>
    %cst_108 = arith.constant dense<0.000000e+00> : vector<16x32xf32>
    %102 = tpu.matmul %5, %80, %cst_108 {dimension_numbers = #tpu.dot_dimension_numbers<[1], [0], [0], [1], [0, 0, 1, 1], [], []>} : vector<16x16xf32>, vector<16x32xf32>, vector<16x32xf32> -> vector<16x32xf32>
    %c0_109 = arith.constant 0 : index
    %c2_110 = arith.constant 2 : index
    %c0_111 = arith.constant 0 : index
    %c0_112 = arith.constant 0 : index
    %103 = vector.load %arg7[%c0_109, %c2_110, %c0_111, %c0_112] : memref<2x3x4x32xf32, #tpu.memory_space<vmem>>, vector<1x1x4x32xf32>
    %104 = vector.shape_cast %103 : vector<1x1x4x32xf32> to vector<4x32xf32>
    %cst_113 = arith.constant dense<0.000000e+00> : vector<16x32xf32>
    %105 = tpu.matmul %12, %104, %cst_113 {dimension_numbers = #tpu.dot_dimension_numbers<[1], [0], [0], [1], [0, 0, 1, 1], [], []>} : vector<16x4xf32>, vector<4x32xf32>, vector<16x32xf32> -> vector<16x32xf32>
    %106 = arith.addf %101, %105 : vector<16x32xf32>
    %c0_114 = arith.constant 0 : index
    %c2_115 = arith.constant 2 : index
    %c0_116 = arith.constant 0 : index
    %c0_117 = arith.constant 0 : index
    %107 = vector.load %arg8[%c0_114, %c2_115, %c0_116, %c0_117] : memref<2x3x32x32xf32, #tpu.memory_space<vmem>>, vector<1x1x32x32xf32>
    %108 = vector.shape_cast %107 : vector<1x1x32x32xf32> to vector<32x32xf32>
    %cst_118 = arith.constant dense<0.000000e+00> : vector<16x32xf32>
    %109 = tpu.matmul %102, %108, %cst_118 {dimension_numbers = #tpu.dot_dimension_numbers<[1], [0], [0], [1], [0, 0, 1, 1], [], []>} : vector<16x32xf32>, vector<32x32xf32>, vector<16x32xf32> -> vector<16x32xf32>
    %110 = arith.addf %106, %109 : vector<16x32xf32>
    %111 = math.tanh %110 : vector<16x32xf32>
    %cst_119 = arith.constant 1.000000e+00 : f32
    %112 = vector.broadcast %cst_119 : f32 to vector<16x32xf32>
    %113 = arith.subf %112, %74 : vector<16x32xf32>
    %114 = arith.mulf %113, %6 : vector<16x32xf32>
    %115 = arith.mulf %74, %111 : vector<16x32xf32>
    %116 = arith.addf %114, %115 : vector<16x32xf32>
    %c1_i32 = arith.constant 1 : i32
    %c0_120 = arith.constant 0 : index
    %117 = arith.index_cast %c1_i32 : i32 to index
    %c0_121 = arith.constant 0 : index
    %c0_122 = arith.constant 0 : index
    %118 = vector.load %arg1[%c0_120, %117, %c0_121, %c0_122] : memref<1x8x16x4xf32, #tpu.memory_space<vmem>>, vector<1x1x16x4xf32>
    %119 = vector.shape_cast %118 : vector<1x1x16x4xf32> to vector<16x4xf32>
    %cst_123 = arith.constant dense<0.000000e+00> : vector<16x4xf32>
    %120 = tpu.matmul %1, %119, %cst_123 {dimension_numbers = #tpu.dot_dimension_numbers<[1], [0], [0], [1], [0, 0, 1, 1], [], []>} : vector<16x16xf32>, vector<16x4xf32>, vector<16x4xf32> -> vector<16x4xf32>
    %cst_124 = arith.constant dense<0.000000e+00> : vector<16x4xf32>
    %121 = tpu.matmul %3, %119, %cst_124 {dimension_numbers = #tpu.dot_dimension_numbers<[1], [0], [0], [1], [0, 0, 1, 1], [], []>} : vector<16x16xf32>, vector<16x4xf32>, vector<16x4xf32> -> vector<16x4xf32>
    %cst_125 = arith.constant dense<0.000000e+00> : vector<16x4xf32>
    %122 = tpu.matmul %5, %119, %cst_125 {dimension_numbers = #tpu.dot_dimension_numbers<[1], [0], [0], [1], [0, 0, 1, 1], [], []>} : vector<16x16xf32>, vector<16x4xf32>, vector<16x4xf32> -> vector<16x4xf32>
    %cst_126 = arith.constant dense<0.000000e+00> : vector<16x32xf32>
    %123 = tpu.matmul %1, %116, %cst_126 {dimension_numbers = #tpu.dot_dimension_numbers<[1], [0], [0], [1], [0, 0, 1, 1], [], []>} : vector<16x16xf32>, vector<16x32xf32>, vector<16x32xf32> -> vector<16x32xf32>
    %cst_127 = arith.constant dense<0.000000e+00> : vector<16x32xf32>
    %124 = tpu.matmul %3, %116, %cst_127 {dimension_numbers = #tpu.dot_dimension_numbers<[1], [0], [0], [1], [0, 0, 1, 1], [], []>} : vector<16x16xf32>, vector<16x32xf32>, vector<16x32xf32> -> vector<16x32xf32>
    %cst_128 = arith.constant dense<0.000000e+00> : vector<16x32xf32>
    %125 = tpu.matmul %5, %116, %cst_128 {dimension_numbers = #tpu.dot_dimension_numbers<[1], [0], [0], [1], [0, 0, 1, 1], [], []>} : vector<16x16xf32>, vector<16x32xf32>, vector<16x32xf32> -> vector<16x32xf32>
    %c0_129 = arith.constant 0 : index
    %c0_130 = arith.constant 0 : index
    %c0_131 = arith.constant 0 : index
    %126 = vector.load %arg9[%c0_129, %c0_130, %c0_131] : memref<2x1x32xf32, #tpu.memory_space<vmem>>, vector<1x1x32xf32>
    %127 = vector.shape_cast %126 : vector<1x1x32xf32> to vector<1x32xf32>
    %c0_132 = arith.constant 0 : index
    %c0_133 = arith.constant 0 : index
    %c0_134 = arith.constant 0 : index
    %128 = vector.load %arg10[%c0_132, %c0_133, %c0_134] : memref<2x1x32xf32, #tpu.memory_space<vmem>>, vector<1x1x32xf32>
    %129 = vector.shape_cast %128 : vector<1x1x32xf32> to vector<1x32xf32>
    %c0_135 = arith.constant 0 : index
    %c0_136 = arith.constant 0 : index
    %c0_137 = arith.constant 0 : index
    %c0_138 = arith.constant 0 : index
    %130 = vector.load %arg3[%c0_135, %c0_136, %c0_137, %c0_138] : memref<2x3x4x32xf32, #tpu.memory_space<vmem>>, vector<1x1x4x32xf32>
    %131 = vector.shape_cast %130 : vector<1x1x4x32xf32> to vector<4x32xf32>
    %cst_139 = arith.constant dense<0.000000e+00> : vector<16x32xf32>
    %132 = tpu.matmul %120, %131, %cst_139 {dimension_numbers = #tpu.dot_dimension_numbers<[1], [0], [0], [1], [0, 0, 1, 1], [], []>} : vector<16x4xf32>, vector<4x32xf32>, vector<16x32xf32> -> vector<16x32xf32>
    %133 = vector.broadcast %127 : vector<1x32xf32> to vector<16x32xf32>
    %134 = arith.addf %133, %132 : vector<16x32xf32>
    %c0_140 = arith.constant 0 : index
    %c0_141 = arith.constant 0 : index
    %c0_142 = arith.constant 0 : index
    %c0_143 = arith.constant 0 : index
    %135 = vector.load %arg4[%c0_140, %c0_141, %c0_142, %c0_143] : memref<2x3x32x32xf32, #tpu.memory_space<vmem>>, vector<1x1x32x32xf32>
    %136 = vector.shape_cast %135 : vector<1x1x32x32xf32> to vector<32x32xf32>
    %cst_144 = arith.constant dense<0.000000e+00> : vector<16x32xf32>
    %137 = tpu.matmul %123, %136, %cst_144 {dimension_numbers = #tpu.dot_dimension_numbers<[1], [0], [0], [1], [0, 0, 1, 1], [], []>} : vector<16x32xf32>, vector<32x32xf32>, vector<16x32xf32> -> vector<16x32xf32>
    %138 = arith.addf %134, %137 : vector<16x32xf32>
    %c0_145 = arith.constant 0 : index
    %c0_146 = arith.constant 0 : index
    %c0_147 = arith.constant 0 : index
    %c0_148 = arith.constant 0 : index
    %139 = vector.load %arg5[%c0_145, %c0_146, %c0_147, %c0_148] : memref<2x3x4x32xf32, #tpu.memory_space<vmem>>, vector<1x1x4x32xf32>
    %140 = vector.shape_cast %139 : vector<1x1x4x32xf32> to vector<4x32xf32>
    %cst_149 = arith.constant dense<0.000000e+00> : vector<16x32xf32>
    %141 = tpu.matmul %120, %140, %cst_149 {dimension_numbers = #tpu.dot_dimension_numbers<[1], [0], [0], [1], [0, 0, 1, 1], [], []>} : vector<16x4xf32>, vector<4x32xf32>, vector<16x32xf32> -> vector<16x32xf32>
    %142 = vector.broadcast %129 : vector<1x32xf32> to vector<16x32xf32>
    %143 = arith.addf %142, %141 : vector<16x32xf32>
    %c0_150 = arith.constant 0 : index
    %c0_151 = arith.constant 0 : index
    %c0_152 = arith.constant 0 : index
    %c0_153 = arith.constant 0 : index
    %144 = vector.load %arg6[%c0_150, %c0_151, %c0_152, %c0_153] : memref<2x3x32x32xf32, #tpu.memory_space<vmem>>, vector<1x1x32x32xf32>
    %145 = vector.shape_cast %144 : vector<1x1x32x32xf32> to vector<32x32xf32>
    %cst_154 = arith.constant dense<0.000000e+00> : vector<16x32xf32>
    %146 = tpu.matmul %123, %145, %cst_154 {dimension_numbers = #tpu.dot_dimension_numbers<[1], [0], [0], [1], [0, 0, 1, 1], [], []>} : vector<16x32xf32>, vector<32x32xf32>, vector<16x32xf32> -> vector<16x32xf32>
    %147 = arith.addf %143, %146 : vector<16x32xf32>
    %c0_155 = arith.constant 0 : index
    %c1_156 = arith.constant 1 : index
    %c0_157 = arith.constant 0 : index
    %c0_158 = arith.constant 0 : index
    %148 = vector.load %arg3[%c0_155, %c1_156, %c0_157, %c0_158] : memref<2x3x4x32xf32, #tpu.memory_space<vmem>>, vector<1x1x4x32xf32>
    %149 = vector.shape_cast %148 : vector<1x1x4x32xf32> to vector<4x32xf32>
    %cst_159 = arith.constant dense<0.000000e+00> : vector<16x32xf32>
    %150 = tpu.matmul %121, %149, %cst_159 {dimension_numbers = #tpu.dot_dimension_numbers<[1], [0], [0], [1], [0, 0, 1, 1], [], []>} : vector<16x4xf32>, vector<4x32xf32>, vector<16x32xf32> -> vector<16x32xf32>
    %151 = arith.addf %138, %150 : vector<16x32xf32>
    %c0_160 = arith.constant 0 : index
    %c1_161 = arith.constant 1 : index
    %c0_162 = arith.constant 0 : index
    %c0_163 = arith.constant 0 : index
    %152 = vector.load %arg4[%c0_160, %c1_161, %c0_162, %c0_163] : memref<2x3x32x32xf32, #tpu.memory_space<vmem>>, vector<1x1x32x32xf32>
    %153 = vector.shape_cast %152 : vector<1x1x32x32xf32> to vector<32x32xf32>
    %cst_164 = arith.constant dense<0.000000e+00> : vector<16x32xf32>
    %154 = tpu.matmul %124, %153, %cst_164 {dimension_numbers = #tpu.dot_dimension_numbers<[1], [0], [0], [1], [0, 0, 1, 1], [], []>} : vector<16x32xf32>, vector<32x32xf32>, vector<16x32xf32> -> vector<16x32xf32>
    %155 = arith.addf %151, %154 : vector<16x32xf32>
    %c0_165 = arith.constant 0 : index
    %c1_166 = arith.constant 1 : index
    %c0_167 = arith.constant 0 : index
    %c0_168 = arith.constant 0 : index
    %156 = vector.load %arg5[%c0_165, %c1_166, %c0_167, %c0_168] : memref<2x3x4x32xf32, #tpu.memory_space<vmem>>, vector<1x1x4x32xf32>
    %157 = vector.shape_cast %156 : vector<1x1x4x32xf32> to vector<4x32xf32>
    %cst_169 = arith.constant dense<0.000000e+00> : vector<16x32xf32>
    %158 = tpu.matmul %121, %157, %cst_169 {dimension_numbers = #tpu.dot_dimension_numbers<[1], [0], [0], [1], [0, 0, 1, 1], [], []>} : vector<16x4xf32>, vector<4x32xf32>, vector<16x32xf32> -> vector<16x32xf32>
    %159 = arith.addf %147, %158 : vector<16x32xf32>
    %c0_170 = arith.constant 0 : index
    %c1_171 = arith.constant 1 : index
    %c0_172 = arith.constant 0 : index
    %c0_173 = arith.constant 0 : index
    %160 = vector.load %arg6[%c0_170, %c1_171, %c0_172, %c0_173] : memref<2x3x32x32xf32, #tpu.memory_space<vmem>>, vector<1x1x32x32xf32>
    %161 = vector.shape_cast %160 : vector<1x1x32x32xf32> to vector<32x32xf32>
    %cst_174 = arith.constant dense<0.000000e+00> : vector<16x32xf32>
    %162 = tpu.matmul %124, %161, %cst_174 {dimension_numbers = #tpu.dot_dimension_numbers<[1], [0], [0], [1], [0, 0, 1, 1], [], []>} : vector<16x32xf32>, vector<32x32xf32>, vector<16x32xf32> -> vector<16x32xf32>
    %163 = arith.addf %159, %162 : vector<16x32xf32>
    %c0_175 = arith.constant 0 : index
    %c2_176 = arith.constant 2 : index
    %c0_177 = arith.constant 0 : index
    %c0_178 = arith.constant 0 : index
    %164 = vector.load %arg3[%c0_175, %c2_176, %c0_177, %c0_178] : memref<2x3x4x32xf32, #tpu.memory_space<vmem>>, vector<1x1x4x32xf32>
    %165 = vector.shape_cast %164 : vector<1x1x4x32xf32> to vector<4x32xf32>
    %cst_179 = arith.constant dense<0.000000e+00> : vector<16x32xf32>
    %166 = tpu.matmul %122, %165, %cst_179 {dimension_numbers = #tpu.dot_dimension_numbers<[1], [0], [0], [1], [0, 0, 1, 1], [], []>} : vector<16x4xf32>, vector<4x32xf32>, vector<16x32xf32> -> vector<16x32xf32>
    %167 = arith.addf %155, %166 : vector<16x32xf32>
    %c0_180 = arith.constant 0 : index
    %c2_181 = arith.constant 2 : index
    %c0_182 = arith.constant 0 : index
    %c0_183 = arith.constant 0 : index
    %168 = vector.load %arg4[%c0_180, %c2_181, %c0_182, %c0_183] : memref<2x3x32x32xf32, #tpu.memory_space<vmem>>, vector<1x1x32x32xf32>
    %169 = vector.shape_cast %168 : vector<1x1x32x32xf32> to vector<32x32xf32>
    %cst_184 = arith.constant dense<0.000000e+00> : vector<16x32xf32>
    %170 = tpu.matmul %125, %169, %cst_184 {dimension_numbers = #tpu.dot_dimension_numbers<[1], [0], [0], [1], [0, 0, 1, 1], [], []>} : vector<16x32xf32>, vector<32x32xf32>, vector<16x32xf32> -> vector<16x32xf32>
    %171 = arith.addf %167, %170 : vector<16x32xf32>
    %c0_185 = arith.constant 0 : index
    %c2_186 = arith.constant 2 : index
    %c0_187 = arith.constant 0 : index
    %c0_188 = arith.constant 0 : index
    %172 = vector.load %arg5[%c0_185, %c2_186, %c0_187, %c0_188] : memref<2x3x4x32xf32, #tpu.memory_space<vmem>>, vector<1x1x4x32xf32>
    %173 = vector.shape_cast %172 : vector<1x1x4x32xf32> to vector<4x32xf32>
    %cst_189 = arith.constant dense<0.000000e+00> : vector<16x32xf32>
    %174 = tpu.matmul %122, %173, %cst_189 {dimension_numbers = #tpu.dot_dimension_numbers<[1], [0], [0], [1], [0, 0, 1, 1], [], []>} : vector<16x4xf32>, vector<4x32xf32>, vector<16x32xf32> -> vector<16x32xf32>
    %175 = arith.addf %163, %174 : vector<16x32xf32>
    %c0_190 = arith.constant 0 : index
    %c2_191 = arith.constant 2 : index
    %c0_192 = arith.constant 0 : index
    %c0_193 = arith.constant 0 : index
    %176 = vector.load %arg6[%c0_190, %c2_191, %c0_192, %c0_193] : memref<2x3x32x32xf32, #tpu.memory_space<vmem>>, vector<1x1x32x32xf32>
    %177 = vector.shape_cast %176 : vector<1x1x32x32xf32> to vector<32x32xf32>
    %cst_194 = arith.constant dense<0.000000e+00> : vector<16x32xf32>
    %178 = tpu.matmul %125, %177, %cst_194 {dimension_numbers = #tpu.dot_dimension_numbers<[1], [0], [0], [1], [0, 0, 1, 1], [], []>} : vector<16x32xf32>, vector<32x32xf32>, vector<16x32xf32> -> vector<16x32xf32>
    %179 = arith.addf %175, %178 : vector<16x32xf32>
    %180 = arith.negf %171 : vector<16x32xf32>
    %181 = math.exp %180 : vector<16x32xf32>
    %cst_195 = arith.constant 1.000000e+00 : f32
    %182 = vector.broadcast %cst_195 : f32 to vector<16x32xf32>
    %183 = arith.addf %182, %181 : vector<16x32xf32>
    %184 = arith.divf %182, %183 : vector<16x32xf32>
    %185 = arith.negf %179 : vector<16x32xf32>
    %186 = math.exp %185 : vector<16x32xf32>
    %cst_196 = arith.constant 1.000000e+00 : f32
    %187 = vector.broadcast %cst_196 : f32 to vector<16x32xf32>
    %188 = arith.addf %187, %186 : vector<16x32xf32>
    %189 = arith.divf %187, %188 : vector<16x32xf32>
    %190 = arith.mulf %189, %116 : vector<16x32xf32>
    %c0_197 = arith.constant 0 : index
    %c0_198 = arith.constant 0 : index
    %c0_199 = arith.constant 0 : index
    %191 = vector.load %arg11[%c0_197, %c0_198, %c0_199] : memref<2x1x32xf32, #tpu.memory_space<vmem>>, vector<1x1x32xf32>
    %192 = vector.shape_cast %191 : vector<1x1x32xf32> to vector<1x32xf32>
    %cst_200 = arith.constant dense<0.000000e+00> : vector<16x32xf32>
    %193 = tpu.matmul %1, %190, %cst_200 {dimension_numbers = #tpu.dot_dimension_numbers<[1], [0], [0], [1], [0, 0, 1, 1], [], []>} : vector<16x16xf32>, vector<16x32xf32>, vector<16x32xf32> -> vector<16x32xf32>
    %c0_201 = arith.constant 0 : index
    %c0_202 = arith.constant 0 : index
    %c0_203 = arith.constant 0 : index
    %c0_204 = arith.constant 0 : index
    %194 = vector.load %arg7[%c0_201, %c0_202, %c0_203, %c0_204] : memref<2x3x4x32xf32, #tpu.memory_space<vmem>>, vector<1x1x4x32xf32>
    %195 = vector.shape_cast %194 : vector<1x1x4x32xf32> to vector<4x32xf32>
    %cst_205 = arith.constant dense<0.000000e+00> : vector<16x32xf32>
    %196 = tpu.matmul %120, %195, %cst_205 {dimension_numbers = #tpu.dot_dimension_numbers<[1], [0], [0], [1], [0, 0, 1, 1], [], []>} : vector<16x4xf32>, vector<4x32xf32>, vector<16x32xf32> -> vector<16x32xf32>
    %197 = vector.broadcast %192 : vector<1x32xf32> to vector<16x32xf32>
    %198 = arith.addf %197, %196 : vector<16x32xf32>
    %c0_206 = arith.constant 0 : index
    %c0_207 = arith.constant 0 : index
    %c0_208 = arith.constant 0 : index
    %c0_209 = arith.constant 0 : index
    %199 = vector.load %arg8[%c0_206, %c0_207, %c0_208, %c0_209] : memref<2x3x32x32xf32, #tpu.memory_space<vmem>>, vector<1x1x32x32xf32>
    %200 = vector.shape_cast %199 : vector<1x1x32x32xf32> to vector<32x32xf32>
    %cst_210 = arith.constant dense<0.000000e+00> : vector<16x32xf32>
    %201 = tpu.matmul %193, %200, %cst_210 {dimension_numbers = #tpu.dot_dimension_numbers<[1], [0], [0], [1], [0, 0, 1, 1], [], []>} : vector<16x32xf32>, vector<32x32xf32>, vector<16x32xf32> -> vector<16x32xf32>
    %202 = arith.addf %198, %201 : vector<16x32xf32>
    %cst_211 = arith.constant dense<0.000000e+00> : vector<16x32xf32>
    %203 = tpu.matmul %3, %190, %cst_211 {dimension_numbers = #tpu.dot_dimension_numbers<[1], [0], [0], [1], [0, 0, 1, 1], [], []>} : vector<16x16xf32>, vector<16x32xf32>, vector<16x32xf32> -> vector<16x32xf32>
    %c0_212 = arith.constant 0 : index
    %c1_213 = arith.constant 1 : index
    %c0_214 = arith.constant 0 : index
    %c0_215 = arith.constant 0 : index
    %204 = vector.load %arg7[%c0_212, %c1_213, %c0_214, %c0_215] : memref<2x3x4x32xf32, #tpu.memory_space<vmem>>, vector<1x1x4x32xf32>
    %205 = vector.shape_cast %204 : vector<1x1x4x32xf32> to vector<4x32xf32>
    %cst_216 = arith.constant dense<0.000000e+00> : vector<16x32xf32>
    %206 = tpu.matmul %121, %205, %cst_216 {dimension_numbers = #tpu.dot_dimension_numbers<[1], [0], [0], [1], [0, 0, 1, 1], [], []>} : vector<16x4xf32>, vector<4x32xf32>, vector<16x32xf32> -> vector<16x32xf32>
    %207 = arith.addf %202, %206 : vector<16x32xf32>
    %c0_217 = arith.constant 0 : index
    %c1_218 = arith.constant 1 : index
    %c0_219 = arith.constant 0 : index
    %c0_220 = arith.constant 0 : index
    %208 = vector.load %arg8[%c0_217, %c1_218, %c0_219, %c0_220] : memref<2x3x32x32xf32, #tpu.memory_space<vmem>>, vector<1x1x32x32xf32>
    %209 = vector.shape_cast %208 : vector<1x1x32x32xf32> to vector<32x32xf32>
    %cst_221 = arith.constant dense<0.000000e+00> : vector<16x32xf32>
    %210 = tpu.matmul %203, %209, %cst_221 {dimension_numbers = #tpu.dot_dimension_numbers<[1], [0], [0], [1], [0, 0, 1, 1], [], []>} : vector<16x32xf32>, vector<32x32xf32>, vector<16x32xf32> -> vector<16x32xf32>
    %211 = arith.addf %207, %210 : vector<16x32xf32>
    %cst_222 = arith.constant dense<0.000000e+00> : vector<16x32xf32>
    %212 = tpu.matmul %5, %190, %cst_222 {dimension_numbers = #tpu.dot_dimension_numbers<[1], [0], [0], [1], [0, 0, 1, 1], [], []>} : vector<16x16xf32>, vector<16x32xf32>, vector<16x32xf32> -> vector<16x32xf32>
    %c0_223 = arith.constant 0 : index
    %c2_224 = arith.constant 2 : index
    %c0_225 = arith.constant 0 : index
    %c0_226 = arith.constant 0 : index
    %213 = vector.load %arg7[%c0_223, %c2_224, %c0_225, %c0_226] : memref<2x3x4x32xf32, #tpu.memory_space<vmem>>, vector<1x1x4x32xf32>
    %214 = vector.shape_cast %213 : vector<1x1x4x32xf32> to vector<4x32xf32>
    %cst_227 = arith.constant dense<0.000000e+00> : vector<16x32xf32>
    %215 = tpu.matmul %122, %214, %cst_227 {dimension_numbers = #tpu.dot_dimension_numbers<[1], [0], [0], [1], [0, 0, 1, 1], [], []>} : vector<16x4xf32>, vector<4x32xf32>, vector<16x32xf32> -> vector<16x32xf32>
    %216 = arith.addf %211, %215 : vector<16x32xf32>
    %c0_228 = arith.constant 0 : index
    %c2_229 = arith.constant 2 : index
    %c0_230 = arith.constant 0 : index
    %c0_231 = arith.constant 0 : index
    %217 = vector.load %arg8[%c0_228, %c2_229, %c0_230, %c0_231] : memref<2x3x32x32xf32, #tpu.memory_space<vmem>>, vector<1x1x32x32xf32>
    %218 = vector.shape_cast %217 : vector<1x1x32x32xf32> to vector<32x32xf32>
    %cst_232 = arith.constant dense<0.000000e+00> : vector<16x32xf32>
    %219 = tpu.matmul %212, %218, %cst_232 {dimension_numbers = #tpu.dot_dimension_numbers<[1], [0], [0], [1], [0, 0, 1, 1], [], []>} : vector<16x32xf32>, vector<32x32xf32>, vector<16x32xf32> -> vector<16x32xf32>
    %220 = arith.addf %216, %219 : vector<16x32xf32>
    %221 = math.tanh %220 : vector<16x32xf32>
    %cst_233 = arith.constant 1.000000e+00 : f32
    %222 = vector.broadcast %cst_233 : f32 to vector<16x32xf32>
    %223 = arith.subf %222, %184 : vector<16x32xf32>
    %224 = arith.mulf %223, %116 : vector<16x32xf32>
    %225 = arith.mulf %184, %221 : vector<16x32xf32>
    %226 = arith.addf %224, %225 : vector<16x32xf32>
    %c2_i32 = arith.constant 2 : i32
    %c0_234 = arith.constant 0 : index
    %227 = arith.index_cast %c2_i32 : i32 to index
    %c0_235 = arith.constant 0 : index
    %c0_236 = arith.constant 0 : index
    %228 = vector.load %arg1[%c0_234, %227, %c0_235, %c0_236] : memref<1x8x16x4xf32, #tpu.memory_space<vmem>>, vector<1x1x16x4xf32>
    %229 = vector.shape_cast %228 : vector<1x1x16x4xf32> to vector<16x4xf32>
    %cst_237 = arith.constant dense<0.000000e+00> : vector<16x4xf32>
    %230 = tpu.matmul %1, %229, %cst_237 {dimension_numbers = #tpu.dot_dimension_numbers<[1], [0], [0], [1], [0, 0, 1, 1], [], []>} : vector<16x16xf32>, vector<16x4xf32>, vector<16x4xf32> -> vector<16x4xf32>
    %cst_238 = arith.constant dense<0.000000e+00> : vector<16x4xf32>
    %231 = tpu.matmul %3, %229, %cst_238 {dimension_numbers = #tpu.dot_dimension_numbers<[1], [0], [0], [1], [0, 0, 1, 1], [], []>} : vector<16x16xf32>, vector<16x4xf32>, vector<16x4xf32> -> vector<16x4xf32>
    %cst_239 = arith.constant dense<0.000000e+00> : vector<16x4xf32>
    %232 = tpu.matmul %5, %229, %cst_239 {dimension_numbers = #tpu.dot_dimension_numbers<[1], [0], [0], [1], [0, 0, 1, 1], [], []>} : vector<16x16xf32>, vector<16x4xf32>, vector<16x4xf32> -> vector<16x4xf32>
    %cst_240 = arith.constant dense<0.000000e+00> : vector<16x32xf32>
    %233 = tpu.matmul %1, %226, %cst_240 {dimension_numbers = #tpu.dot_dimension_numbers<[1], [0], [0], [1], [0, 0, 1, 1], [], []>} : vector<16x16xf32>, vector<16x32xf32>, vector<16x32xf32> -> vector<16x32xf32>
    %cst_241 = arith.constant dense<0.000000e+00> : vector<16x32xf32>
    %234 = tpu.matmul %3, %226, %cst_241 {dimension_numbers = #tpu.dot_dimension_numbers<[1], [0], [0], [1], [0, 0, 1, 1], [], []>} : vector<16x16xf32>, vector<16x32xf32>, vector<16x32xf32> -> vector<16x32xf32>
    %cst_242 = arith.constant dense<0.000000e+00> : vector<16x32xf32>
    %235 = tpu.matmul %5, %226, %cst_242 {dimension_numbers = #tpu.dot_dimension_numbers<[1], [0], [0], [1], [0, 0, 1, 1], [], []>} : vector<16x16xf32>, vector<16x32xf32>, vector<16x32xf32> -> vector<16x32xf32>
    %c0_243 = arith.constant 0 : index
    %c0_244 = arith.constant 0 : index
    %c0_245 = arith.constant 0 : index
    %236 = vector.load %arg9[%c0_243, %c0_244, %c0_245] : memref<2x1x32xf32, #tpu.memory_space<vmem>>, vector<1x1x32xf32>
    %237 = vector.shape_cast %236 : vector<1x1x32xf32> to vector<1x32xf32>
    %c0_246 = arith.constant 0 : index
    %c0_247 = arith.constant 0 : index
    %c0_248 = arith.constant 0 : index
    %238 = vector.load %arg10[%c0_246, %c0_247, %c0_248] : memref<2x1x32xf32, #tpu.memory_space<vmem>>, vector<1x1x32xf32>
    %239 = vector.shape_cast %238 : vector<1x1x32xf32> to vector<1x32xf32>
    %c0_249 = arith.constant 0 : index
    %c0_250 = arith.constant 0 : index
    %c0_251 = arith.constant 0 : index
    %c0_252 = arith.constant 0 : index
    %240 = vector.load %arg3[%c0_249, %c0_250, %c0_251, %c0_252] : memref<2x3x4x32xf32, #tpu.memory_space<vmem>>, vector<1x1x4x32xf32>
    %241 = vector.shape_cast %240 : vector<1x1x4x32xf32> to vector<4x32xf32>
    %cst_253 = arith.constant dense<0.000000e+00> : vector<16x32xf32>
    %242 = tpu.matmul %230, %241, %cst_253 {dimension_numbers = #tpu.dot_dimension_numbers<[1], [0], [0], [1], [0, 0, 1, 1], [], []>} : vector<16x4xf32>, vector<4x32xf32>, vector<16x32xf32> -> vector<16x32xf32>
    %243 = vector.broadcast %237 : vector<1x32xf32> to vector<16x32xf32>
    %244 = arith.addf %243, %242 : vector<16x32xf32>
    %c0_254 = arith.constant 0 : index
    %c0_255 = arith.constant 0 : index
    %c0_256 = arith.constant 0 : index
    %c0_257 = arith.constant 0 : index
    %245 = vector.load %arg4[%c0_254, %c0_255, %c0_256, %c0_257] : memref<2x3x32x32xf32, #tpu.memory_space<vmem>>, vector<1x1x32x32xf32>
    %246 = vector.shape_cast %245 : vector<1x1x32x32xf32> to vector<32x32xf32>
    %cst_258 = arith.constant dense<0.000000e+00> : vector<16x32xf32>
    %247 = tpu.matmul %233, %246, %cst_258 {dimension_numbers = #tpu.dot_dimension_numbers<[1], [0], [0], [1], [0, 0, 1, 1], [], []>} : vector<16x32xf32>, vector<32x32xf32>, vector<16x32xf32> -> vector<16x32xf32>
    %248 = arith.addf %244, %247 : vector<16x32xf32>
    %c0_259 = arith.constant 0 : index
    %c0_260 = arith.constant 0 : index
    %c0_261 = arith.constant 0 : index
    %c0_262 = arith.constant 0 : index
    %249 = vector.load %arg5[%c0_259, %c0_260, %c0_261, %c0_262] : memref<2x3x4x32xf32, #tpu.memory_space<vmem>>, vector<1x1x4x32xf32>
    %250 = vector.shape_cast %249 : vector<1x1x4x32xf32> to vector<4x32xf32>
    %cst_263 = arith.constant dense<0.000000e+00> : vector<16x32xf32>
    %251 = tpu.matmul %230, %250, %cst_263 {dimension_numbers = #tpu.dot_dimension_numbers<[1], [0], [0], [1], [0, 0, 1, 1], [], []>} : vector<16x4xf32>, vector<4x32xf32>, vector<16x32xf32> -> vector<16x32xf32>
    %252 = vector.broadcast %239 : vector<1x32xf32> to vector<16x32xf32>
    %253 = arith.addf %252, %251 : vector<16x32xf32>
    %c0_264 = arith.constant 0 : index
    %c0_265 = arith.constant 0 : index
    %c0_266 = arith.constant 0 : index
    %c0_267 = arith.constant 0 : index
    %254 = vector.load %arg6[%c0_264, %c0_265, %c0_266, %c0_267] : memref<2x3x32x32xf32, #tpu.memory_space<vmem>>, vector<1x1x32x32xf32>
    %255 = vector.shape_cast %254 : vector<1x1x32x32xf32> to vector<32x32xf32>
    %cst_268 = arith.constant dense<0.000000e+00> : vector<16x32xf32>
    %256 = tpu.matmul %233, %255, %cst_268 {dimension_numbers = #tpu.dot_dimension_numbers<[1], [0], [0], [1], [0, 0, 1, 1], [], []>} : vector<16x32xf32>, vector<32x32xf32>, vector<16x32xf32> -> vector<16x32xf32>
    %257 = arith.addf %253, %256 : vector<16x32xf32>
    %c0_269 = arith.constant 0 : index
    %c1_270 = arith.constant 1 : index
    %c0_271 = arith.constant 0 : index
    %c0_272 = arith.constant 0 : index
    %258 = vector.load %arg3[%c0_269, %c1_270, %c0_271, %c0_272] : memref<2x3x4x32xf32, #tpu.memory_space<vmem>>, vector<1x1x4x32xf32>
    %259 = vector.shape_cast %258 : vector<1x1x4x32xf32> to vector<4x32xf32>
    %cst_273 = arith.constant dense<0.000000e+00> : vector<16x32xf32>
    %260 = tpu.matmul %231, %259, %cst_273 {dimension_numbers = #tpu.dot_dimension_numbers<[1], [0], [0], [1], [0, 0, 1, 1], [], []>} : vector<16x4xf32>, vector<4x32xf32>, vector<16x32xf32> -> vector<16x32xf32>
    %261 = arith.addf %248, %260 : vector<16x32xf32>
    %c0_274 = arith.constant 0 : index
    %c1_275 = arith.constant 1 : index
    %c0_276 = arith.constant 0 : index
    %c0_277 = arith.constant 0 : index
    %262 = vector.load %arg4[%c0_274, %c1_275, %c0_276, %c0_277] : memref<2x3x32x32xf32, #tpu.memory_space<vmem>>, vector<1x1x32x32xf32>
    %263 = vector.shape_cast %262 : vector<1x1x32x32xf32> to vector<32x32xf32>
    %cst_278 = arith.constant dense<0.000000e+00> : vector<16x32xf32>
    %264 = tpu.matmul %234, %263, %cst_278 {dimension_numbers = #tpu.dot_dimension_numbers<[1], [0], [0], [1], [0, 0, 1, 1], [], []>} : vector<16x32xf32>, vector<32x32xf32>, vector<16x32xf32> -> vector<16x32xf32>
    %265 = arith.addf %261, %264 : vector<16x32xf32>
    %c0_279 = arith.constant 0 : index
    %c1_280 = arith.constant 1 : index
    %c0_281 = arith.constant 0 : index
    %c0_282 = arith.constant 0 : index
    %266 = vector.load %arg5[%c0_279, %c1_280, %c0_281, %c0_282] : memref<2x3x4x32xf32, #tpu.memory_space<vmem>>, vector<1x1x4x32xf32>
    %267 = vector.shape_cast %266 : vector<1x1x4x32xf32> to vector<4x32xf32>
    %cst_283 = arith.constant dense<0.000000e+00> : vector<16x32xf32>
    %268 = tpu.matmul %231, %267, %cst_283 {dimension_numbers = #tpu.dot_dimension_numbers<[1], [0], [0], [1], [0, 0, 1, 1], [], []>} : vector<16x4xf32>, vector<4x32xf32>, vector<16x32xf32> -> vector<16x32xf32>
    %269 = arith.addf %257, %268 : vector<16x32xf32>
    %c0_284 = arith.constant 0 : index
    %c1_285 = arith.constant 1 : index
    %c0_286 = arith.constant 0 : index
    %c0_287 = arith.constant 0 : index
    %270 = vector.load %arg6[%c0_284, %c1_285, %c0_286, %c0_287] : memref<2x3x32x32xf32, #tpu.memory_space<vmem>>, vector<1x1x32x32xf32>
    %271 = vector.shape_cast %270 : vector<1x1x32x32xf32> to vector<32x32xf32>
    %cst_288 = arith.constant dense<0.000000e+00> : vector<16x32xf32>
    %272 = tpu.matmul %234, %271, %cst_288 {dimension_numbers = #tpu.dot_dimension_numbers<[1], [0], [0], [1], [0, 0, 1, 1], [], []>} : vector<16x32xf32>, vector<32x32xf32>, vector<16x32xf32> -> vector<16x32xf32>
    %273 = arith.addf %269, %272 : vector<16x32xf32>
    %c0_289 = arith.constant 0 : index
    %c2_290 = arith.constant 2 : index
    %c0_291 = arith.constant 0 : index
    %c0_292 = arith.constant 0 : index
    %274 = vector.load %arg3[%c0_289, %c2_290, %c0_291, %c0_292] : memref<2x3x4x32xf32, #tpu.memory_space<vmem>>, vector<1x1x4x32xf32>
    %275 = vector.shape_cast %274 : vector<1x1x4x32xf32> to vector<4x32xf32>
    %cst_293 = arith.constant dense<0.000000e+00> : vector<16x32xf32>
    %276 = tpu.matmul %232, %275, %cst_293 {dimension_numbers = #tpu.dot_dimension_numbers<[1], [0], [0], [1], [0, 0, 1, 1], [], []>} : vector<16x4xf32>, vector<4x32xf32>, vector<16x32xf32> -> vector<16x32xf32>
    %277 = arith.addf %265, %276 : vector<16x32xf32>
    %c0_294 = arith.constant 0 : index
    %c2_295 = arith.constant 2 : index
    %c0_296 = arith.constant 0 : index
    %c0_297 = arith.constant 0 : index
    %278 = vector.load %arg4[%c0_294, %c2_295, %c0_296, %c0_297] : memref<2x3x32x32xf32, #tpu.memory_space<vmem>>, vector<1x1x32x32xf32>
    %279 = vector.shape_cast %278 : vector<1x1x32x32xf32> to vector<32x32xf32>
    %cst_298 = arith.constant dense<0.000000e+00> : vector<16x32xf32>
    %280 = tpu.matmul %235, %279, %cst_298 {dimension_numbers = #tpu.dot_dimension_numbers<[1], [0], [0], [1], [0, 0, 1, 1], [], []>} : vector<16x32xf32>, vector<32x32xf32>, vector<16x32xf32> -> vector<16x32xf32>
    %281 = arith.addf %277, %280 : vector<16x32xf32>
    %c0_299 = arith.constant 0 : index
    %c2_300 = arith.constant 2 : index
    %c0_301 = arith.constant 0 : index
    %c0_302 = arith.constant 0 : index
    %282 = vector.load %arg5[%c0_299, %c2_300, %c0_301, %c0_302] : memref<2x3x4x32xf32, #tpu.memory_space<vmem>>, vector<1x1x4x32xf32>
    %283 = vector.shape_cast %282 : vector<1x1x4x32xf32> to vector<4x32xf32>
    %cst_303 = arith.constant dense<0.000000e+00> : vector<16x32xf32>
    %284 = tpu.matmul %232, %283, %cst_303 {dimension_numbers = #tpu.dot_dimension_numbers<[1], [0], [0], [1], [0, 0, 1, 1], [], []>} : vector<16x4xf32>, vector<4x32xf32>, vector<16x32xf32> -> vector<16x32xf32>
    %285 = arith.addf %273, %284 : vector<16x32xf32>
    %c0_304 = arith.constant 0 : index
    %c2_305 = arith.constant 2 : index
    %c0_306 = arith.constant 0 : index
    %c0_307 = arith.constant 0 : index
    %286 = vector.load %arg6[%c0_304, %c2_305, %c0_306, %c0_307] : memref<2x3x32x32xf32, #tpu.memory_space<vmem>>, vector<1x1x32x32xf32>
    %287 = vector.shape_cast %286 : vector<1x1x32x32xf32> to vector<32x32xf32>
    %cst_308 = arith.constant dense<0.000000e+00> : vector<16x32xf32>
    %288 = tpu.matmul %235, %287, %cst_308 {dimension_numbers = #tpu.dot_dimension_numbers<[1], [0], [0], [1], [0, 0, 1, 1], [], []>} : vector<16x32xf32>, vector<32x32xf32>, vector<16x32xf32> -> vector<16x32xf32>
    %289 = arith.addf %285, %288 : vector<16x32xf32>
    %290 = arith.negf %281 : vector<16x32xf32>
    %291 = math.exp %290 : vector<16x32xf32>
    %cst_309 = arith.constant 1.000000e+00 : f32
    %292 = vector.broadcast %cst_309 : f32 to vector<16x32xf32>
    %293 = arith.addf %292, %291 : vector<16x32xf32>
    %294 = arith.divf %292, %293 : vector<16x32xf32>
    %295 = arith.negf %289 : vector<16x32xf32>
    %296 = math.exp %295 : vector<16x32xf32>
    %cst_310 = arith.constant 1.000000e+00 : f32
    %297 = vector.broadcast %cst_310 : f32 to vector<16x32xf32>
    %298 = arith.addf %297, %296 : vector<16x32xf32>
    %299 = arith.divf %297, %298 : vector<16x32xf32>
    %300 = arith.mulf %299, %226 : vector<16x32xf32>
    %c0_311 = arith.constant 0 : index
    %c0_312 = arith.constant 0 : index
    %c0_313 = arith.constant 0 : index
    %301 = vector.load %arg11[%c0_311, %c0_312, %c0_313] : memref<2x1x32xf32, #tpu.memory_space<vmem>>, vector<1x1x32xf32>
    %302 = vector.shape_cast %301 : vector<1x1x32xf32> to vector<1x32xf32>
    %cst_314 = arith.constant dense<0.000000e+00> : vector<16x32xf32>
    %303 = tpu.matmul %1, %300, %cst_314 {dimension_numbers = #tpu.dot_dimension_numbers<[1], [0], [0], [1], [0, 0, 1, 1], [], []>} : vector<16x16xf32>, vector<16x32xf32>, vector<16x32xf32> -> vector<16x32xf32>
    %c0_315 = arith.constant 0 : index
    %c0_316 = arith.constant 0 : index
    %c0_317 = arith.constant 0 : index
    %c0_318 = arith.constant 0 : index
    %304 = vector.load %arg7[%c0_315, %c0_316, %c0_317, %c0_318] : memref<2x3x4x32xf32, #tpu.memory_space<vmem>>, vector<1x1x4x32xf32>
    %305 = vector.shape_cast %304 : vector<1x1x4x32xf32> to vector<4x32xf32>
    %cst_319 = arith.constant dense<0.000000e+00> : vector<16x32xf32>
    %306 = tpu.matmul %230, %305, %cst_319 {dimension_numbers = #tpu.dot_dimension_numbers<[1], [0], [0], [1], [0, 0, 1, 1], [], []>} : vector<16x4xf32>, vector<4x32xf32>, vector<16x32xf32> -> vector<16x32xf32>
    %307 = vector.broadcast %302 : vector<1x32xf32> to vector<16x32xf32>
    %308 = arith.addf %307, %306 : vector<16x32xf32>
    %c0_320 = arith.constant 0 : index
    %c0_321 = arith.constant 0 : index
    %c0_322 = arith.constant 0 : index
    %c0_323 = arith.constant 0 : index
    %309 = vector.load %arg8[%c0_320, %c0_321, %c0_322, %c0_323] : memref<2x3x32x32xf32, #tpu.memory_space<vmem>>, vector<1x1x32x32xf32>
    %310 = vector.shape_cast %309 : vector<1x1x32x32xf32> to vector<32x32xf32>
    %cst_324 = arith.constant dense<0.000000e+00> : vector<16x32xf32>
    %311 = tpu.matmul %303, %310, %cst_324 {dimension_numbers = #tpu.dot_dimension_numbers<[1], [0], [0], [1], [0, 0, 1, 1], [], []>} : vector<16x32xf32>, vector<32x32xf32>, vector<16x32xf32> -> vector<16x32xf32>
    %312 = arith.addf %308, %311 : vector<16x32xf32>
    %cst_325 = arith.constant dense<0.000000e+00> : vector<16x32xf32>
    %313 = tpu.matmul %3, %300, %cst_325 {dimension_numbers = #tpu.dot_dimension_numbers<[1], [0], [0], [1], [0, 0, 1, 1], [], []>} : vector<16x16xf32>, vector<16x32xf32>, vector<16x32xf32> -> vector<16x32xf32>
    %c0_326 = arith.constant 0 : index
    %c1_327 = arith.constant 1 : index
    %c0_328 = arith.constant 0 : index
    %c0_329 = arith.constant 0 : index
    %314 = vector.load %arg7[%c0_326, %c1_327, %c0_328, %c0_329] : memref<2x3x4x32xf32, #tpu.memory_space<vmem>>, vector<1x1x4x32xf32>
    %315 = vector.shape_cast %314 : vector<1x1x4x32xf32> to vector<4x32xf32>
    %cst_330 = arith.constant dense<0.000000e+00> : vector<16x32xf32>
    %316 = tpu.matmul %231, %315, %cst_330 {dimension_numbers = #tpu.dot_dimension_numbers<[1], [0], [0], [1], [0, 0, 1, 1], [], []>} : vector<16x4xf32>, vector<4x32xf32>, vector<16x32xf32> -> vector<16x32xf32>
    %317 = arith.addf %312, %316 : vector<16x32xf32>
    %c0_331 = arith.constant 0 : index
    %c1_332 = arith.constant 1 : index
    %c0_333 = arith.constant 0 : index
    %c0_334 = arith.constant 0 : index
    %318 = vector.load %arg8[%c0_331, %c1_332, %c0_333, %c0_334] : memref<2x3x32x32xf32, #tpu.memory_space<vmem>>, vector<1x1x32x32xf32>
    %319 = vector.shape_cast %318 : vector<1x1x32x32xf32> to vector<32x32xf32>
    %cst_335 = arith.constant dense<0.000000e+00> : vector<16x32xf32>
    %320 = tpu.matmul %313, %319, %cst_335 {dimension_numbers = #tpu.dot_dimension_numbers<[1], [0], [0], [1], [0, 0, 1, 1], [], []>} : vector<16x32xf32>, vector<32x32xf32>, vector<16x32xf32> -> vector<16x32xf32>
    %321 = arith.addf %317, %320 : vector<16x32xf32>
    %cst_336 = arith.constant dense<0.000000e+00> : vector<16x32xf32>
    %322 = tpu.matmul %5, %300, %cst_336 {dimension_numbers = #tpu.dot_dimension_numbers<[1], [0], [0], [1], [0, 0, 1, 1], [], []>} : vector<16x16xf32>, vector<16x32xf32>, vector<16x32xf32> -> vector<16x32xf32>
    %c0_337 = arith.constant 0 : index
    %c2_338 = arith.constant 2 : index
    %c0_339 = arith.constant 0 : index
    %c0_340 = arith.constant 0 : index
    %323 = vector.load %arg7[%c0_337, %c2_338, %c0_339, %c0_340] : memref<2x3x4x32xf32, #tpu.memory_space<vmem>>, vector<1x1x4x32xf32>
    %324 = vector.shape_cast %323 : vector<1x1x4x32xf32> to vector<4x32xf32>
    %cst_341 = arith.constant dense<0.000000e+00> : vector<16x32xf32>
    %325 = tpu.matmul %232, %324, %cst_341 {dimension_numbers = #tpu.dot_dimension_numbers<[1], [0], [0], [1], [0, 0, 1, 1], [], []>} : vector<16x4xf32>, vector<4x32xf32>, vector<16x32xf32> -> vector<16x32xf32>
    %326 = arith.addf %321, %325 : vector<16x32xf32>
    %c0_342 = arith.constant 0 : index
    %c2_343 = arith.constant 2 : index
    %c0_344 = arith.constant 0 : index
    %c0_345 = arith.constant 0 : index
    %327 = vector.load %arg8[%c0_342, %c2_343, %c0_344, %c0_345] : memref<2x3x32x32xf32, #tpu.memory_space<vmem>>, vector<1x1x32x32xf32>
    %328 = vector.shape_cast %327 : vector<1x1x32x32xf32> to vector<32x32xf32>
    %cst_346 = arith.constant dense<0.000000e+00> : vector<16x32xf32>
    %329 = tpu.matmul %322, %328, %cst_346 {dimension_numbers = #tpu.dot_dimension_numbers<[1], [0], [0], [1], [0, 0, 1, 1], [], []>} : vector<16x32xf32>, vector<32x32xf32>, vector<16x32xf32> -> vector<16x32xf32>
    %330 = arith.addf %326, %329 : vector<16x32xf32>
    %331 = math.tanh %330 : vector<16x32xf32>
    %cst_347 = arith.constant 1.000000e+00 : f32
    %332 = vector.broadcast %cst_347 : f32 to vector<16x32xf32>
    %333 = arith.subf %332, %294 : vector<16x32xf32>
    %334 = arith.mulf %333, %226 : vector<16x32xf32>
    %335 = arith.mulf %294, %331 : vector<16x32xf32>
    %336 = arith.addf %334, %335 : vector<16x32xf32>
    %c3_i32 = arith.constant 3 : i32
    %c0_348 = arith.constant 0 : index
    %337 = arith.index_cast %c3_i32 : i32 to index
    %c0_349 = arith.constant 0 : index
    %c0_350 = arith.constant 0 : index
    %338 = vector.load %arg1[%c0_348, %337, %c0_349, %c0_350] : memref<1x8x16x4xf32, #tpu.memory_space<vmem>>, vector<1x1x16x4xf32>
    %339 = vector.shape_cast %338 : vector<1x1x16x4xf32> to vector<16x4xf32>
    %cst_351 = arith.constant dense<0.000000e+00> : vector<16x4xf32>
    %340 = tpu.matmul %1, %339, %cst_351 {dimension_numbers = #tpu.dot_dimension_numbers<[1], [0], [0], [1], [0, 0, 1, 1], [], []>} : vector<16x16xf32>, vector<16x4xf32>, vector<16x4xf32> -> vector<16x4xf32>
    %cst_352 = arith.constant dense<0.000000e+00> : vector<16x4xf32>
    %341 = tpu.matmul %3, %339, %cst_352 {dimension_numbers = #tpu.dot_dimension_numbers<[1], [0], [0], [1], [0, 0, 1, 1], [], []>} : vector<16x16xf32>, vector<16x4xf32>, vector<16x4xf32> -> vector<16x4xf32>
    %cst_353 = arith.constant dense<0.000000e+00> : vector<16x4xf32>
    %342 = tpu.matmul %5, %339, %cst_353 {dimension_numbers = #tpu.dot_dimension_numbers<[1], [0], [0], [1], [0, 0, 1, 1], [], []>} : vector<16x16xf32>, vector<16x4xf32>, vector<16x4xf32> -> vector<16x4xf32>
    %cst_354 = arith.constant dense<0.000000e+00> : vector<16x32xf32>
    %343 = tpu.matmul %1, %336, %cst_354 {dimension_numbers = #tpu.dot_dimension_numbers<[1], [0], [0], [1], [0, 0, 1, 1], [], []>} : vector<16x16xf32>, vector<16x32xf32>, vector<16x32xf32> -> vector<16x32xf32>
    %cst_355 = arith.constant dense<0.000000e+00> : vector<16x32xf32>
    %344 = tpu.matmul %3, %336, %cst_355 {dimension_numbers = #tpu.dot_dimension_numbers<[1], [0], [0], [1], [0, 0, 1, 1], [], []>} : vector<16x16xf32>, vector<16x32xf32>, vector<16x32xf32> -> vector<16x32xf32>
    %cst_356 = arith.constant dense<0.000000e+00> : vector<16x32xf32>
    %345 = tpu.matmul %5, %336, %cst_356 {dimension_numbers = #tpu.dot_dimension_numbers<[1], [0], [0], [1], [0, 0, 1, 1], [], []>} : vector<16x16xf32>, vector<16x32xf32>, vector<16x32xf32> -> vector<16x32xf32>
    %c0_357 = arith.constant 0 : index
    %c0_358 = arith.constant 0 : index
    %c0_359 = arith.constant 0 : index
    %346 = vector.load %arg9[%c0_357, %c0_358, %c0_359] : memref<2x1x32xf32, #tpu.memory_space<vmem>>, vector<1x1x32xf32>
    %347 = vector.shape_cast %346 : vector<1x1x32xf32> to vector<1x32xf32>
    %c0_360 = arith.constant 0 : index
    %c0_361 = arith.constant 0 : index
    %c0_362 = arith.constant 0 : index
    %348 = vector.load %arg10[%c0_360, %c0_361, %c0_362] : memref<2x1x32xf32, #tpu.memory_space<vmem>>, vector<1x1x32xf32>
    %349 = vector.shape_cast %348 : vector<1x1x32xf32> to vector<1x32xf32>
    %c0_363 = arith.constant 0 : index
    %c0_364 = arith.constant 0 : index
    %c0_365 = arith.constant 0 : index
    %c0_366 = arith.constant 0 : index
    %350 = vector.load %arg3[%c0_363, %c0_364, %c0_365, %c0_366] : memref<2x3x4x32xf32, #tpu.memory_space<vmem>>, vector<1x1x4x32xf32>
    %351 = vector.shape_cast %350 : vector<1x1x4x32xf32> to vector<4x32xf32>
    %cst_367 = arith.constant dense<0.000000e+00> : vector<16x32xf32>
    %352 = tpu.matmul %340, %351, %cst_367 {dimension_numbers = #tpu.dot_dimension_numbers<[1], [0], [0], [1], [0, 0, 1, 1], [], []>} : vector<16x4xf32>, vector<4x32xf32>, vector<16x32xf32> -> vector<16x32xf32>
    %353 = vector.broadcast %347 : vector<1x32xf32> to vector<16x32xf32>
    %354 = arith.addf %353, %352 : vector<16x32xf32>
    %c0_368 = arith.constant 0 : index
    %c0_369 = arith.constant 0 : index
    %c0_370 = arith.constant 0 : index
    %c0_371 = arith.constant 0 : index
    %355 = vector.load %arg4[%c0_368, %c0_369, %c0_370, %c0_371] : memref<2x3x32x32xf32, #tpu.memory_space<vmem>>, vector<1x1x32x32xf32>
    %356 = vector.shape_cast %355 : vector<1x1x32x32xf32> to vector<32x32xf32>
    %cst_372 = arith.constant dense<0.000000e+00> : vector<16x32xf32>
    %357 = tpu.matmul %343, %356, %cst_372 {dimension_numbers = #tpu.dot_dimension_numbers<[1], [0], [0], [1], [0, 0, 1, 1], [], []>} : vector<16x32xf32>, vector<32x32xf32>, vector<16x32xf32> -> vector<16x32xf32>
    %358 = arith.addf %354, %357 : vector<16x32xf32>
    %c0_373 = arith.constant 0 : index
    %c0_374 = arith.constant 0 : index
    %c0_375 = arith.constant 0 : index
    %c0_376 = arith.constant 0 : index
    %359 = vector.load %arg5[%c0_373, %c0_374, %c0_375, %c0_376] : memref<2x3x4x32xf32, #tpu.memory_space<vmem>>, vector<1x1x4x32xf32>
    %360 = vector.shape_cast %359 : vector<1x1x4x32xf32> to vector<4x32xf32>
    %cst_377 = arith.constant dense<0.000000e+00> : vector<16x32xf32>
    %361 = tpu.matmul %340, %360, %cst_377 {dimension_numbers = #tpu.dot_dimension_numbers<[1], [0], [0], [1], [0, 0, 1, 1], [], []>} : vector<16x4xf32>, vector<4x32xf32>, vector<16x32xf32> -> vector<16x32xf32>
    %362 = vector.broadcast %349 : vector<1x32xf32> to vector<16x32xf32>
    %363 = arith.addf %362, %361 : vector<16x32xf32>
    %c0_378 = arith.constant 0 : index
    %c0_379 = arith.constant 0 : index
    %c0_380 = arith.constant 0 : index
    %c0_381 = arith.constant 0 : index
    %364 = vector.load %arg6[%c0_378, %c0_379, %c0_380, %c0_381] : memref<2x3x32x32xf32, #tpu.memory_space<vmem>>, vector<1x1x32x32xf32>
    %365 = vector.shape_cast %364 : vector<1x1x32x32xf32> to vector<32x32xf32>
    %cst_382 = arith.constant dense<0.000000e+00> : vector<16x32xf32>
    %366 = tpu.matmul %343, %365, %cst_382 {dimension_numbers = #tpu.dot_dimension_numbers<[1], [0], [0], [1], [0, 0, 1, 1], [], []>} : vector<16x32xf32>, vector<32x32xf32>, vector<16x32xf32> -> vector<16x32xf32>
    %367 = arith.addf %363, %366 : vector<16x32xf32>
    %c0_383 = arith.constant 0 : index
    %c1_384 = arith.constant 1 : index
    %c0_385 = arith.constant 0 : index
    %c0_386 = arith.constant 0 : index
    %368 = vector.load %arg3[%c0_383, %c1_384, %c0_385, %c0_386] : memref<2x3x4x32xf32, #tpu.memory_space<vmem>>, vector<1x1x4x32xf32>
    %369 = vector.shape_cast %368 : vector<1x1x4x32xf32> to vector<4x32xf32>
    %cst_387 = arith.constant dense<0.000000e+00> : vector<16x32xf32>
    %370 = tpu.matmul %341, %369, %cst_387 {dimension_numbers = #tpu.dot_dimension_numbers<[1], [0], [0], [1], [0, 0, 1, 1], [], []>} : vector<16x4xf32>, vector<4x32xf32>, vector<16x32xf32> -> vector<16x32xf32>
    %371 = arith.addf %358, %370 : vector<16x32xf32>
    %c0_388 = arith.constant 0 : index
    %c1_389 = arith.constant 1 : index
    %c0_390 = arith.constant 0 : index
    %c0_391 = arith.constant 0 : index
    %372 = vector.load %arg4[%c0_388, %c1_389, %c0_390, %c0_391] : memref<2x3x32x32xf32, #tpu.memory_space<vmem>>, vector<1x1x32x32xf32>
    %373 = vector.shape_cast %372 : vector<1x1x32x32xf32> to vector<32x32xf32>
    %cst_392 = arith.constant dense<0.000000e+00> : vector<16x32xf32>
    %374 = tpu.matmul %344, %373, %cst_392 {dimension_numbers = #tpu.dot_dimension_numbers<[1], [0], [0], [1], [0, 0, 1, 1], [], []>} : vector<16x32xf32>, vector<32x32xf32>, vector<16x32xf32> -> vector<16x32xf32>
    %375 = arith.addf %371, %374 : vector<16x32xf32>
    %c0_393 = arith.constant 0 : index
    %c1_394 = arith.constant 1 : index
    %c0_395 = arith.constant 0 : index
    %c0_396 = arith.constant 0 : index
    %376 = vector.load %arg5[%c0_393, %c1_394, %c0_395, %c0_396] : memref<2x3x4x32xf32, #tpu.memory_space<vmem>>, vector<1x1x4x32xf32>
    %377 = vector.shape_cast %376 : vector<1x1x4x32xf32> to vector<4x32xf32>
    %cst_397 = arith.constant dense<0.000000e+00> : vector<16x32xf32>
    %378 = tpu.matmul %341, %377, %cst_397 {dimension_numbers = #tpu.dot_dimension_numbers<[1], [0], [0], [1], [0, 0, 1, 1], [], []>} : vector<16x4xf32>, vector<4x32xf32>, vector<16x32xf32> -> vector<16x32xf32>
    %379 = arith.addf %367, %378 : vector<16x32xf32>
    %c0_398 = arith.constant 0 : index
    %c1_399 = arith.constant 1 : index
    %c0_400 = arith.constant 0 : index
    %c0_401 = arith.constant 0 : index
    %380 = vector.load %arg6[%c0_398, %c1_399, %c0_400, %c0_401] : memref<2x3x32x32xf32, #tpu.memory_space<vmem>>, vector<1x1x32x32xf32>
    %381 = vector.shape_cast %380 : vector<1x1x32x32xf32> to vector<32x32xf32>
    %cst_402 = arith.constant dense<0.000000e+00> : vector<16x32xf32>
    %382 = tpu.matmul %344, %381, %cst_402 {dimension_numbers = #tpu.dot_dimension_numbers<[1], [0], [0], [1], [0, 0, 1, 1], [], []>} : vector<16x32xf32>, vector<32x32xf32>, vector<16x32xf32> -> vector<16x32xf32>
    %383 = arith.addf %379, %382 : vector<16x32xf32>
    %c0_403 = arith.constant 0 : index
    %c2_404 = arith.constant 2 : index
    %c0_405 = arith.constant 0 : index
    %c0_406 = arith.constant 0 : index
    %384 = vector.load %arg3[%c0_403, %c2_404, %c0_405, %c0_406] : memref<2x3x4x32xf32, #tpu.memory_space<vmem>>, vector<1x1x4x32xf32>
    %385 = vector.shape_cast %384 : vector<1x1x4x32xf32> to vector<4x32xf32>
    %cst_407 = arith.constant dense<0.000000e+00> : vector<16x32xf32>
    %386 = tpu.matmul %342, %385, %cst_407 {dimension_numbers = #tpu.dot_dimension_numbers<[1], [0], [0], [1], [0, 0, 1, 1], [], []>} : vector<16x4xf32>, vector<4x32xf32>, vector<16x32xf32> -> vector<16x32xf32>
    %387 = arith.addf %375, %386 : vector<16x32xf32>
    %c0_408 = arith.constant 0 : index
    %c2_409 = arith.constant 2 : index
    %c0_410 = arith.constant 0 : index
    %c0_411 = arith.constant 0 : index
    %388 = vector.load %arg4[%c0_408, %c2_409, %c0_410, %c0_411] : memref<2x3x32x32xf32, #tpu.memory_space<vmem>>, vector<1x1x32x32xf32>
    %389 = vector.shape_cast %388 : vector<1x1x32x32xf32> to vector<32x32xf32>
    %cst_412 = arith.constant dense<0.000000e+00> : vector<16x32xf32>
    %390 = tpu.matmul %345, %389, %cst_412 {dimension_numbers = #tpu.dot_dimension_numbers<[1], [0], [0], [1], [0, 0, 1, 1], [], []>} : vector<16x32xf32>, vector<32x32xf32>, vector<16x32xf32> -> vector<16x32xf32>
    %391 = arith.addf %387, %390 : vector<16x32xf32>
    %c0_413 = arith.constant 0 : index
    %c2_414 = arith.constant 2 : index
    %c0_415 = arith.constant 0 : index
    %c0_416 = arith.constant 0 : index
    %392 = vector.load %arg5[%c0_413, %c2_414, %c0_415, %c0_416] : memref<2x3x4x32xf32, #tpu.memory_space<vmem>>, vector<1x1x4x32xf32>
    %393 = vector.shape_cast %392 : vector<1x1x4x32xf32> to vector<4x32xf32>
    %cst_417 = arith.constant dense<0.000000e+00> : vector<16x32xf32>
    %394 = tpu.matmul %342, %393, %cst_417 {dimension_numbers = #tpu.dot_dimension_numbers<[1], [0], [0], [1], [0, 0, 1, 1], [], []>} : vector<16x4xf32>, vector<4x32xf32>, vector<16x32xf32> -> vector<16x32xf32>
    %395 = arith.addf %383, %394 : vector<16x32xf32>
    %c0_418 = arith.constant 0 : index
    %c2_419 = arith.constant 2 : index
    %c0_420 = arith.constant 0 : index
    %c0_421 = arith.constant 0 : index
    %396 = vector.load %arg6[%c0_418, %c2_419, %c0_420, %c0_421] : memref<2x3x32x32xf32, #tpu.memory_space<vmem>>, vector<1x1x32x32xf32>
    %397 = vector.shape_cast %396 : vector<1x1x32x32xf32> to vector<32x32xf32>
    %cst_422 = arith.constant dense<0.000000e+00> : vector<16x32xf32>
    %398 = tpu.matmul %345, %397, %cst_422 {dimension_numbers = #tpu.dot_dimension_numbers<[1], [0], [0], [1], [0, 0, 1, 1], [], []>} : vector<16x32xf32>, vector<32x32xf32>, vector<16x32xf32> -> vector<16x32xf32>
    %399 = arith.addf %395, %398 : vector<16x32xf32>
    %400 = arith.negf %391 : vector<16x32xf32>
    %401 = math.exp %400 : vector<16x32xf32>
    %cst_423 = arith.constant 1.000000e+00 : f32
    %402 = vector.broadcast %cst_423 : f32 to vector<16x32xf32>
    %403 = arith.addf %402, %401 : vector<16x32xf32>
    %404 = arith.divf %402, %403 : vector<16x32xf32>
    %405 = arith.negf %399 : vector<16x32xf32>
    %406 = math.exp %405 : vector<16x32xf32>
    %cst_424 = arith.constant 1.000000e+00 : f32
    %407 = vector.broadcast %cst_424 : f32 to vector<16x32xf32>
    %408 = arith.addf %407, %406 : vector<16x32xf32>
    %409 = arith.divf %407, %408 : vector<16x32xf32>
    %410 = arith.mulf %409, %336 : vector<16x32xf32>
    %c0_425 = arith.constant 0 : index
    %c0_426 = arith.constant 0 : index
    %c0_427 = arith.constant 0 : index
    %411 = vector.load %arg11[%c0_425, %c0_426, %c0_427] : memref<2x1x32xf32, #tpu.memory_space<vmem>>, vector<1x1x32xf32>
    %412 = vector.shape_cast %411 : vector<1x1x32xf32> to vector<1x32xf32>
    %cst_428 = arith.constant dense<0.000000e+00> : vector<16x32xf32>
    %413 = tpu.matmul %1, %410, %cst_428 {dimension_numbers = #tpu.dot_dimension_numbers<[1], [0], [0], [1], [0, 0, 1, 1], [], []>} : vector<16x16xf32>, vector<16x32xf32>, vector<16x32xf32> -> vector<16x32xf32>
    %c0_429 = arith.constant 0 : index
    %c0_430 = arith.constant 0 : index
    %c0_431 = arith.constant 0 : index
    %c0_432 = arith.constant 0 : index
    %414 = vector.load %arg7[%c0_429, %c0_430, %c0_431, %c0_432] : memref<2x3x4x32xf32, #tpu.memory_space<vmem>>, vector<1x1x4x32xf32>
    %415 = vector.shape_cast %414 : vector<1x1x4x32xf32> to vector<4x32xf32>
    %cst_433 = arith.constant dense<0.000000e+00> : vector<16x32xf32>
    %416 = tpu.matmul %340, %415, %cst_433 {dimension_numbers = #tpu.dot_dimension_numbers<[1], [0], [0], [1], [0, 0, 1, 1], [], []>} : vector<16x4xf32>, vector<4x32xf32>, vector<16x32xf32> -> vector<16x32xf32>
    %417 = vector.broadcast %412 : vector<1x32xf32> to vector<16x32xf32>
    %418 = arith.addf %417, %416 : vector<16x32xf32>
    %c0_434 = arith.constant 0 : index
    %c0_435 = arith.constant 0 : index
    %c0_436 = arith.constant 0 : index
    %c0_437 = arith.constant 0 : index
    %419 = vector.load %arg8[%c0_434, %c0_435, %c0_436, %c0_437] : memref<2x3x32x32xf32, #tpu.memory_space<vmem>>, vector<1x1x32x32xf32>
    %420 = vector.shape_cast %419 : vector<1x1x32x32xf32> to vector<32x32xf32>
    %cst_438 = arith.constant dense<0.000000e+00> : vector<16x32xf32>
    %421 = tpu.matmul %413, %420, %cst_438 {dimension_numbers = #tpu.dot_dimension_numbers<[1], [0], [0], [1], [0, 0, 1, 1], [], []>} : vector<16x32xf32>, vector<32x32xf32>, vector<16x32xf32> -> vector<16x32xf32>
    %422 = arith.addf %418, %421 : vector<16x32xf32>
    %cst_439 = arith.constant dense<0.000000e+00> : vector<16x32xf32>
    %423 = tpu.matmul %3, %410, %cst_439 {dimension_numbers = #tpu.dot_dimension_numbers<[1], [0], [0], [1], [0, 0, 1, 1], [], []>} : vector<16x16xf32>, vector<16x32xf32>, vector<16x32xf32> -> vector<16x32xf32>
    %c0_440 = arith.constant 0 : index
    %c1_441 = arith.constant 1 : index
    %c0_442 = arith.constant 0 : index
    %c0_443 = arith.constant 0 : index
    %424 = vector.load %arg7[%c0_440, %c1_441, %c0_442, %c0_443] : memref<2x3x4x32xf32, #tpu.memory_space<vmem>>, vector<1x1x4x32xf32>
    %425 = vector.shape_cast %424 : vector<1x1x4x32xf32> to vector<4x32xf32>
    %cst_444 = arith.constant dense<0.000000e+00> : vector<16x32xf32>
    %426 = tpu.matmul %341, %425, %cst_444 {dimension_numbers = #tpu.dot_dimension_numbers<[1], [0], [0], [1], [0, 0, 1, 1], [], []>} : vector<16x4xf32>, vector<4x32xf32>, vector<16x32xf32> -> vector<16x32xf32>
    %427 = arith.addf %422, %426 : vector<16x32xf32>
    %c0_445 = arith.constant 0 : index
    %c1_446 = arith.constant 1 : index
    %c0_447 = arith.constant 0 : index
    %c0_448 = arith.constant 0 : index
    %428 = vector.load %arg8[%c0_445, %c1_446, %c0_447, %c0_448] : memref<2x3x32x32xf32, #tpu.memory_space<vmem>>, vector<1x1x32x32xf32>
    %429 = vector.shape_cast %428 : vector<1x1x32x32xf32> to vector<32x32xf32>
    %cst_449 = arith.constant dense<0.000000e+00> : vector<16x32xf32>
    %430 = tpu.matmul %423, %429, %cst_449 {dimension_numbers = #tpu.dot_dimension_numbers<[1], [0], [0], [1], [0, 0, 1, 1], [], []>} : vector<16x32xf32>, vector<32x32xf32>, vector<16x32xf32> -> vector<16x32xf32>
    %431 = arith.addf %427, %430 : vector<16x32xf32>
    %cst_450 = arith.constant dense<0.000000e+00> : vector<16x32xf32>
    %432 = tpu.matmul %5, %410, %cst_450 {dimension_numbers = #tpu.dot_dimension_numbers<[1], [0], [0], [1], [0, 0, 1, 1], [], []>} : vector<16x16xf32>, vector<16x32xf32>, vector<16x32xf32> -> vector<16x32xf32>
    %c0_451 = arith.constant 0 : index
    %c2_452 = arith.constant 2 : index
    %c0_453 = arith.constant 0 : index
    %c0_454 = arith.constant 0 : index
    %433 = vector.load %arg7[%c0_451, %c2_452, %c0_453, %c0_454] : memref<2x3x4x32xf32, #tpu.memory_space<vmem>>, vector<1x1x4x32xf32>
    %434 = vector.shape_cast %433 : vector<1x1x4x32xf32> to vector<4x32xf32>
    %cst_455 = arith.constant dense<0.000000e+00> : vector<16x32xf32>
    %435 = tpu.matmul %342, %434, %cst_455 {dimension_numbers = #tpu.dot_dimension_numbers<[1], [0], [0], [1], [0, 0, 1, 1], [], []>} : vector<16x4xf32>, vector<4x32xf32>, vector<16x32xf32> -> vector<16x32xf32>
    %436 = arith.addf %431, %435 : vector<16x32xf32>
    %c0_456 = arith.constant 0 : index
    %c2_457 = arith.constant 2 : index
    %c0_458 = arith.constant 0 : index
    %c0_459 = arith.constant 0 : index
    %437 = vector.load %arg8[%c0_456, %c2_457, %c0_458, %c0_459] : memref<2x3x32x32xf32, #tpu.memory_space<vmem>>, vector<1x1x32x32xf32>
    %438 = vector.shape_cast %437 : vector<1x1x32x32xf32> to vector<32x32xf32>
    %cst_460 = arith.constant dense<0.000000e+00> : vector<16x32xf32>
    %439 = tpu.matmul %432, %438, %cst_460 {dimension_numbers = #tpu.dot_dimension_numbers<[1], [0], [0], [1], [0, 0, 1, 1], [], []>} : vector<16x32xf32>, vector<32x32xf32>, vector<16x32xf32> -> vector<16x32xf32>
    %440 = arith.addf %436, %439 : vector<16x32xf32>
    %441 = math.tanh %440 : vector<16x32xf32>
    %cst_461 = arith.constant 1.000000e+00 : f32
    %442 = vector.broadcast %cst_461 : f32 to vector<16x32xf32>
    %443 = arith.subf %442, %404 : vector<16x32xf32>
    %444 = arith.mulf %443, %336 : vector<16x32xf32>
    %445 = arith.mulf %404, %441 : vector<16x32xf32>
    %446 = arith.addf %444, %445 : vector<16x32xf32>
    %c4_i32 = arith.constant 4 : i32
    %c0_462 = arith.constant 0 : index
    %447 = arith.index_cast %c4_i32 : i32 to index
    %c0_463 = arith.constant 0 : index
    %c0_464 = arith.constant 0 : index
    %448 = vector.load %arg1[%c0_462, %447, %c0_463, %c0_464] : memref<1x8x16x4xf32, #tpu.memory_space<vmem>>, vector<1x1x16x4xf32>
    %449 = vector.shape_cast %448 : vector<1x1x16x4xf32> to vector<16x4xf32>
    %cst_465 = arith.constant dense<0.000000e+00> : vector<16x4xf32>
    %450 = tpu.matmul %1, %449, %cst_465 {dimension_numbers = #tpu.dot_dimension_numbers<[1], [0], [0], [1], [0, 0, 1, 1], [], []>} : vector<16x16xf32>, vector<16x4xf32>, vector<16x4xf32> -> vector<16x4xf32>
    %cst_466 = arith.constant dense<0.000000e+00> : vector<16x4xf32>
    %451 = tpu.matmul %3, %449, %cst_466 {dimension_numbers = #tpu.dot_dimension_numbers<[1], [0], [0], [1], [0, 0, 1, 1], [], []>} : vector<16x16xf32>, vector<16x4xf32>, vector<16x4xf32> -> vector<16x4xf32>
    %cst_467 = arith.constant dense<0.000000e+00> : vector<16x4xf32>
    %452 = tpu.matmul %5, %449, %cst_467 {dimension_numbers = #tpu.dot_dimension_numbers<[1], [0], [0], [1], [0, 0, 1, 1], [], []>} : vector<16x16xf32>, vector<16x4xf32>, vector<16x4xf32> -> vector<16x4xf32>
    %cst_468 = arith.constant dense<0.000000e+00> : vector<16x32xf32>
    %453 = tpu.matmul %1, %446, %cst_468 {dimension_numbers = #tpu.dot_dimension_numbers<[1], [0], [0], [1], [0, 0, 1, 1], [], []>} : vector<16x16xf32>, vector<16x32xf32>, vector<16x32xf32> -> vector<16x32xf32>
    %cst_469 = arith.constant dense<0.000000e+00> : vector<16x32xf32>
    %454 = tpu.matmul %3, %446, %cst_469 {dimension_numbers = #tpu.dot_dimension_numbers<[1], [0], [0], [1], [0, 0, 1, 1], [], []>} : vector<16x16xf32>, vector<16x32xf32>, vector<16x32xf32> -> vector<16x32xf32>
    %cst_470 = arith.constant dense<0.000000e+00> : vector<16x32xf32>
    %455 = tpu.matmul %5, %446, %cst_470 {dimension_numbers = #tpu.dot_dimension_numbers<[1], [0], [0], [1], [0, 0, 1, 1], [], []>} : vector<16x16xf32>, vector<16x32xf32>, vector<16x32xf32> -> vector<16x32xf32>
    %c0_471 = arith.constant 0 : index
    %c0_472 = arith.constant 0 : index
    %c0_473 = arith.constant 0 : index
    %456 = vector.load %arg9[%c0_471, %c0_472, %c0_473] : memref<2x1x32xf32, #tpu.memory_space<vmem>>, vector<1x1x32xf32>
    %457 = vector.shape_cast %456 : vector<1x1x32xf32> to vector<1x32xf32>
    %c0_474 = arith.constant 0 : index
    %c0_475 = arith.constant 0 : index
    %c0_476 = arith.constant 0 : index
    %458 = vector.load %arg10[%c0_474, %c0_475, %c0_476] : memref<2x1x32xf32, #tpu.memory_space<vmem>>, vector<1x1x32xf32>
    %459 = vector.shape_cast %458 : vector<1x1x32xf32> to vector<1x32xf32>
    %c0_477 = arith.constant 0 : index
    %c0_478 = arith.constant 0 : index
    %c0_479 = arith.constant 0 : index
    %c0_480 = arith.constant 0 : index
    %460 = vector.load %arg3[%c0_477, %c0_478, %c0_479, %c0_480] : memref<2x3x4x32xf32, #tpu.memory_space<vmem>>, vector<1x1x4x32xf32>
    %461 = vector.shape_cast %460 : vector<1x1x4x32xf32> to vector<4x32xf32>
    %cst_481 = arith.constant dense<0.000000e+00> : vector<16x32xf32>
    %462 = tpu.matmul %450, %461, %cst_481 {dimension_numbers = #tpu.dot_dimension_numbers<[1], [0], [0], [1], [0, 0, 1, 1], [], []>} : vector<16x4xf32>, vector<4x32xf32>, vector<16x32xf32> -> vector<16x32xf32>
    %463 = vector.broadcast %457 : vector<1x32xf32> to vector<16x32xf32>
    %464 = arith.addf %463, %462 : vector<16x32xf32>
    %c0_482 = arith.constant 0 : index
    %c0_483 = arith.constant 0 : index
    %c0_484 = arith.constant 0 : index
    %c0_485 = arith.constant 0 : index
    %465 = vector.load %arg4[%c0_482, %c0_483, %c0_484, %c0_485] : memref<2x3x32x32xf32, #tpu.memory_space<vmem>>, vector<1x1x32x32xf32>
    %466 = vector.shape_cast %465 : vector<1x1x32x32xf32> to vector<32x32xf32>
    %cst_486 = arith.constant dense<0.000000e+00> : vector<16x32xf32>
    %467 = tpu.matmul %453, %466, %cst_486 {dimension_numbers = #tpu.dot_dimension_numbers<[1], [0], [0], [1], [0, 0, 1, 1], [], []>} : vector<16x32xf32>, vector<32x32xf32>, vector<16x32xf32> -> vector<16x32xf32>
    %468 = arith.addf %464, %467 : vector<16x32xf32>
    %c0_487 = arith.constant 0 : index
    %c0_488 = arith.constant 0 : index
    %c0_489 = arith.constant 0 : index
    %c0_490 = arith.constant 0 : index
    %469 = vector.load %arg5[%c0_487, %c0_488, %c0_489, %c0_490] : memref<2x3x4x32xf32, #tpu.memory_space<vmem>>, vector<1x1x4x32xf32>
    %470 = vector.shape_cast %469 : vector<1x1x4x32xf32> to vector<4x32xf32>
    %cst_491 = arith.constant dense<0.000000e+00> : vector<16x32xf32>
    %471 = tpu.matmul %450, %470, %cst_491 {dimension_numbers = #tpu.dot_dimension_numbers<[1], [0], [0], [1], [0, 0, 1, 1], [], []>} : vector<16x4xf32>, vector<4x32xf32>, vector<16x32xf32> -> vector<16x32xf32>
    %472 = vector.broadcast %459 : vector<1x32xf32> to vector<16x32xf32>
    %473 = arith.addf %472, %471 : vector<16x32xf32>
    %c0_492 = arith.constant 0 : index
    %c0_493 = arith.constant 0 : index
    %c0_494 = arith.constant 0 : index
    %c0_495 = arith.constant 0 : index
    %474 = vector.load %arg6[%c0_492, %c0_493, %c0_494, %c0_495] : memref<2x3x32x32xf32, #tpu.memory_space<vmem>>, vector<1x1x32x32xf32>
    %475 = vector.shape_cast %474 : vector<1x1x32x32xf32> to vector<32x32xf32>
    %cst_496 = arith.constant dense<0.000000e+00> : vector<16x32xf32>
    %476 = tpu.matmul %453, %475, %cst_496 {dimension_numbers = #tpu.dot_dimension_numbers<[1], [0], [0], [1], [0, 0, 1, 1], [], []>} : vector<16x32xf32>, vector<32x32xf32>, vector<16x32xf32> -> vector<16x32xf32>
    %477 = arith.addf %473, %476 : vector<16x32xf32>
    %c0_497 = arith.constant 0 : index
    %c1_498 = arith.constant 1 : index
    %c0_499 = arith.constant 0 : index
    %c0_500 = arith.constant 0 : index
    %478 = vector.load %arg3[%c0_497, %c1_498, %c0_499, %c0_500] : memref<2x3x4x32xf32, #tpu.memory_space<vmem>>, vector<1x1x4x32xf32>
    %479 = vector.shape_cast %478 : vector<1x1x4x32xf32> to vector<4x32xf32>
    %cst_501 = arith.constant dense<0.000000e+00> : vector<16x32xf32>
    %480 = tpu.matmul %451, %479, %cst_501 {dimension_numbers = #tpu.dot_dimension_numbers<[1], [0], [0], [1], [0, 0, 1, 1], [], []>} : vector<16x4xf32>, vector<4x32xf32>, vector<16x32xf32> -> vector<16x32xf32>
    %481 = arith.addf %468, %480 : vector<16x32xf32>
    %c0_502 = arith.constant 0 : index
    %c1_503 = arith.constant 1 : index
    %c0_504 = arith.constant 0 : index
    %c0_505 = arith.constant 0 : index
    %482 = vector.load %arg4[%c0_502, %c1_503, %c0_504, %c0_505] : memref<2x3x32x32xf32, #tpu.memory_space<vmem>>, vector<1x1x32x32xf32>
    %483 = vector.shape_cast %482 : vector<1x1x32x32xf32> to vector<32x32xf32>
    %cst_506 = arith.constant dense<0.000000e+00> : vector<16x32xf32>
    %484 = tpu.matmul %454, %483, %cst_506 {dimension_numbers = #tpu.dot_dimension_numbers<[1], [0], [0], [1], [0, 0, 1, 1], [], []>} : vector<16x32xf32>, vector<32x32xf32>, vector<16x32xf32> -> vector<16x32xf32>
    %485 = arith.addf %481, %484 : vector<16x32xf32>
    %c0_507 = arith.constant 0 : index
    %c1_508 = arith.constant 1 : index
    %c0_509 = arith.constant 0 : index
    %c0_510 = arith.constant 0 : index
    %486 = vector.load %arg5[%c0_507, %c1_508, %c0_509, %c0_510] : memref<2x3x4x32xf32, #tpu.memory_space<vmem>>, vector<1x1x4x32xf32>
    %487 = vector.shape_cast %486 : vector<1x1x4x32xf32> to vector<4x32xf32>
    %cst_511 = arith.constant dense<0.000000e+00> : vector<16x32xf32>
    %488 = tpu.matmul %451, %487, %cst_511 {dimension_numbers = #tpu.dot_dimension_numbers<[1], [0], [0], [1], [0, 0, 1, 1], [], []>} : vector<16x4xf32>, vector<4x32xf32>, vector<16x32xf32> -> vector<16x32xf32>
    %489 = arith.addf %477, %488 : vector<16x32xf32>
    %c0_512 = arith.constant 0 : index
    %c1_513 = arith.constant 1 : index
    %c0_514 = arith.constant 0 : index
    %c0_515 = arith.constant 0 : index
    %490 = vector.load %arg6[%c0_512, %c1_513, %c0_514, %c0_515] : memref<2x3x32x32xf32, #tpu.memory_space<vmem>>, vector<1x1x32x32xf32>
    %491 = vector.shape_cast %490 : vector<1x1x32x32xf32> to vector<32x32xf32>
    %cst_516 = arith.constant dense<0.000000e+00> : vector<16x32xf32>
    %492 = tpu.matmul %454, %491, %cst_516 {dimension_numbers = #tpu.dot_dimension_numbers<[1], [0], [0], [1], [0, 0, 1, 1], [], []>} : vector<16x32xf32>, vector<32x32xf32>, vector<16x32xf32> -> vector<16x32xf32>
    %493 = arith.addf %489, %492 : vector<16x32xf32>
    %c0_517 = arith.constant 0 : index
    %c2_518 = arith.constant 2 : index
    %c0_519 = arith.constant 0 : index
    %c0_520 = arith.constant 0 : index
    %494 = vector.load %arg3[%c0_517, %c2_518, %c0_519, %c0_520] : memref<2x3x4x32xf32, #tpu.memory_space<vmem>>, vector<1x1x4x32xf32>
    %495 = vector.shape_cast %494 : vector<1x1x4x32xf32> to vector<4x32xf32>
    %cst_521 = arith.constant dense<0.000000e+00> : vector<16x32xf32>
    %496 = tpu.matmul %452, %495, %cst_521 {dimension_numbers = #tpu.dot_dimension_numbers<[1], [0], [0], [1], [0, 0, 1, 1], [], []>} : vector<16x4xf32>, vector<4x32xf32>, vector<16x32xf32> -> vector<16x32xf32>
    %497 = arith.addf %485, %496 : vector<16x32xf32>
    %c0_522 = arith.constant 0 : index
    %c2_523 = arith.constant 2 : index
    %c0_524 = arith.constant 0 : index
    %c0_525 = arith.constant 0 : index
    %498 = vector.load %arg4[%c0_522, %c2_523, %c0_524, %c0_525] : memref<2x3x32x32xf32, #tpu.memory_space<vmem>>, vector<1x1x32x32xf32>
    %499 = vector.shape_cast %498 : vector<1x1x32x32xf32> to vector<32x32xf32>
    %cst_526 = arith.constant dense<0.000000e+00> : vector<16x32xf32>
    %500 = tpu.matmul %455, %499, %cst_526 {dimension_numbers = #tpu.dot_dimension_numbers<[1], [0], [0], [1], [0, 0, 1, 1], [], []>} : vector<16x32xf32>, vector<32x32xf32>, vector<16x32xf32> -> vector<16x32xf32>
    %501 = arith.addf %497, %500 : vector<16x32xf32>
    %c0_527 = arith.constant 0 : index
    %c2_528 = arith.constant 2 : index
    %c0_529 = arith.constant 0 : index
    %c0_530 = arith.constant 0 : index
    %502 = vector.load %arg5[%c0_527, %c2_528, %c0_529, %c0_530] : memref<2x3x4x32xf32, #tpu.memory_space<vmem>>, vector<1x1x4x32xf32>
    %503 = vector.shape_cast %502 : vector<1x1x4x32xf32> to vector<4x32xf32>
    %cst_531 = arith.constant dense<0.000000e+00> : vector<16x32xf32>
    %504 = tpu.matmul %452, %503, %cst_531 {dimension_numbers = #tpu.dot_dimension_numbers<[1], [0], [0], [1], [0, 0, 1, 1], [], []>} : vector<16x4xf32>, vector<4x32xf32>, vector<16x32xf32> -> vector<16x32xf32>
    %505 = arith.addf %493, %504 : vector<16x32xf32>
    %c0_532 = arith.constant 0 : index
    %c2_533 = arith.constant 2 : index
    %c0_534 = arith.constant 0 : index
    %c0_535 = arith.constant 0 : index
    %506 = vector.load %arg6[%c0_532, %c2_533, %c0_534, %c0_535] : memref<2x3x32x32xf32, #tpu.memory_space<vmem>>, vector<1x1x32x32xf32>
    %507 = vector.shape_cast %506 : vector<1x1x32x32xf32> to vector<32x32xf32>
    %cst_536 = arith.constant dense<0.000000e+00> : vector<16x32xf32>
    %508 = tpu.matmul %455, %507, %cst_536 {dimension_numbers = #tpu.dot_dimension_numbers<[1], [0], [0], [1], [0, 0, 1, 1], [], []>} : vector<16x32xf32>, vector<32x32xf32>, vector<16x32xf32> -> vector<16x32xf32>
    %509 = arith.addf %505, %508 : vector<16x32xf32>
    %510 = arith.negf %501 : vector<16x32xf32>
    %511 = math.exp %510 : vector<16x32xf32>
    %cst_537 = arith.constant 1.000000e+00 : f32
    %512 = vector.broadcast %cst_537 : f32 to vector<16x32xf32>
    %513 = arith.addf %512, %511 : vector<16x32xf32>
    %514 = arith.divf %512, %513 : vector<16x32xf32>
    %515 = arith.negf %509 : vector<16x32xf32>
    %516 = math.exp %515 : vector<16x32xf32>
    %cst_538 = arith.constant 1.000000e+00 : f32
    %517 = vector.broadcast %cst_538 : f32 to vector<16x32xf32>
    %518 = arith.addf %517, %516 : vector<16x32xf32>
    %519 = arith.divf %517, %518 : vector<16x32xf32>
    %520 = arith.mulf %519, %446 : vector<16x32xf32>
    %c0_539 = arith.constant 0 : index
    %c0_540 = arith.constant 0 : index
    %c0_541 = arith.constant 0 : index
    %521 = vector.load %arg11[%c0_539, %c0_540, %c0_541] : memref<2x1x32xf32, #tpu.memory_space<vmem>>, vector<1x1x32xf32>
    %522 = vector.shape_cast %521 : vector<1x1x32xf32> to vector<1x32xf32>
    %cst_542 = arith.constant dense<0.000000e+00> : vector<16x32xf32>
    %523 = tpu.matmul %1, %520, %cst_542 {dimension_numbers = #tpu.dot_dimension_numbers<[1], [0], [0], [1], [0, 0, 1, 1], [], []>} : vector<16x16xf32>, vector<16x32xf32>, vector<16x32xf32> -> vector<16x32xf32>
    %c0_543 = arith.constant 0 : index
    %c0_544 = arith.constant 0 : index
    %c0_545 = arith.constant 0 : index
    %c0_546 = arith.constant 0 : index
    %524 = vector.load %arg7[%c0_543, %c0_544, %c0_545, %c0_546] : memref<2x3x4x32xf32, #tpu.memory_space<vmem>>, vector<1x1x4x32xf32>
    %525 = vector.shape_cast %524 : vector<1x1x4x32xf32> to vector<4x32xf32>
    %cst_547 = arith.constant dense<0.000000e+00> : vector<16x32xf32>
    %526 = tpu.matmul %450, %525, %cst_547 {dimension_numbers = #tpu.dot_dimension_numbers<[1], [0], [0], [1], [0, 0, 1, 1], [], []>} : vector<16x4xf32>, vector<4x32xf32>, vector<16x32xf32> -> vector<16x32xf32>
    %527 = vector.broadcast %522 : vector<1x32xf32> to vector<16x32xf32>
    %528 = arith.addf %527, %526 : vector<16x32xf32>
    %c0_548 = arith.constant 0 : index
    %c0_549 = arith.constant 0 : index
    %c0_550 = arith.constant 0 : index
    %c0_551 = arith.constant 0 : index
    %529 = vector.load %arg8[%c0_548, %c0_549, %c0_550, %c0_551] : memref<2x3x32x32xf32, #tpu.memory_space<vmem>>, vector<1x1x32x32xf32>
    %530 = vector.shape_cast %529 : vector<1x1x32x32xf32> to vector<32x32xf32>
    %cst_552 = arith.constant dense<0.000000e+00> : vector<16x32xf32>
    %531 = tpu.matmul %523, %530, %cst_552 {dimension_numbers = #tpu.dot_dimension_numbers<[1], [0], [0], [1], [0, 0, 1, 1], [], []>} : vector<16x32xf32>, vector<32x32xf32>, vector<16x32xf32> -> vector<16x32xf32>
    %532 = arith.addf %528, %531 : vector<16x32xf32>
    %cst_553 = arith.constant dense<0.000000e+00> : vector<16x32xf32>
    %533 = tpu.matmul %3, %520, %cst_553 {dimension_numbers = #tpu.dot_dimension_numbers<[1], [0], [0], [1], [0, 0, 1, 1], [], []>} : vector<16x16xf32>, vector<16x32xf32>, vector<16x32xf32> -> vector<16x32xf32>
    %c0_554 = arith.constant 0 : index
    %c1_555 = arith.constant 1 : index
    %c0_556 = arith.constant 0 : index
    %c0_557 = arith.constant 0 : index
    %534 = vector.load %arg7[%c0_554, %c1_555, %c0_556, %c0_557] : memref<2x3x4x32xf32, #tpu.memory_space<vmem>>, vector<1x1x4x32xf32>
    %535 = vector.shape_cast %534 : vector<1x1x4x32xf32> to vector<4x32xf32>
    %cst_558 = arith.constant dense<0.000000e+00> : vector<16x32xf32>
    %536 = tpu.matmul %451, %535, %cst_558 {dimension_numbers = #tpu.dot_dimension_numbers<[1], [0], [0], [1], [0, 0, 1, 1], [], []>} : vector<16x4xf32>, vector<4x32xf32>, vector<16x32xf32> -> vector<16x32xf32>
    %537 = arith.addf %532, %536 : vector<16x32xf32>
    %c0_559 = arith.constant 0 : index
    %c1_560 = arith.constant 1 : index
    %c0_561 = arith.constant 0 : index
    %c0_562 = arith.constant 0 : index
    %538 = vector.load %arg8[%c0_559, %c1_560, %c0_561, %c0_562] : memref<2x3x32x32xf32, #tpu.memory_space<vmem>>, vector<1x1x32x32xf32>
    %539 = vector.shape_cast %538 : vector<1x1x32x32xf32> to vector<32x32xf32>
    %cst_563 = arith.constant dense<0.000000e+00> : vector<16x32xf32>
    %540 = tpu.matmul %533, %539, %cst_563 {dimension_numbers = #tpu.dot_dimension_numbers<[1], [0], [0], [1], [0, 0, 1, 1], [], []>} : vector<16x32xf32>, vector<32x32xf32>, vector<16x32xf32> -> vector<16x32xf32>
    %541 = arith.addf %537, %540 : vector<16x32xf32>
    %cst_564 = arith.constant dense<0.000000e+00> : vector<16x32xf32>
    %542 = tpu.matmul %5, %520, %cst_564 {dimension_numbers = #tpu.dot_dimension_numbers<[1], [0], [0], [1], [0, 0, 1, 1], [], []>} : vector<16x16xf32>, vector<16x32xf32>, vector<16x32xf32> -> vector<16x32xf32>
    %c0_565 = arith.constant 0 : index
    %c2_566 = arith.constant 2 : index
    %c0_567 = arith.constant 0 : index
    %c0_568 = arith.constant 0 : index
    %543 = vector.load %arg7[%c0_565, %c2_566, %c0_567, %c0_568] : memref<2x3x4x32xf32, #tpu.memory_space<vmem>>, vector<1x1x4x32xf32>
    %544 = vector.shape_cast %543 : vector<1x1x4x32xf32> to vector<4x32xf32>
    %cst_569 = arith.constant dense<0.000000e+00> : vector<16x32xf32>
    %545 = tpu.matmul %452, %544, %cst_569 {dimension_numbers = #tpu.dot_dimension_numbers<[1], [0], [0], [1], [0, 0, 1, 1], [], []>} : vector<16x4xf32>, vector<4x32xf32>, vector<16x32xf32> -> vector<16x32xf32>
    %546 = arith.addf %541, %545 : vector<16x32xf32>
    %c0_570 = arith.constant 0 : index
    %c2_571 = arith.constant 2 : index
    %c0_572 = arith.constant 0 : index
    %c0_573 = arith.constant 0 : index
    %547 = vector.load %arg8[%c0_570, %c2_571, %c0_572, %c0_573] : memref<2x3x32x32xf32, #tpu.memory_space<vmem>>, vector<1x1x32x32xf32>
    %548 = vector.shape_cast %547 : vector<1x1x32x32xf32> to vector<32x32xf32>
    %cst_574 = arith.constant dense<0.000000e+00> : vector<16x32xf32>
    %549 = tpu.matmul %542, %548, %cst_574 {dimension_numbers = #tpu.dot_dimension_numbers<[1], [0], [0], [1], [0, 0, 1, 1], [], []>} : vector<16x32xf32>, vector<32x32xf32>, vector<16x32xf32> -> vector<16x32xf32>
    %550 = arith.addf %546, %549 : vector<16x32xf32>
    %551 = math.tanh %550 : vector<16x32xf32>
    %cst_575 = arith.constant 1.000000e+00 : f32
    %552 = vector.broadcast %cst_575 : f32 to vector<16x32xf32>
    %553 = arith.subf %552, %514 : vector<16x32xf32>
    %554 = arith.mulf %553, %446 : vector<16x32xf32>
    %555 = arith.mulf %514, %551 : vector<16x32xf32>
    %556 = arith.addf %554, %555 : vector<16x32xf32>
    %c5_i32 = arith.constant 5 : i32
    %c0_576 = arith.constant 0 : index
    %557 = arith.index_cast %c5_i32 : i32 to index
    %c0_577 = arith.constant 0 : index
    %c0_578 = arith.constant 0 : index
    %558 = vector.load %arg1[%c0_576, %557, %c0_577, %c0_578] : memref<1x8x16x4xf32, #tpu.memory_space<vmem>>, vector<1x1x16x4xf32>
    %559 = vector.shape_cast %558 : vector<1x1x16x4xf32> to vector<16x4xf32>
    %cst_579 = arith.constant dense<0.000000e+00> : vector<16x4xf32>
    %560 = tpu.matmul %1, %559, %cst_579 {dimension_numbers = #tpu.dot_dimension_numbers<[1], [0], [0], [1], [0, 0, 1, 1], [], []>} : vector<16x16xf32>, vector<16x4xf32>, vector<16x4xf32> -> vector<16x4xf32>
    %cst_580 = arith.constant dense<0.000000e+00> : vector<16x4xf32>
    %561 = tpu.matmul %3, %559, %cst_580 {dimension_numbers = #tpu.dot_dimension_numbers<[1], [0], [0], [1], [0, 0, 1, 1], [], []>} : vector<16x16xf32>, vector<16x4xf32>, vector<16x4xf32> -> vector<16x4xf32>
    %cst_581 = arith.constant dense<0.000000e+00> : vector<16x4xf32>
    %562 = tpu.matmul %5, %559, %cst_581 {dimension_numbers = #tpu.dot_dimension_numbers<[1], [0], [0], [1], [0, 0, 1, 1], [], []>} : vector<16x16xf32>, vector<16x4xf32>, vector<16x4xf32> -> vector<16x4xf32>
    %cst_582 = arith.constant dense<0.000000e+00> : vector<16x32xf32>
    %563 = tpu.matmul %1, %556, %cst_582 {dimension_numbers = #tpu.dot_dimension_numbers<[1], [0], [0], [1], [0, 0, 1, 1], [], []>} : vector<16x16xf32>, vector<16x32xf32>, vector<16x32xf32> -> vector<16x32xf32>
    %cst_583 = arith.constant dense<0.000000e+00> : vector<16x32xf32>
    %564 = tpu.matmul %3, %556, %cst_583 {dimension_numbers = #tpu.dot_dimension_numbers<[1], [0], [0], [1], [0, 0, 1, 1], [], []>} : vector<16x16xf32>, vector<16x32xf32>, vector<16x32xf32> -> vector<16x32xf32>
    %cst_584 = arith.constant dense<0.000000e+00> : vector<16x32xf32>
    %565 = tpu.matmul %5, %556, %cst_584 {dimension_numbers = #tpu.dot_dimension_numbers<[1], [0], [0], [1], [0, 0, 1, 1], [], []>} : vector<16x16xf32>, vector<16x32xf32>, vector<16x32xf32> -> vector<16x32xf32>
    %c0_585 = arith.constant 0 : index
    %c0_586 = arith.constant 0 : index
    %c0_587 = arith.constant 0 : index
    %566 = vector.load %arg9[%c0_585, %c0_586, %c0_587] : memref<2x1x32xf32, #tpu.memory_space<vmem>>, vector<1x1x32xf32>
    %567 = vector.shape_cast %566 : vector<1x1x32xf32> to vector<1x32xf32>
    %c0_588 = arith.constant 0 : index
    %c0_589 = arith.constant 0 : index
    %c0_590 = arith.constant 0 : index
    %568 = vector.load %arg10[%c0_588, %c0_589, %c0_590] : memref<2x1x32xf32, #tpu.memory_space<vmem>>, vector<1x1x32xf32>
    %569 = vector.shape_cast %568 : vector<1x1x32xf32> to vector<1x32xf32>
    %c0_591 = arith.constant 0 : index
    %c0_592 = arith.constant 0 : index
    %c0_593 = arith.constant 0 : index
    %c0_594 = arith.constant 0 : index
    %570 = vector.load %arg3[%c0_591, %c0_592, %c0_593, %c0_594] : memref<2x3x4x32xf32, #tpu.memory_space<vmem>>, vector<1x1x4x32xf32>
    %571 = vector.shape_cast %570 : vector<1x1x4x32xf32> to vector<4x32xf32>
    %cst_595 = arith.constant dense<0.000000e+00> : vector<16x32xf32>
    %572 = tpu.matmul %560, %571, %cst_595 {dimension_numbers = #tpu.dot_dimension_numbers<[1], [0], [0], [1], [0, 0, 1, 1], [], []>} : vector<16x4xf32>, vector<4x32xf32>, vector<16x32xf32> -> vector<16x32xf32>
    %573 = vector.broadcast %567 : vector<1x32xf32> to vector<16x32xf32>
    %574 = arith.addf %573, %572 : vector<16x32xf32>
    %c0_596 = arith.constant 0 : index
    %c0_597 = arith.constant 0 : index
    %c0_598 = arith.constant 0 : index
    %c0_599 = arith.constant 0 : index
    %575 = vector.load %arg4[%c0_596, %c0_597, %c0_598, %c0_599] : memref<2x3x32x32xf32, #tpu.memory_space<vmem>>, vector<1x1x32x32xf32>
    %576 = vector.shape_cast %575 : vector<1x1x32x32xf32> to vector<32x32xf32>
    %cst_600 = arith.constant dense<0.000000e+00> : vector<16x32xf32>
    %577 = tpu.matmul %563, %576, %cst_600 {dimension_numbers = #tpu.dot_dimension_numbers<[1], [0], [0], [1], [0, 0, 1, 1], [], []>} : vector<16x32xf32>, vector<32x32xf32>, vector<16x32xf32> -> vector<16x32xf32>
    %578 = arith.addf %574, %577 : vector<16x32xf32>
    %c0_601 = arith.constant 0 : index
    %c0_602 = arith.constant 0 : index
    %c0_603 = arith.constant 0 : index
    %c0_604 = arith.constant 0 : index
    %579 = vector.load %arg5[%c0_601, %c0_602, %c0_603, %c0_604] : memref<2x3x4x32xf32, #tpu.memory_space<vmem>>, vector<1x1x4x32xf32>
    %580 = vector.shape_cast %579 : vector<1x1x4x32xf32> to vector<4x32xf32>
    %cst_605 = arith.constant dense<0.000000e+00> : vector<16x32xf32>
    %581 = tpu.matmul %560, %580, %cst_605 {dimension_numbers = #tpu.dot_dimension_numbers<[1], [0], [0], [1], [0, 0, 1, 1], [], []>} : vector<16x4xf32>, vector<4x32xf32>, vector<16x32xf32> -> vector<16x32xf32>
    %582 = vector.broadcast %569 : vector<1x32xf32> to vector<16x32xf32>
    %583 = arith.addf %582, %581 : vector<16x32xf32>
    %c0_606 = arith.constant 0 : index
    %c0_607 = arith.constant 0 : index
    %c0_608 = arith.constant 0 : index
    %c0_609 = arith.constant 0 : index
    %584 = vector.load %arg6[%c0_606, %c0_607, %c0_608, %c0_609] : memref<2x3x32x32xf32, #tpu.memory_space<vmem>>, vector<1x1x32x32xf32>
    %585 = vector.shape_cast %584 : vector<1x1x32x32xf32> to vector<32x32xf32>
    %cst_610 = arith.constant dense<0.000000e+00> : vector<16x32xf32>
    %586 = tpu.matmul %563, %585, %cst_610 {dimension_numbers = #tpu.dot_dimension_numbers<[1], [0], [0], [1], [0, 0, 1, 1], [], []>} : vector<16x32xf32>, vector<32x32xf32>, vector<16x32xf32> -> vector<16x32xf32>
    %587 = arith.addf %583, %586 : vector<16x32xf32>
    %c0_611 = arith.constant 0 : index
    %c1_612 = arith.constant 1 : index
    %c0_613 = arith.constant 0 : index
    %c0_614 = arith.constant 0 : index
    %588 = vector.load %arg3[%c0_611, %c1_612, %c0_613, %c0_614] : memref<2x3x4x32xf32, #tpu.memory_space<vmem>>, vector<1x1x4x32xf32>
    %589 = vector.shape_cast %588 : vector<1x1x4x32xf32> to vector<4x32xf32>
    %cst_615 = arith.constant dense<0.000000e+00> : vector<16x32xf32>
    %590 = tpu.matmul %561, %589, %cst_615 {dimension_numbers = #tpu.dot_dimension_numbers<[1], [0], [0], [1], [0, 0, 1, 1], [], []>} : vector<16x4xf32>, vector<4x32xf32>, vector<16x32xf32> -> vector<16x32xf32>
    %591 = arith.addf %578, %590 : vector<16x32xf32>
    %c0_616 = arith.constant 0 : index
    %c1_617 = arith.constant 1 : index
    %c0_618 = arith.constant 0 : index
    %c0_619 = arith.constant 0 : index
    %592 = vector.load %arg4[%c0_616, %c1_617, %c0_618, %c0_619] : memref<2x3x32x32xf32, #tpu.memory_space<vmem>>, vector<1x1x32x32xf32>
    %593 = vector.shape_cast %592 : vector<1x1x32x32xf32> to vector<32x32xf32>
    %cst_620 = arith.constant dense<0.000000e+00> : vector<16x32xf32>
    %594 = tpu.matmul %564, %593, %cst_620 {dimension_numbers = #tpu.dot_dimension_numbers<[1], [0], [0], [1], [0, 0, 1, 1], [], []>} : vector<16x32xf32>, vector<32x32xf32>, vector<16x32xf32> -> vector<16x32xf32>
    %595 = arith.addf %591, %594 : vector<16x32xf32>
    %c0_621 = arith.constant 0 : index
    %c1_622 = arith.constant 1 : index
    %c0_623 = arith.constant 0 : index
    %c0_624 = arith.constant 0 : index
    %596 = vector.load %arg5[%c0_621, %c1_622, %c0_623, %c0_624] : memref<2x3x4x32xf32, #tpu.memory_space<vmem>>, vector<1x1x4x32xf32>
    %597 = vector.shape_cast %596 : vector<1x1x4x32xf32> to vector<4x32xf32>
    %cst_625 = arith.constant dense<0.000000e+00> : vector<16x32xf32>
    %598 = tpu.matmul %561, %597, %cst_625 {dimension_numbers = #tpu.dot_dimension_numbers<[1], [0], [0], [1], [0, 0, 1, 1], [], []>} : vector<16x4xf32>, vector<4x32xf32>, vector<16x32xf32> -> vector<16x32xf32>
    %599 = arith.addf %587, %598 : vector<16x32xf32>
    %c0_626 = arith.constant 0 : index
    %c1_627 = arith.constant 1 : index
    %c0_628 = arith.constant 0 : index
    %c0_629 = arith.constant 0 : index
    %600 = vector.load %arg6[%c0_626, %c1_627, %c0_628, %c0_629] : memref<2x3x32x32xf32, #tpu.memory_space<vmem>>, vector<1x1x32x32xf32>
    %601 = vector.shape_cast %600 : vector<1x1x32x32xf32> to vector<32x32xf32>
    %cst_630 = arith.constant dense<0.000000e+00> : vector<16x32xf32>
    %602 = tpu.matmul %564, %601, %cst_630 {dimension_numbers = #tpu.dot_dimension_numbers<[1], [0], [0], [1], [0, 0, 1, 1], [], []>} : vector<16x32xf32>, vector<32x32xf32>, vector<16x32xf32> -> vector<16x32xf32>
    %603 = arith.addf %599, %602 : vector<16x32xf32>
    %c0_631 = arith.constant 0 : index
    %c2_632 = arith.constant 2 : index
    %c0_633 = arith.constant 0 : index
    %c0_634 = arith.constant 0 : index
    %604 = vector.load %arg3[%c0_631, %c2_632, %c0_633, %c0_634] : memref<2x3x4x32xf32, #tpu.memory_space<vmem>>, vector<1x1x4x32xf32>
    %605 = vector.shape_cast %604 : vector<1x1x4x32xf32> to vector<4x32xf32>
    %cst_635 = arith.constant dense<0.000000e+00> : vector<16x32xf32>
    %606 = tpu.matmul %562, %605, %cst_635 {dimension_numbers = #tpu.dot_dimension_numbers<[1], [0], [0], [1], [0, 0, 1, 1], [], []>} : vector<16x4xf32>, vector<4x32xf32>, vector<16x32xf32> -> vector<16x32xf32>
    %607 = arith.addf %595, %606 : vector<16x32xf32>
    %c0_636 = arith.constant 0 : index
    %c2_637 = arith.constant 2 : index
    %c0_638 = arith.constant 0 : index
    %c0_639 = arith.constant 0 : index
    %608 = vector.load %arg4[%c0_636, %c2_637, %c0_638, %c0_639] : memref<2x3x32x32xf32, #tpu.memory_space<vmem>>, vector<1x1x32x32xf32>
    %609 = vector.shape_cast %608 : vector<1x1x32x32xf32> to vector<32x32xf32>
    %cst_640 = arith.constant dense<0.000000e+00> : vector<16x32xf32>
    %610 = tpu.matmul %565, %609, %cst_640 {dimension_numbers = #tpu.dot_dimension_numbers<[1], [0], [0], [1], [0, 0, 1, 1], [], []>} : vector<16x32xf32>, vector<32x32xf32>, vector<16x32xf32> -> vector<16x32xf32>
    %611 = arith.addf %607, %610 : vector<16x32xf32>
    %c0_641 = arith.constant 0 : index
    %c2_642 = arith.constant 2 : index
    %c0_643 = arith.constant 0 : index
    %c0_644 = arith.constant 0 : index
    %612 = vector.load %arg5[%c0_641, %c2_642, %c0_643, %c0_644] : memref<2x3x4x32xf32, #tpu.memory_space<vmem>>, vector<1x1x4x32xf32>
    %613 = vector.shape_cast %612 : vector<1x1x4x32xf32> to vector<4x32xf32>
    %cst_645 = arith.constant dense<0.000000e+00> : vector<16x32xf32>
    %614 = tpu.matmul %562, %613, %cst_645 {dimension_numbers = #tpu.dot_dimension_numbers<[1], [0], [0], [1], [0, 0, 1, 1], [], []>} : vector<16x4xf32>, vector<4x32xf32>, vector<16x32xf32> -> vector<16x32xf32>
    %615 = arith.addf %603, %614 : vector<16x32xf32>
    %c0_646 = arith.constant 0 : index
    %c2_647 = arith.constant 2 : index
    %c0_648 = arith.constant 0 : index
    %c0_649 = arith.constant 0 : index
    %616 = vector.load %arg6[%c0_646, %c2_647, %c0_648, %c0_649] : memref<2x3x32x32xf32, #tpu.memory_space<vmem>>, vector<1x1x32x32xf32>
    %617 = vector.shape_cast %616 : vector<1x1x32x32xf32> to vector<32x32xf32>
    %cst_650 = arith.constant dense<0.000000e+00> : vector<16x32xf32>
    %618 = tpu.matmul %565, %617, %cst_650 {dimension_numbers = #tpu.dot_dimension_numbers<[1], [0], [0], [1], [0, 0, 1, 1], [], []>} : vector<16x32xf32>, vector<32x32xf32>, vector<16x32xf32> -> vector<16x32xf32>
    %619 = arith.addf %615, %618 : vector<16x32xf32>
    %620 = arith.negf %611 : vector<16x32xf32>
    %621 = math.exp %620 : vector<16x32xf32>
    %cst_651 = arith.constant 1.000000e+00 : f32
    %622 = vector.broadcast %cst_651 : f32 to vector<16x32xf32>
    %623 = arith.addf %622, %621 : vector<16x32xf32>
    %624 = arith.divf %622, %623 : vector<16x32xf32>
    %625 = arith.negf %619 : vector<16x32xf32>
    %626 = math.exp %625 : vector<16x32xf32>
    %cst_652 = arith.constant 1.000000e+00 : f32
    %627 = vector.broadcast %cst_652 : f32 to vector<16x32xf32>
    %628 = arith.addf %627, %626 : vector<16x32xf32>
    %629 = arith.divf %627, %628 : vector<16x32xf32>
    %630 = arith.mulf %629, %556 : vector<16x32xf32>
    %c0_653 = arith.constant 0 : index
    %c0_654 = arith.constant 0 : index
    %c0_655 = arith.constant 0 : index
    %631 = vector.load %arg11[%c0_653, %c0_654, %c0_655] : memref<2x1x32xf32, #tpu.memory_space<vmem>>, vector<1x1x32xf32>
    %632 = vector.shape_cast %631 : vector<1x1x32xf32> to vector<1x32xf32>
    %cst_656 = arith.constant dense<0.000000e+00> : vector<16x32xf32>
    %633 = tpu.matmul %1, %630, %cst_656 {dimension_numbers = #tpu.dot_dimension_numbers<[1], [0], [0], [1], [0, 0, 1, 1], [], []>} : vector<16x16xf32>, vector<16x32xf32>, vector<16x32xf32> -> vector<16x32xf32>
    %c0_657 = arith.constant 0 : index
    %c0_658 = arith.constant 0 : index
    %c0_659 = arith.constant 0 : index
    %c0_660 = arith.constant 0 : index
    %634 = vector.load %arg7[%c0_657, %c0_658, %c0_659, %c0_660] : memref<2x3x4x32xf32, #tpu.memory_space<vmem>>, vector<1x1x4x32xf32>
    %635 = vector.shape_cast %634 : vector<1x1x4x32xf32> to vector<4x32xf32>
    %cst_661 = arith.constant dense<0.000000e+00> : vector<16x32xf32>
    %636 = tpu.matmul %560, %635, %cst_661 {dimension_numbers = #tpu.dot_dimension_numbers<[1], [0], [0], [1], [0, 0, 1, 1], [], []>} : vector<16x4xf32>, vector<4x32xf32>, vector<16x32xf32> -> vector<16x32xf32>
    %637 = vector.broadcast %632 : vector<1x32xf32> to vector<16x32xf32>
    %638 = arith.addf %637, %636 : vector<16x32xf32>
    %c0_662 = arith.constant 0 : index
    %c0_663 = arith.constant 0 : index
    %c0_664 = arith.constant 0 : index
    %c0_665 = arith.constant 0 : index
    %639 = vector.load %arg8[%c0_662, %c0_663, %c0_664, %c0_665] : memref<2x3x32x32xf32, #tpu.memory_space<vmem>>, vector<1x1x32x32xf32>
    %640 = vector.shape_cast %639 : vector<1x1x32x32xf32> to vector<32x32xf32>
    %cst_666 = arith.constant dense<0.000000e+00> : vector<16x32xf32>
    %641 = tpu.matmul %633, %640, %cst_666 {dimension_numbers = #tpu.dot_dimension_numbers<[1], [0], [0], [1], [0, 0, 1, 1], [], []>} : vector<16x32xf32>, vector<32x32xf32>, vector<16x32xf32> -> vector<16x32xf32>
    %642 = arith.addf %638, %641 : vector<16x32xf32>
    %cst_667 = arith.constant dense<0.000000e+00> : vector<16x32xf32>
    %643 = tpu.matmul %3, %630, %cst_667 {dimension_numbers = #tpu.dot_dimension_numbers<[1], [0], [0], [1], [0, 0, 1, 1], [], []>} : vector<16x16xf32>, vector<16x32xf32>, vector<16x32xf32> -> vector<16x32xf32>
    %c0_668 = arith.constant 0 : index
    %c1_669 = arith.constant 1 : index
    %c0_670 = arith.constant 0 : index
    %c0_671 = arith.constant 0 : index
    %644 = vector.load %arg7[%c0_668, %c1_669, %c0_670, %c0_671] : memref<2x3x4x32xf32, #tpu.memory_space<vmem>>, vector<1x1x4x32xf32>
    %645 = vector.shape_cast %644 : vector<1x1x4x32xf32> to vector<4x32xf32>
    %cst_672 = arith.constant dense<0.000000e+00> : vector<16x32xf32>
    %646 = tpu.matmul %561, %645, %cst_672 {dimension_numbers = #tpu.dot_dimension_numbers<[1], [0], [0], [1], [0, 0, 1, 1], [], []>} : vector<16x4xf32>, vector<4x32xf32>, vector<16x32xf32> -> vector<16x32xf32>
    %647 = arith.addf %642, %646 : vector<16x32xf32>
    %c0_673 = arith.constant 0 : index
    %c1_674 = arith.constant 1 : index
    %c0_675 = arith.constant 0 : index
    %c0_676 = arith.constant 0 : index
    %648 = vector.load %arg8[%c0_673, %c1_674, %c0_675, %c0_676] : memref<2x3x32x32xf32, #tpu.memory_space<vmem>>, vector<1x1x32x32xf32>
    %649 = vector.shape_cast %648 : vector<1x1x32x32xf32> to vector<32x32xf32>
    %cst_677 = arith.constant dense<0.000000e+00> : vector<16x32xf32>
    %650 = tpu.matmul %643, %649, %cst_677 {dimension_numbers = #tpu.dot_dimension_numbers<[1], [0], [0], [1], [0, 0, 1, 1], [], []>} : vector<16x32xf32>, vector<32x32xf32>, vector<16x32xf32> -> vector<16x32xf32>
    %651 = arith.addf %647, %650 : vector<16x32xf32>
    %cst_678 = arith.constant dense<0.000000e+00> : vector<16x32xf32>
    %652 = tpu.matmul %5, %630, %cst_678 {dimension_numbers = #tpu.dot_dimension_numbers<[1], [0], [0], [1], [0, 0, 1, 1], [], []>} : vector<16x16xf32>, vector<16x32xf32>, vector<16x32xf32> -> vector<16x32xf32>
    %c0_679 = arith.constant 0 : index
    %c2_680 = arith.constant 2 : index
    %c0_681 = arith.constant 0 : index
    %c0_682 = arith.constant 0 : index
    %653 = vector.load %arg7[%c0_679, %c2_680, %c0_681, %c0_682] : memref<2x3x4x32xf32, #tpu.memory_space<vmem>>, vector<1x1x4x32xf32>
    %654 = vector.shape_cast %653 : vector<1x1x4x32xf32> to vector<4x32xf32>
    %cst_683 = arith.constant dense<0.000000e+00> : vector<16x32xf32>
    %655 = tpu.matmul %562, %654, %cst_683 {dimension_numbers = #tpu.dot_dimension_numbers<[1], [0], [0], [1], [0, 0, 1, 1], [], []>} : vector<16x4xf32>, vector<4x32xf32>, vector<16x32xf32> -> vector<16x32xf32>
    %656 = arith.addf %651, %655 : vector<16x32xf32>
    %c0_684 = arith.constant 0 : index
    %c2_685 = arith.constant 2 : index
    %c0_686 = arith.constant 0 : index
    %c0_687 = arith.constant 0 : index
    %657 = vector.load %arg8[%c0_684, %c2_685, %c0_686, %c0_687] : memref<2x3x32x32xf32, #tpu.memory_space<vmem>>, vector<1x1x32x32xf32>
    %658 = vector.shape_cast %657 : vector<1x1x32x32xf32> to vector<32x32xf32>
    %cst_688 = arith.constant dense<0.000000e+00> : vector<16x32xf32>
    %659 = tpu.matmul %652, %658, %cst_688 {dimension_numbers = #tpu.dot_dimension_numbers<[1], [0], [0], [1], [0, 0, 1, 1], [], []>} : vector<16x32xf32>, vector<32x32xf32>, vector<16x32xf32> -> vector<16x32xf32>
    %660 = arith.addf %656, %659 : vector<16x32xf32>
    %661 = math.tanh %660 : vector<16x32xf32>
    %cst_689 = arith.constant 1.000000e+00 : f32
    %662 = vector.broadcast %cst_689 : f32 to vector<16x32xf32>
    %663 = arith.subf %662, %624 : vector<16x32xf32>
    %664 = arith.mulf %663, %556 : vector<16x32xf32>
    %665 = arith.mulf %624, %661 : vector<16x32xf32>
    %666 = arith.addf %664, %665 : vector<16x32xf32>
    %c6_i32 = arith.constant 6 : i32
    %c0_690 = arith.constant 0 : index
    %667 = arith.index_cast %c6_i32 : i32 to index
    %c0_691 = arith.constant 0 : index
    %c0_692 = arith.constant 0 : index
    %668 = vector.load %arg1[%c0_690, %667, %c0_691, %c0_692] : memref<1x8x16x4xf32, #tpu.memory_space<vmem>>, vector<1x1x16x4xf32>
    %669 = vector.shape_cast %668 : vector<1x1x16x4xf32> to vector<16x4xf32>
    %cst_693 = arith.constant dense<0.000000e+00> : vector<16x4xf32>
    %670 = tpu.matmul %1, %669, %cst_693 {dimension_numbers = #tpu.dot_dimension_numbers<[1], [0], [0], [1], [0, 0, 1, 1], [], []>} : vector<16x16xf32>, vector<16x4xf32>, vector<16x4xf32> -> vector<16x4xf32>
    %cst_694 = arith.constant dense<0.000000e+00> : vector<16x4xf32>
    %671 = tpu.matmul %3, %669, %cst_694 {dimension_numbers = #tpu.dot_dimension_numbers<[1], [0], [0], [1], [0, 0, 1, 1], [], []>} : vector<16x16xf32>, vector<16x4xf32>, vector<16x4xf32> -> vector<16x4xf32>
    %cst_695 = arith.constant dense<0.000000e+00> : vector<16x4xf32>
    %672 = tpu.matmul %5, %669, %cst_695 {dimension_numbers = #tpu.dot_dimension_numbers<[1], [0], [0], [1], [0, 0, 1, 1], [], []>} : vector<16x16xf32>, vector<16x4xf32>, vector<16x4xf32> -> vector<16x4xf32>
    %cst_696 = arith.constant dense<0.000000e+00> : vector<16x32xf32>
    %673 = tpu.matmul %1, %666, %cst_696 {dimension_numbers = #tpu.dot_dimension_numbers<[1], [0], [0], [1], [0, 0, 1, 1], [], []>} : vector<16x16xf32>, vector<16x32xf32>, vector<16x32xf32> -> vector<16x32xf32>
    %cst_697 = arith.constant dense<0.000000e+00> : vector<16x32xf32>
    %674 = tpu.matmul %3, %666, %cst_697 {dimension_numbers = #tpu.dot_dimension_numbers<[1], [0], [0], [1], [0, 0, 1, 1], [], []>} : vector<16x16xf32>, vector<16x32xf32>, vector<16x32xf32> -> vector<16x32xf32>
    %cst_698 = arith.constant dense<0.000000e+00> : vector<16x32xf32>
    %675 = tpu.matmul %5, %666, %cst_698 {dimension_numbers = #tpu.dot_dimension_numbers<[1], [0], [0], [1], [0, 0, 1, 1], [], []>} : vector<16x16xf32>, vector<16x32xf32>, vector<16x32xf32> -> vector<16x32xf32>
    %c0_699 = arith.constant 0 : index
    %c0_700 = arith.constant 0 : index
    %c0_701 = arith.constant 0 : index
    %676 = vector.load %arg9[%c0_699, %c0_700, %c0_701] : memref<2x1x32xf32, #tpu.memory_space<vmem>>, vector<1x1x32xf32>
    %677 = vector.shape_cast %676 : vector<1x1x32xf32> to vector<1x32xf32>
    %c0_702 = arith.constant 0 : index
    %c0_703 = arith.constant 0 : index
    %c0_704 = arith.constant 0 : index
    %678 = vector.load %arg10[%c0_702, %c0_703, %c0_704] : memref<2x1x32xf32, #tpu.memory_space<vmem>>, vector<1x1x32xf32>
    %679 = vector.shape_cast %678 : vector<1x1x32xf32> to vector<1x32xf32>
    %c0_705 = arith.constant 0 : index
    %c0_706 = arith.constant 0 : index
    %c0_707 = arith.constant 0 : index
    %c0_708 = arith.constant 0 : index
    %680 = vector.load %arg3[%c0_705, %c0_706, %c0_707, %c0_708] : memref<2x3x4x32xf32, #tpu.memory_space<vmem>>, vector<1x1x4x32xf32>
    %681 = vector.shape_cast %680 : vector<1x1x4x32xf32> to vector<4x32xf32>
    %cst_709 = arith.constant dense<0.000000e+00> : vector<16x32xf32>
    %682 = tpu.matmul %670, %681, %cst_709 {dimension_numbers = #tpu.dot_dimension_numbers<[1], [0], [0], [1], [0, 0, 1, 1], [], []>} : vector<16x4xf32>, vector<4x32xf32>, vector<16x32xf32> -> vector<16x32xf32>
    %683 = vector.broadcast %677 : vector<1x32xf32> to vector<16x32xf32>
    %684 = arith.addf %683, %682 : vector<16x32xf32>
    %c0_710 = arith.constant 0 : index
    %c0_711 = arith.constant 0 : index
    %c0_712 = arith.constant 0 : index
    %c0_713 = arith.constant 0 : index
    %685 = vector.load %arg4[%c0_710, %c0_711, %c0_712, %c0_713] : memref<2x3x32x32xf32, #tpu.memory_space<vmem>>, vector<1x1x32x32xf32>
    %686 = vector.shape_cast %685 : vector<1x1x32x32xf32> to vector<32x32xf32>
    %cst_714 = arith.constant dense<0.000000e+00> : vector<16x32xf32>
    %687 = tpu.matmul %673, %686, %cst_714 {dimension_numbers = #tpu.dot_dimension_numbers<[1], [0], [0], [1], [0, 0, 1, 1], [], []>} : vector<16x32xf32>, vector<32x32xf32>, vector<16x32xf32> -> vector<16x32xf32>
    %688 = arith.addf %684, %687 : vector<16x32xf32>
    %c0_715 = arith.constant 0 : index
    %c0_716 = arith.constant 0 : index
    %c0_717 = arith.constant 0 : index
    %c0_718 = arith.constant 0 : index
    %689 = vector.load %arg5[%c0_715, %c0_716, %c0_717, %c0_718] : memref<2x3x4x32xf32, #tpu.memory_space<vmem>>, vector<1x1x4x32xf32>
    %690 = vector.shape_cast %689 : vector<1x1x4x32xf32> to vector<4x32xf32>
    %cst_719 = arith.constant dense<0.000000e+00> : vector<16x32xf32>
    %691 = tpu.matmul %670, %690, %cst_719 {dimension_numbers = #tpu.dot_dimension_numbers<[1], [0], [0], [1], [0, 0, 1, 1], [], []>} : vector<16x4xf32>, vector<4x32xf32>, vector<16x32xf32> -> vector<16x32xf32>
    %692 = vector.broadcast %679 : vector<1x32xf32> to vector<16x32xf32>
    %693 = arith.addf %692, %691 : vector<16x32xf32>
    %c0_720 = arith.constant 0 : index
    %c0_721 = arith.constant 0 : index
    %c0_722 = arith.constant 0 : index
    %c0_723 = arith.constant 0 : index
    %694 = vector.load %arg6[%c0_720, %c0_721, %c0_722, %c0_723] : memref<2x3x32x32xf32, #tpu.memory_space<vmem>>, vector<1x1x32x32xf32>
    %695 = vector.shape_cast %694 : vector<1x1x32x32xf32> to vector<32x32xf32>
    %cst_724 = arith.constant dense<0.000000e+00> : vector<16x32xf32>
    %696 = tpu.matmul %673, %695, %cst_724 {dimension_numbers = #tpu.dot_dimension_numbers<[1], [0], [0], [1], [0, 0, 1, 1], [], []>} : vector<16x32xf32>, vector<32x32xf32>, vector<16x32xf32> -> vector<16x32xf32>
    %697 = arith.addf %693, %696 : vector<16x32xf32>
    %c0_725 = arith.constant 0 : index
    %c1_726 = arith.constant 1 : index
    %c0_727 = arith.constant 0 : index
    %c0_728 = arith.constant 0 : index
    %698 = vector.load %arg3[%c0_725, %c1_726, %c0_727, %c0_728] : memref<2x3x4x32xf32, #tpu.memory_space<vmem>>, vector<1x1x4x32xf32>
    %699 = vector.shape_cast %698 : vector<1x1x4x32xf32> to vector<4x32xf32>
    %cst_729 = arith.constant dense<0.000000e+00> : vector<16x32xf32>
    %700 = tpu.matmul %671, %699, %cst_729 {dimension_numbers = #tpu.dot_dimension_numbers<[1], [0], [0], [1], [0, 0, 1, 1], [], []>} : vector<16x4xf32>, vector<4x32xf32>, vector<16x32xf32> -> vector<16x32xf32>
    %701 = arith.addf %688, %700 : vector<16x32xf32>
    %c0_730 = arith.constant 0 : index
    %c1_731 = arith.constant 1 : index
    %c0_732 = arith.constant 0 : index
    %c0_733 = arith.constant 0 : index
    %702 = vector.load %arg4[%c0_730, %c1_731, %c0_732, %c0_733] : memref<2x3x32x32xf32, #tpu.memory_space<vmem>>, vector<1x1x32x32xf32>
    %703 = vector.shape_cast %702 : vector<1x1x32x32xf32> to vector<32x32xf32>
    %cst_734 = arith.constant dense<0.000000e+00> : vector<16x32xf32>
    %704 = tpu.matmul %674, %703, %cst_734 {dimension_numbers = #tpu.dot_dimension_numbers<[1], [0], [0], [1], [0, 0, 1, 1], [], []>} : vector<16x32xf32>, vector<32x32xf32>, vector<16x32xf32> -> vector<16x32xf32>
    %705 = arith.addf %701, %704 : vector<16x32xf32>
    %c0_735 = arith.constant 0 : index
    %c1_736 = arith.constant 1 : index
    %c0_737 = arith.constant 0 : index
    %c0_738 = arith.constant 0 : index
    %706 = vector.load %arg5[%c0_735, %c1_736, %c0_737, %c0_738] : memref<2x3x4x32xf32, #tpu.memory_space<vmem>>, vector<1x1x4x32xf32>
    %707 = vector.shape_cast %706 : vector<1x1x4x32xf32> to vector<4x32xf32>
    %cst_739 = arith.constant dense<0.000000e+00> : vector<16x32xf32>
    %708 = tpu.matmul %671, %707, %cst_739 {dimension_numbers = #tpu.dot_dimension_numbers<[1], [0], [0], [1], [0, 0, 1, 1], [], []>} : vector<16x4xf32>, vector<4x32xf32>, vector<16x32xf32> -> vector<16x32xf32>
    %709 = arith.addf %697, %708 : vector<16x32xf32>
    %c0_740 = arith.constant 0 : index
    %c1_741 = arith.constant 1 : index
    %c0_742 = arith.constant 0 : index
    %c0_743 = arith.constant 0 : index
    %710 = vector.load %arg6[%c0_740, %c1_741, %c0_742, %c0_743] : memref<2x3x32x32xf32, #tpu.memory_space<vmem>>, vector<1x1x32x32xf32>
    %711 = vector.shape_cast %710 : vector<1x1x32x32xf32> to vector<32x32xf32>
    %cst_744 = arith.constant dense<0.000000e+00> : vector<16x32xf32>
    %712 = tpu.matmul %674, %711, %cst_744 {dimension_numbers = #tpu.dot_dimension_numbers<[1], [0], [0], [1], [0, 0, 1, 1], [], []>} : vector<16x32xf32>, vector<32x32xf32>, vector<16x32xf32> -> vector<16x32xf32>
    %713 = arith.addf %709, %712 : vector<16x32xf32>
    %c0_745 = arith.constant 0 : index
    %c2_746 = arith.constant 2 : index
    %c0_747 = arith.constant 0 : index
    %c0_748 = arith.constant 0 : index
    %714 = vector.load %arg3[%c0_745, %c2_746, %c0_747, %c0_748] : memref<2x3x4x32xf32, #tpu.memory_space<vmem>>, vector<1x1x4x32xf32>
    %715 = vector.shape_cast %714 : vector<1x1x4x32xf32> to vector<4x32xf32>
    %cst_749 = arith.constant dense<0.000000e+00> : vector<16x32xf32>
    %716 = tpu.matmul %672, %715, %cst_749 {dimension_numbers = #tpu.dot_dimension_numbers<[1], [0], [0], [1], [0, 0, 1, 1], [], []>} : vector<16x4xf32>, vector<4x32xf32>, vector<16x32xf32> -> vector<16x32xf32>
    %717 = arith.addf %705, %716 : vector<16x32xf32>
    %c0_750 = arith.constant 0 : index
    %c2_751 = arith.constant 2 : index
    %c0_752 = arith.constant 0 : index
    %c0_753 = arith.constant 0 : index
    %718 = vector.load %arg4[%c0_750, %c2_751, %c0_752, %c0_753] : memref<2x3x32x32xf32, #tpu.memory_space<vmem>>, vector<1x1x32x32xf32>
    %719 = vector.shape_cast %718 : vector<1x1x32x32xf32> to vector<32x32xf32>
    %cst_754 = arith.constant dense<0.000000e+00> : vector<16x32xf32>
    %720 = tpu.matmul %675, %719, %cst_754 {dimension_numbers = #tpu.dot_dimension_numbers<[1], [0], [0], [1], [0, 0, 1, 1], [], []>} : vector<16x32xf32>, vector<32x32xf32>, vector<16x32xf32> -> vector<16x32xf32>
    %721 = arith.addf %717, %720 : vector<16x32xf32>
    %c0_755 = arith.constant 0 : index
    %c2_756 = arith.constant 2 : index
    %c0_757 = arith.constant 0 : index
    %c0_758 = arith.constant 0 : index
    %722 = vector.load %arg5[%c0_755, %c2_756, %c0_757, %c0_758] : memref<2x3x4x32xf32, #tpu.memory_space<vmem>>, vector<1x1x4x32xf32>
    %723 = vector.shape_cast %722 : vector<1x1x4x32xf32> to vector<4x32xf32>
    %cst_759 = arith.constant dense<0.000000e+00> : vector<16x32xf32>
    %724 = tpu.matmul %672, %723, %cst_759 {dimension_numbers = #tpu.dot_dimension_numbers<[1], [0], [0], [1], [0, 0, 1, 1], [], []>} : vector<16x4xf32>, vector<4x32xf32>, vector<16x32xf32> -> vector<16x32xf32>
    %725 = arith.addf %713, %724 : vector<16x32xf32>
    %c0_760 = arith.constant 0 : index
    %c2_761 = arith.constant 2 : index
    %c0_762 = arith.constant 0 : index
    %c0_763 = arith.constant 0 : index
    %726 = vector.load %arg6[%c0_760, %c2_761, %c0_762, %c0_763] : memref<2x3x32x32xf32, #tpu.memory_space<vmem>>, vector<1x1x32x32xf32>
    %727 = vector.shape_cast %726 : vector<1x1x32x32xf32> to vector<32x32xf32>
    %cst_764 = arith.constant dense<0.000000e+00> : vector<16x32xf32>
    %728 = tpu.matmul %675, %727, %cst_764 {dimension_numbers = #tpu.dot_dimension_numbers<[1], [0], [0], [1], [0, 0, 1, 1], [], []>} : vector<16x32xf32>, vector<32x32xf32>, vector<16x32xf32> -> vector<16x32xf32>
    %729 = arith.addf %725, %728 : vector<16x32xf32>
    %730 = arith.negf %721 : vector<16x32xf32>
    %731 = math.exp %730 : vector<16x32xf32>
    %cst_765 = arith.constant 1.000000e+00 : f32
    %732 = vector.broadcast %cst_765 : f32 to vector<16x32xf32>
    %733 = arith.addf %732, %731 : vector<16x32xf32>
    %734 = arith.divf %732, %733 : vector<16x32xf32>
    %735 = arith.negf %729 : vector<16x32xf32>
    %736 = math.exp %735 : vector<16x32xf32>
    %cst_766 = arith.constant 1.000000e+00 : f32
    %737 = vector.broadcast %cst_766 : f32 to vector<16x32xf32>
    %738 = arith.addf %737, %736 : vector<16x32xf32>
    %739 = arith.divf %737, %738 : vector<16x32xf32>
    %740 = arith.mulf %739, %666 : vector<16x32xf32>
    %c0_767 = arith.constant 0 : index
    %c0_768 = arith.constant 0 : index
    %c0_769 = arith.constant 0 : index
    %741 = vector.load %arg11[%c0_767, %c0_768, %c0_769] : memref<2x1x32xf32, #tpu.memory_space<vmem>>, vector<1x1x32xf32>
    %742 = vector.shape_cast %741 : vector<1x1x32xf32> to vector<1x32xf32>
    %cst_770 = arith.constant dense<0.000000e+00> : vector<16x32xf32>
    %743 = tpu.matmul %1, %740, %cst_770 {dimension_numbers = #tpu.dot_dimension_numbers<[1], [0], [0], [1], [0, 0, 1, 1], [], []>} : vector<16x16xf32>, vector<16x32xf32>, vector<16x32xf32> -> vector<16x32xf32>
    %c0_771 = arith.constant 0 : index
    %c0_772 = arith.constant 0 : index
    %c0_773 = arith.constant 0 : index
    %c0_774 = arith.constant 0 : index
    %744 = vector.load %arg7[%c0_771, %c0_772, %c0_773, %c0_774] : memref<2x3x4x32xf32, #tpu.memory_space<vmem>>, vector<1x1x4x32xf32>
    %745 = vector.shape_cast %744 : vector<1x1x4x32xf32> to vector<4x32xf32>
    %cst_775 = arith.constant dense<0.000000e+00> : vector<16x32xf32>
    %746 = tpu.matmul %670, %745, %cst_775 {dimension_numbers = #tpu.dot_dimension_numbers<[1], [0], [0], [1], [0, 0, 1, 1], [], []>} : vector<16x4xf32>, vector<4x32xf32>, vector<16x32xf32> -> vector<16x32xf32>
    %747 = vector.broadcast %742 : vector<1x32xf32> to vector<16x32xf32>
    %748 = arith.addf %747, %746 : vector<16x32xf32>
    %c0_776 = arith.constant 0 : index
    %c0_777 = arith.constant 0 : index
    %c0_778 = arith.constant 0 : index
    %c0_779 = arith.constant 0 : index
    %749 = vector.load %arg8[%c0_776, %c0_777, %c0_778, %c0_779] : memref<2x3x32x32xf32, #tpu.memory_space<vmem>>, vector<1x1x32x32xf32>
    %750 = vector.shape_cast %749 : vector<1x1x32x32xf32> to vector<32x32xf32>
    %cst_780 = arith.constant dense<0.000000e+00> : vector<16x32xf32>
    %751 = tpu.matmul %743, %750, %cst_780 {dimension_numbers = #tpu.dot_dimension_numbers<[1], [0], [0], [1], [0, 0, 1, 1], [], []>} : vector<16x32xf32>, vector<32x32xf32>, vector<16x32xf32> -> vector<16x32xf32>
    %752 = arith.addf %748, %751 : vector<16x32xf32>
    %cst_781 = arith.constant dense<0.000000e+00> : vector<16x32xf32>
    %753 = tpu.matmul %3, %740, %cst_781 {dimension_numbers = #tpu.dot_dimension_numbers<[1], [0], [0], [1], [0, 0, 1, 1], [], []>} : vector<16x16xf32>, vector<16x32xf32>, vector<16x32xf32> -> vector<16x32xf32>
    %c0_782 = arith.constant 0 : index
    %c1_783 = arith.constant 1 : index
    %c0_784 = arith.constant 0 : index
    %c0_785 = arith.constant 0 : index
    %754 = vector.load %arg7[%c0_782, %c1_783, %c0_784, %c0_785] : memref<2x3x4x32xf32, #tpu.memory_space<vmem>>, vector<1x1x4x32xf32>
    %755 = vector.shape_cast %754 : vector<1x1x4x32xf32> to vector<4x32xf32>
    %cst_786 = arith.constant dense<0.000000e+00> : vector<16x32xf32>
    %756 = tpu.matmul %671, %755, %cst_786 {dimension_numbers = #tpu.dot_dimension_numbers<[1], [0], [0], [1], [0, 0, 1, 1], [], []>} : vector<16x4xf32>, vector<4x32xf32>, vector<16x32xf32> -> vector<16x32xf32>
    %757 = arith.addf %752, %756 : vector<16x32xf32>
    %c0_787 = arith.constant 0 : index
    %c1_788 = arith.constant 1 : index
    %c0_789 = arith.constant 0 : index
    %c0_790 = arith.constant 0 : index
    %758 = vector.load %arg8[%c0_787, %c1_788, %c0_789, %c0_790] : memref<2x3x32x32xf32, #tpu.memory_space<vmem>>, vector<1x1x32x32xf32>
    %759 = vector.shape_cast %758 : vector<1x1x32x32xf32> to vector<32x32xf32>
    %cst_791 = arith.constant dense<0.000000e+00> : vector<16x32xf32>
    %760 = tpu.matmul %753, %759, %cst_791 {dimension_numbers = #tpu.dot_dimension_numbers<[1], [0], [0], [1], [0, 0, 1, 1], [], []>} : vector<16x32xf32>, vector<32x32xf32>, vector<16x32xf32> -> vector<16x32xf32>
    %761 = arith.addf %757, %760 : vector<16x32xf32>
    %cst_792 = arith.constant dense<0.000000e+00> : vector<16x32xf32>
    %762 = tpu.matmul %5, %740, %cst_792 {dimension_numbers = #tpu.dot_dimension_numbers<[1], [0], [0], [1], [0, 0, 1, 1], [], []>} : vector<16x16xf32>, vector<16x32xf32>, vector<16x32xf32> -> vector<16x32xf32>
    %c0_793 = arith.constant 0 : index
    %c2_794 = arith.constant 2 : index
    %c0_795 = arith.constant 0 : index
    %c0_796 = arith.constant 0 : index
    %763 = vector.load %arg7[%c0_793, %c2_794, %c0_795, %c0_796] : memref<2x3x4x32xf32, #tpu.memory_space<vmem>>, vector<1x1x4x32xf32>
    %764 = vector.shape_cast %763 : vector<1x1x4x32xf32> to vector<4x32xf32>
    %cst_797 = arith.constant dense<0.000000e+00> : vector<16x32xf32>
    %765 = tpu.matmul %672, %764, %cst_797 {dimension_numbers = #tpu.dot_dimension_numbers<[1], [0], [0], [1], [0, 0, 1, 1], [], []>} : vector<16x4xf32>, vector<4x32xf32>, vector<16x32xf32> -> vector<16x32xf32>
    %766 = arith.addf %761, %765 : vector<16x32xf32>
    %c0_798 = arith.constant 0 : index
    %c2_799 = arith.constant 2 : index
    %c0_800 = arith.constant 0 : index
    %c0_801 = arith.constant 0 : index
    %767 = vector.load %arg8[%c0_798, %c2_799, %c0_800, %c0_801] : memref<2x3x32x32xf32, #tpu.memory_space<vmem>>, vector<1x1x32x32xf32>
    %768 = vector.shape_cast %767 : vector<1x1x32x32xf32> to vector<32x32xf32>
    %cst_802 = arith.constant dense<0.000000e+00> : vector<16x32xf32>
    %769 = tpu.matmul %762, %768, %cst_802 {dimension_numbers = #tpu.dot_dimension_numbers<[1], [0], [0], [1], [0, 0, 1, 1], [], []>} : vector<16x32xf32>, vector<32x32xf32>, vector<16x32xf32> -> vector<16x32xf32>
    %770 = arith.addf %766, %769 : vector<16x32xf32>
    %771 = math.tanh %770 : vector<16x32xf32>
    %cst_803 = arith.constant 1.000000e+00 : f32
    %772 = vector.broadcast %cst_803 : f32 to vector<16x32xf32>
    %773 = arith.subf %772, %734 : vector<16x32xf32>
    %774 = arith.mulf %773, %666 : vector<16x32xf32>
    %775 = arith.mulf %734, %771 : vector<16x32xf32>
    %776 = arith.addf %774, %775 : vector<16x32xf32>
    %c7_i32 = arith.constant 7 : i32
    %c0_804 = arith.constant 0 : index
    %777 = arith.index_cast %c7_i32 : i32 to index
    %c0_805 = arith.constant 0 : index
    %c0_806 = arith.constant 0 : index
    %778 = vector.load %arg1[%c0_804, %777, %c0_805, %c0_806] : memref<1x8x16x4xf32, #tpu.memory_space<vmem>>, vector<1x1x16x4xf32>
    %779 = vector.shape_cast %778 : vector<1x1x16x4xf32> to vector<16x4xf32>
    %cst_807 = arith.constant dense<0.000000e+00> : vector<16x4xf32>
    %780 = tpu.matmul %1, %779, %cst_807 {dimension_numbers = #tpu.dot_dimension_numbers<[1], [0], [0], [1], [0, 0, 1, 1], [], []>} : vector<16x16xf32>, vector<16x4xf32>, vector<16x4xf32> -> vector<16x4xf32>
    %cst_808 = arith.constant dense<0.000000e+00> : vector<16x4xf32>
    %781 = tpu.matmul %3, %779, %cst_808 {dimension_numbers = #tpu.dot_dimension_numbers<[1], [0], [0], [1], [0, 0, 1, 1], [], []>} : vector<16x16xf32>, vector<16x4xf32>, vector<16x4xf32> -> vector<16x4xf32>
    %cst_809 = arith.constant dense<0.000000e+00> : vector<16x4xf32>
    %782 = tpu.matmul %5, %779, %cst_809 {dimension_numbers = #tpu.dot_dimension_numbers<[1], [0], [0], [1], [0, 0, 1, 1], [], []>} : vector<16x16xf32>, vector<16x4xf32>, vector<16x4xf32> -> vector<16x4xf32>
    %cst_810 = arith.constant dense<0.000000e+00> : vector<16x32xf32>
    %783 = tpu.matmul %1, %776, %cst_810 {dimension_numbers = #tpu.dot_dimension_numbers<[1], [0], [0], [1], [0, 0, 1, 1], [], []>} : vector<16x16xf32>, vector<16x32xf32>, vector<16x32xf32> -> vector<16x32xf32>
    %cst_811 = arith.constant dense<0.000000e+00> : vector<16x32xf32>
    %784 = tpu.matmul %3, %776, %cst_811 {dimension_numbers = #tpu.dot_dimension_numbers<[1], [0], [0], [1], [0, 0, 1, 1], [], []>} : vector<16x16xf32>, vector<16x32xf32>, vector<16x32xf32> -> vector<16x32xf32>
    %cst_812 = arith.constant dense<0.000000e+00> : vector<16x32xf32>
    %785 = tpu.matmul %5, %776, %cst_812 {dimension_numbers = #tpu.dot_dimension_numbers<[1], [0], [0], [1], [0, 0, 1, 1], [], []>} : vector<16x16xf32>, vector<16x32xf32>, vector<16x32xf32> -> vector<16x32xf32>
    %c0_813 = arith.constant 0 : index
    %c0_814 = arith.constant 0 : index
    %c0_815 = arith.constant 0 : index
    %786 = vector.load %arg9[%c0_813, %c0_814, %c0_815] : memref<2x1x32xf32, #tpu.memory_space<vmem>>, vector<1x1x32xf32>
    %787 = vector.shape_cast %786 : vector<1x1x32xf32> to vector<1x32xf32>
    %c0_816 = arith.constant 0 : index
    %c0_817 = arith.constant 0 : index
    %c0_818 = arith.constant 0 : index
    %788 = vector.load %arg10[%c0_816, %c0_817, %c0_818] : memref<2x1x32xf32, #tpu.memory_space<vmem>>, vector<1x1x32xf32>
    %789 = vector.shape_cast %788 : vector<1x1x32xf32> to vector<1x32xf32>
    %c0_819 = arith.constant 0 : index
    %c0_820 = arith.constant 0 : index
    %c0_821 = arith.constant 0 : index
    %c0_822 = arith.constant 0 : index
    %790 = vector.load %arg3[%c0_819, %c0_820, %c0_821, %c0_822] : memref<2x3x4x32xf32, #tpu.memory_space<vmem>>, vector<1x1x4x32xf32>
    %791 = vector.shape_cast %790 : vector<1x1x4x32xf32> to vector<4x32xf32>
    %cst_823 = arith.constant dense<0.000000e+00> : vector<16x32xf32>
    %792 = tpu.matmul %780, %791, %cst_823 {dimension_numbers = #tpu.dot_dimension_numbers<[1], [0], [0], [1], [0, 0, 1, 1], [], []>} : vector<16x4xf32>, vector<4x32xf32>, vector<16x32xf32> -> vector<16x32xf32>
    %793 = vector.broadcast %787 : vector<1x32xf32> to vector<16x32xf32>
    %794 = arith.addf %793, %792 : vector<16x32xf32>
    %c0_824 = arith.constant 0 : index
    %c0_825 = arith.constant 0 : index
    %c0_826 = arith.constant 0 : index
    %c0_827 = arith.constant 0 : index
    %795 = vector.load %arg4[%c0_824, %c0_825, %c0_826, %c0_827] : memref<2x3x32x32xf32, #tpu.memory_space<vmem>>, vector<1x1x32x32xf32>
    %796 = vector.shape_cast %795 : vector<1x1x32x32xf32> to vector<32x32xf32>
    %cst_828 = arith.constant dense<0.000000e+00> : vector<16x32xf32>
    %797 = tpu.matmul %783, %796, %cst_828 {dimension_numbers = #tpu.dot_dimension_numbers<[1], [0], [0], [1], [0, 0, 1, 1], [], []>} : vector<16x32xf32>, vector<32x32xf32>, vector<16x32xf32> -> vector<16x32xf32>
    %798 = arith.addf %794, %797 : vector<16x32xf32>
    %c0_829 = arith.constant 0 : index
    %c0_830 = arith.constant 0 : index
    %c0_831 = arith.constant 0 : index
    %c0_832 = arith.constant 0 : index
    %799 = vector.load %arg5[%c0_829, %c0_830, %c0_831, %c0_832] : memref<2x3x4x32xf32, #tpu.memory_space<vmem>>, vector<1x1x4x32xf32>
    %800 = vector.shape_cast %799 : vector<1x1x4x32xf32> to vector<4x32xf32>
    %cst_833 = arith.constant dense<0.000000e+00> : vector<16x32xf32>
    %801 = tpu.matmul %780, %800, %cst_833 {dimension_numbers = #tpu.dot_dimension_numbers<[1], [0], [0], [1], [0, 0, 1, 1], [], []>} : vector<16x4xf32>, vector<4x32xf32>, vector<16x32xf32> -> vector<16x32xf32>
    %802 = vector.broadcast %789 : vector<1x32xf32> to vector<16x32xf32>
    %803 = arith.addf %802, %801 : vector<16x32xf32>
    %c0_834 = arith.constant 0 : index
    %c0_835 = arith.constant 0 : index
    %c0_836 = arith.constant 0 : index
    %c0_837 = arith.constant 0 : index
    %804 = vector.load %arg6[%c0_834, %c0_835, %c0_836, %c0_837] : memref<2x3x32x32xf32, #tpu.memory_space<vmem>>, vector<1x1x32x32xf32>
    %805 = vector.shape_cast %804 : vector<1x1x32x32xf32> to vector<32x32xf32>
    %cst_838 = arith.constant dense<0.000000e+00> : vector<16x32xf32>
    %806 = tpu.matmul %783, %805, %cst_838 {dimension_numbers = #tpu.dot_dimension_numbers<[1], [0], [0], [1], [0, 0, 1, 1], [], []>} : vector<16x32xf32>, vector<32x32xf32>, vector<16x32xf32> -> vector<16x32xf32>
    %807 = arith.addf %803, %806 : vector<16x32xf32>
    %c0_839 = arith.constant 0 : index
    %c1_840 = arith.constant 1 : index
    %c0_841 = arith.constant 0 : index
    %c0_842 = arith.constant 0 : index
    %808 = vector.load %arg3[%c0_839, %c1_840, %c0_841, %c0_842] : memref<2x3x4x32xf32, #tpu.memory_space<vmem>>, vector<1x1x4x32xf32>
    %809 = vector.shape_cast %808 : vector<1x1x4x32xf32> to vector<4x32xf32>
    %cst_843 = arith.constant dense<0.000000e+00> : vector<16x32xf32>
    %810 = tpu.matmul %781, %809, %cst_843 {dimension_numbers = #tpu.dot_dimension_numbers<[1], [0], [0], [1], [0, 0, 1, 1], [], []>} : vector<16x4xf32>, vector<4x32xf32>, vector<16x32xf32> -> vector<16x32xf32>
    %811 = arith.addf %798, %810 : vector<16x32xf32>
    %c0_844 = arith.constant 0 : index
    %c1_845 = arith.constant 1 : index
    %c0_846 = arith.constant 0 : index
    %c0_847 = arith.constant 0 : index
    %812 = vector.load %arg4[%c0_844, %c1_845, %c0_846, %c0_847] : memref<2x3x32x32xf32, #tpu.memory_space<vmem>>, vector<1x1x32x32xf32>
    %813 = vector.shape_cast %812 : vector<1x1x32x32xf32> to vector<32x32xf32>
    %cst_848 = arith.constant dense<0.000000e+00> : vector<16x32xf32>
    %814 = tpu.matmul %784, %813, %cst_848 {dimension_numbers = #tpu.dot_dimension_numbers<[1], [0], [0], [1], [0, 0, 1, 1], [], []>} : vector<16x32xf32>, vector<32x32xf32>, vector<16x32xf32> -> vector<16x32xf32>
    %815 = arith.addf %811, %814 : vector<16x32xf32>
    %c0_849 = arith.constant 0 : index
    %c1_850 = arith.constant 1 : index
    %c0_851 = arith.constant 0 : index
    %c0_852 = arith.constant 0 : index
    %816 = vector.load %arg5[%c0_849, %c1_850, %c0_851, %c0_852] : memref<2x3x4x32xf32, #tpu.memory_space<vmem>>, vector<1x1x4x32xf32>
    %817 = vector.shape_cast %816 : vector<1x1x4x32xf32> to vector<4x32xf32>
    %cst_853 = arith.constant dense<0.000000e+00> : vector<16x32xf32>
    %818 = tpu.matmul %781, %817, %cst_853 {dimension_numbers = #tpu.dot_dimension_numbers<[1], [0], [0], [1], [0, 0, 1, 1], [], []>} : vector<16x4xf32>, vector<4x32xf32>, vector<16x32xf32> -> vector<16x32xf32>
    %819 = arith.addf %807, %818 : vector<16x32xf32>
    %c0_854 = arith.constant 0 : index
    %c1_855 = arith.constant 1 : index
    %c0_856 = arith.constant 0 : index
    %c0_857 = arith.constant 0 : index
    %820 = vector.load %arg6[%c0_854, %c1_855, %c0_856, %c0_857] : memref<2x3x32x32xf32, #tpu.memory_space<vmem>>, vector<1x1x32x32xf32>
    %821 = vector.shape_cast %820 : vector<1x1x32x32xf32> to vector<32x32xf32>
    %cst_858 = arith.constant dense<0.000000e+00> : vector<16x32xf32>
    %822 = tpu.matmul %784, %821, %cst_858 {dimension_numbers = #tpu.dot_dimension_numbers<[1], [0], [0], [1], [0, 0, 1, 1], [], []>} : vector<16x32xf32>, vector<32x32xf32>, vector<16x32xf32> -> vector<16x32xf32>
    %823 = arith.addf %819, %822 : vector<16x32xf32>
    %c0_859 = arith.constant 0 : index
    %c2_860 = arith.constant 2 : index
    %c0_861 = arith.constant 0 : index
    %c0_862 = arith.constant 0 : index
    %824 = vector.load %arg3[%c0_859, %c2_860, %c0_861, %c0_862] : memref<2x3x4x32xf32, #tpu.memory_space<vmem>>, vector<1x1x4x32xf32>
    %825 = vector.shape_cast %824 : vector<1x1x4x32xf32> to vector<4x32xf32>
    %cst_863 = arith.constant dense<0.000000e+00> : vector<16x32xf32>
    %826 = tpu.matmul %782, %825, %cst_863 {dimension_numbers = #tpu.dot_dimension_numbers<[1], [0], [0], [1], [0, 0, 1, 1], [], []>} : vector<16x4xf32>, vector<4x32xf32>, vector<16x32xf32> -> vector<16x32xf32>
    %827 = arith.addf %815, %826 : vector<16x32xf32>
    %c0_864 = arith.constant 0 : index
    %c2_865 = arith.constant 2 : index
    %c0_866 = arith.constant 0 : index
    %c0_867 = arith.constant 0 : index
    %828 = vector.load %arg4[%c0_864, %c2_865, %c0_866, %c0_867] : memref<2x3x32x32xf32, #tpu.memory_space<vmem>>, vector<1x1x32x32xf32>
    %829 = vector.shape_cast %828 : vector<1x1x32x32xf32> to vector<32x32xf32>
    %cst_868 = arith.constant dense<0.000000e+00> : vector<16x32xf32>
    %830 = tpu.matmul %785, %829, %cst_868 {dimension_numbers = #tpu.dot_dimension_numbers<[1], [0], [0], [1], [0, 0, 1, 1], [], []>} : vector<16x32xf32>, vector<32x32xf32>, vector<16x32xf32> -> vector<16x32xf32>
    %831 = arith.addf %827, %830 : vector<16x32xf32>
    %c0_869 = arith.constant 0 : index
    %c2_870 = arith.constant 2 : index
    %c0_871 = arith.constant 0 : index
    %c0_872 = arith.constant 0 : index
    %832 = vector.load %arg5[%c0_869, %c2_870, %c0_871, %c0_872] : memref<2x3x4x32xf32, #tpu.memory_space<vmem>>, vector<1x1x4x32xf32>
    %833 = vector.shape_cast %832 : vector<1x1x4x32xf32> to vector<4x32xf32>
    %cst_873 = arith.constant dense<0.000000e+00> : vector<16x32xf32>
    %834 = tpu.matmul %782, %833, %cst_873 {dimension_numbers = #tpu.dot_dimension_numbers<[1], [0], [0], [1], [0, 0, 1, 1], [], []>} : vector<16x4xf32>, vector<4x32xf32>, vector<16x32xf32> -> vector<16x32xf32>
    %835 = arith.addf %823, %834 : vector<16x32xf32>
    %c0_874 = arith.constant 0 : index
    %c2_875 = arith.constant 2 : index
    %c0_876 = arith.constant 0 : index
    %c0_877 = arith.constant 0 : index
    %836 = vector.load %arg6[%c0_874, %c2_875, %c0_876, %c0_877] : memref<2x3x32x32xf32, #tpu.memory_space<vmem>>, vector<1x1x32x32xf32>
    %837 = vector.shape_cast %836 : vector<1x1x32x32xf32> to vector<32x32xf32>
    %cst_878 = arith.constant dense<0.000000e+00> : vector<16x32xf32>
    %838 = tpu.matmul %785, %837, %cst_878 {dimension_numbers = #tpu.dot_dimension_numbers<[1], [0], [0], [1], [0, 0, 1, 1], [], []>} : vector<16x32xf32>, vector<32x32xf32>, vector<16x32xf32> -> vector<16x32xf32>
    %839 = arith.addf %835, %838 : vector<16x32xf32>
    %840 = arith.negf %831 : vector<16x32xf32>
    %841 = math.exp %840 : vector<16x32xf32>
    %cst_879 = arith.constant 1.000000e+00 : f32
    %842 = vector.broadcast %cst_879 : f32 to vector<16x32xf32>
    %843 = arith.addf %842, %841 : vector<16x32xf32>
    %844 = arith.divf %842, %843 : vector<16x32xf32>
    %845 = arith.negf %839 : vector<16x32xf32>
    %846 = math.exp %845 : vector<16x32xf32>
    %cst_880 = arith.constant 1.000000e+00 : f32
    %847 = vector.broadcast %cst_880 : f32 to vector<16x32xf32>
    %848 = arith.addf %847, %846 : vector<16x32xf32>
    %849 = arith.divf %847, %848 : vector<16x32xf32>
    %850 = arith.mulf %849, %776 : vector<16x32xf32>
    %c0_881 = arith.constant 0 : index
    %c0_882 = arith.constant 0 : index
    %c0_883 = arith.constant 0 : index
    %851 = vector.load %arg11[%c0_881, %c0_882, %c0_883] : memref<2x1x32xf32, #tpu.memory_space<vmem>>, vector<1x1x32xf32>
    %852 = vector.shape_cast %851 : vector<1x1x32xf32> to vector<1x32xf32>
    %cst_884 = arith.constant dense<0.000000e+00> : vector<16x32xf32>
    %853 = tpu.matmul %1, %850, %cst_884 {dimension_numbers = #tpu.dot_dimension_numbers<[1], [0], [0], [1], [0, 0, 1, 1], [], []>} : vector<16x16xf32>, vector<16x32xf32>, vector<16x32xf32> -> vector<16x32xf32>
    %c0_885 = arith.constant 0 : index
    %c0_886 = arith.constant 0 : index
    %c0_887 = arith.constant 0 : index
    %c0_888 = arith.constant 0 : index
    %854 = vector.load %arg7[%c0_885, %c0_886, %c0_887, %c0_888] : memref<2x3x4x32xf32, #tpu.memory_space<vmem>>, vector<1x1x4x32xf32>
    %855 = vector.shape_cast %854 : vector<1x1x4x32xf32> to vector<4x32xf32>
    %cst_889 = arith.constant dense<0.000000e+00> : vector<16x32xf32>
    %856 = tpu.matmul %780, %855, %cst_889 {dimension_numbers = #tpu.dot_dimension_numbers<[1], [0], [0], [1], [0, 0, 1, 1], [], []>} : vector<16x4xf32>, vector<4x32xf32>, vector<16x32xf32> -> vector<16x32xf32>
    %857 = vector.broadcast %852 : vector<1x32xf32> to vector<16x32xf32>
    %858 = arith.addf %857, %856 : vector<16x32xf32>
    %c0_890 = arith.constant 0 : index
    %c0_891 = arith.constant 0 : index
    %c0_892 = arith.constant 0 : index
    %c0_893 = arith.constant 0 : index
    %859 = vector.load %arg8[%c0_890, %c0_891, %c0_892, %c0_893] : memref<2x3x32x32xf32, #tpu.memory_space<vmem>>, vector<1x1x32x32xf32>
    %860 = vector.shape_cast %859 : vector<1x1x32x32xf32> to vector<32x32xf32>
    %cst_894 = arith.constant dense<0.000000e+00> : vector<16x32xf32>
    %861 = tpu.matmul %853, %860, %cst_894 {dimension_numbers = #tpu.dot_dimension_numbers<[1], [0], [0], [1], [0, 0, 1, 1], [], []>} : vector<16x32xf32>, vector<32x32xf32>, vector<16x32xf32> -> vector<16x32xf32>
    %862 = arith.addf %858, %861 : vector<16x32xf32>
    %cst_895 = arith.constant dense<0.000000e+00> : vector<16x32xf32>
    %863 = tpu.matmul %3, %850, %cst_895 {dimension_numbers = #tpu.dot_dimension_numbers<[1], [0], [0], [1], [0, 0, 1, 1], [], []>} : vector<16x16xf32>, vector<16x32xf32>, vector<16x32xf32> -> vector<16x32xf32>
    %c0_896 = arith.constant 0 : index
    %c1_897 = arith.constant 1 : index
    %c0_898 = arith.constant 0 : index
    %c0_899 = arith.constant 0 : index
    %864 = vector.load %arg7[%c0_896, %c1_897, %c0_898, %c0_899] : memref<2x3x4x32xf32, #tpu.memory_space<vmem>>, vector<1x1x4x32xf32>
    %865 = vector.shape_cast %864 : vector<1x1x4x32xf32> to vector<4x32xf32>
    %cst_900 = arith.constant dense<0.000000e+00> : vector<16x32xf32>
    %866 = tpu.matmul %781, %865, %cst_900 {dimension_numbers = #tpu.dot_dimension_numbers<[1], [0], [0], [1], [0, 0, 1, 1], [], []>} : vector<16x4xf32>, vector<4x32xf32>, vector<16x32xf32> -> vector<16x32xf32>
    %867 = arith.addf %862, %866 : vector<16x32xf32>
    %c0_901 = arith.constant 0 : index
    %c1_902 = arith.constant 1 : index
    %c0_903 = arith.constant 0 : index
    %c0_904 = arith.constant 0 : index
    %868 = vector.load %arg8[%c0_901, %c1_902, %c0_903, %c0_904] : memref<2x3x32x32xf32, #tpu.memory_space<vmem>>, vector<1x1x32x32xf32>
    %869 = vector.shape_cast %868 : vector<1x1x32x32xf32> to vector<32x32xf32>
    %cst_905 = arith.constant dense<0.000000e+00> : vector<16x32xf32>
    %870 = tpu.matmul %863, %869, %cst_905 {dimension_numbers = #tpu.dot_dimension_numbers<[1], [0], [0], [1], [0, 0, 1, 1], [], []>} : vector<16x32xf32>, vector<32x32xf32>, vector<16x32xf32> -> vector<16x32xf32>
    %871 = arith.addf %867, %870 : vector<16x32xf32>
    %cst_906 = arith.constant dense<0.000000e+00> : vector<16x32xf32>
    %872 = tpu.matmul %5, %850, %cst_906 {dimension_numbers = #tpu.dot_dimension_numbers<[1], [0], [0], [1], [0, 0, 1, 1], [], []>} : vector<16x16xf32>, vector<16x32xf32>, vector<16x32xf32> -> vector<16x32xf32>
    %c0_907 = arith.constant 0 : index
    %c2_908 = arith.constant 2 : index
    %c0_909 = arith.constant 0 : index
    %c0_910 = arith.constant 0 : index
    %873 = vector.load %arg7[%c0_907, %c2_908, %c0_909, %c0_910] : memref<2x3x4x32xf32, #tpu.memory_space<vmem>>, vector<1x1x4x32xf32>
    %874 = vector.shape_cast %873 : vector<1x1x4x32xf32> to vector<4x32xf32>
    %cst_911 = arith.constant dense<0.000000e+00> : vector<16x32xf32>
    %875 = tpu.matmul %782, %874, %cst_911 {dimension_numbers = #tpu.dot_dimension_numbers<[1], [0], [0], [1], [0, 0, 1, 1], [], []>} : vector<16x4xf32>, vector<4x32xf32>, vector<16x32xf32> -> vector<16x32xf32>
    %876 = arith.addf %871, %875 : vector<16x32xf32>
    %c0_912 = arith.constant 0 : index
    %c2_913 = arith.constant 2 : index
    %c0_914 = arith.constant 0 : index
    %c0_915 = arith.constant 0 : index
    %877 = vector.load %arg8[%c0_912, %c2_913, %c0_914, %c0_915] : memref<2x3x32x32xf32, #tpu.memory_space<vmem>>, vector<1x1x32x32xf32>
    %878 = vector.shape_cast %877 : vector<1x1x32x32xf32> to vector<32x32xf32>
    %cst_916 = arith.constant dense<0.000000e+00> : vector<16x32xf32>
    %879 = tpu.matmul %872, %878, %cst_916 {dimension_numbers = #tpu.dot_dimension_numbers<[1], [0], [0], [1], [0, 0, 1, 1], [], []>} : vector<16x32xf32>, vector<32x32xf32>, vector<16x32xf32> -> vector<16x32xf32>
    %880 = arith.addf %876, %879 : vector<16x32xf32>
    %881 = math.tanh %880 : vector<16x32xf32>
    %cst_917 = arith.constant 1.000000e+00 : f32
    %882 = vector.broadcast %cst_917 : f32 to vector<16x32xf32>
    %883 = arith.subf %882, %844 : vector<16x32xf32>
    %884 = arith.mulf %883, %776 : vector<16x32xf32>
    %885 = arith.mulf %844, %881 : vector<16x32xf32>
    %886 = arith.addf %884, %885 : vector<16x32xf32>
    %c8_i32 = arith.constant 8 : i32
    %cst_918 = arith.constant 0.000000e+00 : f32
    %887 = vector.broadcast %cst_918 : f32 to vector<16x4xf32>
    %c0_i32_919 = arith.constant 0 : i32
    %cst_920 = arith.constant dense<0.000000e+00> : vector<16x4xf32>
    %888 = tpu.matmul %1, %887, %cst_920 {dimension_numbers = #tpu.dot_dimension_numbers<[1], [0], [0], [1], [0, 0, 1, 1], [], []>} : vector<16x16xf32>, vector<16x4xf32>, vector<16x4xf32> -> vector<16x4xf32>
    %cst_921 = arith.constant dense<0.000000e+00> : vector<16x4xf32>
    %889 = tpu.matmul %3, %887, %cst_921 {dimension_numbers = #tpu.dot_dimension_numbers<[1], [0], [0], [1], [0, 0, 1, 1], [], []>} : vector<16x16xf32>, vector<16x4xf32>, vector<16x4xf32> -> vector<16x4xf32>
    %cst_922 = arith.constant dense<0.000000e+00> : vector<16x4xf32>
    %890 = tpu.matmul %5, %887, %cst_922 {dimension_numbers = #tpu.dot_dimension_numbers<[1], [0], [0], [1], [0, 0, 1, 1], [], []>} : vector<16x16xf32>, vector<16x4xf32>, vector<16x4xf32> -> vector<16x4xf32>
    %cst_923 = arith.constant dense<0.000000e+00> : vector<16x32xf32>
    %891 = tpu.matmul %1, %886, %cst_923 {dimension_numbers = #tpu.dot_dimension_numbers<[1], [0], [0], [1], [0, 0, 1, 1], [], []>} : vector<16x16xf32>, vector<16x32xf32>, vector<16x32xf32> -> vector<16x32xf32>
    %cst_924 = arith.constant dense<0.000000e+00> : vector<16x32xf32>
    %892 = tpu.matmul %3, %886, %cst_924 {dimension_numbers = #tpu.dot_dimension_numbers<[1], [0], [0], [1], [0, 0, 1, 1], [], []>} : vector<16x16xf32>, vector<16x32xf32>, vector<16x32xf32> -> vector<16x32xf32>
    %cst_925 = arith.constant dense<0.000000e+00> : vector<16x32xf32>
    %893 = tpu.matmul %5, %886, %cst_925 {dimension_numbers = #tpu.dot_dimension_numbers<[1], [0], [0], [1], [0, 0, 1, 1], [], []>} : vector<16x16xf32>, vector<16x32xf32>, vector<16x32xf32> -> vector<16x32xf32>
    %c1_926 = arith.constant 1 : index
    %c0_927 = arith.constant 0 : index
    %c0_928 = arith.constant 0 : index
    %894 = vector.load %arg9[%c1_926, %c0_927, %c0_928] : memref<2x1x32xf32, #tpu.memory_space<vmem>>, vector<1x1x32xf32>
    %895 = vector.shape_cast %894 : vector<1x1x32xf32> to vector<1x32xf32>
    %c1_929 = arith.constant 1 : index
    %c0_930 = arith.constant 0 : index
    %c0_931 = arith.constant 0 : index
    %896 = vector.load %arg10[%c1_929, %c0_930, %c0_931] : memref<2x1x32xf32, #tpu.memory_space<vmem>>, vector<1x1x32xf32>
    %897 = vector.shape_cast %896 : vector<1x1x32xf32> to vector<1x32xf32>
    %c1_932 = arith.constant 1 : index
    %c0_933 = arith.constant 0 : index
    %c0_934 = arith.constant 0 : index
    %c0_935 = arith.constant 0 : index
    %898 = vector.load %arg3[%c1_932, %c0_933, %c0_934, %c0_935] : memref<2x3x4x32xf32, #tpu.memory_space<vmem>>, vector<1x1x4x32xf32>
    %899 = vector.shape_cast %898 : vector<1x1x4x32xf32> to vector<4x32xf32>
    %cst_936 = arith.constant dense<0.000000e+00> : vector<16x32xf32>
    %900 = tpu.matmul %888, %899, %cst_936 {dimension_numbers = #tpu.dot_dimension_numbers<[1], [0], [0], [1], [0, 0, 1, 1], [], []>} : vector<16x4xf32>, vector<4x32xf32>, vector<16x32xf32> -> vector<16x32xf32>
    %901 = vector.broadcast %895 : vector<1x32xf32> to vector<16x32xf32>
    %902 = arith.addf %901, %900 : vector<16x32xf32>
    %c1_937 = arith.constant 1 : index
    %c0_938 = arith.constant 0 : index
    %c0_939 = arith.constant 0 : index
    %c0_940 = arith.constant 0 : index
    %903 = vector.load %arg4[%c1_937, %c0_938, %c0_939, %c0_940] : memref<2x3x32x32xf32, #tpu.memory_space<vmem>>, vector<1x1x32x32xf32>
    %904 = vector.shape_cast %903 : vector<1x1x32x32xf32> to vector<32x32xf32>
    %cst_941 = arith.constant dense<0.000000e+00> : vector<16x32xf32>
    %905 = tpu.matmul %891, %904, %cst_941 {dimension_numbers = #tpu.dot_dimension_numbers<[1], [0], [0], [1], [0, 0, 1, 1], [], []>} : vector<16x32xf32>, vector<32x32xf32>, vector<16x32xf32> -> vector<16x32xf32>
    %906 = arith.addf %902, %905 : vector<16x32xf32>
    %c1_942 = arith.constant 1 : index
    %c0_943 = arith.constant 0 : index
    %c0_944 = arith.constant 0 : index
    %c0_945 = arith.constant 0 : index
    %907 = vector.load %arg5[%c1_942, %c0_943, %c0_944, %c0_945] : memref<2x3x4x32xf32, #tpu.memory_space<vmem>>, vector<1x1x4x32xf32>
    %908 = vector.shape_cast %907 : vector<1x1x4x32xf32> to vector<4x32xf32>
    %cst_946 = arith.constant dense<0.000000e+00> : vector<16x32xf32>
    %909 = tpu.matmul %888, %908, %cst_946 {dimension_numbers = #tpu.dot_dimension_numbers<[1], [0], [0], [1], [0, 0, 1, 1], [], []>} : vector<16x4xf32>, vector<4x32xf32>, vector<16x32xf32> -> vector<16x32xf32>
    %910 = vector.broadcast %897 : vector<1x32xf32> to vector<16x32xf32>
    %911 = arith.addf %910, %909 : vector<16x32xf32>
    %c1_947 = arith.constant 1 : index
    %c0_948 = arith.constant 0 : index
    %c0_949 = arith.constant 0 : index
    %c0_950 = arith.constant 0 : index
    %912 = vector.load %arg6[%c1_947, %c0_948, %c0_949, %c0_950] : memref<2x3x32x32xf32, #tpu.memory_space<vmem>>, vector<1x1x32x32xf32>
    %913 = vector.shape_cast %912 : vector<1x1x32x32xf32> to vector<32x32xf32>
    %cst_951 = arith.constant dense<0.000000e+00> : vector<16x32xf32>
    %914 = tpu.matmul %891, %913, %cst_951 {dimension_numbers = #tpu.dot_dimension_numbers<[1], [0], [0], [1], [0, 0, 1, 1], [], []>} : vector<16x32xf32>, vector<32x32xf32>, vector<16x32xf32> -> vector<16x32xf32>
    %915 = arith.addf %911, %914 : vector<16x32xf32>
    %c1_952 = arith.constant 1 : index
    %c1_953 = arith.constant 1 : index
    %c0_954 = arith.constant 0 : index
    %c0_955 = arith.constant 0 : index
    %916 = vector.load %arg3[%c1_952, %c1_953, %c0_954, %c0_955] : memref<2x3x4x32xf32, #tpu.memory_space<vmem>>, vector<1x1x4x32xf32>
    %917 = vector.shape_cast %916 : vector<1x1x4x32xf32> to vector<4x32xf32>
    %cst_956 = arith.constant dense<0.000000e+00> : vector<16x32xf32>
    %918 = tpu.matmul %889, %917, %cst_956 {dimension_numbers = #tpu.dot_dimension_numbers<[1], [0], [0], [1], [0, 0, 1, 1], [], []>} : vector<16x4xf32>, vector<4x32xf32>, vector<16x32xf32> -> vector<16x32xf32>
    %919 = arith.addf %906, %918 : vector<16x32xf32>
    %c1_957 = arith.constant 1 : index
    %c1_958 = arith.constant 1 : index
    %c0_959 = arith.constant 0 : index
    %c0_960 = arith.constant 0 : index
    %920 = vector.load %arg4[%c1_957, %c1_958, %c0_959, %c0_960] : memref<2x3x32x32xf32, #tpu.memory_space<vmem>>, vector<1x1x32x32xf32>
    %921 = vector.shape_cast %920 : vector<1x1x32x32xf32> to vector<32x32xf32>
    %cst_961 = arith.constant dense<0.000000e+00> : vector<16x32xf32>
    %922 = tpu.matmul %892, %921, %cst_961 {dimension_numbers = #tpu.dot_dimension_numbers<[1], [0], [0], [1], [0, 0, 1, 1], [], []>} : vector<16x32xf32>, vector<32x32xf32>, vector<16x32xf32> -> vector<16x32xf32>
    %923 = arith.addf %919, %922 : vector<16x32xf32>
    %c1_962 = arith.constant 1 : index
    %c1_963 = arith.constant 1 : index
    %c0_964 = arith.constant 0 : index
    %c0_965 = arith.constant 0 : index
    %924 = vector.load %arg5[%c1_962, %c1_963, %c0_964, %c0_965] : memref<2x3x4x32xf32, #tpu.memory_space<vmem>>, vector<1x1x4x32xf32>
    %925 = vector.shape_cast %924 : vector<1x1x4x32xf32> to vector<4x32xf32>
    %cst_966 = arith.constant dense<0.000000e+00> : vector<16x32xf32>
    %926 = tpu.matmul %889, %925, %cst_966 {dimension_numbers = #tpu.dot_dimension_numbers<[1], [0], [0], [1], [0, 0, 1, 1], [], []>} : vector<16x4xf32>, vector<4x32xf32>, vector<16x32xf32> -> vector<16x32xf32>
    %927 = arith.addf %915, %926 : vector<16x32xf32>
    %c1_967 = arith.constant 1 : index
    %c1_968 = arith.constant 1 : index
    %c0_969 = arith.constant 0 : index
    %c0_970 = arith.constant 0 : index
    %928 = vector.load %arg6[%c1_967, %c1_968, %c0_969, %c0_970] : memref<2x3x32x32xf32, #tpu.memory_space<vmem>>, vector<1x1x32x32xf32>
    %929 = vector.shape_cast %928 : vector<1x1x32x32xf32> to vector<32x32xf32>
    %cst_971 = arith.constant dense<0.000000e+00> : vector<16x32xf32>
    %930 = tpu.matmul %892, %929, %cst_971 {dimension_numbers = #tpu.dot_dimension_numbers<[1], [0], [0], [1], [0, 0, 1, 1], [], []>} : vector<16x32xf32>, vector<32x32xf32>, vector<16x32xf32> -> vector<16x32xf32>
    %931 = arith.addf %927, %930 : vector<16x32xf32>
    %c1_972 = arith.constant 1 : index
    %c2_973 = arith.constant 2 : index
    %c0_974 = arith.constant 0 : index
    %c0_975 = arith.constant 0 : index
    %932 = vector.load %arg3[%c1_972, %c2_973, %c0_974, %c0_975] : memref<2x3x4x32xf32, #tpu.memory_space<vmem>>, vector<1x1x4x32xf32>
    %933 = vector.shape_cast %932 : vector<1x1x4x32xf32> to vector<4x32xf32>
    %cst_976 = arith.constant dense<0.000000e+00> : vector<16x32xf32>
    %934 = tpu.matmul %890, %933, %cst_976 {dimension_numbers = #tpu.dot_dimension_numbers<[1], [0], [0], [1], [0, 0, 1, 1], [], []>} : vector<16x4xf32>, vector<4x32xf32>, vector<16x32xf32> -> vector<16x32xf32>
    %935 = arith.addf %923, %934 : vector<16x32xf32>
    %c1_977 = arith.constant 1 : index
    %c2_978 = arith.constant 2 : index
    %c0_979 = arith.constant 0 : index
    %c0_980 = arith.constant 0 : index
    %936 = vector.load %arg4[%c1_977, %c2_978, %c0_979, %c0_980] : memref<2x3x32x32xf32, #tpu.memory_space<vmem>>, vector<1x1x32x32xf32>
    %937 = vector.shape_cast %936 : vector<1x1x32x32xf32> to vector<32x32xf32>
    %cst_981 = arith.constant dense<0.000000e+00> : vector<16x32xf32>
    %938 = tpu.matmul %893, %937, %cst_981 {dimension_numbers = #tpu.dot_dimension_numbers<[1], [0], [0], [1], [0, 0, 1, 1], [], []>} : vector<16x32xf32>, vector<32x32xf32>, vector<16x32xf32> -> vector<16x32xf32>
    %939 = arith.addf %935, %938 : vector<16x32xf32>
    %c1_982 = arith.constant 1 : index
    %c2_983 = arith.constant 2 : index
    %c0_984 = arith.constant 0 : index
    %c0_985 = arith.constant 0 : index
    %940 = vector.load %arg5[%c1_982, %c2_983, %c0_984, %c0_985] : memref<2x3x4x32xf32, #tpu.memory_space<vmem>>, vector<1x1x4x32xf32>
    %941 = vector.shape_cast %940 : vector<1x1x4x32xf32> to vector<4x32xf32>
    %cst_986 = arith.constant dense<0.000000e+00> : vector<16x32xf32>
    %942 = tpu.matmul %890, %941, %cst_986 {dimension_numbers = #tpu.dot_dimension_numbers<[1], [0], [0], [1], [0, 0, 1, 1], [], []>} : vector<16x4xf32>, vector<4x32xf32>, vector<16x32xf32> -> vector<16x32xf32>
    %943 = arith.addf %931, %942 : vector<16x32xf32>
    %c1_987 = arith.constant 1 : index
    %c2_988 = arith.constant 2 : index
    %c0_989 = arith.constant 0 : index
    %c0_990 = arith.constant 0 : index
    %944 = vector.load %arg6[%c1_987, %c2_988, %c0_989, %c0_990] : memref<2x3x32x32xf32, #tpu.memory_space<vmem>>, vector<1x1x32x32xf32>
    %945 = vector.shape_cast %944 : vector<1x1x32x32xf32> to vector<32x32xf32>
    %cst_991 = arith.constant dense<0.000000e+00> : vector<16x32xf32>
    %946 = tpu.matmul %893, %945, %cst_991 {dimension_numbers = #tpu.dot_dimension_numbers<[1], [0], [0], [1], [0, 0, 1, 1], [], []>} : vector<16x32xf32>, vector<32x32xf32>, vector<16x32xf32> -> vector<16x32xf32>
    %947 = arith.addf %943, %946 : vector<16x32xf32>
    %948 = arith.negf %939 : vector<16x32xf32>
    %949 = math.exp %948 : vector<16x32xf32>
    %cst_992 = arith.constant 1.000000e+00 : f32
    %950 = vector.broadcast %cst_992 : f32 to vector<16x32xf32>
    %951 = arith.addf %950, %949 : vector<16x32xf32>
    %952 = arith.divf %950, %951 : vector<16x32xf32>
    %953 = arith.negf %947 : vector<16x32xf32>
    %954 = math.exp %953 : vector<16x32xf32>
    %cst_993 = arith.constant 1.000000e+00 : f32
    %955 = vector.broadcast %cst_993 : f32 to vector<16x32xf32>
    %956 = arith.addf %955, %954 : vector<16x32xf32>
    %957 = arith.divf %955, %956 : vector<16x32xf32>
    %958 = arith.mulf %957, %886 : vector<16x32xf32>
    %c1_994 = arith.constant 1 : index
    %c0_995 = arith.constant 0 : index
    %c0_996 = arith.constant 0 : index
    %959 = vector.load %arg11[%c1_994, %c0_995, %c0_996] : memref<2x1x32xf32, #tpu.memory_space<vmem>>, vector<1x1x32xf32>
    %960 = vector.shape_cast %959 : vector<1x1x32xf32> to vector<1x32xf32>
    %cst_997 = arith.constant dense<0.000000e+00> : vector<16x32xf32>
    %961 = tpu.matmul %1, %958, %cst_997 {dimension_numbers = #tpu.dot_dimension_numbers<[1], [0], [0], [1], [0, 0, 1, 1], [], []>} : vector<16x16xf32>, vector<16x32xf32>, vector<16x32xf32> -> vector<16x32xf32>
    %c1_998 = arith.constant 1 : index
    %c0_999 = arith.constant 0 : index
    %c0_1000 = arith.constant 0 : index
    %c0_1001 = arith.constant 0 : index
    %962 = vector.load %arg7[%c1_998, %c0_999, %c0_1000, %c0_1001] : memref<2x3x4x32xf32, #tpu.memory_space<vmem>>, vector<1x1x4x32xf32>
    %963 = vector.shape_cast %962 : vector<1x1x4x32xf32> to vector<4x32xf32>
    %cst_1002 = arith.constant dense<0.000000e+00> : vector<16x32xf32>
    %964 = tpu.matmul %888, %963, %cst_1002 {dimension_numbers = #tpu.dot_dimension_numbers<[1], [0], [0], [1], [0, 0, 1, 1], [], []>} : vector<16x4xf32>, vector<4x32xf32>, vector<16x32xf32> -> vector<16x32xf32>
    %965 = vector.broadcast %960 : vector<1x32xf32> to vector<16x32xf32>
    %966 = arith.addf %965, %964 : vector<16x32xf32>
    %c1_1003 = arith.constant 1 : index
    %c0_1004 = arith.constant 0 : index
    %c0_1005 = arith.constant 0 : index
    %c0_1006 = arith.constant 0 : index
    %967 = vector.load %arg8[%c1_1003, %c0_1004, %c0_1005, %c0_1006] : memref<2x3x32x32xf32, #tpu.memory_space<vmem>>, vector<1x1x32x32xf32>
    %968 = vector.shape_cast %967 : vector<1x1x32x32xf32> to vector<32x32xf32>
    %cst_1007 = arith.constant dense<0.000000e+00> : vector<16x32xf32>
    %969 = tpu.matmul %961, %968, %cst_1007 {dimension_numbers = #tpu.dot_dimension_numbers<[1], [0], [0], [1], [0, 0, 1, 1], [], []>} : vector<16x32xf32>, vector<32x32xf32>, vector<16x32xf32> -> vector<16x32xf32>
    %970 = arith.addf %966, %969 : vector<16x32xf32>
    %cst_1008 = arith.constant dense<0.000000e+00> : vector<16x32xf32>
    %971 = tpu.matmul %3, %958, %cst_1008 {dimension_numbers = #tpu.dot_dimension_numbers<[1], [0], [0], [1], [0, 0, 1, 1], [], []>} : vector<16x16xf32>, vector<16x32xf32>, vector<16x32xf32> -> vector<16x32xf32>
    %c1_1009 = arith.constant 1 : index
    %c1_1010 = arith.constant 1 : index
    %c0_1011 = arith.constant 0 : index
    %c0_1012 = arith.constant 0 : index
    %972 = vector.load %arg7[%c1_1009, %c1_1010, %c0_1011, %c0_1012] : memref<2x3x4x32xf32, #tpu.memory_space<vmem>>, vector<1x1x4x32xf32>
    %973 = vector.shape_cast %972 : vector<1x1x4x32xf32> to vector<4x32xf32>
    %cst_1013 = arith.constant dense<0.000000e+00> : vector<16x32xf32>
    %974 = tpu.matmul %889, %973, %cst_1013 {dimension_numbers = #tpu.dot_dimension_numbers<[1], [0], [0], [1], [0, 0, 1, 1], [], []>} : vector<16x4xf32>, vector<4x32xf32>, vector<16x32xf32> -> vector<16x32xf32>
    %975 = arith.addf %970, %974 : vector<16x32xf32>
    %c1_1014 = arith.constant 1 : index
    %c1_1015 = arith.constant 1 : index
    %c0_1016 = arith.constant 0 : index
    %c0_1017 = arith.constant 0 : index
    %976 = vector.load %arg8[%c1_1014, %c1_1015, %c0_1016, %c0_1017] : memref<2x3x32x32xf32, #tpu.memory_space<vmem>>, vector<1x1x32x32xf32>
    %977 = vector.shape_cast %976 : vector<1x1x32x32xf32> to vector<32x32xf32>
    %cst_1018 = arith.constant dense<0.000000e+00> : vector<16x32xf32>
    %978 = tpu.matmul %971, %977, %cst_1018 {dimension_numbers = #tpu.dot_dimension_numbers<[1], [0], [0], [1], [0, 0, 1, 1], [], []>} : vector<16x32xf32>, vector<32x32xf32>, vector<16x32xf32> -> vector<16x32xf32>
    %979 = arith.addf %975, %978 : vector<16x32xf32>
    %cst_1019 = arith.constant dense<0.000000e+00> : vector<16x32xf32>
    %980 = tpu.matmul %5, %958, %cst_1019 {dimension_numbers = #tpu.dot_dimension_numbers<[1], [0], [0], [1], [0, 0, 1, 1], [], []>} : vector<16x16xf32>, vector<16x32xf32>, vector<16x32xf32> -> vector<16x32xf32>
    %c1_1020 = arith.constant 1 : index
    %c2_1021 = arith.constant 2 : index
    %c0_1022 = arith.constant 0 : index
    %c0_1023 = arith.constant 0 : index
    %981 = vector.load %arg7[%c1_1020, %c2_1021, %c0_1022, %c0_1023] : memref<2x3x4x32xf32, #tpu.memory_space<vmem>>, vector<1x1x4x32xf32>
    %982 = vector.shape_cast %981 : vector<1x1x4x32xf32> to vector<4x32xf32>
    %cst_1024 = arith.constant dense<0.000000e+00> : vector<16x32xf32>
    %983 = tpu.matmul %890, %982, %cst_1024 {dimension_numbers = #tpu.dot_dimension_numbers<[1], [0], [0], [1], [0, 0, 1, 1], [], []>} : vector<16x4xf32>, vector<4x32xf32>, vector<16x32xf32> -> vector<16x32xf32>
    %984 = arith.addf %979, %983 : vector<16x32xf32>
    %c1_1025 = arith.constant 1 : index
    %c2_1026 = arith.constant 2 : index
    %c0_1027 = arith.constant 0 : index
    %c0_1028 = arith.constant 0 : index
    %985 = vector.load %arg8[%c1_1025, %c2_1026, %c0_1027, %c0_1028] : memref<2x3x32x32xf32, #tpu.memory_space<vmem>>, vector<1x1x32x32xf32>
    %986 = vector.shape_cast %985 : vector<1x1x32x32xf32> to vector<32x32xf32>
    %cst_1029 = arith.constant dense<0.000000e+00> : vector<16x32xf32>
    %987 = tpu.matmul %980, %986, %cst_1029 {dimension_numbers = #tpu.dot_dimension_numbers<[1], [0], [0], [1], [0, 0, 1, 1], [], []>} : vector<16x32xf32>, vector<32x32xf32>, vector<16x32xf32> -> vector<16x32xf32>
    %988 = arith.addf %984, %987 : vector<16x32xf32>
    %989 = math.tanh %988 : vector<16x32xf32>
    %cst_1030 = arith.constant 1.000000e+00 : f32
    %990 = vector.broadcast %cst_1030 : f32 to vector<16x32xf32>
    %991 = arith.subf %990, %952 : vector<16x32xf32>
    %992 = arith.mulf %991, %886 : vector<16x32xf32>
    %993 = arith.mulf %952, %989 : vector<16x32xf32>
    %994 = arith.addf %992, %993 : vector<16x32xf32>
    %c0_1031 = arith.constant 0 : index
    %c0_1032 = arith.constant 0 : index
    %995 = vector.load %arg12[%c0_1031, %c0_1032] : memref<32x4xf32, #tpu.memory_space<vmem>>, vector<32x4xf32>
    %cst_1033 = arith.constant dense<0.000000e+00> : vector<16x4xf32>
    %996 = tpu.matmul %994, %995, %cst_1033 {dimension_numbers = #tpu.dot_dimension_numbers<[1], [0], [0], [1], [0, 0, 1, 1], [], []>} : vector<16x32xf32>, vector<32x4xf32>, vector<16x4xf32> -> vector<16x4xf32>
    %c0_1034 = arith.constant 0 : index
    %c0_1035 = arith.constant 0 : index
    %997 = vector.load %arg13[%c0_1034, %c0_1035] : memref<1x4xf32, #tpu.memory_space<vmem>>, vector<1x4xf32>
    %998 = vector.broadcast %997 : vector<1x4xf32> to vector<16x4xf32>
    %999 = arith.addf %996, %998 : vector<16x4xf32>
    %c0_1036 = arith.constant 0 : index
    %1000 = arith.index_cast %c0_i32_919 : i32 to index
    %c0_1037 = arith.constant 0 : index
    %c0_1038 = arith.constant 0 : index
    %1001 = vector.load %arg14[%c0_1036, %1000, %c0_1037, %c0_1038] : memref<1x3x16x4xf32, #tpu.memory_space<vmem>>, vector<1x1x16x4xf32>
    %1002 = vector.shape_cast %1001 : vector<1x1x16x4xf32> to vector<16x4xf32>
    %1003 = vector.shape_cast %999 : vector<16x4xf32> to vector<1x1x16x4xf32>
    tpu.vector_store %arg14[%c0_1036, %1000, %c0_1037, %c0_1038], %1003 {strides = array<i32>} : memref<1x3x16x4xf32, #tpu.memory_space<vmem>>, vector<1x1x16x4xf32>,
    %c1_i32_1039 = arith.constant 1 : i32
    %cst_1040 = arith.constant dense<0.000000e+00> : vector<16x4xf32>
    %1004 = tpu.matmul %1, %999, %cst_1040 {dimension_numbers = #tpu.dot_dimension_numbers<[1], [0], [0], [1], [0, 0, 1, 1], [], []>} : vector<16x16xf32>, vector<16x4xf32>, vector<16x4xf32> -> vector<16x4xf32>
    %cst_1041 = arith.constant dense<0.000000e+00> : vector<16x4xf32>
    %1005 = tpu.matmul %3, %999, %cst_1041 {dimension_numbers = #tpu.dot_dimension_numbers<[1], [0], [0], [1], [0, 0, 1, 1], [], []>} : vector<16x16xf32>, vector<16x4xf32>, vector<16x4xf32> -> vector<16x4xf32>
    %cst_1042 = arith.constant dense<0.000000e+00> : vector<16x4xf32>
    %1006 = tpu.matmul %5, %999, %cst_1042 {dimension_numbers = #tpu.dot_dimension_numbers<[1], [0], [0], [1], [0, 0, 1, 1], [], []>} : vector<16x16xf32>, vector<16x4xf32>, vector<16x4xf32> -> vector<16x4xf32>
    %cst_1043 = arith.constant dense<0.000000e+00> : vector<16x32xf32>
    %1007 = tpu.matmul %1, %994, %cst_1043 {dimension_numbers = #tpu.dot_dimension_numbers<[1], [0], [0], [1], [0, 0, 1, 1], [], []>} : vector<16x16xf32>, vector<16x32xf32>, vector<16x32xf32> -> vector<16x32xf32>
    %cst_1044 = arith.constant dense<0.000000e+00> : vector<16x32xf32>
    %1008 = tpu.matmul %3, %994, %cst_1044 {dimension_numbers = #tpu.dot_dimension_numbers<[1], [0], [0], [1], [0, 0, 1, 1], [], []>} : vector<16x16xf32>, vector<16x32xf32>, vector<16x32xf32> -> vector<16x32xf32>
    %cst_1045 = arith.constant dense<0.000000e+00> : vector<16x32xf32>
    %1009 = tpu.matmul %5, %994, %cst_1045 {dimension_numbers = #tpu.dot_dimension_numbers<[1], [0], [0], [1], [0, 0, 1, 1], [], []>} : vector<16x16xf32>, vector<16x32xf32>, vector<16x32xf32> -> vector<16x32xf32>
    %c1_1046 = arith.constant 1 : index
    %c0_1047 = arith.constant 0 : index
    %c0_1048 = arith.constant 0 : index
    %1010 = vector.load %arg9[%c1_1046, %c0_1047, %c0_1048] : memref<2x1x32xf32, #tpu.memory_space<vmem>>, vector<1x1x32xf32>
    %1011 = vector.shape_cast %1010 : vector<1x1x32xf32> to vector<1x32xf32>
    %c1_1049 = arith.constant 1 : index
    %c0_1050 = arith.constant 0 : index
    %c0_1051 = arith.constant 0 : index
    %1012 = vector.load %arg10[%c1_1049, %c0_1050, %c0_1051] : memref<2x1x32xf32, #tpu.memory_space<vmem>>, vector<1x1x32xf32>
    %1013 = vector.shape_cast %1012 : vector<1x1x32xf32> to vector<1x32xf32>
    %c1_1052 = arith.constant 1 : index
    %c0_1053 = arith.constant 0 : index
    %c0_1054 = arith.constant 0 : index
    %c0_1055 = arith.constant 0 : index
    %1014 = vector.load %arg3[%c1_1052, %c0_1053, %c0_1054, %c0_1055] : memref<2x3x4x32xf32, #tpu.memory_space<vmem>>, vector<1x1x4x32xf32>
    %1015 = vector.shape_cast %1014 : vector<1x1x4x32xf32> to vector<4x32xf32>
    %cst_1056 = arith.constant dense<0.000000e+00> : vector<16x32xf32>
    %1016 = tpu.matmul %1004, %1015, %cst_1056 {dimension_numbers = #tpu.dot_dimension_numbers<[1], [0], [0], [1], [0, 0, 1, 1], [], []>} : vector<16x4xf32>, vector<4x32xf32>, vector<16x32xf32> -> vector<16x32xf32>
    %1017 = vector.broadcast %1011 : vector<1x32xf32> to vector<16x32xf32>
    %1018 = arith.addf %1017, %1016 : vector<16x32xf32>
    %c1_1057 = arith.constant 1 : index
    %c0_1058 = arith.constant 0 : index
    %c0_1059 = arith.constant 0 : index
    %c0_1060 = arith.constant 0 : index
    %1019 = vector.load %arg4[%c1_1057, %c0_1058, %c0_1059, %c0_1060] : memref<2x3x32x32xf32, #tpu.memory_space<vmem>>, vector<1x1x32x32xf32>
    %1020 = vector.shape_cast %1019 : vector<1x1x32x32xf32> to vector<32x32xf32>
    %cst_1061 = arith.constant dense<0.000000e+00> : vector<16x32xf32>
    %1021 = tpu.matmul %1007, %1020, %cst_1061 {dimension_numbers = #tpu.dot_dimension_numbers<[1], [0], [0], [1], [0, 0, 1, 1], [], []>} : vector<16x32xf32>, vector<32x32xf32>, vector<16x32xf32> -> vector<16x32xf32>
    %1022 = arith.addf %1018, %1021 : vector<16x32xf32>
    %c1_1062 = arith.constant 1 : index
    %c0_1063 = arith.constant 0 : index
    %c0_1064 = arith.constant 0 : index
    %c0_1065 = arith.constant 0 : index
    %1023 = vector.load %arg5[%c1_1062, %c0_1063, %c0_1064, %c0_1065] : memref<2x3x4x32xf32, #tpu.memory_space<vmem>>, vector<1x1x4x32xf32>
    %1024 = vector.shape_cast %1023 : vector<1x1x4x32xf32> to vector<4x32xf32>
    %cst_1066 = arith.constant dense<0.000000e+00> : vector<16x32xf32>
    %1025 = tpu.matmul %1004, %1024, %cst_1066 {dimension_numbers = #tpu.dot_dimension_numbers<[1], [0], [0], [1], [0, 0, 1, 1], [], []>} : vector<16x4xf32>, vector<4x32xf32>, vector<16x32xf32> -> vector<16x32xf32>
    %1026 = vector.broadcast %1013 : vector<1x32xf32> to vector<16x32xf32>
    %1027 = arith.addf %1026, %1025 : vector<16x32xf32>
    %c1_1067 = arith.constant 1 : index
    %c0_1068 = arith.constant 0 : index
    %c0_1069 = arith.constant 0 : index
    %c0_1070 = arith.constant 0 : index
    %1028 = vector.load %arg6[%c1_1067, %c0_1068, %c0_1069, %c0_1070] : memref<2x3x32x32xf32, #tpu.memory_space<vmem>>, vector<1x1x32x32xf32>
    %1029 = vector.shape_cast %1028 : vector<1x1x32x32xf32> to vector<32x32xf32>
    %cst_1071 = arith.constant dense<0.000000e+00> : vector<16x32xf32>
    %1030 = tpu.matmul %1007, %1029, %cst_1071 {dimension_numbers = #tpu.dot_dimension_numbers<[1], [0], [0], [1], [0, 0, 1, 1], [], []>} : vector<16x32xf32>, vector<32x32xf32>, vector<16x32xf32> -> vector<16x32xf32>
    %1031 = arith.addf %1027, %1030 : vector<16x32xf32>
    %c1_1072 = arith.constant 1 : index
    %c1_1073 = arith.constant 1 : index
    %c0_1074 = arith.constant 0 : index
    %c0_1075 = arith.constant 0 : index
    %1032 = vector.load %arg3[%c1_1072, %c1_1073, %c0_1074, %c0_1075] : memref<2x3x4x32xf32, #tpu.memory_space<vmem>>, vector<1x1x4x32xf32>
    %1033 = vector.shape_cast %1032 : vector<1x1x4x32xf32> to vector<4x32xf32>
    %cst_1076 = arith.constant dense<0.000000e+00> : vector<16x32xf32>
    %1034 = tpu.matmul %1005, %1033, %cst_1076 {dimension_numbers = #tpu.dot_dimension_numbers<[1], [0], [0], [1], [0, 0, 1, 1], [], []>} : vector<16x4xf32>, vector<4x32xf32>, vector<16x32xf32> -> vector<16x32xf32>
    %1035 = arith.addf %1022, %1034 : vector<16x32xf32>
    %c1_1077 = arith.constant 1 : index
    %c1_1078 = arith.constant 1 : index
    %c0_1079 = arith.constant 0 : index
    %c0_1080 = arith.constant 0 : index
    %1036 = vector.load %arg4[%c1_1077, %c1_1078, %c0_1079, %c0_1080] : memref<2x3x32x32xf32, #tpu.memory_space<vmem>>, vector<1x1x32x32xf32>
    %1037 = vector.shape_cast %1036 : vector<1x1x32x32xf32> to vector<32x32xf32>
    %cst_1081 = arith.constant dense<0.000000e+00> : vector<16x32xf32>
    %1038 = tpu.matmul %1008, %1037, %cst_1081 {dimension_numbers = #tpu.dot_dimension_numbers<[1], [0], [0], [1], [0, 0, 1, 1], [], []>} : vector<16x32xf32>, vector<32x32xf32>, vector<16x32xf32> -> vector<16x32xf32>
    %1039 = arith.addf %1035, %1038 : vector<16x32xf32>
    %c1_1082 = arith.constant 1 : index
    %c1_1083 = arith.constant 1 : index
    %c0_1084 = arith.constant 0 : index
    %c0_1085 = arith.constant 0 : index
    %1040 = vector.load %arg5[%c1_1082, %c1_1083, %c0_1084, %c0_1085] : memref<2x3x4x32xf32, #tpu.memory_space<vmem>>, vector<1x1x4x32xf32>
    %1041 = vector.shape_cast %1040 : vector<1x1x4x32xf32> to vector<4x32xf32>
    %cst_1086 = arith.constant dense<0.000000e+00> : vector<16x32xf32>
    %1042 = tpu.matmul %1005, %1041, %cst_1086 {dimension_numbers = #tpu.dot_dimension_numbers<[1], [0], [0], [1], [0, 0, 1, 1], [], []>} : vector<16x4xf32>, vector<4x32xf32>, vector<16x32xf32> -> vector<16x32xf32>
    %1043 = arith.addf %1031, %1042 : vector<16x32xf32>
    %c1_1087 = arith.constant 1 : index
    %c1_1088 = arith.constant 1 : index
    %c0_1089 = arith.constant 0 : index
    %c0_1090 = arith.constant 0 : index
    %1044 = vector.load %arg6[%c1_1087, %c1_1088, %c0_1089, %c0_1090] : memref<2x3x32x32xf32, #tpu.memory_space<vmem>>, vector<1x1x32x32xf32>
    %1045 = vector.shape_cast %1044 : vector<1x1x32x32xf32> to vector<32x32xf32>
    %cst_1091 = arith.constant dense<0.000000e+00> : vector<16x32xf32>
    %1046 = tpu.matmul %1008, %1045, %cst_1091 {dimension_numbers = #tpu.dot_dimension_numbers<[1], [0], [0], [1], [0, 0, 1, 1], [], []>} : vector<16x32xf32>, vector<32x32xf32>, vector<16x32xf32> -> vector<16x32xf32>
    %1047 = arith.addf %1043, %1046 : vector<16x32xf32>
    %c1_1092 = arith.constant 1 : index
    %c2_1093 = arith.constant 2 : index
    %c0_1094 = arith.constant 0 : index
    %c0_1095 = arith.constant 0 : index
    %1048 = vector.load %arg3[%c1_1092, %c2_1093, %c0_1094, %c0_1095] : memref<2x3x4x32xf32, #tpu.memory_space<vmem>>, vector<1x1x4x32xf32>
    %1049 = vector.shape_cast %1048 : vector<1x1x4x32xf32> to vector<4x32xf32>
    %cst_1096 = arith.constant dense<0.000000e+00> : vector<16x32xf32>
    %1050 = tpu.matmul %1006, %1049, %cst_1096 {dimension_numbers = #tpu.dot_dimension_numbers<[1], [0], [0], [1], [0, 0, 1, 1], [], []>} : vector<16x4xf32>, vector<4x32xf32>, vector<16x32xf32> -> vector<16x32xf32>
    %1051 = arith.addf %1039, %1050 : vector<16x32xf32>
    %c1_1097 = arith.constant 1 : index
    %c2_1098 = arith.constant 2 : index
    %c0_1099 = arith.constant 0 : index
    %c0_1100 = arith.constant 0 : index
    %1052 = vector.load %arg4[%c1_1097, %c2_1098, %c0_1099, %c0_1100] : memref<2x3x32x32xf32, #tpu.memory_space<vmem>>, vector<1x1x32x32xf32>
    %1053 = vector.shape_cast %1052 : vector<1x1x32x32xf32> to vector<32x32xf32>
    %cst_1101 = arith.constant dense<0.000000e+00> : vector<16x32xf32>
    %1054 = tpu.matmul %1009, %1053, %cst_1101 {dimension_numbers = #tpu.dot_dimension_numbers<[1], [0], [0], [1], [0, 0, 1, 1], [], []>} : vector<16x32xf32>, vector<32x32xf32>, vector<16x32xf32> -> vector<16x32xf32>
    %1055 = arith.addf %1051, %1054 : vector<16x32xf32>
    %c1_1102 = arith.constant 1 : index
    %c2_1103 = arith.constant 2 : index
    %c0_1104 = arith.constant 0 : index
    %c0_1105 = arith.constant 0 : index
    %1056 = vector.load %arg5[%c1_1102, %c2_1103, %c0_1104, %c0_1105] : memref<2x3x4x32xf32, #tpu.memory_space<vmem>>, vector<1x1x4x32xf32>
    %1057 = vector.shape_cast %1056 : vector<1x1x4x32xf32> to vector<4x32xf32>
    %cst_1106 = arith.constant dense<0.000000e+00> : vector<16x32xf32>
    %1058 = tpu.matmul %1006, %1057, %cst_1106 {dimension_numbers = #tpu.dot_dimension_numbers<[1], [0], [0], [1], [0, 0, 1, 1], [], []>} : vector<16x4xf32>, vector<4x32xf32>, vector<16x32xf32> -> vector<16x32xf32>
    %1059 = arith.addf %1047, %1058 : vector<16x32xf32>
    %c1_1107 = arith.constant 1 : index
    %c2_1108 = arith.constant 2 : index
    %c0_1109 = arith.constant 0 : index
    %c0_1110 = arith.constant 0 : index
    %1060 = vector.load %arg6[%c1_1107, %c2_1108, %c0_1109, %c0_1110] : memref<2x3x32x32xf32, #tpu.memory_space<vmem>>, vector<1x1x32x32xf32>
    %1061 = vector.shape_cast %1060 : vector<1x1x32x32xf32> to vector<32x32xf32>
    %cst_1111 = arith.constant dense<0.000000e+00> : vector<16x32xf32>
    %1062 = tpu.matmul %1009, %1061, %cst_1111 {dimension_numbers = #tpu.dot_dimension_numbers<[1], [0], [0], [1], [0, 0, 1, 1], [], []>} : vector<16x32xf32>, vector<32x32xf32>, vector<16x32xf32> -> vector<16x32xf32>
    %1063 = arith.addf %1059, %1062 : vector<16x32xf32>
    %1064 = arith.negf %1055 : vector<16x32xf32>
    %1065 = math.exp %1064 : vector<16x32xf32>
    %cst_1112 = arith.constant 1.000000e+00 : f32
    %1066 = vector.broadcast %cst_1112 : f32 to vector<16x32xf32>
    %1067 = arith.addf %1066, %1065 : vector<16x32xf32>
    %1068 = arith.divf %1066, %1067 : vector<16x32xf32>
    %1069 = arith.negf %1063 : vector<16x32xf32>
    %1070 = math.exp %1069 : vector<16x32xf32>
    %cst_1113 = arith.constant 1.000000e+00 : f32
    %1071 = vector.broadcast %cst_1113 : f32 to vector<16x32xf32>
    %1072 = arith.addf %1071, %1070 : vector<16x32xf32>
    %1073 = arith.divf %1071, %1072 : vector<16x32xf32>
    %1074 = arith.mulf %1073, %994 : vector<16x32xf32>
    %c1_1114 = arith.constant 1 : index
    %c0_1115 = arith.constant 0 : index
    %c0_1116 = arith.constant 0 : index
    %1075 = vector.load %arg11[%c1_1114, %c0_1115, %c0_1116] : memref<2x1x32xf32, #tpu.memory_space<vmem>>, vector<1x1x32xf32>
    %1076 = vector.shape_cast %1075 : vector<1x1x32xf32> to vector<1x32xf32>
    %cst_1117 = arith.constant dense<0.000000e+00> : vector<16x32xf32>
    %1077 = tpu.matmul %1, %1074, %cst_1117 {dimension_numbers = #tpu.dot_dimension_numbers<[1], [0], [0], [1], [0, 0, 1, 1], [], []>} : vector<16x16xf32>, vector<16x32xf32>, vector<16x32xf32> -> vector<16x32xf32>
    %c1_1118 = arith.constant 1 : index
    %c0_1119 = arith.constant 0 : index
    %c0_1120 = arith.constant 0 : index
    %c0_1121 = arith.constant 0 : index
    %1078 = vector.load %arg7[%c1_1118, %c0_1119, %c0_1120, %c0_1121] : memref<2x3x4x32xf32, #tpu.memory_space<vmem>>, vector<1x1x4x32xf32>
    %1079 = vector.shape_cast %1078 : vector<1x1x4x32xf32> to vector<4x32xf32>
    %cst_1122 = arith.constant dense<0.000000e+00> : vector<16x32xf32>
    %1080 = tpu.matmul %1004, %1079, %cst_1122 {dimension_numbers = #tpu.dot_dimension_numbers<[1], [0], [0], [1], [0, 0, 1, 1], [], []>} : vector<16x4xf32>, vector<4x32xf32>, vector<16x32xf32> -> vector<16x32xf32>
    %1081 = vector.broadcast %1076 : vector<1x32xf32> to vector<16x32xf32>
    %1082 = arith.addf %1081, %1080 : vector<16x32xf32>
    %c1_1123 = arith.constant 1 : index
    %c0_1124 = arith.constant 0 : index
    %c0_1125 = arith.constant 0 : index
    %c0_1126 = arith.constant 0 : index
    %1083 = vector.load %arg8[%c1_1123, %c0_1124, %c0_1125, %c0_1126] : memref<2x3x32x32xf32, #tpu.memory_space<vmem>>, vector<1x1x32x32xf32>
    %1084 = vector.shape_cast %1083 : vector<1x1x32x32xf32> to vector<32x32xf32>
    %cst_1127 = arith.constant dense<0.000000e+00> : vector<16x32xf32>
    %1085 = tpu.matmul %1077, %1084, %cst_1127 {dimension_numbers = #tpu.dot_dimension_numbers<[1], [0], [0], [1], [0, 0, 1, 1], [], []>} : vector<16x32xf32>, vector<32x32xf32>, vector<16x32xf32> -> vector<16x32xf32>
    %1086 = arith.addf %1082, %1085 : vector<16x32xf32>
    %cst_1128 = arith.constant dense<0.000000e+00> : vector<16x32xf32>
    %1087 = tpu.matmul %3, %1074, %cst_1128 {dimension_numbers = #tpu.dot_dimension_numbers<[1], [0], [0], [1], [0, 0, 1, 1], [], []>} : vector<16x16xf32>, vector<16x32xf32>, vector<16x32xf32> -> vector<16x32xf32>
    %c1_1129 = arith.constant 1 : index
    %c1_1130 = arith.constant 1 : index
    %c0_1131 = arith.constant 0 : index
    %c0_1132 = arith.constant 0 : index
    %1088 = vector.load %arg7[%c1_1129, %c1_1130, %c0_1131, %c0_1132] : memref<2x3x4x32xf32, #tpu.memory_space<vmem>>, vector<1x1x4x32xf32>
    %1089 = vector.shape_cast %1088 : vector<1x1x4x32xf32> to vector<4x32xf32>
    %cst_1133 = arith.constant dense<0.000000e+00> : vector<16x32xf32>
    %1090 = tpu.matmul %1005, %1089, %cst_1133 {dimension_numbers = #tpu.dot_dimension_numbers<[1], [0], [0], [1], [0, 0, 1, 1], [], []>} : vector<16x4xf32>, vector<4x32xf32>, vector<16x32xf32> -> vector<16x32xf32>
    %1091 = arith.addf %1086, %1090 : vector<16x32xf32>
    %c1_1134 = arith.constant 1 : index
    %c1_1135 = arith.constant 1 : index
    %c0_1136 = arith.constant 0 : index
    %c0_1137 = arith.constant 0 : index
    %1092 = vector.load %arg8[%c1_1134, %c1_1135, %c0_1136, %c0_1137] : memref<2x3x32x32xf32, #tpu.memory_space<vmem>>, vector<1x1x32x32xf32>
    %1093 = vector.shape_cast %1092 : vector<1x1x32x32xf32> to vector<32x32xf32>
    %cst_1138 = arith.constant dense<0.000000e+00> : vector<16x32xf32>
    %1094 = tpu.matmul %1087, %1093, %cst_1138 {dimension_numbers = #tpu.dot_dimension_numbers<[1], [0], [0], [1], [0, 0, 1, 1], [], []>} : vector<16x32xf32>, vector<32x32xf32>, vector<16x32xf32> -> vector<16x32xf32>
    %1095 = arith.addf %1091, %1094 : vector<16x32xf32>
    %cst_1139 = arith.constant dense<0.000000e+00> : vector<16x32xf32>
    %1096 = tpu.matmul %5, %1074, %cst_1139 {dimension_numbers = #tpu.dot_dimension_numbers<[1], [0], [0], [1], [0, 0, 1, 1], [], []>} : vector<16x16xf32>, vector<16x32xf32>, vector<16x32xf32> -> vector<16x32xf32>
    %c1_1140 = arith.constant 1 : index
    %c2_1141 = arith.constant 2 : index
    %c0_1142 = arith.constant 0 : index
    %c0_1143 = arith.constant 0 : index
    %1097 = vector.load %arg7[%c1_1140, %c2_1141, %c0_1142, %c0_1143] : memref<2x3x4x32xf32, #tpu.memory_space<vmem>>, vector<1x1x4x32xf32>
    %1098 = vector.shape_cast %1097 : vector<1x1x4x32xf32> to vector<4x32xf32>
    %cst_1144 = arith.constant dense<0.000000e+00> : vector<16x32xf32>
    %1099 = tpu.matmul %1006, %1098, %cst_1144 {dimension_numbers = #tpu.dot_dimension_numbers<[1], [0], [0], [1], [0, 0, 1, 1], [], []>} : vector<16x4xf32>, vector<4x32xf32>, vector<16x32xf32> -> vector<16x32xf32>
    %1100 = arith.addf %1095, %1099 : vector<16x32xf32>
    %c1_1145 = arith.constant 1 : index
    %c2_1146 = arith.constant 2 : index
    %c0_1147 = arith.constant 0 : index
    %c0_1148 = arith.constant 0 : index
    %1101 = vector.load %arg8[%c1_1145, %c2_1146, %c0_1147, %c0_1148] : memref<2x3x32x32xf32, #tpu.memory_space<vmem>>, vector<1x1x32x32xf32>
    %1102 = vector.shape_cast %1101 : vector<1x1x32x32xf32> to vector<32x32xf32>
    %cst_1149 = arith.constant dense<0.000000e+00> : vector<16x32xf32>
    %1103 = tpu.matmul %1096, %1102, %cst_1149 {dimension_numbers = #tpu.dot_dimension_numbers<[1], [0], [0], [1], [0, 0, 1, 1], [], []>} : vector<16x32xf32>, vector<32x32xf32>, vector<16x32xf32> -> vector<16x32xf32>
    %1104 = arith.addf %1100, %1103 : vector<16x32xf32>
    %1105 = math.tanh %1104 : vector<16x32xf32>
    %cst_1150 = arith.constant 1.000000e+00 : f32
    %1106 = vector.broadcast %cst_1150 : f32 to vector<16x32xf32>
    %1107 = arith.subf %1106, %1068 : vector<16x32xf32>
    %1108 = arith.mulf %1107, %994 : vector<16x32xf32>
    %1109 = arith.mulf %1068, %1105 : vector<16x32xf32>
    %1110 = arith.addf %1108, %1109 : vector<16x32xf32>
    %c0_1151 = arith.constant 0 : index
    %c0_1152 = arith.constant 0 : index
    %1111 = vector.load %arg12[%c0_1151, %c0_1152] : memref<32x4xf32, #tpu.memory_space<vmem>>, vector<32x4xf32>
    %cst_1153 = arith.constant dense<0.000000e+00> : vector<16x4xf32>
    %1112 = tpu.matmul %1110, %1111, %cst_1153 {dimension_numbers = #tpu.dot_dimension_numbers<[1], [0], [0], [1], [0, 0, 1, 1], [], []>} : vector<16x32xf32>, vector<32x4xf32>, vector<16x4xf32> -> vector<16x4xf32>
    %c0_1154 = arith.constant 0 : index
    %c0_1155 = arith.constant 0 : index
    %1113 = vector.load %arg13[%c0_1154, %c0_1155] : memref<1x4xf32, #tpu.memory_space<vmem>>, vector<1x4xf32>
    %1114 = vector.broadcast %1113 : vector<1x4xf32> to vector<16x4xf32>
    %1115 = arith.addf %1112, %1114 : vector<16x4xf32>
    %c0_1156 = arith.constant 0 : index
    %1116 = arith.index_cast %c1_i32_1039 : i32 to index
    %c0_1157 = arith.constant 0 : index
    %c0_1158 = arith.constant 0 : index
    %1117 = vector.load %arg14[%c0_1156, %1116, %c0_1157, %c0_1158] : memref<1x3x16x4xf32, #tpu.memory_space<vmem>>, vector<1x1x16x4xf32>
    %1118 = vector.shape_cast %1117 : vector<1x1x16x4xf32> to vector<16x4xf32>
    %1119 = vector.shape_cast %1115 : vector<16x4xf32> to vector<1x1x16x4xf32>
    tpu.vector_store %arg14[%c0_1156, %1116, %c0_1157, %c0_1158], %1119 {strides = array<i32>} : memref<1x3x16x4xf32, #tpu.memory_space<vmem>>, vector<1x1x16x4xf32>,
    %c2_i32_1159 = arith.constant 2 : i32
    %cst_1160 = arith.constant dense<0.000000e+00> : vector<16x4xf32>
    %1120 = tpu.matmul %1, %1115, %cst_1160 {dimension_numbers = #tpu.dot_dimension_numbers<[1], [0], [0], [1], [0, 0, 1, 1], [], []>} : vector<16x16xf32>, vector<16x4xf32>, vector<16x4xf32> -> vector<16x4xf32>
    %cst_1161 = arith.constant dense<0.000000e+00> : vector<16x4xf32>
    %1121 = tpu.matmul %3, %1115, %cst_1161 {dimension_numbers = #tpu.dot_dimension_numbers<[1], [0], [0], [1], [0, 0, 1, 1], [], []>} : vector<16x16xf32>, vector<16x4xf32>, vector<16x4xf32> -> vector<16x4xf32>
    %cst_1162 = arith.constant dense<0.000000e+00> : vector<16x4xf32>
    %1122 = tpu.matmul %5, %1115, %cst_1162 {dimension_numbers = #tpu.dot_dimension_numbers<[1], [0], [0], [1], [0, 0, 1, 1], [], []>} : vector<16x16xf32>, vector<16x4xf32>, vector<16x4xf32> -> vector<16x4xf32>
    %cst_1163 = arith.constant dense<0.000000e+00> : vector<16x32xf32>
    %1123 = tpu.matmul %1, %1110, %cst_1163 {dimension_numbers = #tpu.dot_dimension_numbers<[1], [0], [0], [1], [0, 0, 1, 1], [], []>} : vector<16x16xf32>, vector<16x32xf32>, vector<16x32xf32> -> vector<16x32xf32>
    %cst_1164 = arith.constant dense<0.000000e+00> : vector<16x32xf32>
    %1124 = tpu.matmul %3, %1110, %cst_1164 {dimension_numbers = #tpu.dot_dimension_numbers<[1], [0], [0], [1], [0, 0, 1, 1], [], []>} : vector<16x16xf32>, vector<16x32xf32>, vector<16x32xf32> -> vector<16x32xf32>
    %cst_1165 = arith.constant dense<0.000000e+00> : vector<16x32xf32>
    %1125 = tpu.matmul %5, %1110, %cst_1165 {dimension_numbers = #tpu.dot_dimension_numbers<[1], [0], [0], [1], [0, 0, 1, 1], [], []>} : vector<16x16xf32>, vector<16x32xf32>, vector<16x32xf32> -> vector<16x32xf32>
    %c1_1166 = arith.constant 1 : index
    %c0_1167 = arith.constant 0 : index
    %c0_1168 = arith.constant 0 : index
    %1126 = vector.load %arg9[%c1_1166, %c0_1167, %c0_1168] : memref<2x1x32xf32, #tpu.memory_space<vmem>>, vector<1x1x32xf32>
    %1127 = vector.shape_cast %1126 : vector<1x1x32xf32> to vector<1x32xf32>
    %c1_1169 = arith.constant 1 : index
    %c0_1170 = arith.constant 0 : index
    %c0_1171 = arith.constant 0 : index
    %1128 = vector.load %arg10[%c1_1169, %c0_1170, %c0_1171] : memref<2x1x32xf32, #tpu.memory_space<vmem>>, vector<1x1x32xf32>
    %1129 = vector.shape_cast %1128 : vector<1x1x32xf32> to vector<1x32xf32>
    %c1_1172 = arith.constant 1 : index
    %c0_1173 = arith.constant 0 : index
    %c0_1174 = arith.constant 0 : index
    %c0_1175 = arith.constant 0 : index
    %1130 = vector.load %arg3[%c1_1172, %c0_1173, %c0_1174, %c0_1175] : memref<2x3x4x32xf32, #tpu.memory_space<vmem>>, vector<1x1x4x32xf32>
    %1131 = vector.shape_cast %1130 : vector<1x1x4x32xf32> to vector<4x32xf32>
    %cst_1176 = arith.constant dense<0.000000e+00> : vector<16x32xf32>
    %1132 = tpu.matmul %1120, %1131, %cst_1176 {dimension_numbers = #tpu.dot_dimension_numbers<[1], [0], [0], [1], [0, 0, 1, 1], [], []>} : vector<16x4xf32>, vector<4x32xf32>, vector<16x32xf32> -> vector<16x32xf32>
    %1133 = vector.broadcast %1127 : vector<1x32xf32> to vector<16x32xf32>
    %1134 = arith.addf %1133, %1132 : vector<16x32xf32>
    %c1_1177 = arith.constant 1 : index
    %c0_1178 = arith.constant 0 : index
    %c0_1179 = arith.constant 0 : index
    %c0_1180 = arith.constant 0 : index
    %1135 = vector.load %arg4[%c1_1177, %c0_1178, %c0_1179, %c0_1180] : memref<2x3x32x32xf32, #tpu.memory_space<vmem>>, vector<1x1x32x32xf32>
    %1136 = vector.shape_cast %1135 : vector<1x1x32x32xf32> to vector<32x32xf32>
    %cst_1181 = arith.constant dense<0.000000e+00> : vector<16x32xf32>
    %1137 = tpu.matmul %1123, %1136, %cst_1181 {dimension_numbers = #tpu.dot_dimension_numbers<[1], [0], [0], [1], [0, 0, 1, 1], [], []>} : vector<16x32xf32>, vector<32x32xf32>, vector<16x32xf32> -> vector<16x32xf32>
    %1138 = arith.addf %1134, %1137 : vector<16x32xf32>
    %c1_1182 = arith.constant 1 : index
    %c0_1183 = arith.constant 0 : index
    %c0_1184 = arith.constant 0 : index
    %c0_1185 = arith.constant 0 : index
    %1139 = vector.load %arg5[%c1_1182, %c0_1183, %c0_1184, %c0_1185] : memref<2x3x4x32xf32, #tpu.memory_space<vmem>>, vector<1x1x4x32xf32>
    %1140 = vector.shape_cast %1139 : vector<1x1x4x32xf32> to vector<4x32xf32>
    %cst_1186 = arith.constant dense<0.000000e+00> : vector<16x32xf32>
    %1141 = tpu.matmul %1120, %1140, %cst_1186 {dimension_numbers = #tpu.dot_dimension_numbers<[1], [0], [0], [1], [0, 0, 1, 1], [], []>} : vector<16x4xf32>, vector<4x32xf32>, vector<16x32xf32> -> vector<16x32xf32>
    %1142 = vector.broadcast %1129 : vector<1x32xf32> to vector<16x32xf32>
    %1143 = arith.addf %1142, %1141 : vector<16x32xf32>
    %c1_1187 = arith.constant 1 : index
    %c0_1188 = arith.constant 0 : index
    %c0_1189 = arith.constant 0 : index
    %c0_1190 = arith.constant 0 : index
    %1144 = vector.load %arg6[%c1_1187, %c0_1188, %c0_1189, %c0_1190] : memref<2x3x32x32xf32, #tpu.memory_space<vmem>>, vector<1x1x32x32xf32>
    %1145 = vector.shape_cast %1144 : vector<1x1x32x32xf32> to vector<32x32xf32>
    %cst_1191 = arith.constant dense<0.000000e+00> : vector<16x32xf32>
    %1146 = tpu.matmul %1123, %1145, %cst_1191 {dimension_numbers = #tpu.dot_dimension_numbers<[1], [0], [0], [1], [0, 0, 1, 1], [], []>} : vector<16x32xf32>, vector<32x32xf32>, vector<16x32xf32> -> vector<16x32xf32>
    %1147 = arith.addf %1143, %1146 : vector<16x32xf32>
    %c1_1192 = arith.constant 1 : index
    %c1_1193 = arith.constant 1 : index
    %c0_1194 = arith.constant 0 : index
    %c0_1195 = arith.constant 0 : index
    %1148 = vector.load %arg3[%c1_1192, %c1_1193, %c0_1194, %c0_1195] : memref<2x3x4x32xf32, #tpu.memory_space<vmem>>, vector<1x1x4x32xf32>
    %1149 = vector.shape_cast %1148 : vector<1x1x4x32xf32> to vector<4x32xf32>
    %cst_1196 = arith.constant dense<0.000000e+00> : vector<16x32xf32>
    %1150 = tpu.matmul %1121, %1149, %cst_1196 {dimension_numbers = #tpu.dot_dimension_numbers<[1], [0], [0], [1], [0, 0, 1, 1], [], []>} : vector<16x4xf32>, vector<4x32xf32>, vector<16x32xf32> -> vector<16x32xf32>
    %1151 = arith.addf %1138, %1150 : vector<16x32xf32>
    %c1_1197 = arith.constant 1 : index
    %c1_1198 = arith.constant 1 : index
    %c0_1199 = arith.constant 0 : index
    %c0_1200 = arith.constant 0 : index
    %1152 = vector.load %arg4[%c1_1197, %c1_1198, %c0_1199, %c0_1200] : memref<2x3x32x32xf32, #tpu.memory_space<vmem>>, vector<1x1x32x32xf32>
    %1153 = vector.shape_cast %1152 : vector<1x1x32x32xf32> to vector<32x32xf32>
    %cst_1201 = arith.constant dense<0.000000e+00> : vector<16x32xf32>
    %1154 = tpu.matmul %1124, %1153, %cst_1201 {dimension_numbers = #tpu.dot_dimension_numbers<[1], [0], [0], [1], [0, 0, 1, 1], [], []>} : vector<16x32xf32>, vector<32x32xf32>, vector<16x32xf32> -> vector<16x32xf32>
    %1155 = arith.addf %1151, %1154 : vector<16x32xf32>
    %c1_1202 = arith.constant 1 : index
    %c1_1203 = arith.constant 1 : index
    %c0_1204 = arith.constant 0 : index
    %c0_1205 = arith.constant 0 : index
    %1156 = vector.load %arg5[%c1_1202, %c1_1203, %c0_1204, %c0_1205] : memref<2x3x4x32xf32, #tpu.memory_space<vmem>>, vector<1x1x4x32xf32>
    %1157 = vector.shape_cast %1156 : vector<1x1x4x32xf32> to vector<4x32xf32>
    %cst_1206 = arith.constant dense<0.000000e+00> : vector<16x32xf32>
    %1158 = tpu.matmul %1121, %1157, %cst_1206 {dimension_numbers = #tpu.dot_dimension_numbers<[1], [0], [0], [1], [0, 0, 1, 1], [], []>} : vector<16x4xf32>, vector<4x32xf32>, vector<16x32xf32> -> vector<16x32xf32>
    %1159 = arith.addf %1147, %1158 : vector<16x32xf32>
    %c1_1207 = arith.constant 1 : index
    %c1_1208 = arith.constant 1 : index
    %c0_1209 = arith.constant 0 : index
    %c0_1210 = arith.constant 0 : index
    %1160 = vector.load %arg6[%c1_1207, %c1_1208, %c0_1209, %c0_1210] : memref<2x3x32x32xf32, #tpu.memory_space<vmem>>, vector<1x1x32x32xf32>
    %1161 = vector.shape_cast %1160 : vector<1x1x32x32xf32> to vector<32x32xf32>
    %cst_1211 = arith.constant dense<0.000000e+00> : vector<16x32xf32>
    %1162 = tpu.matmul %1124, %1161, %cst_1211 {dimension_numbers = #tpu.dot_dimension_numbers<[1], [0], [0], [1], [0, 0, 1, 1], [], []>} : vector<16x32xf32>, vector<32x32xf32>, vector<16x32xf32> -> vector<16x32xf32>
    %1163 = arith.addf %1159, %1162 : vector<16x32xf32>
    %c1_1212 = arith.constant 1 : index
    %c2_1213 = arith.constant 2 : index
    %c0_1214 = arith.constant 0 : index
    %c0_1215 = arith.constant 0 : index
    %1164 = vector.load %arg3[%c1_1212, %c2_1213, %c0_1214, %c0_1215] : memref<2x3x4x32xf32, #tpu.memory_space<vmem>>, vector<1x1x4x32xf32>
    %1165 = vector.shape_cast %1164 : vector<1x1x4x32xf32> to vector<4x32xf32>
    %cst_1216 = arith.constant dense<0.000000e+00> : vector<16x32xf32>
    %1166 = tpu.matmul %1122, %1165, %cst_1216 {dimension_numbers = #tpu.dot_dimension_numbers<[1], [0], [0], [1], [0, 0, 1, 1], [], []>} : vector<16x4xf32>, vector<4x32xf32>, vector<16x32xf32> -> vector<16x32xf32>
    %1167 = arith.addf %1155, %1166 : vector<16x32xf32>
    %c1_1217 = arith.constant 1 : index
    %c2_1218 = arith.constant 2 : index
    %c0_1219 = arith.constant 0 : index
    %c0_1220 = arith.constant 0 : index
    %1168 = vector.load %arg4[%c1_1217, %c2_1218, %c0_1219, %c0_1220] : memref<2x3x32x32xf32, #tpu.memory_space<vmem>>, vector<1x1x32x32xf32>
    %1169 = vector.shape_cast %1168 : vector<1x1x32x32xf32> to vector<32x32xf32>
    %cst_1221 = arith.constant dense<0.000000e+00> : vector<16x32xf32>
    %1170 = tpu.matmul %1125, %1169, %cst_1221 {dimension_numbers = #tpu.dot_dimension_numbers<[1], [0], [0], [1], [0, 0, 1, 1], [], []>} : vector<16x32xf32>, vector<32x32xf32>, vector<16x32xf32> -> vector<16x32xf32>
    %1171 = arith.addf %1167, %1170 : vector<16x32xf32>
    %c1_1222 = arith.constant 1 : index
    %c2_1223 = arith.constant 2 : index
    %c0_1224 = arith.constant 0 : index
    %c0_1225 = arith.constant 0 : index
    %1172 = vector.load %arg5[%c1_1222, %c2_1223, %c0_1224, %c0_1225] : memref<2x3x4x32xf32, #tpu.memory_space<vmem>>, vector<1x1x4x32xf32>
    %1173 = vector.shape_cast %1172 : vector<1x1x4x32xf32> to vector<4x32xf32>
    %cst_1226 = arith.constant dense<0.000000e+00> : vector<16x32xf32>
    %1174 = tpu.matmul %1122, %1173, %cst_1226 {dimension_numbers = #tpu.dot_dimension_numbers<[1], [0], [0], [1], [0, 0, 1, 1], [], []>} : vector<16x4xf32>, vector<4x32xf32>, vector<16x32xf32> -> vector<16x32xf32>
    %1175 = arith.addf %1163, %1174 : vector<16x32xf32>
    %c1_1227 = arith.constant 1 : index
    %c2_1228 = arith.constant 2 : index
    %c0_1229 = arith.constant 0 : index
    %c0_1230 = arith.constant 0 : index
    %1176 = vector.load %arg6[%c1_1227, %c2_1228, %c0_1229, %c0_1230] : memref<2x3x32x32xf32, #tpu.memory_space<vmem>>, vector<1x1x32x32xf32>
    %1177 = vector.shape_cast %1176 : vector<1x1x32x32xf32> to vector<32x32xf32>
    %cst_1231 = arith.constant dense<0.000000e+00> : vector<16x32xf32>
    %1178 = tpu.matmul %1125, %1177, %cst_1231 {dimension_numbers = #tpu.dot_dimension_numbers<[1], [0], [0], [1], [0, 0, 1, 1], [], []>} : vector<16x32xf32>, vector<32x32xf32>, vector<16x32xf32> -> vector<16x32xf32>
    %1179 = arith.addf %1175, %1178 : vector<16x32xf32>
    %1180 = arith.negf %1171 : vector<16x32xf32>
    %1181 = math.exp %1180 : vector<16x32xf32>
    %cst_1232 = arith.constant 1.000000e+00 : f32
    %1182 = vector.broadcast %cst_1232 : f32 to vector<16x32xf32>
    %1183 = arith.addf %1182, %1181 : vector<16x32xf32>
    %1184 = arith.divf %1182, %1183 : vector<16x32xf32>
    %1185 = arith.negf %1179 : vector<16x32xf32>
    %1186 = math.exp %1185 : vector<16x32xf32>
    %cst_1233 = arith.constant 1.000000e+00 : f32
    %1187 = vector.broadcast %cst_1233 : f32 to vector<16x32xf32>
    %1188 = arith.addf %1187, %1186 : vector<16x32xf32>
    %1189 = arith.divf %1187, %1188 : vector<16x32xf32>
    %1190 = arith.mulf %1189, %1110 : vector<16x32xf32>
    %c1_1234 = arith.constant 1 : index
    %c0_1235 = arith.constant 0 : index
    %c0_1236 = arith.constant 0 : index
    %1191 = vector.load %arg11[%c1_1234, %c0_1235, %c0_1236] : memref<2x1x32xf32, #tpu.memory_space<vmem>>, vector<1x1x32xf32>
    %1192 = vector.shape_cast %1191 : vector<1x1x32xf32> to vector<1x32xf32>
    %cst_1237 = arith.constant dense<0.000000e+00> : vector<16x32xf32>
    %1193 = tpu.matmul %1, %1190, %cst_1237 {dimension_numbers = #tpu.dot_dimension_numbers<[1], [0], [0], [1], [0, 0, 1, 1], [], []>} : vector<16x16xf32>, vector<16x32xf32>, vector<16x32xf32> -> vector<16x32xf32>
    %c1_1238 = arith.constant 1 : index
    %c0_1239 = arith.constant 0 : index
    %c0_1240 = arith.constant 0 : index
    %c0_1241 = arith.constant 0 : index
    %1194 = vector.load %arg7[%c1_1238, %c0_1239, %c0_1240, %c0_1241] : memref<2x3x4x32xf32, #tpu.memory_space<vmem>>, vector<1x1x4x32xf32>
    %1195 = vector.shape_cast %1194 : vector<1x1x4x32xf32> to vector<4x32xf32>
    %cst_1242 = arith.constant dense<0.000000e+00> : vector<16x32xf32>
    %1196 = tpu.matmul %1120, %1195, %cst_1242 {dimension_numbers = #tpu.dot_dimension_numbers<[1], [0], [0], [1], [0, 0, 1, 1], [], []>} : vector<16x4xf32>, vector<4x32xf32>, vector<16x32xf32> -> vector<16x32xf32>
    %1197 = vector.broadcast %1192 : vector<1x32xf32> to vector<16x32xf32>
    %1198 = arith.addf %1197, %1196 : vector<16x32xf32>
    %c1_1243 = arith.constant 1 : index
    %c0_1244 = arith.constant 0 : index
    %c0_1245 = arith.constant 0 : index
    %c0_1246 = arith.constant 0 : index
    %1199 = vector.load %arg8[%c1_1243, %c0_1244, %c0_1245, %c0_1246] : memref<2x3x32x32xf32, #tpu.memory_space<vmem>>, vector<1x1x32x32xf32>
    %1200 = vector.shape_cast %1199 : vector<1x1x32x32xf32> to vector<32x32xf32>
    %cst_1247 = arith.constant dense<0.000000e+00> : vector<16x32xf32>
    %1201 = tpu.matmul %1193, %1200, %cst_1247 {dimension_numbers = #tpu.dot_dimension_numbers<[1], [0], [0], [1], [0, 0, 1, 1], [], []>} : vector<16x32xf32>, vector<32x32xf32>, vector<16x32xf32> -> vector<16x32xf32>
    %1202 = arith.addf %1198, %1201 : vector<16x32xf32>
    %cst_1248 = arith.constant dense<0.000000e+00> : vector<16x32xf32>
    %1203 = tpu.matmul %3, %1190, %cst_1248 {dimension_numbers = #tpu.dot_dimension_numbers<[1], [0], [0], [1], [0, 0, 1, 1], [], []>} : vector<16x16xf32>, vector<16x32xf32>, vector<16x32xf32> -> vector<16x32xf32>
    %c1_1249 = arith.constant 1 : index
    %c1_1250 = arith.constant 1 : index
    %c0_1251 = arith.constant 0 : index
    %c0_1252 = arith.constant 0 : index
    %1204 = vector.load %arg7[%c1_1249, %c1_1250, %c0_1251, %c0_1252] : memref<2x3x4x32xf32, #tpu.memory_space<vmem>>, vector<1x1x4x32xf32>
    %1205 = vector.shape_cast %1204 : vector<1x1x4x32xf32> to vector<4x32xf32>
    %cst_1253 = arith.constant dense<0.000000e+00> : vector<16x32xf32>
    %1206 = tpu.matmul %1121, %1205, %cst_1253 {dimension_numbers = #tpu.dot_dimension_numbers<[1], [0], [0], [1], [0, 0, 1, 1], [], []>} : vector<16x4xf32>, vector<4x32xf32>, vector<16x32xf32> -> vector<16x32xf32>
    %1207 = arith.addf %1202, %1206 : vector<16x32xf32>
    %c1_1254 = arith.constant 1 : index
    %c1_1255 = arith.constant 1 : index
    %c0_1256 = arith.constant 0 : index
    %c0_1257 = arith.constant 0 : index
    %1208 = vector.load %arg8[%c1_1254, %c1_1255, %c0_1256, %c0_1257] : memref<2x3x32x32xf32, #tpu.memory_space<vmem>>, vector<1x1x32x32xf32>
    %1209 = vector.shape_cast %1208 : vector<1x1x32x32xf32> to vector<32x32xf32>
    %cst_1258 = arith.constant dense<0.000000e+00> : vector<16x32xf32>
    %1210 = tpu.matmul %1203, %1209, %cst_1258 {dimension_numbers = #tpu.dot_dimension_numbers<[1], [0], [0], [1], [0, 0, 1, 1], [], []>} : vector<16x32xf32>, vector<32x32xf32>, vector<16x32xf32> -> vector<16x32xf32>
    %1211 = arith.addf %1207, %1210 : vector<16x32xf32>
    %cst_1259 = arith.constant dense<0.000000e+00> : vector<16x32xf32>
    %1212 = tpu.matmul %5, %1190, %cst_1259 {dimension_numbers = #tpu.dot_dimension_numbers<[1], [0], [0], [1], [0, 0, 1, 1], [], []>} : vector<16x16xf32>, vector<16x32xf32>, vector<16x32xf32> -> vector<16x32xf32>
    %c1_1260 = arith.constant 1 : index
    %c2_1261 = arith.constant 2 : index
    %c0_1262 = arith.constant 0 : index
    %c0_1263 = arith.constant 0 : index
    %1213 = vector.load %arg7[%c1_1260, %c2_1261, %c0_1262, %c0_1263] : memref<2x3x4x32xf32, #tpu.memory_space<vmem>>, vector<1x1x4x32xf32>
    %1214 = vector.shape_cast %1213 : vector<1x1x4x32xf32> to vector<4x32xf32>
    %cst_1264 = arith.constant dense<0.000000e+00> : vector<16x32xf32>
    %1215 = tpu.matmul %1122, %1214, %cst_1264 {dimension_numbers = #tpu.dot_dimension_numbers<[1], [0], [0], [1], [0, 0, 1, 1], [], []>} : vector<16x4xf32>, vector<4x32xf32>, vector<16x32xf32> -> vector<16x32xf32>
    %1216 = arith.addf %1211, %1215 : vector<16x32xf32>
    %c1_1265 = arith.constant 1 : index
    %c2_1266 = arith.constant 2 : index
    %c0_1267 = arith.constant 0 : index
    %c0_1268 = arith.constant 0 : index
    %1217 = vector.load %arg8[%c1_1265, %c2_1266, %c0_1267, %c0_1268] : memref<2x3x32x32xf32, #tpu.memory_space<vmem>>, vector<1x1x32x32xf32>
    %1218 = vector.shape_cast %1217 : vector<1x1x32x32xf32> to vector<32x32xf32>
    %cst_1269 = arith.constant dense<0.000000e+00> : vector<16x32xf32>
    %1219 = tpu.matmul %1212, %1218, %cst_1269 {dimension_numbers = #tpu.dot_dimension_numbers<[1], [0], [0], [1], [0, 0, 1, 1], [], []>} : vector<16x32xf32>, vector<32x32xf32>, vector<16x32xf32> -> vector<16x32xf32>
    %1220 = arith.addf %1216, %1219 : vector<16x32xf32>
    %1221 = math.tanh %1220 : vector<16x32xf32>
    %cst_1270 = arith.constant 1.000000e+00 : f32
    %1222 = vector.broadcast %cst_1270 : f32 to vector<16x32xf32>
    %1223 = arith.subf %1222, %1184 : vector<16x32xf32>
    %1224 = arith.mulf %1223, %1110 : vector<16x32xf32>
    %1225 = arith.mulf %1184, %1221 : vector<16x32xf32>
    %1226 = arith.addf %1224, %1225 : vector<16x32xf32>
    %c0_1271 = arith.constant 0 : index
    %c0_1272 = arith.constant 0 : index
    %1227 = vector.load %arg12[%c0_1271, %c0_1272] : memref<32x4xf32, #tpu.memory_space<vmem>>, vector<32x4xf32>
    %cst_1273 = arith.constant dense<0.000000e+00> : vector<16x4xf32>
    %1228 = tpu.matmul %1226, %1227, %cst_1273 {dimension_numbers = #tpu.dot_dimension_numbers<[1], [0], [0], [1], [0, 0, 1, 1], [], []>} : vector<16x32xf32>, vector<32x4xf32>, vector<16x4xf32> -> vector<16x4xf32>
    %c0_1274 = arith.constant 0 : index
    %c0_1275 = arith.constant 0 : index
    %1229 = vector.load %arg13[%c0_1274, %c0_1275] : memref<1x4xf32, #tpu.memory_space<vmem>>, vector<1x4xf32>
    %1230 = vector.broadcast %1229 : vector<1x4xf32> to vector<16x4xf32>
    %1231 = arith.addf %1228, %1230 : vector<16x4xf32>
    %c0_1276 = arith.constant 0 : index
    %1232 = arith.index_cast %c2_i32_1159 : i32 to index
    %c0_1277 = arith.constant 0 : index
    %c0_1278 = arith.constant 0 : index
    %1233 = vector.load %arg14[%c0_1276, %1232, %c0_1277, %c0_1278] : memref<1x3x16x4xf32, #tpu.memory_space<vmem>>, vector<1x1x16x4xf32>
    %1234 = vector.shape_cast %1233 : vector<1x1x16x4xf32> to vector<16x4xf32>
    %1235 = vector.shape_cast %1231 : vector<16x4xf32> to vector<1x1x16x4xf32>
    tpu.vector_store %arg14[%c0_1276, %1232, %c0_1277, %c0_1278], %1235 {strides = array<i32>} : memref<1x3x16x4xf32, #tpu.memory_space<vmem>>, vector<1x1x16x4xf32>,
    %c3_i32_1279 = arith.constant 3 : i32
    return
  }
  func.func @transform_0(%arg0: i32) -> (i32, i32, i32, i32) {
    %c0_i32 = arith.constant 0 : i32
    %c0_i32_0 = arith.constant 0 : i32
    %c0_i32_1 = arith.constant 0 : i32
    %c0_i32_2 = arith.constant 0 : i32
    return %arg0, %c0_i32, %c0_i32_0, %c0_i32_1 : i32, i32, i32, i32
  }
  func.func @transform_1(%arg0: i32) -> (i32, i32, i32) {
    %c0_i32 = arith.constant 0 : i32
    %c0_i32_0 = arith.constant 0 : i32
    %c0_i32_1 = arith.constant 0 : i32
    %c0_i32_2 = arith.constant 0 : i32
    return %c0_i32, %c0_i32_0, %c0_i32_1 : i32, i32, i32
  }
  func.func @transform_2(%arg0: i32) -> (i32, i32, i32, i32) {
    %c0_i32 = arith.constant 0 : i32
    %c0_i32_0 = arith.constant 0 : i32
    %c0_i32_1 = arith.constant 0 : i32
    %c0_i32_2 = arith.constant 0 : i32
    %c0_i32_3 = arith.constant 0 : i32
    return %c0_i32, %c0_i32_0, %c0_i32_1, %c0_i32_2 : i32, i32, i32, i32
  }
  func.func @transform_3(%arg0: i32) -> (i32, i32, i32, i32) {
    %c0_i32 = arith.constant 0 : i32
    %c0_i32_0 = arith.constant 0 : i32
    %c0_i32_1 = arith.constant 0 : i32
    %c0_i32_2 = arith.constant 0 : i32
    %c0_i32_3 = arith.constant 0 : i32
    return %c0_i32, %c0_i32_0, %c0_i32_1, %c0_i32_2 : i32, i32, i32, i32
  }
  func.func @transform_4(%arg0: i32) -> (i32, i32, i32, i32) {
    %c0_i32 = arith.constant 0 : i32
    %c0_i32_0 = arith.constant 0 : i32
    %c0_i32_1 = arith.constant 0 : i32
    %c0_i32_2 = arith.constant 0 : i32
    %c0_i32_3 = arith.constant 0 : i32
    return %c0_i32, %c0_i32_0, %c0_i32_1, %c0_i32_2 : i32, i32, i32, i32
  }
  func.func @transform_5(%arg0: i32) -> (i32, i32, i32, i32) {
    %c0_i32 = arith.constant 0 : i32
    %c0_i32_0 = arith.constant 0 : i32
    %c0_i32_1 = arith.constant 0 : i32
    %c0_i32_2 = arith.constant 0 : i32
    %c0_i32_3 = arith.constant 0 : i32
    return %c0_i32, %c0_i32_0, %c0_i32_1, %c0_i32_2 : i32, i32, i32, i32
  }
  func.func @transform_6(%arg0: i32) -> (i32, i32, i32, i32) {
    %c0_i32 = arith.constant 0 : i32
    %c0_i32_0 = arith.constant 0 : i32
    %c0_i32_1 = arith.constant 0 : i32
    %c0_i32_2 = arith.constant 0 : i32
    %c0_i32_3 = arith.constant 0 : i32
    return %c0_i32, %c0_i32_0, %c0_i32_1, %c0_i32_2 : i32, i32, i32, i32
  }
  func.func @transform_7(%arg0: i32) -> (i32, i32, i32, i32) {
    %c0_i32 = arith.constant 0 : i32
    %c0_i32_0 = arith.constant 0 : i32
    %c0_i32_1 = arith.constant 0 : i32
    %c0_i32_2 = arith.constant 0 : i32
    %c0_i32_3 = arith.constant 0 : i32
    return %c0_i32, %c0_i32_0, %c0_i32_1, %c0_i32_2 : i32, i32, i32, i32
  }
  func.func @transform_8(%arg0: i32) -> (i32, i32, i32) {
    %c0_i32 = arith.constant 0 : i32
    %c0_i32_0 = arith.constant 0 : i32
    %c0_i32_1 = arith.constant 0 : i32
    %c0_i32_2 = arith.constant 0 : i32
    return %c0_i32, %c0_i32_0, %c0_i32_1 : i32, i32, i32
  }
  func.func @transform_9(%arg0: i32) -> (i32, i32, i32) {
    %c0_i32 = arith.constant 0 : i32
    %c0_i32_0 = arith.constant 0 : i32
    %c0_i32_1 = arith.constant 0 : i32
    %c0_i32_2 = arith.constant 0 : i32
    return %c0_i32, %c0_i32_0, %c0_i32_1 : i32, i32, i32
  }
  func.func @transform_10(%arg0: i32) -> (i32, i32, i32) {
    %c0_i32 = arith.constant 0 : i32
    %c0_i32_0 = arith.constant 0 : i32
    %c0_i32_1 = arith.constant 0 : i32
    %c0_i32_2 = arith.constant 0 : i32
    return %c0_i32, %c0_i32_0, %c0_i32_1 : i32, i32, i32
  }
  func.func @transform_11(%arg0: i32) -> (i32, i32) {
    %c0_i32 = arith.constant 0 : i32
    %c0_i32_0 = arith.constant 0 : i32
    %c0_i32_1 = arith.constant 0 : i32
    return %c0_i32, %c0_i32_0 : i32, i32
  }
  func.func @transform_12(%arg0: i32) -> (i32, i32) {
    %c0_i32 = arith.constant 0 : i32
    %c0_i32_0 = arith.constant 0 : i32
    %c0_i32_1 = arith.constant 0 : i32
    return %c0_i32, %c0_i32_0 : i32, i32
  }
  func.func @transform_13(%arg0: i32) -> (i32, i32, i32, i32) {
    %c0_i32 = arith.constant 0 : i32
    %c0_i32_0 = arith.constant 0 : i32
    %c0_i32_1 = arith.constant 0 : i32
    %c0_i32_2 = arith.constant 0 : i32
    return %arg0, %c0_i32, %c0_i32_0, %c0_i32_1 : i32, i32, i32, i32
  }
}

</mosaic_0001>

<bundles_post_ra>
// kernel: gcn_gru_forward.1
= control target key start
LH: loop header
LB: loop body
LE: loop exit
PB: predicated region body
PF: predicated region fallthrough
CT: control target
= control target key end

     0   :  { %s11194_s25 = smov 0   ;;  %s14684_s0 = inlined_call_operand.vmem [shape: f32[2,8,16,4], index: 0, kind: input, shape index: {}]   ;;  %s14685_s1 = inlined_call_operand.vmem [shape: f32[3,16,16], index: 1, kind: input, shape index: {}]   ;;  %s14686_s2 = inlined_call_operand.vmem [shape: f32[2,3,4,32], index: 2, kind: input, shape index: {}]   ;;  %s14687_s3 = inlined_call_operand.vmem [shape: f32[2,3,32,32], index: 3, kind: input, shape index: {}]   ;;  %s14688_s4 = inlined_call_operand.vmem [shape: f32[2,3,4,32], index: 4, kind: input, shape index: {}]   ;;  %s14689_s5 = inlined_call_operand.vmem [shape: f32[2,3,32,32], index: 5, kind: input, shape index: {}]   ;;  %s14690_s6 = inlined_call_operand.vmem [shape: f32[2,3,4,32], index: 6, kind: input, shape index: {}]   ;;  %s14691_s7 = inlined_call_operand.vmem [shape: f32[2,3,32,32], index: 7, kind: input, shape index: {}]   ;;  %s14692_s8 = inlined_call_operand.vmem [shape: f32[2,1,32], index: 8, kind: input, shape index: {}]   ;;  %s14693_s9 = inlined_call_operand.vmem [shape: f32[2,1,32], index: 9, kind: input, shape index: {}]   ;;  %s14694_s10 = inlined_call_operand.vmem [shape: f32[2,1,32], index: 10, kind: input, shape index: {}]   ;;  %s14695_s11 = inlined_call_operand.vmem [shape: f32[32,4], index: 11, kind: input, shape index: {}]   ;;  %s14696_s12 = inlined_call_operand.vmem [shape: f32[1,4], index: 12, kind: input, shape index: {}]   ;;  %s14697_s13 = inlined_call_operand.vmem [shape: f32[2,3,16,4], index: 13, kind: output, shape index: {}]  }
   0x1 LB: > { %s9751_s26 = sadd.s32 4294967295, %s11121_s25   ;;  %p9755_p0 = scmp.ge.s32.totalorder %s11121_s25, 1  ;;  %s11121_s25 = sphi %s11194_s25, %s23_s25  }
   0x2   : > { %p387_p1 = scmp.lt.s32.totalorder %s11121_s25, 3 }
   0x4   : > { %p388_p2 = pnand %p9755_p0, %p387_p1 }
   0x6   : > { %391 = sbr.rel (%p388_p2) target bundleno = 8793 (0x2259), region = 72 }
   0xb   : > { %p431_p3 = scmp.lt.s32.totalorder %s9751_s26, 1  ;;  %vm451_vm0 = vcmask 130048   ;;  %v11205_v0 = vld [vmem:[%s14685_s1 + $0x8] sm:$0xff]  ;;  %v11123_v1 = vmov 0.0   ;;  %v11220_v2 = vld [vmem:[%s14685_s1] sm:$0xff]  ;;  %v11225_v3 = vld [vmem:[%s14685_s1 + $0x10] sm:$0xff] }
   0xc   : > { %10695 = vmatpush.msra.mxu3 %v11123_v1  ;;  %v11232_v6 = vld [vmem:[%s14685_s1 + $0x20] sm:$0xff]  ;;  %v11245_v7 = vld [vmem:[%s14685_s1 + $0x18] sm:$0xff]  ;;  %v11250_v8 = vld [vmem:[%s14685_s1 + $0x28] sm:$0xff]  ;;  %vm618_vm1 = vcmask 1043456   ;;  %vm611_vm2 = vcmask 31744   ;;  %vm654_vm3 = vcmask 261120  }
   0xd   : > { %s15001_s26 = smov (!%p431_p3, %s9751_s26), 1  ;;  %9770 = vmatmul.msk.f32.vlgmr.msra.gmra.mxu3 %vm451_vm0, %v11205_v0  ;;  %v11269_v9 = vld [vmem:[%s14686_s2] sm:$0xf]  ;;  %v11283_v11 = vld [vmem:[%s14687_s3 + $0x18] sm:$0xff]  ;;  %v11293_v13 = vld [vmem:[%s14687_s3 + $0x10] sm:$0xff] }
   0xe   : > { %577 = vmatpush.msrb.mxu3 %v11123_v1  ;;  %s10694_s29 = sshll.u32 %s15001_s26, 7  ;;  %v11274_v10 = vld [vmem:[%s14688_s4] sm:$0xf]  ;;  %v11288_v12 = vld [vmem:[%s14689_s5 + $0x18] sm:$0xff]  ;;  %v11300_v14 = vld [vmem:[%s14689_s5 + $0x10] sm:$0xff]  ;;  %s10696_s22 = smul.u32 48, %s15001_s26 }
   0xf   : > { %s11215_s15 = scalar_lea.vmem %s14684_s0, %s10694_s29  ;;  %v11305_v15 = vld [vmem:[%s14687_s3 + $0x8] sm:$0xff]  ;;  %v11319_v17 = vld [vmem:[%s14687_s3] sm:$0xff]  ;;  %v11345_v21 = vld [vmem:[%s14687_s3 + $0x38] sm:$0xff] }
  0x10   : > { %v450_v4 = vld [vmem:[%s11215_s15 + $0x8] sm:$0xff]  ;;  %v449_v5 = vld [vmem:[%s11215_s15] sm:$0xff]  ;;  %9780 = vmatpush.msk.msra.mxu3 %vm618_vm1, %v11274_v10  ;;  %v11350_v22 = vld [vmem:[%s14689_s5 + $0x38] sm:$0xff]  ;;  %s14159_s28 = scalar_lea.vmem %s14697_s13, %s10696_s22 }
  0x11   : > { %472 = vmatpush.msra.mxu0 %v450_v4  ;;  %501 = vmatpush.msra.mxu1 %v450_v4  ;;  %v11310_v16 = vld [vmem:[%s14689_s5 + $0x8] sm:$0xff]  ;;  %v11324_v18 = vld [vmem:[%s14689_s5] sm:$0xff]  ;;  %v11355_v23 = vld [vmem:[%s14687_s3 + $0x30] sm:$0xff] }
  0x12   : > { %530 = vmatpush.msra.mxu2 %v450_v4  ;;  %v11329_v19 = vld [vmem:[%s14688_s4 + $0x4] sm:$0xf]  ;;  %v11362_v24 = vld [vmem:[%s14689_s5 + $0x30] sm:$0xff]  ;;  %v11367_v25 = vld [vmem:[%s14687_s3 + $0x28] sm:$0xff] }
  0x13   : > { %473 = vmatpush.msra.mxu0 %v449_v5  ;;  %502 = vmatpush.msra.mxu1 %v449_v5  ;;  %v11338_v20 = vld [vmem:[%s14686_s2 + $0x4] sm:$0xf]  ;;  %v11372_v26 = vld [vmem:[%s14689_s5 + $0x28] sm:$0xff]  ;;  %v11415_v35 = vld [vmem:[%s14687_s3 + $0x58] sm:$0xff] }
  0x14   : > { %9763 = vmatmul.msk.f32.vlgmr.msra.gmra.mxu0 %vm451_vm0, %v11220_v2  ;;  %9765 = vmatmul.msk.f32.vlgmr.msra.gmra.mxu1 %vm451_vm0, %v11225_v3  ;;  %v11381_v27 = vld [vmem:[%s14687_s3 + $0x20] sm:$0xff]  ;;  %v11391_v30 = vld [vmem:[%s14688_s4 + $0x8] sm:$0xf]  ;;  %v11420_v36 = vld [vmem:[%s14689_s5 + $0x58] sm:$0xff] }
  0x15   : > { %554 = vmatpush.msrb.mxu0 %v11123_v1  ;;  %531 = vmatpush.msra.mxu2 %v449_v5  ;;  %v11386_v28 = vld [vmem:[%s14689_s5 + $0x20] sm:$0xff]  ;;  %v11400_v31 = vld [vmem:[%s14686_s2 + $0x8] sm:$0xf]  ;;  %v11435_v38 = vld [vmem:[%s14687_s3 + $0x50] sm:$0xff] }
  0x16   : > { %9767 = vmatmul.msk.f32.vlgmr.msra.gmra.mxu2 %vm451_vm0, %v11232_v6  ;;  %9771 = vmatmul.msk.f32.vlgmr.msrb.gmra.mxu3 %vm451_vm0, %v11225_v3  ;;  %v11440_v39 = vld [vmem:[%s14689_s5 + $0x50] sm:$0xff]  ;;  %v11447_v40 = vld [vmem:[%s14687_s3 + $0x48] sm:$0xff]  ;;  %v11463_v43 = vld [vmem:[%s14687_s3 + $0x40] sm:$0xff] }
  0x17   : > { %600 = vmatpush.msra.mxu0 %v11123_v1  ;;  %9775 = vmatpush.msk.msrb.mxu1 %vm618_vm1, %v11269_v9  ;;  %14808 = vst [vmem:[#allocation4_spill] sm:$0xff] %v11440_v39  ;;  %v11452_v41 = vld [vmem:[%s14689_s5 + $0x48] sm:$0xff]  ;;  %v11468_v44 = vld [vmem:[%s14689_s5 + $0x40] sm:$0xff] }
  0x18   : > { %673 = vmatpush.msrb.mxu2 %v11283_v11  ;;  %9796 = vmatpush.msk.msrb.mxu3 %vm618_vm1, %v11329_v19  ;;  %14809 = vst [vmem:[#allocation5_spill] sm:$0xff] %v11447_v40  ;;  %v11487_v47 = vld [vmem:[%s14690_s6] sm:$0xf] }
  0x19   : > { %9786 = vmatpush.msk.msra.mxu1 %vm618_vm1, %v11338_v20  ;;  %14810 = vst [vmem:[#allocation6_spill] sm:$0xff] %v11452_v41  ;;  %v11528_v59 = vld [vmem:[%s14693_s9] ss:$0 sm:$0xff] }
  0x1a   : > { %674 = vmatpush.msrb.mxu2 %v11293_v13  ;;  %14811 = vst [vmem:[#allocation7_spill] sm:$0xff] %v11463_v43 }
  0x1b   : > { %14812 = vst [vmem:[#allocation8_spill] sm:$0xff] %v11468_v44 }
  0x1c   : > { %9764 = vmatmul.msk.f32.gmra.mxu0 %vm451_vm0, %v11205_v0  ;;  %9766 = vmatmul.msk.f32.gmra.mxu1 %vm451_vm0, %v11245_v7  ;;  %14814 = vst [vmem:[#allocation10_spill] sm:$0xff] %v11487_v47 }
  0x1d   : > { %675 = vmatpush.msrb.mxu2 %v11305_v15  ;;  %14818 = vst [vmem:[#allocation14_spill] sm:$0xff] %v11528_v59 }
  0x1e   : > { %9768 = vmatmul.msk.f32.gmra.mxu2 %vm451_vm0, %v11250_v8  ;;  %9772 = vmatmul.msk.f32.gmra.mxu3 %vm451_vm0, %v11245_v7 }
  0x1f   : > { %676 = vmatpush.msrb.mxu2 %v11319_v17 }
  0x21   : > { %806 = vmatpush.msra.mxu2 %v11345_v21 }
  0x23   : > { %807 = vmatpush.msra.mxu2 %v11355_v23 }
  0x24   : > { %9769 = vmatmul.msk.f32.vlgmr.msrb.gmra.mxu0 %vm451_vm0, %v11220_v2 }
  0x25   : > { %734 = vmatpush.msrb.mxu0 %v11288_v12  ;;  %808 = vmatpush.msra.mxu2 %v11367_v25 }
  0x27   : > { %735 = vmatpush.msrb.mxu0 %v11300_v14  ;;  %809 = vmatpush.msra.mxu2 %v11381_v27 }
  0x29   : > { %736 = vmatpush.msrb.mxu0 %v11310_v16 }
  0x2b   : > { %737 = vmatpush.msrb.mxu0 %v11324_v18 }
  0x2c   : > { %9773 = vmatmul.msk.f32.vlgmr.msra.gmra.mxu0 %vm451_vm0, %v11232_v6 }
  0x2d   : > { %866 = vmatpush.msra.mxu0 %v11350_v22 }
  0x2f   : > { %867 = vmatpush.msra.mxu0 %v11362_v24 }
  0x31   : > { %868 = vmatpush.msra.mxu0 %v11372_v26 }
  0x33   : > { %869 = vmatpush.msra.mxu0 %v11386_v28 }
  0x34   : > { %9774 = vmatmul.msk.f32.gmra.mxu0 %vm451_vm0, %v11250_v8 }
  0x90   : > { %v11428_v37 = vpop.f32.mrf.mxu3 }
  0x91   : > { %v475_v29 = vpop.f32.mrf.mxu0  ;;  %v11408_v33 = vpop.f32.mrf.mxu1  ;;  %14807 = vst [vmem:[#allocation3_spill] sm:$0xff] %v11428_v37 }
  0x92   : > { %9776 = vmatmul.msk.f32.vlgmr.msrb.gmra.mxu1 %vm611_vm2, %v475_v29  ;;  %9781 = vmatmul.msk.f32.vlgmr.msra.gmra.mxu3 %vm611_vm2, %v475_v29 }
  0x93   : > { %9816 = vmatpush.msk.msra.mxu3 %vm618_vm1, %v11391_v30  ;;  %9806 = vmatpush.msk.msrb.mxu1 %vm618_vm1, %v11400_v31 }
  0x99   : > { %v478_v32 = vpop.f32.mrf.mxu0  ;;  %v11456_v42 = vpop.f32.mrf.mxu1 }
  0x9a   : > { %9777 = vmatmul.msk.f32.gmra.mxu1 %vm611_vm2, %v478_v32  ;;  %9782 = vmatmul.msk.f32.gmra.mxu3 %vm611_vm2, %v478_v32  ;;  %v11480_v45 = vpop.f32.mrf.mxu3  ;;  %v11482_v46 = vpop.f32.mrf.mxu2 }
  0x9b   : > { %14813 = vst [vmem:[#allocation9_spill] sm:$0xff] %v11480_v45 }
  0xa1   : > { %v11410_v34 = vpop.f32.mrf.mxu0 }
  0xa2   : > { %14806 = vst [vmem:[#allocation2_spill] sm:$0xff] %v11410_v34  ;;  %9778 = vmatmul.msk.f32.vlgmr.msrb.gmra.mxu2 %vm654_vm3, %v11410_v34  ;;  %9783 = vmatmul.msk.f32.vlgmr.msrb.gmra.mxu0 %vm654_vm3, %v11410_v34  ;;  %v11499_v48 = vpop.f32.mrf.mxu3  ;;  %v11501_v49 = vpop.f32.mrf.mxu2 }
  0xa3   : > { %9797 = vmatmul.msk.f32.vlgmr.msrb.gmra.mxu3 %vm611_vm2, %v11408_v33  ;;  %9787 = vmatmul.msk.f32.vlgmr.msra.gmra.mxu1 %vm611_vm2, %v11408_v33  ;;  %14815 = vst [vmem:[#allocation11_spill] sm:$0xff] %v11499_v48 }
  0xa4   : > { %938 = vmatpush.msrb.mxu2 %v11415_v35  ;;  %998 = vmatpush.msrb.mxu0 %v11420_v36 }
  0xa6   : > { %939 = vmatpush.msrb.mxu2 %v11435_v38  ;;  %999 = vmatpush.msrb.mxu0 %v11440_v39 }
  0xa8   : > { %940 = vmatpush.msrb.mxu2 %v11447_v40  ;;  %1000 = vmatpush.msrb.mxu0 %v11452_v41 }
  0xa9   : > { %v11511_v50 = vpop.f32.mrf.mxu0 }
  0xaa   : > { %9779 = vmatmul.msk.f32.gmra.mxu2 %vm654_vm3, %v11428_v37  ;;  %9784 = vmatmul.msk.f32.gmra.mxu0 %vm654_vm3, %v11428_v37  ;;  %14816 = vst [vmem:[#allocation12_spill] sm:$0xff] %v11511_v50 }
  0xab   : > { %9798 = vmatmul.msk.f32.gmra.mxu3 %vm611_vm2, %v11456_v42  ;;  %9788 = vmatmul.msk.f32.gmra.mxu1 %vm611_vm2, %v11456_v42 }
  0xac   : > { %941 = vmatpush.msrb.mxu2 %v11463_v43  ;;  %1001 = vmatpush.msrb.mxu0 %v11468_v44 }
  0xb1   : > { %v11517_v51 = vpop.f32.mrf.mxu0 }
  0xb2   : > { %9793 = vmatmul.msk.f32.vlgmr.msra.gmra.mxu2 %vm654_vm3, %v11480_v45  ;;  %9803 = vmatmul.msk.f32.vlgmr.msra.gmra.mxu0 %vm654_vm3, %v11480_v45  ;;  %14817 = vst [vmem:[#allocation13_spill] sm:$0xff] %v11517_v51 }
  0xb3   : > { %9817 = vmatmul.msk.f32.vlgmr.msra.gmra.mxu3 %vm611_vm2, %v11482_v46  ;;  %9807 = vmatmul.msk.f32.vlgmr.msrb.gmra.mxu1 %vm611_vm2, %v11482_v46 }
  0xb4   : > { %9831 = vmatpush.msk.msra.mxu2 %vm618_vm1, %v11487_v47 }
  0xba   : > { %9794 = vmatmul.msk.f32.gmra.mxu2 %vm654_vm3, %v11499_v48  ;;  %9804 = vmatmul.msk.f32.gmra.mxu0 %vm654_vm3, %v11499_v48  ;;  %v11535_v48 = vld [vmem:[%s14691_s7 + $0x18] sm:$0xff] }
  0xbb   : > { %9818 = vmatmul.msk.f32.gmra.mxu3 %vm611_vm2, %v11501_v49  ;;  %9808 = vmatmul.msk.f32.gmra.mxu1 %vm611_vm2, %v11501_v49 }
  0xbc   : > { %1167 = vmatpush.msrb.mxu3 %v11535_v48 }
  0xc2   : > { %9813 = vmatmul.msk.f32.vlgmr.msrb.gmra.mxu2 %vm654_vm3, %v11511_v50  ;;  %9823 = vmatmul.msk.f32.vlgmr.msrb.gmra.mxu0 %vm654_vm3, %v11511_v50 }
  0xca   : > { %9814 = vmatmul.msk.f32.gmra.mxu2 %vm654_vm3, %v11517_v51  ;;  %9824 = vmatmul.msk.f32.gmra.mxu0 %vm654_vm3, %v11517_v51 }
  0xd2   : > { %9832 = vmatmul.msk.f32.vlgmr.msra.gmra.mxu2 %vm611_vm2, %v475_v29 }
  0xda   : > { %9833 = vmatmul.msk.f32.gmra.mxu2 %vm611_vm2, %v478_v32 }
 0x115   : > { %v707_v52 = vpop.f32.mrf.mxu3 }
 0x116   : > { %v716_v60 = vadd.f32 %v11528_v59, %v707_v52 }
 0x11d   : > { %v710_v53 = vpop.f32.mrf.mxu3 }
 0x11e   : > { %v717_v5 = vadd.f32 %v11528_v59, %v710_v53 }
 0x11f   : > { %v739_v54 = vpop.f32.mrf.mxu0 }
 0x120   : > { %v745_v62 = vadd.f32 %v739_v54, %v716_v60  ;;  %v11541_v54 = vld [vmem:[%s14691_s7 + $0x10] sm:$0xff] }
 0x121   : > { %1168 = vmatpush.msrb.mxu3 %v11541_v54 }
 0x126   : > { %v841_v55 = vpop.f32.mrf.mxu3 }
 0x127   : > { %v742_v56 = vpop.f32.mrf.mxu0  ;;  %v847_v1 = vadd.f32 %v841_v55, %v745_v62  ;;  %v11547_v55 = vld [vmem:[%s14691_s7 + $0x8] sm:$0xff] }
 0x128   : > { %v746_v51 = vadd.f32 %v742_v56, %v717_v5  ;;  %1169 = vmatpush.msrb.mxu3 %v11547_v55 }
 0x12e   : > { %v844_v57 = vpop.f32.mrf.mxu3 }
 0x12f   : > { %v871_v58 = vpop.f32.mrf.mxu0  ;;  %v848_v45 = vadd.f32 %v844_v57, %v746_v51 }
 0x130   : > { %v877_v4 = vadd.f32 %v871_v58, %v847_v1 }
 0x136   : > { %v973_v63 = vpop.f32.mrf.mxu3 }
 0x137   : > { %v874_v61 = vpop.f32.mrf.mxu0  ;;  %v979_v29 = vadd.f32 %v973_v63, %v877_v4 }
 0x138   : > { %v878_v53 = vadd.f32 %v874_v61, %v848_v45 }
 0x13e   : > { %v976_v52 = vpop.f32.mrf.mxu3 }
 0x13f   : > { %v1003_v32 = vpop.f32.mrf.mxu0  ;;  %v980_v51 = vadd.f32 %v976_v52, %v878_v53 }
 0x140   : > { %v1009_v50 = vadd.f32 %v1003_v32, %v979_v29 }
 0x142   : > { %v9827_v37 = vmul.f32 -1.442695, %v1009_v50  ;;  %v11552_v50 = vld [vmem:[%s14691_s7] sm:$0xff] }
 0x143   : > { %1170 = vmatpush.msrb.mxu3 %v11552_v50 }
 0x144   : > { %10721 = vpow2.f32 %v9827_v37 }
 0x147   : > { %v1006_v56 = vpop.f32.mrf.mxu0 }
 0x148   : > { %v1010_v57 = vadd.f32 %v1006_v56, %v980_v51 }
 0x14a   : > { %v10722_v37 = vpop.eup %10721  ;;  %v9828_v45 = vmul.f32 -1.442695, %v1010_v57 }
 0x14b   : > { %v1055_v58 = vadd.f32 1.0, %v10722_v37 }
 0x14c   : > { %10723 = vpow2.f32 %v9828_v45 }
 0x14d   : > { %10725 = vrcp.f32 %v1055_v58  ;;  %vm1062_vm5 = vweird.f32 %v1055_v58  ;;  %v1068_v51 = vand.u32 2147483648, %v1055_v58  ;;  %v1066_v37 = vand.u32 2147483647, %v1055_v58 }
 0x14f   : > { %vm1067_vm11 = vcmp.eq.f32.partialorder %v1066_v37, 8.507059e+37 }
 0x152   : > { %v10724_v60 = vpop.eup %10723 }
 0x153   : > { %v10726_v61 = vpop.eup %10725  ;;  %v1056_v62 = vadd.f32 1.0, %v10724_v60 }
 0x154   : > { %v1058_v63 = vmul.f32 %v10726_v61, %v1055_v58  ;;  %vm1063_vm4 = vweird.f32 %v10726_v61 }
 0x155   : > { %10727 = vrcp.f32 %v1056_v62  ;;  %v1083_v53 = vand.u32 2147483648, %v1056_v62  ;;  %v1081_v57 = vand.u32 2147483647, %v1056_v62  ;;  %vm1064_vm7 = vmor %vm1062_vm5, %vm1063_vm4  ;;  %vm1077_vm8 = vweird.f32 %v1056_v62 }
 0x156   : > { %v1059_v1 = vsub.f32 1.0, %v1058_v63  ;;  %v1069_v63 = vor.u32 1.1754944e-38, %v1068_v51  ;;  %v11595_v51 = vld [vmem:[%s14691_s7 + $0x30] sm:$0xff] }
 0x157   : > { %v1084_v34 = vor.u32 1.1754944e-38, %v1083_v53  ;;  %vm1082_vm10 = vcmp.eq.f32.partialorder %v1081_v57, 8.507059e+37  ;;  %14822 = vst [vmem:[#allocation18_spill] sm:$0xff] %v11595_v51 }
 0x158   : > { %v1060_v4 = vmul.f32 %v10726_v61, %v1059_v1 }
 0x15a   : > { %v1061_v52 = vadd.f32 %v10726_v61, %v1060_v4  ;;  %v11559_v4 = vld [vmem:[%s14691_s7 + $0x38] sm:$0xff] }
 0x15b   : > { %v10728_v5 = vpop.eup %10727  ;;  %14819 = vst [vmem:[#allocation15_spill] sm:$0xff] %v11559_v4  ;;  %1256 = vmatpush.msrb.mxu2 %v11559_v4 }
 0x15c   : > { %v1073_v29 = vmul.f32 %v10728_v5, %v1056_v62  ;;  %vm1078_vm6 = vweird.f32 %v10728_v5  ;;  %v1065_v60 = vsel %vm1064_vm7, %v10726_v61, %v1061_v52  ;;  %v11565_v61 = vld [vmem:[%s14690_s6 + $0x4] sm:$0xf] }
 0x15d   : > { %vm1079_vm9 = vmor %vm1077_vm8, %vm1078_vm6  ;;  %14820 = vst [vmem:[#allocation16_spill] sm:$0xff] %v11565_v61  ;;  %1257 = vmatpush.msrb.mxu2 %v11595_v51 }
 0x15e   : > { %v1074_v32 = vsub.f32 1.0, %v1073_v29 }
 0x160   : > { %v1075_v56 = vmul.f32 %v10728_v5, %v1074_v32  ;;  %v1070_v32 = vsel %vm1067_vm11, %v1069_v63, %v1065_v60  ;;  %v11621_v63 = vld [vmem:[%s14691_s7 + $0x58] sm:$0xff] }
 0x161   : > { %v1087_v62 = vmul.f32 0.0, %v1070_v32  ;;  %14825 = vst [vmem:[#allocation21_spill] sm:$0xff] %v11621_v63  ;;  %v11639_v32 = vld [vmem:[%s14691_s7 + $0x40] sm:$0xff] }
 0x162   : > { %v1076_v45 = vadd.f32 %v10728_v5, %v1075_v56  ;;  %14828 = vst [vmem:[#allocation24_spill] sm:$0xff] %v11639_v32 }
 0x164   : > { %v1080_v1 = vsel %vm1079_vm9, %v10728_v5, %v1076_v45  ;;  %v11570_v5 = vld [vmem:[%s14690_s6 + $0x8] sm:$0xf] }
 0x165   : > { %v1085_v29 = vsel %vm1082_vm10, %v1084_v34, %v1080_v1  ;;  %14821 = vst [vmem:[#allocation17_spill] sm:$0xff] %v11570_v5  ;;  %v639_v34 = vpop.f32.mrf.mxu1  ;;  %v11627_v1 = vld [vmem:[%s14691_s7 + $0x50] sm:$0xff] }
 0x166   : > { %v1088_v58 = vmul.f32 0.0, %v1085_v29  ;;  %14826 = vst [vmem:[#allocation22_spill] sm:$0xff] %v11627_v1  ;;  %v11633_v29 = vld [vmem:[%s14691_s7 + $0x48] sm:$0xff] }
 0x167   : > { %14827 = vst [vmem:[#allocation23_spill] sm:$0xff] %v11633_v29 }
 0x168   : > { %1104 = vmatpush.msra.mxu1 %v1088_v58  ;;  %1194 = vmatpush.msra.mxu0 %v1088_v58 }
 0x169   : > { %1283 = vmatpush.msra.mxu3 %v1088_v58 }
 0x16a   : > { %1105 = vmatpush.msra.mxu1 %v1087_v62  ;;  %1195 = vmatpush.msra.mxu0 %v1087_v62 }
 0x16b   : > { %1284 = vmatpush.msra.mxu3 %v1087_v62  ;;  %9829 = vmatmul.msk.f32.vlgmr.msra.gmra.mxu1 %vm451_vm0, %v11220_v2 }
 0x16c   : > { %9836 = vmatmul.msk.f32.vlgmr.msra.gmra.mxu0 %vm451_vm0, %v11225_v3  ;;  %9839 = vmatpush.msk.msrb.mxu1 %vm618_vm1, %v11565_v61 }
 0x16d   : > { %9851 = vmatpush.msk.msrb.mxu0 %vm618_vm1, %v11570_v5  ;;  %v642_v52 = vpop.f32.mrf.mxu1 }
 0x16e   : > { %1345 = vmatpush.msra.mxu1 %v11621_v63  ;;  %v11649_v63 = vld [vmem:[%s14692_s8] ss:$0 sm:$0xff] }
 0x16f   : > { %v648_v61 = vadd.f32 %v11649_v63, %v639_v34 }
 0x170   : > { %1346 = vmatpush.msra.mxu1 %v11627_v1 }
 0x172   : > { %1347 = vmatpush.msra.mxu1 %v11633_v29 }
 0x173   : > { %9830 = vmatmul.msk.f32.gmra.mxu1 %vm451_vm0, %v11205_v0 }
 0x174   : > { %9837 = vmatmul.msk.f32.gmra.mxu0 %vm451_vm0, %v11245_v7  ;;  %1348 = vmatpush.msra.mxu1 %v11639_v32  ;;  %v649_v32 = vadd.f32 %v11649_v63, %v642_v52  ;;  %v9861_v52 = vld [vmem:[%s11215_s15 + $0x18] sm:$0xff] }
 0x175   : > { %v775_v53 = vpop.f32.mrf.mxu1  ;;  %1431 = vmatpush.msra.mxu0 %v9861_v52 }
 0x17b   : > { %9840 = vmatmul.msk.f32.vlgmr.msrb.gmra.mxu1 %vm611_vm2, %v11408_v33  ;;  %v11601_v33 = vld [vmem:[%s14691_s7 + $0x28] sm:$0xff] }
 0x17c   : > { %9852 = vmatmul.msk.f32.vlgmr.msrb.gmra.mxu0 %vm611_vm2, %v11482_v46  ;;  %14823 = vst [vmem:[#allocation19_spill] sm:$0xff] %v11601_v33  ;;  %1258 = vmatpush.msrb.mxu2 %v11601_v33 }
 0x17d   : > { %v778_v46 = vpop.f32.mrf.mxu1 }
 0x183   : > { %9841 = vmatmul.msk.f32.gmra.mxu1 %vm611_vm2, %v11456_v42  ;;  %v11606_v42 = vld [vmem:[%s14691_s7 + $0x20] sm:$0xff] }
 0x184   : > { %9853 = vmatmul.msk.f32.gmra.mxu0 %vm611_vm2, %v11501_v49  ;;  %14824 = vst [vmem:[#allocation20_spill] sm:$0xff] %v11606_v42  ;;  %1259 = vmatpush.msrb.mxu2 %v11606_v42 }
 0x185   : > { %v907_v49 = vpop.f32.mrf.mxu1 }
 0x186   : > { %1385 = vmatpush.msra.mxu2 %v9861_v52 }
 0x18d   : > { %v910_v56 = vpop.f32.mrf.mxu1 }
 0x1e8   : > { %v1107_v57 = vpop.f32.mrf.mxu1 }
 0x1e9   : > { %v1197_v37 = vpop.f32.mrf.mxu0  ;;  %9834 = vmatmul.msk.f32.vlgmr.msrb.gmra.mxu3 %vm654_vm3, %v1107_v57 }
 0x1ea   : > { %9846 = vmatmul.msk.f32.vlgmr.msrb.gmra.mxu2 %vm654_vm3, %v1197_v37  ;;  %1408 = vmatpush.msrb.mxu3 %v9861_v52 }
 0x1f0   : > { %v1110_v45 = vpop.f32.mrf.mxu1 }
 0x1f1   : > { %v1200_v60 = vpop.f32.mrf.mxu0  ;;  %9835 = vmatmul.msk.f32.gmra.mxu3 %vm654_vm3, %v1110_v45  ;;  %v678_v45 = vpop.f32.mrf.mxu2 }
 0x1f2   : > { %9847 = vmatmul.msk.f32.gmra.mxu2 %vm654_vm3, %v1200_v60 }
 0x1f9   : > { %9848 = vmatmul.msk.f32.vlgmr.msra.gmra.mxu3 %vm451_vm0, %v11232_v6  ;;  %v681_v60 = vpop.f32.mrf.mxu2 }
 0x1fa   : > { %v685_v59 = vadd.f32 %v681_v60, %v649_v32  ;;  %v9860_v32 = vld [vmem:[%s11215_s15 + $0x10] sm:$0xff] }
 0x1fb   : > { %1386 = vmatpush.msra.mxu2 %v9860_v32  ;;  %1409 = vmatpush.msrb.mxu3 %v9860_v32 }
 0x1fc   : > { %v782_v42 = vadd.f32 %v778_v46, %v685_v59  ;;  %9862 = vmatmul.msk.f32.vlgmr.msra.gmra.mxu2 %vm451_vm0, %v11220_v2  ;;  %1432 = vmatpush.msra.mxu0 %v9860_v32 }
 0x1fd   : > { %9866 = vmatmul.msk.f32.vlgmr.msra.gmra.mxu0 %vm451_vm0, %v11232_v6 }
 0x1fe   : > { %9874 = vmatpush.msk.msrb.mxu0 %vm618_vm1, %v11269_v9  ;;  %v11674_v9 = vld [vmem:[%s14694_s10] ss:$0 sm:$0xff] }
 0x1ff   : > { %14829 = vst [vmem:[#allocation25_spill] sm:$0xff] %v11674_v9 }
 0x200   : > { %9884 = vmatpush.msk.msra.mxu0 %vm618_vm1, %v11338_v20 }
 0x201   : > { %9849 = vmatmul.msk.f32.gmra.mxu3 %vm451_vm0, %v11250_v8  ;;  %v811_v1 = vpop.f32.mrf.mxu2 }
 0x204   : > { %9863 = vmatmul.msk.f32.gmra.mxu2 %vm451_vm0, %v11205_v0 }
 0x205   : > { %9867 = vmatmul.msk.f32.gmra.mxu0 %vm451_vm0, %v11250_v8 }
 0x209   : > { %v814_v29 = vpop.f32.mrf.mxu2  ;;  %9864 = vmatmul.msk.f32.vlgmr.msrb.gmra.mxu3 %vm451_vm0, %v11225_v3 }
 0x211   : > { %v943_v5 = vpop.f32.mrf.mxu2  ;;  %9865 = vmatmul.msk.f32.gmra.mxu3 %vm451_vm0, %v11245_v7 }
 0x219   : > { %v946_v4 = vpop.f32.mrf.mxu2 }
 0x221   : > { %v1134_v34 = vpop.f32.mrf.mxu2 }
 0x222   : > { %v1143_v59 = vadd.f32 %v11674_v9, %v1134_v34 }
 0x26c   : > { %v1172_v58 = vpop.f32.mrf.mxu3 }
 0x274   : > { %v11642_v62 = vpop.f32.mrf.mxu3 }
 0x27c   : > { %v1286_v57 = vpop.f32.mrf.mxu3 }
 0x27d   : > { %9858 = vmatmul.msk.f32.vlgmr.msra.gmra.mxu1 %vm654_vm3, %v1286_v57  ;;  %v684_v57 = vadd.f32 %v678_v45, %v648_v61 }
 0x27f   : > { %v781_v33 = vadd.f32 %v775_v53, %v684_v57 }
 0x281   : > { %v817_v51 = vadd.f32 %v811_v1, %v781_v33  ;;  %v1314_v1 = vpop.f32.mrf.mxu0 }
 0x283   : > { %v913_v44 = vadd.f32 %v907_v49, %v817_v51 }
 0x284   : > { %v1289_v37 = vpop.f32.mrf.mxu3 }
 0x285   : > { %9859 = vmatmul.msk.f32.gmra.mxu1 %vm654_vm3, %v1289_v37  ;;  %v818_v37 = vadd.f32 %v814_v29, %v782_v42  ;;  %v949_v41 = vadd.f32 %v943_v5, %v913_v44  ;;  %v1178_v5 = vadd.f32 %v1172_v58, %v1143_v59 }
 0x287   : > { %v914_v47 = vadd.f32 %v910_v56, %v818_v37  ;;  %v9825_v39 = vmul.f32 -1.442695, %v949_v41 }
 0x289   : > { %v950_v43 = vadd.f32 %v946_v4, %v914_v47  ;;  %v1225_v47 = vpop.f32.mrf.mxu1 }
 0x28a   : > { %v1231_v46 = vadd.f32 %v1225_v47, %v1178_v5 }
 0x28b   : > { %v9826_v40 = vmul.f32 -1.442695, %v950_v43  ;;  %v1137_v43 = vpop.f32.mrf.mxu2 }
 0x28c   : > { %v1144_v33 = vadd.f32 %v11674_v9, %v1137_v43  ;;  %v1317_v43 = vpop.f32.mrf.mxu0 }
 0x28d   : > { %10729 = vpow2.f32 %v9826_v40 }
 0x28e   : > { %10731 = vpow2.f32 %v9825_v39  ;;  %v1179_v49 = vadd.f32 %v11642_v62, %v1144_v33 }
 0x291   : > { %v1228_v51 = vpop.f32.mrf.mxu1 }
 0x292   : > { %v1232_v60 = vadd.f32 %v1228_v51, %v1179_v49 }
 0x293   : > { %v10730_v44 = vpop.eup %10729  ;;  %v1261_v4 = vpop.f32.mrf.mxu2 }
 0x294   : > { %v10732_v39 = vpop.eup %10731  ;;  %v1018_v40 = vadd.f32 1.0, %v10730_v44  ;;  %v1267_v45 = vadd.f32 %v1261_v4, %v1231_v46 }
 0x295   : > { %v1017_v41 = vadd.f32 1.0, %v10732_v39 }
 0x296   : > { %10733 = vrcp.f32 %v1018_v40  ;;  %v1320_v44 = vadd.f32 %v1314_v1, %v1267_v45  ;;  %v1045_v59 = vand.u32 2147483648, %v1018_v40  ;;  %vm1039_vm14 = vweird.f32 %v1018_v40 }
 0x297   : > { %10735 = vrcp.f32 %v1017_v41  ;;  %v1043_v62 = vand.u32 2147483647, %v1018_v40  ;;  %v1030_v47 = vand.u32 2147483648, %v1017_v41  ;;  %vm1024_vm4 = vweird.f32 %v1017_v41 }
 0x298   : > { %v1028_v4 = vand.u32 2147483647, %v1017_v41  ;;  %v1046_v33 = vor.u32 1.1754944e-38, %v1045_v59 }
 0x299   : > { %vm1044_vm6 = vcmp.eq.f32.partialorder %v1043_v62, 8.507059e+37  ;;  %v1031_v49 = vor.u32 1.1754944e-38, %v1030_v47 }
 0x29a   : > { %vm1029_vm7 = vcmp.eq.f32.partialorder %v1028_v4, 8.507059e+37 }
 0x29b   : > { %v1264_v57 = vpop.f32.mrf.mxu2 }
 0x29c   : > { %v10734_v20 = vpop.eup %10733  ;;  %v1268_v32 = vadd.f32 %v1264_v57, %v1232_v60 }
 0x29d   : > { %v10736_v61 = vpop.eup %10735  ;;  %v1035_v53 = vmul.f32 %v10734_v20, %v1018_v40  ;;  %vm1040_vm12 = vweird.f32 %v10734_v20 }
 0x29e   : > { %v1020_v42 = vmul.f32 %v10736_v61, %v1017_v41  ;;  %vm1025_vm13 = vweird.f32 %v10736_v61  ;;  %vm1041_vm15 = vmor %vm1039_vm14, %vm1040_vm12  ;;  %v1321_v5 = vadd.f32 %v1317_v43, %v1268_v32 }
 0x29f   : > { %v1036_v56 = vsub.f32 1.0, %v1035_v53  ;;  %vm1026_vm5 = vmor %vm1024_vm4, %vm1025_vm13 }
 0x2a0   : > { %v1021_v29 = vsub.f32 1.0, %v1020_v42 }
 0x2a1   : > { %v1037_v52 = vmul.f32 %v10734_v20, %v1036_v56 }
 0x2a2   : > { %v1022_v34 = vmul.f32 %v10736_v61, %v1021_v29 }
 0x2a3   : > { %v1038_v58 = vadd.f32 %v10734_v20, %v1037_v52 }
 0x2a4   : > { %v1023_v9 = vadd.f32 %v10736_v61, %v1022_v34 }
 0x2a5   : > { %v1042_v53 = vsel %vm1041_vm15, %v10734_v20, %v1038_v58 }
 0x2a6   : > { %v1027_v46 = vsel %vm1026_vm5, %v10736_v61, %v1023_v9  ;;  %v1047_v56 = vsel %vm1044_vm6, %v1046_v33, %v1042_v53 }
 0x2a7   : > { %v1032_v1 = vsel %vm1029_vm7, %v1031_v49, %v1027_v46  ;;  %v1361_v29 = vsub.f32 1.0, %v1047_v56 }
 0x2a8   : > { %v1360_v45 = vsub.f32 1.0, %v1032_v1 }
 0x2aa   : > { %v1362_v20 = vmul.f32 0.0, %v1360_v45 }
 0x2fa   : > { %v1350_v37 = vpop.f32.mrf.mxu1 }
 0x2fb   : > { %v1356_v39 = vadd.f32 %v1350_v37, %v1320_v44  ;;  %v1363_v37 = vmul.f32 0.0, %v1361_v29 }
 0x2fd   : > { %10737 = vtanh.f32 %v1356_v39 }
 0x302   : > { %v1353_v51 = vpop.f32.mrf.mxu1 }
 0x303   : > { %v1357_v42 = vadd.f32 %v1353_v51, %v1321_v5  ;;  %v10738_v40 = vpop.eup %10737 }
 0x304   : > { %v1364_v57 = vmul.f32 %v10738_v40, %v1032_v1 }
 0x305   : > { %10739 = vtanh.f32 %v1357_v42 }
 0x306   : > { %v11681_v34 = vadd.f32 %v1364_v57, %v1362_v20 }
 0x30b   : > { %v10740_v60 = vpop.eup %10739 }
 0x30c   : > { %v1365_v41 = vmul.f32 %v10740_v60, %v1047_v56 }
 0x30e   : > { %v11679_v52 = vadd.f32 %v1365_v41, %v1363_v37 }
 0x310   : > { %1454 = vmatpush.msrb.mxu1 %v11679_v52  ;;  %1477 = vmatpush.msrb.mxu2 %v11679_v52 }
 0x311   : > { %1500 = vmatpush.msra.mxu3 %v11679_v52 }
 0x312   : > { %1455 = vmatpush.msrb.mxu1 %v11681_v34  ;;  %1478 = vmatpush.msrb.mxu2 %v11681_v34 }
 0x313   : > { %1501 = vmatpush.msra.mxu3 %v11681_v34  ;;  %9868 = vmatmul.msk.f32.vlgmr.msrb.gmra.mxu1 %vm451_vm0, %v11220_v2 }
 0x314   : > { %9870 = vmatmul.msk.f32.vlgmr.msrb.gmra.mxu2 %vm451_vm0, %v11225_v3  ;;  %9872 = vmatmul.msk.f32.vlgmr.msra.gmra.mxu3 %vm451_vm0, %v11232_v6  ;;  %v11729_v3 = vpop.f32.mrf.mxu3 }
 0x315   : > { %9879 = vmatpush.msk.msra.mxu2 %vm618_vm1, %v11274_v10  ;;  %1558 = vmatpush.msra.mxu1 %v11283_v11  ;;  %v14830_v11 = vld [vmem:[#allocation4_spill] sm:$0xff] }
 0x316   : > { %1608 = vmatpush.msrb.mxu3 %v11288_v12  ;;  %v14831_v12 = vld [vmem:[#allocation5_spill] sm:$0xff] }
 0x317   : > { %9889 = vmatpush.msk.msrb.mxu2 %vm618_vm1, %v11329_v19  ;;  %1559 = vmatpush.msra.mxu1 %v11293_v13  ;;  %v14832_v13 = vld [vmem:[#allocation6_spill] sm:$0xff] }
 0x318   : > { %1609 = vmatpush.msrb.mxu3 %v11300_v14 }
 0x319   : > { %1560 = vmatpush.msra.mxu1 %v11305_v15  ;;  %v14833_v15 = vld [vmem:[#allocation7_spill] sm:$0xff] }
 0x31a   : > { %1610 = vmatpush.msrb.mxu3 %v11310_v16  ;;  %v14834_v16 = vld [vmem:[#allocation8_spill] sm:$0xff] }
 0x31b   : > { %9869 = vmatmul.msk.f32.gmra.mxu1 %vm451_vm0, %v11205_v0  ;;  %v1388_v0 = vpop.f32.mrf.mxu2 }
 0x31c   : > { %9871 = vmatmul.msk.f32.gmra.mxu2 %vm451_vm0, %v11245_v7  ;;  %9873 = vmatmul.msk.f32.gmra.mxu3 %vm451_vm0, %v11250_v8  ;;  %v11737_v6 = vpop.f32.mrf.mxu3  ;;  %v11745_v7 = vpop.f32.mrf.mxu0 }
 0x31d   : > { %1561 = vmatpush.msra.mxu1 %v11319_v17  ;;  %1611 = vmatpush.msrb.mxu3 %v11324_v18  ;;  %v14835_v18 = vld [vmem:[#allocation10_spill] sm:$0xff] }
 0x31e   : > { %9875 = vmatmul.msk.f32.vlgmr.msrb.gmra.mxu0 %vm611_vm2, %v1388_v0 }
 0x31f   : > { %1670 = vmatpush.msrb.mxu1 %v11345_v21  ;;  %1720 = vmatpush.msra.mxu3 %v11350_v22  ;;  %v14836_v22 = vld [vmem:[#allocation15_spill] sm:$0xff] }
 0x320   : > { %9894 = vmatpush.msk.msrb.mxu0 %vm618_vm1, %v11400_v31 }
 0x321   : > { %1671 = vmatpush.msrb.mxu1 %v11355_v23  ;;  %1721 = vmatpush.msra.mxu3 %v11362_v24  ;;  %v14837_v23 = vld [vmem:[#allocation18_spill] sm:$0xff] }
 0x323   : > { %1672 = vmatpush.msrb.mxu1 %v11367_v25  ;;  %1722 = vmatpush.msra.mxu3 %v11372_v26  ;;  %v1391_v2 = vpop.f32.mrf.mxu2  ;;  %v14838_v25 = vld [vmem:[#allocation19_spill] sm:$0xff]  ;;  %v14839_v26 = vld [vmem:[#allocation20_spill] sm:$0xff] }
 0x324   : > { %9880 = vmatmul.msk.f32.vlgmr.msra.gmra.mxu2 %vm611_vm2, %v1388_v0  ;;  %v11751_v8 = vpop.f32.mrf.mxu0 }
 0x325   : > { %1673 = vmatpush.msrb.mxu1 %v11381_v27  ;;  %1723 = vmatpush.msra.mxu3 %v11386_v28 }
 0x326   : > { %9899 = vmatpush.msk.msra.mxu2 %vm618_vm1, %v11391_v30  ;;  %9876 = vmatmul.msk.f32.gmra.mxu0 %vm611_vm2, %v1391_v2 }
 0x32c   : > { %9881 = vmatmul.msk.f32.gmra.mxu2 %vm611_vm2, %v1391_v2 }
 0x32e   : > { %9885 = vmatmul.msk.f32.vlgmr.msra.gmra.mxu0 %vm611_vm2, %v11729_v3 }
 0x334   : > { %9890 = vmatmul.msk.f32.vlgmr.msrb.gmra.mxu2 %vm611_vm2, %v11729_v3 }
 0x335   : > { %1989 = vmatpush.msrb.mxu2 %v11535_v48  ;;  %v14840_v48 = vld [vmem:[#allocation14_spill] sm:$0xff] }
 0x336   : > { %9886 = vmatmul.msk.f32.gmra.mxu0 %vm611_vm2, %v11737_v6 }
 0x337   : > { %1990 = vmatpush.msrb.mxu2 %v11541_v54 }
 0x339   : > { %1991 = vmatpush.msrb.mxu2 %v11547_v55 }
 0x33b   : > { %1992 = vmatpush.msrb.mxu2 %v11552_v50 }
 0x33c   : > { %9891 = vmatmul.msk.f32.gmra.mxu2 %vm611_vm2, %v11737_v6 }
 0x33e   : > { %9895 = vmatmul.msk.f32.vlgmr.msrb.gmra.mxu0 %vm611_vm2, %v11745_v7 }
 0x344   : > { %9900 = vmatmul.msk.f32.vlgmr.msra.gmra.mxu2 %vm611_vm2, %v11745_v7 }
 0x346   : > { %9896 = vmatmul.msk.f32.gmra.mxu0 %vm611_vm2, %v11751_v8 }
 0x34c   : > { %9901 = vmatmul.msk.f32.gmra.mxu2 %vm611_vm2, %v11751_v8 }
 0x390   : > { %v1457_v10 = vpop.f32.mrf.mxu1 }
 0x391   : > { %9877 = vmatmul.msk.f32.vlgmr.msra.gmra.mxu1 %vm654_vm3, %v1457_v10  ;;  %9882 = vmatmul.msk.f32.vlgmr.msrb.gmra.mxu3 %vm654_vm3, %v1457_v10 }
 0x392   : > { %1782 = vmatpush.msra.mxu1 %v11415_v35  ;;  %1832 = vmatpush.msrb.mxu3 %v11420_v36 }
 0x394   : > { %1783 = vmatpush.msra.mxu1 %v11435_v38  ;;  %1833 = vmatpush.msrb.mxu3 %v14830_v11 }
 0x396   : > { %1784 = vmatpush.msra.mxu1 %v14831_v12  ;;  %1834 = vmatpush.msrb.mxu3 %v14832_v13 }
 0x397   : > { %v1480_v17 = vpop.f32.mrf.mxu2  ;;  %v1503_v21 = vpop.f32.mrf.mxu3 }
 0x398   : > { %v1460_v14 = vpop.f32.mrf.mxu1  ;;  %1785 = vmatpush.msra.mxu1 %v14833_v15  ;;  %1835 = vmatpush.msrb.mxu3 %v14834_v16 }
 0x399   : > { %9878 = vmatmul.msk.f32.gmra.mxu1 %vm654_vm3, %v1460_v14  ;;  %9883 = vmatmul.msk.f32.gmra.mxu3 %vm654_vm3, %v1460_v14 }
 0x39f   : > { %v1483_v19 = vpop.f32.mrf.mxu2  ;;  %v1506_v24 = vpop.f32.mrf.mxu3 }
 0x3a1   : > { %9887 = vmatmul.msk.f32.vlgmr.msrb.gmra.mxu1 %vm654_vm3, %v1480_v17  ;;  %9892 = vmatmul.msk.f32.vlgmr.msra.gmra.mxu3 %vm654_vm3, %v1480_v17 }
 0x3a2   : > { %9910 = vmatpush.msk.msrb.mxu1 %vm618_vm1, %v14835_v18 }
 0x3a7   : > { %v1588_v27 = vpop.f32.mrf.mxu2 }
 0x3a8   : > { %v1594_v54 = vadd.f32 %v14840_v48, %v1588_v27  ;;  %v14843_v27 = vld [vmem:[#allocation21_spill] sm:$0xff] }
 0x3a9   : > { %9888 = vmatmul.msk.f32.gmra.mxu1 %vm654_vm3, %v1483_v19  ;;  %9893 = vmatmul.msk.f32.gmra.mxu3 %vm654_vm3, %v1483_v19 }
 0x3af   : > { %v1591_v28 = vpop.f32.mrf.mxu2 }
 0x3b0   : > { %v1595_v9 = vadd.f32 %v14840_v48, %v1591_v28  ;;  %v14844_v28 = vld [vmem:[#allocation22_spill] sm:$0xff] }
 0x3b1   : > { %9897 = vmatmul.msk.f32.vlgmr.msra.gmra.mxu1 %vm654_vm3, %v1503_v21  ;;  %9902 = vmatmul.msk.f32.vlgmr.msrb.gmra.mxu3 %vm654_vm3, %v1503_v21 }
 0x3b2   : > { %2068 = vmatpush.msra.mxu1 %v14836_v22 }
 0x3b4   : > { %2069 = vmatpush.msra.mxu1 %v14837_v23  ;;  %v11792_v23 = vld [vmem:[%s14685_s1] sm:$0xff] }
 0x3b6   : > { %2070 = vmatpush.msra.mxu1 %v14838_v25  ;;  %v14841_v25 = vld [vmem:[#allocation16_spill] sm:$0xff] }
 0x3b7   : > { %v1700_v31 = vpop.f32.mrf.mxu2 }
 0x3b8   : > { %2071 = vmatpush.msra.mxu1 %v14839_v26  ;;  %v14842_v26 = vld [vmem:[#allocation17_spill] sm:$0xff] }
 0x3b9   : > { %9898 = vmatmul.msk.f32.gmra.mxu1 %vm654_vm3, %v1506_v24  ;;  %9903 = vmatmul.msk.f32.gmra.mxu3 %vm654_vm3, %v1506_v24  ;;  %v11799_v24 = vld [vmem:[%s14685_s1 + $0x10] sm:$0xff] }
 0x3bf   : > { %v1703_v36 = vpop.f32.mrf.mxu2 }
 0x3c1   : > { %9911 = vmatmul.msk.f32.vlgmr.msrb.gmra.mxu1 %vm611_vm2, %v1388_v0 }
 0x3c7   : > { %v1812_v32 = vpop.f32.mrf.mxu2 }
 0x3c9   : > { %9912 = vmatmul.msk.f32.gmra.mxu1 %vm611_vm2, %v1391_v2 }
 0x3cf   : > { %v1815_v4 = vpop.f32.mrf.mxu2 }
 0x414   : > { %v1613_v30 = vpop.f32.mrf.mxu3 }
 0x415   : > { %v1619_v55 = vadd.f32 %v1613_v30, %v1594_v54  ;;  %v14845_v30 = vld [vmem:[#allocation23_spill] sm:$0xff] }
 0x417   : > { %v1706_v61 = vadd.f32 %v1700_v31, %v1619_v55  ;;  %v11813_v31 = vld [vmem:[%s14685_s1 + $0x8] sm:$0xff] }
 0x41c   : > { %v1616_v35 = vpop.f32.mrf.mxu3 }
 0x41d   : > { %v1620_v58 = vadd.f32 %v1616_v35, %v1595_v9  ;;  %v11820_v35 = vld [vmem:[%s14685_s1 + $0x18] sm:$0xff] }
 0x41f   : > { %v1707_v43 = vadd.f32 %v1703_v36, %v1620_v58  ;;  %v14846_v36 = vld [vmem:[#allocation24_spill] sm:$0xff] }
 0x424   : > { %v1725_v38 = vpop.f32.mrf.mxu3 }
 0x425   : > { %v1731_v44 = vadd.f32 %v1725_v38, %v1706_v61  ;;  %v1532_v38 = vpop.f32.mrf.mxu0 }
 0x427   : > { %v1818_v39 = vadd.f32 %v1812_v32, %v1731_v44 }
 0x42c   : > { %v1728_v50 = vpop.f32.mrf.mxu3 }
 0x42d   : > { %v1732_v47 = vadd.f32 %v1728_v50, %v1707_v43  ;;  %v1535_v48 = vpop.f32.mrf.mxu0  ;;  %v1563_v43 = vpop.f32.mrf.mxu1 }
 0x42f   : > { %v1819_v53 = vadd.f32 %v1815_v4, %v1732_v47  ;;  %v1539_v4 = vadd.f32 %v11649_v63, %v1535_v48 }
 0x434   : > { %v1837_v59 = vpop.f32.mrf.mxu3 }
 0x435   : > { %v1843_v62 = vadd.f32 %v1837_v59, %v1818_v39  ;;  %v1644_v54 = vpop.f32.mrf.mxu0 }
 0x437   : > { %v9906_v5 = vmul.f32 -1.442695, %v1843_v62  ;;  %v1566_v62 = vpop.f32.mrf.mxu1 }
 0x439   : > { %10741 = vpow2.f32 %v9906_v5 }
 0x43c   : > { %v1840_v51 = vpop.f32.mrf.mxu3 }
 0x43d   : > { %v1844_v33 = vadd.f32 %v1840_v51, %v1819_v53  ;;  %v1647_v55 = vpop.f32.mrf.mxu0  ;;  %v1538_v53 = vadd.f32 %v11649_v63, %v1532_v38 }
 0x43f   : > { %v10742_v42 = vpop.eup %10741  ;;  %v9907_v46 = vmul.f32 -1.442695, %v1844_v33  ;;  %v1675_v47 = vpop.f32.mrf.mxu1  ;;  %v1570_v33 = vadd.f32 %v1566_v62, %v1539_v4 }
 0x440   : > { %v1889_v49 = vadd.f32 1.0, %v10742_v42  ;;  %v1569_v42 = vadd.f32 %v1563_v43, %v1538_v53 }
 0x441   : > { %10743 = vpow2.f32 %v9907_v46  ;;  %v1651_v46 = vadd.f32 %v1647_v55, %v1570_v33 }
 0x442   : > { %10745 = vrcp.f32 %v1889_v49  ;;  %vm1896_vm9 = vweird.f32 %v1889_v49  ;;  %v1902_v2 = vand.u32 2147483648, %v1889_v49  ;;  %v1900_v12 = vand.u32 2147483647, %v1889_v49 }
 0x444   : > { %v1903_v16 = vor.u32 1.1754944e-38, %v1902_v2  ;;  %vm1901_vm15 = vcmp.eq.f32.partialorder %v1900_v12, 8.507059e+37  ;;  %v11875_v12 = vld [vmem:[%s14686_s2 + $0x4] sm:$0xf] }
 0x445   : > { %v1756_v50 = vpop.f32.mrf.mxu0 }
 0x447   : > { %v10744_v56 = vpop.eup %10743  ;;  %v1678_v5 = vpop.f32.mrf.mxu1 }
 0x448   : > { %v10746_v1 = vpop.eup %10745  ;;  %v1890_v29 = vadd.f32 1.0, %v10744_v56  ;;  %v1682_v56 = vadd.f32 %v1678_v5, %v1651_v46 }
 0x449   : > { %v1892_v40 = vmul.f32 %v10746_v1, %v1889_v49  ;;  %vm1897_vm8 = vweird.f32 %v10746_v1  ;;  %v1650_v49 = vadd.f32 %v1644_v54, %v1569_v42 }
 0x44a   : > { %10747 = vrcp.f32 %v1890_v29  ;;  %v1917_v0 = vand.u32 2147483648, %v1890_v29  ;;  %v1915_v11 = vand.u32 2147483647, %v1890_v29  ;;  %vm1898_vm11 = vmor %vm1896_vm9, %vm1897_vm8  ;;  %vm1911_vm12 = vweird.f32 %v1890_v29 }
 0x44b   : > { %v1893_v45 = vsub.f32 1.0, %v1892_v40 }
 0x44c   : > { %v1918_v15 = vor.u32 1.1754944e-38, %v1917_v0  ;;  %vm1916_vm14 = vcmp.eq.f32.partialorder %v1915_v11, 8.507059e+37  ;;  %v9929_v0 = vld [vmem:[%s11215_s15 + $0x20] sm:$0xff] }
 0x44d   : > { %v1894_v60 = vmul.f32 %v10746_v1, %v1893_v45  ;;  %v1759_v9 = vpop.f32.mrf.mxu0 }
 0x44e   : > { %v1763_v40 = vadd.f32 %v1759_v9, %v1682_v56 }
 0x44f   : > { %v1895_v20 = vadd.f32 %v10746_v1, %v1894_v60  ;;  %v1787_v51 = vpop.f32.mrf.mxu1 }
 0x450   : > { %v10748_v57 = vpop.eup %10747 }
 0x451   : > { %v1907_v37 = vmul.f32 %v10748_v57, %v1890_v29  ;;  %vm1912_vm10 = vweird.f32 %v10748_v57  ;;  %v1899_v14 = vsel %vm1898_vm11, %v10746_v1, %v1895_v20  ;;  %v1681_v1 = vadd.f32 %v1675_v47, %v1650_v49  ;;  %v9930_v20 = vld [vmem:[%s11215_s15 + $0x28] sm:$0xff] }
 0x452   : > { %vm1913_vm13 = vmor %vm1911_vm12, %vm1912_vm10  ;;  %v1904_v19 = vsel %vm1901_vm15, %v1903_v16, %v1899_v14  ;;  %2187 = vmatpush.msrb.mxu1 %v9930_v20 }
 0x453   : > { %v1908_v41 = vsub.f32 1.0, %v1907_v37  ;;  %v1921_v22 = vmul.f32 %v1904_v19, %v11681_v34  ;;  %v1762_v45 = vadd.f32 %v1756_v50, %v1681_v1 }
 0x454   : > { %2188 = vmatpush.msrb.mxu1 %v9929_v0 }
 0x455   : > { %v1909_v10 = vmul.f32 %v10748_v57, %v1908_v41 }
 0x457   : > { %v1910_v13 = vadd.f32 %v10748_v57, %v1909_v10  ;;  %v1790_v29 = vpop.f32.mrf.mxu1  ;;  %v11868_v10 = vld [vmem:[%s14686_s2] sm:$0xf] }
 0x458   : > { %v1794_v60 = vadd.f32 %v1790_v29, %v1763_v40 }
 0x459   : > { %v1914_v17 = vsel %vm1913_vm13, %v10748_v57, %v1910_v13  ;;  %v1793_v57 = vadd.f32 %v1787_v51, %v1762_v45 }
 0x45a   : > { %v1919_v18 = vsel %vm1916_vm14, %v1918_v15, %v1914_v17  ;;  %v9905_v37 = vmul.f32 -1.442695, %v1794_v60 }
 0x45b   : > { %v1922_v21 = vmul.f32 %v1919_v18, %v11679_v52  ;;  %v9904_v41 = vmul.f32 -1.442695, %v1793_v57  ;;  %v14847_v18 = vld [vmem:[#allocation25_spill] sm:$0xff] }
 0x45c   : > { %10749 = vpow2.f32 %v9905_v37 }
 0x45d   : > { %1937 = vmatpush.msra.mxu0 %v1922_v21  ;;  %2016 = vmatpush.msra.mxu3 %v1922_v21  ;;  %10751 = vpow2.f32 %v9904_v41 }
 0x45e   : > { %2095 = vmatpush.msra.mxu2 %v1922_v21 }
 0x45f   : > { %1938 = vmatpush.msra.mxu0 %v1921_v22  ;;  %2017 = vmatpush.msra.mxu3 %v1921_v22  ;;  %v1963_v63 = vpop.f32.mrf.mxu1 }
 0x460   : > { %2096 = vmatpush.msra.mxu2 %v1921_v22  ;;  %9908 = vmatmul.msk.f32.vlgmr.msra.gmra.mxu0 %vm451_vm0, %v11792_v23  ;;  %v1969_v19 = vadd.f32 %v14847_v18, %v1963_v63 }
 0x461   : > { %9915 = vmatmul.msk.f32.vlgmr.msra.gmra.mxu3 %vm451_vm0, %v11799_v24  ;;  %9917 = vmatpush.msk.msrb.mxu0 %vm618_vm1, %v14841_v25 }
 0x462   : > { %9924 = vmatpush.msk.msrb.mxu3 %vm618_vm1, %v14842_v26  ;;  %v10750_v2 = vpop.eup %10749 }
 0x463   : > { %2147 = vmatpush.msra.mxu0 %v14843_v27  ;;  %v10752_v11 = vpop.eup %10751  ;;  %v1852_v13 = vadd.f32 1.0, %v10750_v2 }
 0x464   : > { %2233 = vmatpush.msra.mxu3 %v9930_v20  ;;  %v1851_v14 = vadd.f32 1.0, %v10752_v11 }
 0x465   : > { %2148 = vmatpush.msra.mxu0 %v14844_v28  ;;  %10753 = vrcp.f32 %v1852_v13  ;;  %v1879_v62 = vand.u32 2147483648, %v1852_v13  ;;  %vm1873_vm6 = vweird.f32 %v1852_v13 }
 0x466   : > { %2234 = vmatpush.msra.mxu3 %v9929_v0  ;;  %10755 = vrcp.f32 %v1851_v14  ;;  %v1864_v4 = vand.u32 2147483648, %v1851_v14  ;;  %vm1858_vm8 = vweird.f32 %v1851_v14  ;;  %v1862_v51 = vand.u32 2147483647, %v1851_v14 }
 0x467   : > { %2149 = vmatpush.msra.mxu0 %v14845_v30  ;;  %v1966_v15 = vpop.f32.mrf.mxu1  ;;  %v1880_v46 = vor.u32 1.1754944e-38, %v1879_v62  ;;  %v12101_v62 = vld [vmem:[%s14687_s3 + $0x58] sm:$0xff] }
 0x468   : > { %9909 = vmatmul.msk.f32.gmra.mxu0 %vm451_vm0, %v11813_v31  ;;  %v1970_v28 = vadd.f32 %v14847_v18, %v1966_v15  ;;  %v1865_v1 = vor.u32 1.1754944e-38, %v1864_v4  ;;  %vm1863_vm11 = vcmp.eq.f32.partialorder %v1862_v51, 8.507059e+37  ;;  %v11935_v15 = vld [vmem:[%s14687_s3 + $0x10] sm:$0xff]  ;;  %v11953_v18 = vld [vmem:[%s14689_s5 + $0x8] sm:$0xff]  ;;  %14848 = vst [vmem:[#allocation4_spill] sm:$0xff] %v12101_v62 }
 0x469   : > { %9916 = vmatmul.msk.f32.gmra.mxu3 %vm451_vm0, %v11820_v35  ;;  %2150 = vmatpush.msra.mxu0 %v14846_v36  ;;  %v12125_v4 = vld [vmem:[%s14687_s3 + $0x48] sm:$0xff] }
 0x46a   : > { %14852 = vst [vmem:[#allocation8_spill] sm:$0xff] %v12125_v4 }
 0x46b   : > { %v10754_v17 = vpop.eup %10753 }
 0x46c   : > { %v10756_v22 = vpop.eup %10755  ;;  %v1869_v26 = vmul.f32 %v10754_v17, %v1852_v13  ;;  %vm1874_vm4 = vweird.f32 %v10754_v17 }
 0x46d   : > { %v1854_v30 = vmul.f32 %v10756_v22, %v1851_v14  ;;  %vm1859_vm5 = vweird.f32 %v10756_v22  ;;  %vm1875_vm7 = vmor %vm1873_vm6, %vm1874_vm4  ;;  %v11928_v14 = vld [vmem:[%s14688_s4 + $0x4] sm:$0xf] }
 0x46e   : > { %v1870_v48 = vsub.f32 1.0, %v1869_v26  ;;  %vm1860_vm9 = vmor %vm1858_vm8, %vm1859_vm5  ;;  %v11989_v26 = vld [vmem:[%s14687_s3 + $0x30] sm:$0xff] }
 0x46f   : > { %v1855_v55 = vsub.f32 1.0, %v1854_v30  ;;  %v12007_v30 = vld [vmem:[%s14689_s5 + $0x28] sm:$0xff] }
 0x470   : > { %9918 = vmatmul.msk.f32.vlgmr.msrb.gmra.mxu0 %vm611_vm2, %v11729_v3 }
 0x471   : > { %9925 = vmatmul.msk.f32.vlgmr.msrb.gmra.mxu3 %vm611_vm2, %v11745_v7 }
 0x472   : > { %9943 = vmatpush.msk.msrb.mxu3 %vm618_vm1, %v11868_v10 }
 0x478   : > { %9919 = vmatmul.msk.f32.gmra.mxu0 %vm611_vm2, %v11737_v6  ;;  %v11840_v6 = vld [vmem:[%s14685_s1 + $0x20] sm:$0xff] }
 0x479   : > { %9926 = vmatmul.msk.f32.gmra.mxu3 %vm611_vm2, %v11751_v8  ;;  %v11847_v8 = vld [vmem:[%s14685_s1 + $0x28] sm:$0xff] }
 0x481   : > { %9935 = vmatmul.msk.f32.vlgmr.msra.gmra.mxu3 %vm451_vm0, %v11840_v6 }
 0x482   : > { %9953 = vmatpush.msk.msra.mxu3 %vm618_vm1, %v11875_v12 }
 0x489   : > { %9936 = vmatmul.msk.f32.gmra.mxu3 %vm451_vm0, %v11847_v8 }
 0x4dd   : > { %v1940_v61 = vpop.f32.mrf.mxu0 }
 0x4de   : > { %9913 = vmatmul.msk.f32.vlgmr.msrb.gmra.mxu2 %vm654_vm3, %v1940_v61 }
 0x4df   : > { %2210 = vmatpush.msrb.mxu2 %v9930_v20 }
 0x4e1   : > { %2211 = vmatpush.msrb.mxu2 %v9929_v0 }
 0x4e4   : > { %v2019_v32 = vpop.f32.mrf.mxu3 }
 0x4e5   : > { %v1943_v3 = vpop.f32.mrf.mxu0  ;;  %9920 = vmatmul.msk.f32.vlgmr.msra.gmra.mxu1 %vm654_vm3, %v2019_v32 }
 0x4e6   : > { %9914 = vmatmul.msk.f32.gmra.mxu2 %vm654_vm3, %v1943_v3  ;;  %v1871_v3 = vmul.f32 %v10754_v17, %v1870_v48 }
 0x4ec   : > { %v2022_v7 = vpop.f32.mrf.mxu3 }
 0x4ed   : > { %9921 = vmatmul.msk.f32.gmra.mxu1 %vm654_vm3, %v2022_v7  ;;  %v2042_v16 = vpop.f32.mrf.mxu0  ;;  %v1856_v7 = vmul.f32 %v10756_v22, %v1855_v55  ;;  %v12038_v55 = vld [vmem:[%s14688_s4 + $0x8] sm:$0xf] }
 0x4ee   : > { %9922 = vmatmul.msk.f32.vlgmr.msra.gmra.mxu2 %vm451_vm0, %v11840_v6 }
 0x4ef   : > { %v1857_v5 = vadd.f32 %v10756_v22, %v1856_v7  ;;  %v12071_v7 = vld [vmem:[%s14691_s7 + $0x8] sm:$0xff] }
 0x4f1   : > { %v1861_v56 = vsel %vm1860_vm9, %v10756_v22, %v1857_v5  ;;  %v11977_v22 = vld [vmem:[%s14687_s3 + $0x38] sm:$0xff]  ;;  %v12113_v5 = vld [vmem:[%s14687_s3 + $0x50] sm:$0xff] }
 0x4f2   : > { %v1866_v40 = vsel %vm1863_vm11, %v1865_v1, %v1861_v56  ;;  %14850 = vst [vmem:[#allocation6_spill] sm:$0xff] %v12113_v5 }
 0x4f3   : > { %v2162_v57 = vsub.f32 1.0, %v1866_v40 }
 0x4f4   : > { %v2121_v54 = vpop.f32.mrf.mxu3 }
 0x4f5   : > { %9931 = vmatmul.msk.f32.vlgmr.msrb.gmra.mxu1 %vm451_vm0, %v11792_v23  ;;  %v2045_v27 = vpop.f32.mrf.mxu0  ;;  %v2164_v0 = vmul.f32 %v2162_v57, %v11681_v34  ;;  %v11916_v34 = vld [vmem:[%s14687_s3 + $0x18] sm:$0xff]  ;;  %v12182_v57 = vld [vmem:[%s14691_s7 + $0x20] sm:$0xff] }
 0x4f6   : > { %9923 = vmatmul.msk.f32.gmra.mxu2 %vm451_vm0, %v11847_v8  ;;  %14860 = vst [vmem:[#allocation17_spill] sm:$0xff] %v12182_v57 }
 0x4fc   : > { %v2124_v47 = vpop.f32.mrf.mxu3 }
 0x4fd   : > { %9932 = vmatmul.msk.f32.gmra.mxu1 %vm451_vm0, %v11813_v31 }
 0x4fe   : > { %9933 = vmatmul.msk.f32.vlgmr.msrb.gmra.mxu2 %vm451_vm0, %v11799_v24 }
 0x506   : > { %9934 = vmatmul.msk.f32.gmra.mxu2 %vm451_vm0, %v11820_v35 }
 0x561   : > { %v1994_v44 = vpop.f32.mrf.mxu2 }
 0x562   : > { %v2073_v21 = vpop.f32.mrf.mxu1  ;;  %v2000_v25 = vadd.f32 %v1994_v44, %v1969_v19  ;;  %v1872_v44 = vadd.f32 %v10754_v17, %v1871_v3  ;;  %v11965_v19 = vld [vmem:[%s14687_s3] sm:$0xff] }
 0x564   : > { %v2048_v36 = vadd.f32 %v2042_v16, %v2000_v25  ;;  %v1876_v33 = vsel %vm1875_vm7, %v10754_v17, %v1872_v44  ;;  %v11941_v16 = vld [vmem:[%s14689_s5 + $0x10] sm:$0xff]  ;;  %v11947_v17 = vld [vmem:[%s14687_s3 + $0x8] sm:$0xff]  ;;  %v11983_v25 = vld [vmem:[%s14689_s5 + $0x38] sm:$0xff] }
 0x566   : > { %v2079_v50 = vadd.f32 %v2073_v21, %v2048_v36  ;;  %v11971_v21 = vld [vmem:[%s14689_s5] sm:$0xff] }
 0x567   : > { %v12013_v36 = vld [vmem:[%s14687_s3 + $0x20] sm:$0xff] }
 0x569   : > { %v11851_v58 = vpop.f32.mrf.mxu2 }
 0x56a   : > { %v2001_v38 = vadd.f32 %v11851_v58, %v1970_v28  ;;  %v2076_v61 = vpop.f32.mrf.mxu1  ;;  %v1877_v58 = vand.u32 2147483647, %v1852_v13  ;;  %v11922_v13 = vld [vmem:[%s14689_s5 + $0x18] sm:$0xff]  ;;  %v12001_v28 = vld [vmem:[%s14687_s3 + $0x28] sm:$0xff] }
 0x56c   : > { %v2049_v9 = vadd.f32 %v2045_v27, %v2001_v38  ;;  %vm1878_vm10 = vcmp.eq.f32.partialorder %v1877_v58, 8.507059e+37  ;;  %v11995_v27 = vld [vmem:[%s14689_s5 + $0x30] sm:$0xff]  ;;  %v12019_v38 = vld [vmem:[%s14689_s5 + $0x20] sm:$0xff] }
 0x56d   : > { %v1881_v29 = vsel %vm1878_vm10, %v1880_v46, %v1876_v33  ;;  %v12119_v58 = vld [vmem:[%s14689_s5 + $0x50] sm:$0xff]  ;;  %v12137_v33 = vld [vmem:[%s14687_s3 + $0x40] sm:$0xff] }
 0x56e   : > { %v2163_v45 = vsub.f32 1.0, %v1881_v29  ;;  %14851 = vst [vmem:[#allocation7_spill] sm:$0xff] %v12119_v58 }
 0x56f   : > { %14854 = vst [vmem:[#allocation15_spill] sm:$0xff] %v12137_v33 }
 0x570   : > { %v2165_v20 = vmul.f32 %v2163_v45, %v11679_v52  ;;  %v11909_v52 = vld [vmem:[%s14688_s4] sm:$0xf] }
 0x571   : > { %v2098_v39 = vpop.f32.mrf.mxu2 }
 0x572   : > { %9927 = vmatmul.msk.f32.vlgmr.msra.gmra.mxu0 %vm654_vm3, %v2098_v39  ;;  %v2080_v39 = vadd.f32 %v2076_v61, %v2049_v9  ;;  %v12022_v48 = vpop.f32.mrf.mxu1  ;;  %v12057_v61 = vld [vmem:[%s14691_s7 + $0x18] sm:$0xff] }
 0x573   : > { %9944 = vmatmul.msk.f32.vlgmr.msrb.gmra.mxu3 %vm611_vm2, %v12022_v48 }
 0x574   : > { %v2128_v53 = vadd.f32 %v2124_v47, %v2080_v39  ;;  %v12077_v39 = vld [vmem:[%s14691_s7] sm:$0xff]  ;;  %v12107_v47 = vld [vmem:[%s14689_s5 + $0x58] sm:$0xff] }
 0x575   : > { %14849 = vst [vmem:[#allocation5_spill] sm:$0xff] %v12107_v47 }
 0x579   : > { %v2101_v59 = vpop.f32.mrf.mxu2 }
 0x57a   : > { %9928 = vmatmul.msk.f32.gmra.mxu0 %vm654_vm3, %v2101_v59  ;;  %v2127_v59 = vadd.f32 %v2121_v54, %v2079_v50  ;;  %v12031_v54 = vld [vmem:[%s14686_s2 + $0x8] sm:$0xf]  ;;  %v12042_v50 = vpop.f32.mrf.mxu1 }
 0x57b   : > { %9963 = vmatpush.msk.msrb.mxu3 %vm618_vm1, %v12031_v54 }
 0x57c   : > { %9945 = vmatmul.msk.f32.gmra.mxu3 %vm611_vm2, %v12042_v50 }
 0x581   : > { %v12048_v9 = vpop.f32.mrf.mxu2 }
 0x584   : > { %9954 = vmatmul.msk.f32.vlgmr.msra.gmra.mxu3 %vm611_vm2, %v12048_v9 }
 0x589   : > { %v12066_v3 = vpop.f32.mrf.mxu2 }
 0x58c   : > { %9955 = vmatmul.msk.f32.gmra.mxu3 %vm611_vm2, %v12066_v3 }
 0x5ef   : > { %v2152_v32 = vpop.f32.mrf.mxu0 }
 0x5f0   : > { %v2158_v43 = vadd.f32 %v2152_v32, %v2127_v59  ;;  %v12063_v32 = vld [vmem:[%s14691_s7 + $0x10] sm:$0xff]  ;;  %v12084_v59 = vpop.f32.mrf.mxu3 }
 0x5f1   : > { %9964 = vmatmul.msk.f32.vlgmr.msrb.gmra.mxu3 %vm611_vm2, %v12084_v59 }
 0x5f2   : > { %10757 = vtanh.f32 %v2158_v43 }
 0x5f7   : > { %v2155_v42 = vpop.f32.mrf.mxu0 }
 0x5f8   : > { %v2159_v49 = vadd.f32 %v2155_v42, %v2128_v53  ;;  %v10758_v60 = vpop.eup %10757  ;;  %v12090_v44 = vpop.f32.mrf.mxu3  ;;  %v12131_v53 = vld [vmem:[%s14689_s5 + $0x48] sm:$0xff]  ;;  %v12143_v42 = vld [vmem:[%s14689_s5 + $0x40] sm:$0xff] }
 0x5f9   : > { %v2166_v41 = vmul.f32 %v10758_v60, %v1866_v40  ;;  %9965 = vmatmul.msk.f32.gmra.mxu3 %vm611_vm2, %v12090_v44  ;;  %14853 = vst [vmem:[#allocation10_spill] sm:$0xff] %v12131_v53  ;;  %v12170_v40 = vld [vmem:[%s14691_s7 + $0x30] sm:$0xff]  ;;  %v12176_v60 = vld [vmem:[%s14691_s7 + $0x28] sm:$0xff] }
 0x5fa   : > { %10759 = vtanh.f32 %v2159_v49  ;;  %14855 = vst [vmem:[#allocation18_spill] sm:$0xff] %v12143_v42  ;;  %v12153_v49 = vld [vmem:[%s14690_s6] sm:$0xf] }
 0x5fb   : > { %v11892_v11 = vadd.f32 %v2166_v41, %v2164_v0  ;;  %14856 = vst [vmem:[#allocation19_spill] sm:$0xff] %v12153_v49 }
 0x5fc   : > { %14858 = vst [vmem:[#allocation14_spill] sm:$0xff] %v12170_v40 }
 0x5fd   : > { %14859 = vst [vmem:[#allocation16_spill] sm:$0xff] %v12176_v60 }
 0x600   : > { %v10760_v37 = vpop.eup %10759 }
 0x601   : > { %v2167_v63 = vmul.f32 %v10760_v37, %v1881_v29  ;;  %v12164_v29 = vld [vmem:[%s14691_s7 + $0x38] sm:$0xff] }
 0x602   : > { %14857 = vst [vmem:[#allocation20_spill] sm:$0xff] %v12164_v29 }
 0x603   : > { %v11890_v2 = vadd.f32 %v2167_v63, %v2165_v20 }
 0x605   : > { %2256 = vmatpush.msrb.mxu0 %v11890_v2  ;;  %2279 = vmatpush.msra.mxu1 %v11890_v2 }
 0x606   : > { %2302 = vmatpush.msra.mxu2 %v11890_v2 }
 0x607   : > { %2257 = vmatpush.msrb.mxu0 %v11892_v11  ;;  %2280 = vmatpush.msra.mxu1 %v11892_v11 }
 0x608   : > { %2303 = vmatpush.msra.mxu2 %v11892_v11  ;;  %9937 = vmatmul.msk.f32.vlgmr.msrb.gmra.mxu0 %vm451_vm0, %v11792_v23 }
 0x609   : > { %9939 = vmatmul.msk.f32.vlgmr.msra.gmra.mxu1 %vm451_vm0, %v11799_v24  ;;  %9941 = vmatmul.msk.f32.vlgmr.msra.gmra.mxu2 %vm451_vm0, %v11840_v6 }
 0x60a   : > { %9948 = vmatpush.msk.msrb.mxu1 %vm618_vm1, %v11909_v52  ;;  %2360 = vmatpush.msra.mxu0 %v11916_v34 }
 0x60b   : > { %2410 = vmatpush.msrb.mxu2 %v11922_v13 }
 0x60c   : > { %9958 = vmatpush.msk.msra.mxu1 %vm618_vm1, %v11928_v14  ;;  %2361 = vmatpush.msra.mxu0 %v11935_v15 }
 0x60d   : > { %2411 = vmatpush.msrb.mxu2 %v11941_v16 }
 0x60e   : > { %2362 = vmatpush.msra.mxu0 %v11947_v17 }
 0x60f   : > { %2412 = vmatpush.msrb.mxu2 %v11953_v18 }
 0x610   : > { %9938 = vmatmul.msk.f32.gmra.mxu0 %vm451_vm0, %v11813_v31 }
 0x611   : > { %9940 = vmatmul.msk.f32.gmra.mxu1 %vm451_vm0, %v11820_v35  ;;  %9942 = vmatmul.msk.f32.gmra.mxu2 %vm451_vm0, %v11847_v8 }
 0x612   : > { %2363 = vmatpush.msra.mxu0 %v11965_v19  ;;  %2413 = vmatpush.msrb.mxu2 %v11971_v21 }
 0x614   : > { %2472 = vmatpush.msrb.mxu0 %v11977_v22  ;;  %2522 = vmatpush.msra.mxu2 %v11983_v25 }
 0x616   : > { %2473 = vmatpush.msrb.mxu0 %v11989_v26  ;;  %2523 = vmatpush.msra.mxu2 %v11995_v27 }
 0x618   : > { %2474 = vmatpush.msrb.mxu0 %v12001_v28  ;;  %2524 = vmatpush.msra.mxu2 %v12007_v30 }
 0x619   : > { %9949 = vmatmul.msk.f32.vlgmr.msrb.gmra.mxu1 %vm611_vm2, %v12022_v48 }
 0x61a   : > { %2475 = vmatpush.msrb.mxu0 %v12013_v36  ;;  %2525 = vmatpush.msra.mxu2 %v12019_v38 }
 0x61b   : > { %9968 = vmatpush.msk.msrb.mxu1 %vm618_vm1, %v12038_v55 }
 0x621   : > { %9950 = vmatmul.msk.f32.gmra.mxu1 %vm611_vm2, %v12042_v50 }
 0x629   : > { %9959 = vmatmul.msk.f32.vlgmr.msra.gmra.mxu1 %vm611_vm2, %v12048_v9 }
 0x62a   : > { %2791 = vmatpush.msra.mxu1 %v12057_v61 }
 0x62c   : > { %2792 = vmatpush.msra.mxu1 %v12063_v32 }
 0x62e   : > { %2793 = vmatpush.msra.mxu1 %v12071_v7 }
 0x630   : > { %2794 = vmatpush.msra.mxu1 %v12077_v39 }
 0x631   : > { %9960 = vmatmul.msk.f32.gmra.mxu1 %vm611_vm2, %v12066_v3 }
 0x639   : > { %9969 = vmatmul.msk.f32.vlgmr.msrb.gmra.mxu1 %vm611_vm2, %v12084_v59 }
 0x641   : > { %9970 = vmatmul.msk.f32.gmra.mxu1 %vm611_vm2, %v12090_v44 }
 0x685   : > { %v2259_v43 = vpop.f32.mrf.mxu0 }
 0x686   : > { %9946 = vmatmul.msk.f32.vlgmr.msra.gmra.mxu0 %vm654_vm3, %v2259_v43  ;;  %9951 = vmatmul.msk.f32.vlgmr.msrb.gmra.mxu2 %vm654_vm3, %v2259_v43  ;;  %v2282_v46 = vpop.f32.mrf.mxu1 }
 0x687   : > { %2584 = vmatpush.msra.mxu0 %v12101_v62  ;;  %2634 = vmatpush.msrb.mxu2 %v12107_v47 }
 0x689   : > { %2585 = vmatpush.msra.mxu0 %v12113_v5  ;;  %2635 = vmatpush.msrb.mxu2 %v12119_v58 }
 0x68b   : > { %2586 = vmatpush.msra.mxu0 %v12125_v4  ;;  %2636 = vmatpush.msrb.mxu2 %v12131_v53 }
 0x68c   : > { %v2305_v1 = vpop.f32.mrf.mxu2 }
 0x68d   : > { %v2262_v51 = vpop.f32.mrf.mxu0  ;;  %2587 = vmatpush.msra.mxu0 %v12137_v33  ;;  %2637 = vmatpush.msrb.mxu2 %v12143_v42 }
 0x68e   : > { %9947 = vmatmul.msk.f32.gmra.mxu0 %vm654_vm3, %v2262_v51  ;;  %9952 = vmatmul.msk.f32.gmra.mxu2 %vm654_vm3, %v2262_v51  ;;  %v2285_v56 = vpop.f32.mrf.mxu1 }
 0x694   : > { %v2308_v45 = vpop.f32.mrf.mxu2 }
 0x696   : > { %9956 = vmatmul.msk.f32.vlgmr.msrb.gmra.mxu0 %vm654_vm3, %v2282_v46  ;;  %9961 = vmatmul.msk.f32.vlgmr.msra.gmra.mxu2 %vm654_vm3, %v2282_v46  ;;  %v2390_v37 = vpop.f32.mrf.mxu1  ;;  %v12194_v46 = vld [vmem:[%s14693_s9] ss:$0 sm:$0xff] }
 0x697   : > { %9979 = vmatpush.msk.msrb.mxu0 %vm618_vm1, %v12153_v49 }
 0x69e   : > { %9957 = vmatmul.msk.f32.gmra.mxu0 %vm654_vm3, %v2285_v56  ;;  %9962 = vmatmul.msk.f32.gmra.mxu2 %vm654_vm3, %v2285_v56  ;;  %v2393_v41 = vpop.f32.mrf.mxu1  ;;  %v2396_v56 = vadd.f32 %v12194_v46, %v2390_v37 }
 0x6a6   : > { %9966 = vmatmul.msk.f32.vlgmr.msra.gmra.mxu0 %vm654_vm3, %v2305_v1  ;;  %9971 = vmatmul.msk.f32.vlgmr.msrb.gmra.mxu2 %vm654_vm3, %v2305_v1  ;;  %v2502_v63 = vpop.f32.mrf.mxu1 }
 0x6a7   : > { %2870 = vmatpush.msra.mxu0 %v12164_v29 }
 0x6a9   : > { %2871 = vmatpush.msra.mxu0 %v12170_v40 }
 0x6ab   : > { %2872 = vmatpush.msra.mxu0 %v12176_v60 }
 0x6ad   : > { %2873 = vmatpush.msra.mxu0 %v12182_v57 }
 0x6ae   : > { %9967 = vmatmul.msk.f32.gmra.mxu0 %vm654_vm3, %v2308_v45  ;;  %9972 = vmatmul.msk.f32.gmra.mxu2 %vm654_vm3, %v2308_v45  ;;  %v2505_v43 = vpop.f32.mrf.mxu1 }
 0x6b6   : > { %9980 = vmatmul.msk.f32.vlgmr.msrb.gmra.mxu0 %vm611_vm2, %v12022_v48  ;;  %v2614_v57 = vpop.f32.mrf.mxu1 }
 0x6be   : > { %9981 = vmatmul.msk.f32.gmra.mxu0 %vm611_vm2, %v12042_v50  ;;  %v2397_v50 = vadd.f32 %v12194_v46, %v2393_v41  ;;  %v2617_v58 = vpop.f32.mrf.mxu1 }
 0x709   : > { %v2415_v20 = vpop.f32.mrf.mxu2 }
 0x70a   : > { %v2421_v1 = vadd.f32 %v2415_v20, %v2396_v56 }
 0x70c   : > { %v2508_v48 = vadd.f32 %v2502_v63, %v2421_v1 }
 0x711   : > { %v2418_v0 = vpop.f32.mrf.mxu2 }
 0x712   : > { %v2422_v40 = vadd.f32 %v2418_v0, %v2397_v50 }
 0x714   : > { %v2509_v42 = vadd.f32 %v2505_v43, %v2422_v40 }
 0x719   : > { %v2527_v51 = vpop.f32.mrf.mxu2 }
 0x71a   : > { %v2533_v60 = vadd.f32 %v2527_v51, %v2508_v48 }
 0x71c   : > { %v2620_v29 = vadd.f32 %v2614_v57, %v2533_v60 }
 0x721   : > { %v2530_v45 = vpop.f32.mrf.mxu2 }
 0x722   : > { %v2534_v53 = vadd.f32 %v2530_v45, %v2509_v42 }
 0x724   : > { %v2621_v5 = vadd.f32 %v2617_v58, %v2534_v53 }
 0x729   : > { %v2639_v49 = vpop.f32.mrf.mxu2 }
 0x72a   : > { %v2645_v33 = vadd.f32 %v2639_v49, %v2620_v29 }
 0x72c   : > { %v9975_v4 = vmul.f32 -1.442695, %v2645_v33 }
 0x72e   : > { %10761 = vpow2.f32 %v9975_v4 }
 0x731   : > { %v2642_v47 = vpop.f32.mrf.mxu2 }
 0x732   : > { %v2646_v62 = vadd.f32 %v2642_v47, %v2621_v5 }
 0x734   : > { %v10762_v37 = vpop.eup %10761  ;;  %v9976_v20 = vmul.f32 -1.442695, %v2646_v62 }
 0x735   : > { %v2691_v56 = vadd.f32 1.0, %v10762_v37 }
 0x736   : > { %10763 = vpow2.f32 %v9976_v20 }
 0x737   : > { %10765 = vrcp.f32 %v2691_v56  ;;  %vm2698_vm13 = vweird.f32 %v2691_v56  ;;  %v2704_v47 = vand.u32 2147483648, %v2691_v56  ;;  %v2702_v4 = vand.u32 2147483647, %v2691_v56 }
 0x739   : > { %v2705_v1 = vor.u32 1.1754944e-38, %v2704_v47  ;;  %vm2703_vm7 = vcmp.eq.f32.partialorder %v2702_v4, 8.507059e+37 }
 0x73c   : > { %v10764_v63 = vpop.eup %10763 }
 0x73d   : > { %v10766_v41 = vpop.eup %10765  ;;  %v2692_v51 = vadd.f32 1.0, %v10764_v63  ;;  %v12214_v63 = vld [vmem:[%s14690_s6 + $0x8] sm:$0xf] }
 0x73e   : > { %v2694_v0 = vmul.f32 %v10766_v41, %v2691_v56  ;;  %vm2699_vm12 = vweird.f32 %v10766_v41  ;;  %v12207_v56 = vld [vmem:[%s14690_s6 + $0x4] sm:$0xf]  ;;  %14862 = vst [vmem:[#allocation22_spill] sm:$0xff] %v12214_v63 }
 0x73f   : > { %10767 = vrcp.f32 %v2692_v51  ;;  %v2719_v58 = vand.u32 2147483648, %v2692_v51  ;;  %v2717_v62 = vand.u32 2147483647, %v2692_v51  ;;  %vm2700_vm15 = vmor %vm2698_vm13, %vm2699_vm12  ;;  %vm2713_vm4 = vweird.f32 %v2692_v51  ;;  %14861 = vst [vmem:[#allocation21_spill] sm:$0xff] %v12207_v56 }
 0x740   : > { %v2695_v60 = vsub.f32 1.0, %v2694_v0  ;;  %v12233_v0 = vld [vmem:[%s14691_s7 + $0x48] sm:$0xff] }
 0x741   : > { %v2720_v43 = vor.u32 1.1754944e-38, %v2719_v58  ;;  %vm2718_vm6 = vcmp.eq.f32.partialorder %v2717_v62, 8.507059e+37  ;;  %14865 = vst [vmem:[#allocation25_spill] sm:$0xff] %v12233_v0 }
 0x742   : > { %v2696_v40 = vmul.f32 %v10766_v41, %v2695_v60  ;;  %v12243_v60 = vld [vmem:[%s14691_s7 + $0x40] sm:$0xff] }
 0x743   : > { %14866 = vst [vmem:[#allocation26_spill] sm:$0xff] %v12243_v60 }
 0x744   : > { %v2697_v29 = vadd.f32 %v10766_v41, %v2696_v40  ;;  %v2334_v40 = vpop.f32.mrf.mxu3 }
 0x745   : > { %v10768_v49 = vpop.eup %10767 }
 0x746   : > { %v2709_v42 = vmul.f32 %v10768_v49, %v2692_v51  ;;  %vm2714_vm14 = vweird.f32 %v10768_v49  ;;  %v2701_v57 = vsel %vm2700_vm15, %v10766_v41, %v2697_v29  ;;  %v12221_v41 = vld [vmem:[%s14691_s7 + $0x58] sm:$0xff]  ;;  %v12227_v51 = vld [vmem:[%s14691_s7 + $0x50] sm:$0xff] }
 0x747   : > { %vm2715_vm5 = vmor %vm2713_vm4, %vm2714_vm14  ;;  %v2706_v50 = vsel %vm2703_vm7, %v2705_v1, %v2701_v57  ;;  %14863 = vst [vmem:[#allocation23_spill] sm:$0xff] %v12221_v41 }
 0x748   : > { %v2710_v33 = vsub.f32 1.0, %v2709_v42  ;;  %v2723_v20 = vmul.f32 %v2706_v50, %v11892_v11  ;;  %14864 = vst [vmem:[#allocation24_spill] sm:$0xff] %v12227_v51 }
 0x74a   : > { %v2711_v5 = vmul.f32 %v10768_v49, %v2710_v33 }
 0x74c   : > { %v2712_v53 = vadd.f32 %v10768_v49, %v2711_v5 }
 0x74e   : > { %v2716_v45 = vsel %vm2715_vm5, %v10768_v49, %v2712_v53  ;;  %v2337_v49 = vpop.f32.mrf.mxu3  ;;  %v2365_v53 = vpop.f32.mrf.mxu0 }
 0x74f   : > { %v2721_v48 = vsel %vm2718_vm6, %v2720_v43, %v2716_v45  ;;  %v12269_v45 = vld [vmem:[%s14692_s8] ss:$0 sm:$0xff] }
 0x750   : > { %v2724_v37 = vmul.f32 %v2721_v48, %v11890_v2  ;;  %14867 = vst [vmem:[#allocation27_spill] sm:$0xff] %v12269_v45  ;;  %v2341_v48 = vadd.f32 %v12269_v45, %v2337_v49  ;;  %v2340_v50 = vadd.f32 %v12269_v45, %v2334_v40 }
 0x752   : > { %2739 = vmatpush.msra.mxu3 %v2724_v37  ;;  %2818 = vmatpush.msra.mxu2 %v2724_v37 }
 0x753   : > { %2897 = vmatpush.msrb.mxu1 %v2724_v37 }
 0x754   : > { %2740 = vmatpush.msra.mxu3 %v2723_v20  ;;  %2819 = vmatpush.msra.mxu2 %v2723_v20 }
 0x755   : > { %2898 = vmatpush.msrb.mxu1 %v2723_v20  ;;  %9977 = vmatmul.msk.f32.vlgmr.msra.gmra.mxu3 %vm451_vm0, %v11792_v23 }
 0x756   : > { %9984 = vmatmul.msk.f32.vlgmr.msra.gmra.mxu2 %vm451_vm0, %v11799_v24  ;;  %9986 = vmatpush.msk.msrb.mxu3 %vm618_vm1, %v12207_v56  ;;  %v2446_v42 = vpop.f32.mrf.mxu3  ;;  %v2368_v57 = vpop.f32.mrf.mxu0 }
 0x757   : > { %9993 = vmatpush.msk.msrb.mxu2 %vm618_vm1, %v12214_v63  ;;  %v2372_v20 = vadd.f32 %v2368_v57, %v2341_v48 }
 0x758   : > { %2949 = vmatpush.msra.mxu3 %v12221_v41 }
 0x75a   : > { %2950 = vmatpush.msra.mxu3 %v12227_v51 }
 0x75c   : > { %2951 = vmatpush.msra.mxu3 %v12233_v0 }
 0x75d   : > { %9978 = vmatmul.msk.f32.gmra.mxu3 %vm451_vm0, %v11813_v31 }
 0x75e   : > { %9985 = vmatmul.msk.f32.gmra.mxu2 %vm451_vm0, %v11820_v35  ;;  %2952 = vmatpush.msra.mxu3 %v12243_v60  ;;  %v2449_v33 = vpop.f32.mrf.mxu3  ;;  %v2477_v43 = vpop.f32.mrf.mxu0 }
 0x765   : > { %9987 = vmatmul.msk.f32.vlgmr.msrb.gmra.mxu3 %vm611_vm2, %v12048_v9 }
 0x766   : > { %9994 = vmatmul.msk.f32.vlgmr.msrb.gmra.mxu2 %vm611_vm2, %v12084_v59  ;;  %v2558_v29 = vpop.f32.mrf.mxu3  ;;  %v2480_v1 = vpop.f32.mrf.mxu0 }
 0x76d   : > { %9988 = vmatmul.msk.f32.gmra.mxu3 %vm611_vm2, %v12066_v3 }
 0x76e   : > { %9995 = vmatmul.msk.f32.gmra.mxu2 %vm611_vm2, %v12090_v44  ;;  %v2561_v58 = vpop.f32.mrf.mxu3  ;;  %v2589_v37 = vpop.f32.mrf.mxu0 }
 0x7d8   : > { %v2742_v47 = vpop.f32.mrf.mxu3 }
 0x7d9   : > { %v2821_v5 = vpop.f32.mrf.mxu2  ;;  %9982 = vmatmul.msk.f32.vlgmr.msra.gmra.mxu1 %vm654_vm3, %v2742_v47  ;;  %v2371_v47 = vadd.f32 %v2365_v53, %v2340_v50 }
 0x7da   : > { %9989 = vmatmul.msk.f32.vlgmr.msra.gmra.mxu0 %vm654_vm3, %v2821_v5  ;;  %v2453_v5 = vadd.f32 %v2449_v33, %v2372_v20 }
 0x7e0   : > { %v2745_v9 = vpop.f32.mrf.mxu3 }
 0x7e1   : > { %v2824_v59 = vpop.f32.mrf.mxu2  ;;  %9983 = vmatmul.msk.f32.gmra.mxu1 %vm654_vm3, %v2745_v9  ;;  %v2452_v9 = vadd.f32 %v2446_v42, %v2371_v47 }
 0x7e2   : > { %9990 = vmatmul.msk.f32.gmra.mxu0 %vm654_vm3, %v2824_v59  ;;  %v2484_v59 = vadd.f32 %v2480_v1, %v2453_v5 }
 0x7e4   : > { %v2565_v60 = vadd.f32 %v2561_v58, %v2484_v59 }
 0x7e8   : > { %v2844_v53 = vpop.f32.mrf.mxu3 }
 0x7e9   : > { %9991 = vmatmul.msk.f32.vlgmr.msrb.gmra.mxu1 %vm451_vm0, %v11840_v6 }
 0x7f0   : > { %v2847_v1 = vpop.f32.mrf.mxu3 }
 0x7f1   : > { %9992 = vmatmul.msk.f32.gmra.mxu1 %vm451_vm0, %v11847_v8 }
 0x856   : > { %v2796_v3 = vpop.f32.mrf.mxu1 }
 0x85e   : > { %v12262_v44 = vpop.f32.mrf.mxu1 }
 0x866   : > { %v2900_v62 = vpop.f32.mrf.mxu1 }
 0x867   : > { %9996 = vmatmul.msk.f32.vlgmr.msra.gmra.mxu3 %vm654_vm3, %v2900_v62  ;;  %v2483_v62 = vadd.f32 %v2477_v43, %v2452_v9  ;;  %v9999_v43 = vld [vmem:[%s11215_s15 + $0x38] sm:$0xff] }
 0x868   : > { %2989 = vmatpush.msrb.mxu0 %v9999_v43  ;;  %3012 = vmatpush.msra.mxu1 %v9999_v43 }
 0x869   : > { %v2564_v0 = vadd.f32 %v2558_v29, %v2483_v62  ;;  %3035 = vmatpush.msra.mxu2 %v9999_v43 }
 0x86b   : > { %v2595_v41 = vadd.f32 %v2589_v37, %v2564_v0  ;;  %v9998_v0 = vld [vmem:[%s11215_s15 + $0x30] sm:$0xff] }
 0x86c   : > { %2990 = vmatpush.msrb.mxu0 %v9998_v0  ;;  %3013 = vmatpush.msra.mxu1 %v9998_v0 }
 0x86d   : > { %v9973_v56 = vmul.f32 -1.442695, %v2595_v41  ;;  %10000 = vmatmul.msk.f32.vlgmr.msrb.gmra.mxu0 %vm451_vm0, %v11792_v23  ;;  %10002 = vmatmul.msk.f32.vlgmr.msra.gmra.mxu1 %vm451_vm0, %v11799_v24 }
 0x86e   : > { %v2903_v4 = vpop.f32.mrf.mxu1  ;;  %3036 = vmatpush.msra.mxu2 %v9998_v0 }
 0x86f   : > { %9997 = vmatmul.msk.f32.gmra.mxu3 %vm654_vm3, %v2903_v4  ;;  %v2592_v4 = vpop.f32.mrf.mxu0  ;;  %10004 = vmatmul.msk.f32.vlgmr.msra.gmra.mxu2 %vm451_vm0, %v11840_v6 }
 0x870   : > { %v2596_v51 = vadd.f32 %v2592_v4, %v2565_v60  ;;  %10012 = vmatpush.msk.msrb.mxu2 %vm618_vm1, %v11868_v10 }
 0x872   : > { %v9974_v63 = vmul.f32 -1.442695, %v2596_v51  ;;  %10022 = vmatpush.msk.msra.mxu2 %vm618_vm1, %v11875_v12  ;;  %v2923_v12 = vpop.f32.mrf.mxu2 }
 0x874   : > { %10769 = vpow2.f32 %v9974_v63  ;;  %v12290_v63 = vld [vmem:[%s14694_s10] ss:$0 sm:$0xff] }
 0x875   : > { %10771 = vpow2.f32 %v9973_v56  ;;  %10001 = vmatmul.msk.f32.gmra.mxu0 %vm451_vm0, %v11813_v31  ;;  %10003 = vmatmul.msk.f32.gmra.mxu1 %vm451_vm0, %v11820_v35 }
 0x877   : > { %v2765_v49 = vpop.f32.mrf.mxu0  ;;  %10005 = vmatmul.msk.f32.gmra.mxu2 %vm451_vm0, %v11847_v8 }
 0x878   : > { %v2771_v41 = vadd.f32 %v12290_v63, %v2765_v49 }
 0x87a   : > { %v10770_v40 = vpop.eup %10769  ;;  %v2802_v29 = vadd.f32 %v2796_v3, %v2771_v41 }
 0x87b   : > { %v10772_v45 = vpop.eup %10771  ;;  %v12273_v57 = vadd.f32 1.0, %v10770_v40 }
 0x87c   : > { %v12275_v33 = vadd.f32 1.0, %v10772_v45  ;;  %v2850_v10 = vadd.f32 %v2844_v53, %v2802_v29 }
 0x87d   : > { %10773 = vrcp.f32 %v12273_v57  ;;  %v2681_v53 = vand.u32 2147483648, %v12273_v57  ;;  %vm2675_vm10 = vweird.f32 %v12273_v57  ;;  %v2679_v0 = vand.u32 2147483647, %v12273_v57 }
 0x87e   : > { %10775 = vrcp.f32 %v12275_v33  ;;  %v2666_v41 = vand.u32 2147483648, %v12275_v33  ;;  %vm2660_vm12 = vweird.f32 %v12275_v33  ;;  %v2664_v29 = vand.u32 2147483647, %v12275_v33 }
 0x87f   : > { %v2768_v42 = vpop.f32.mrf.mxu0  ;;  %vm2680_vm14 = vcmp.eq.f32.partialorder %v2679_v0, 8.507059e+37 }
 0x880   : > { %v2772_v45 = vadd.f32 %v12290_v63, %v2768_v42  ;;  %vm2665_vm15 = vcmp.eq.f32.partialorder %v2664_v29, 8.507059e+37 }
 0x882   : > { %v2803_v50 = vadd.f32 %v12262_v44, %v2772_v45  ;;  %v2926_v44 = vpop.f32.mrf.mxu2  ;;  %v2682_v45 = vor.u32 1.1754944e-38, %v2681_v53 }
 0x883   : > { %v10774_v56 = vpop.eup %10773 }
 0x884   : > { %v10776_v60 = vpop.eup %10775  ;;  %v2671_v58 = vmul.f32 %v10774_v56, %v12273_v57  ;;  %v2851_v47 = vadd.f32 %v2847_v1, %v2803_v50  ;;  %vm2676_vm8 = vweird.f32 %v10774_v56  ;;  %v2667_v50 = vor.u32 1.1754944e-38, %v2666_v41 }
 0x885   : > { %v2656_v48 = vmul.f32 %v10776_v60, %v12275_v33  ;;  %vm2661_vm9 = vweird.f32 %v10776_v60  ;;  %vm2677_vm11 = vmor %vm2675_vm10, %vm2676_vm8 }
 0x886   : > { %v2672_v37 = vsub.f32 1.0, %v2671_v58  ;;  %vm2662_vm13 = vmor %vm2660_vm12, %vm2661_vm9 }
 0x887   : > { %v2875_v51 = vpop.f32.mrf.mxu0  ;;  %v2657_v3 = vsub.f32 1.0, %v2656_v48 }
 0x888   : > { %v2881_v20 = vadd.f32 %v2875_v51, %v2850_v10  ;;  %v2673_v59 = vmul.f32 %v10774_v56, %v2672_v37 }
 0x889   : > { %v2658_v62 = vmul.f32 %v10776_v60, %v2657_v3 }
 0x88a   : > { %v2929_v49 = vadd.f32 %v2923_v12, %v2881_v20  ;;  %v2674_v40 = vadd.f32 %v10774_v56, %v2673_v59 }
 0x88b   : > { %v2659_v43 = vadd.f32 %v10776_v60, %v2658_v62 }
 0x88c   : > { %v2678_v58 = vsel %vm2677_vm11, %v10774_v56, %v2674_v40 }
 0x88d   : > { %v2663_v10 = vsel %vm2662_vm13, %v10776_v60, %v2659_v43  ;;  %v2683_v37 = vsel %vm2680_vm14, %v2682_v45, %v2678_v58 }
 0x88e   : > { %v2668_v57 = vsel %vm2665_vm15, %v2667_v50, %v2663_v10  ;;  %v2965_v12 = vsub.f32 1.0, %v2683_v37 }
 0x88f   : > { %v2878_v5 = vpop.f32.mrf.mxu0  ;;  %v2964_v20 = vsub.f32 1.0, %v2668_v57 }
 0x890   : > { %v2882_v4 = vadd.f32 %v2878_v5, %v2851_v47  ;;  %v2967_v33 = vmul.f32 %v2965_v12, %v11890_v2 }
 0x892   : > { %v2930_v51 = vadd.f32 %v2926_v44, %v2882_v4 }
 0x8ea   : > { %v2954_v9 = vpop.f32.mrf.mxu3 }
 0x8eb   : > { %v2960_v42 = vadd.f32 %v2954_v9, %v2929_v49  ;;  %v2966_v9 = vmul.f32 %v2964_v20, %v11892_v11  ;;  %v14868_v11 = vld [vmem:[#allocation4_spill] sm:$0xff] }
 0x8ed   : > { %10777 = vtanh.f32 %v2960_v42 }
 0x8f2   : > { %v2957_v1 = vpop.f32.mrf.mxu3 }
 0x8f3   : > { %v2961_v48 = vadd.f32 %v2957_v1, %v2930_v51  ;;  %v10778_v3 = vpop.eup %10777 }
 0x8f4   : > { %v2968_v5 = vmul.f32 %v10778_v3, %v2668_v57 }
 0x8f5   : > { %10779 = vtanh.f32 %v2961_v48 }
 0x8f6   : > { %v12317_v62 = vadd.f32 %v2968_v5, %v2966_v9 }
 0x8fb   : > { %v10780_v47 = vpop.eup %10779 }
 0x8fc   : > { %v2969_v56 = vmul.f32 %v10780_v47, %v2683_v37 }
 0x8fe   : > { %v12315_v59 = vadd.f32 %v2969_v56, %v2967_v33 }
 0x900   : > { %3058 = vmatpush.msrb.mxu3 %v12315_v59  ;;  %3081 = vmatpush.msra.mxu0 %v12315_v59 }
 0x901   : > { %3104 = vmatpush.msrb.mxu1 %v12315_v59 }
 0x902   : > { %3059 = vmatpush.msrb.mxu3 %v12317_v62  ;;  %3082 = vmatpush.msra.mxu0 %v12317_v62 }
 0x903   : > { %3105 = vmatpush.msrb.mxu1 %v12317_v62  ;;  %10006 = vmatmul.msk.f32.vlgmr.msrb.gmra.mxu3 %vm451_vm0, %v11792_v23  ;;  %v2992_v23 = vpop.f32.mrf.mxu0 }
 0x904   : > { %10008 = vmatmul.msk.f32.vlgmr.msra.gmra.mxu0 %vm451_vm0, %v11799_v24  ;;  %10010 = vmatmul.msk.f32.vlgmr.msrb.gmra.mxu1 %vm451_vm0, %v11840_v6  ;;  %v12381_v6 = vpop.f32.mrf.mxu2 }
 0x905   : > { %10017 = vmatpush.msk.msrb.mxu0 %vm618_vm1, %v11909_v52  ;;  %3162 = vmatpush.msra.mxu3 %v11916_v34  ;;  %v14869_v52 = vld [vmem:[#allocation5_spill] sm:$0xff]  ;;  %v14870_v34 = vld [vmem:[#allocation6_spill] sm:$0xff] }
 0x906   : > { %3212 = vmatpush.msra.mxu1 %v11922_v13  ;;  %10013 = vmatmul.msk.f32.vlgmr.msrb.gmra.mxu2 %vm611_vm2, %v2992_v23  ;;  %v14871_v13 = vld [vmem:[#allocation7_spill] sm:$0xff] }
 0x907   : > { %10027 = vmatpush.msk.msra.mxu0 %vm618_vm1, %v11928_v14  ;;  %3163 = vmatpush.msra.mxu3 %v11935_v15  ;;  %v14872_v14 = vld [vmem:[#allocation8_spill] sm:$0xff]  ;;  %v14873_v15 = vld [vmem:[#allocation10_spill] sm:$0xff] }
 0x908   : > { %3213 = vmatpush.msra.mxu1 %v11941_v16  ;;  %10032 = vmatpush.msk.msrb.mxu2 %vm618_vm1, %v12031_v54 }
 0x909   : > { %3164 = vmatpush.msra.mxu3 %v11947_v17  ;;  %v14874_v17 = vld [vmem:[#allocation15_spill] sm:$0xff] }
 0x90a   : > { %3214 = vmatpush.msra.mxu1 %v11953_v18  ;;  %v14875_v18 = vld [vmem:[#allocation18_spill] sm:$0xff] }
 0x90b   : > { %10007 = vmatmul.msk.f32.gmra.mxu3 %vm451_vm0, %v11813_v31  ;;  %v2995_v24 = vpop.f32.mrf.mxu0  ;;  %v12365_v31 = vpop.f32.mrf.mxu1 }
 0x90c   : > { %10009 = vmatmul.msk.f32.gmra.mxu0 %vm451_vm0, %v11820_v35  ;;  %10011 = vmatmul.msk.f32.gmra.mxu1 %vm451_vm0, %v11847_v8  ;;  %v12387_v8 = vpop.f32.mrf.mxu2 }
 0x90d   : > { %3165 = vmatpush.msra.mxu3 %v11965_v19  ;;  %3215 = vmatpush.msra.mxu1 %v11971_v21  ;;  %v14876_v21 = vld [vmem:[#allocation19_spill] sm:$0xff] }
 0x90e   : > { %10014 = vmatmul.msk.f32.gmra.mxu2 %vm611_vm2, %v2995_v24 }
 0x90f   : > { %3274 = vmatpush.msrb.mxu3 %v11977_v22  ;;  %3324 = vmatpush.msrb.mxu1 %v11983_v25 }
 0x911   : > { %3275 = vmatpush.msrb.mxu3 %v11989_v26  ;;  %3325 = vmatpush.msrb.mxu1 %v11995_v27  ;;  %v14877_v26 = vld [vmem:[#allocation20_spill] sm:$0xff]  ;;  %v14878_v27 = vld [vmem:[#allocation14_spill] sm:$0xff] }
 0x913   : > { %3276 = vmatpush.msrb.mxu3 %v12001_v28  ;;  %3326 = vmatpush.msrb.mxu1 %v12007_v30  ;;  %v12373_v35 = vpop.f32.mrf.mxu1  ;;  %v14879_v30 = vld [vmem:[#allocation16_spill] sm:$0xff] }
 0x914   : > { %10018 = vmatmul.msk.f32.vlgmr.msrb.gmra.mxu0 %vm611_vm2, %v2992_v23 }
 0x915   : > { %3277 = vmatpush.msrb.mxu3 %v12013_v36  ;;  %3327 = vmatpush.msrb.mxu1 %v12019_v38  ;;  %v14880_v36 = vld [vmem:[#allocation17_spill] sm:$0xff] }
 0x916   : > { %10037 = vmatpush.msk.msrb.mxu0 %vm618_vm1, %v12038_v55  ;;  %10023 = vmatmul.msk.f32.vlgmr.msra.gmra.mxu2 %vm611_vm2, %v12365_v31 }
 0x91c   : > { %10019 = vmatmul.msk.f32.gmra.mxu0 %vm611_vm2, %v2995_v24 }
 0x91e   : > { %10024 = vmatmul.msk.f32.gmra.mxu2 %vm611_vm2, %v12373_v35 }
 0x924   : > { %10028 = vmatmul.msk.f32.vlgmr.msra.gmra.mxu0 %vm611_vm2, %v12365_v31 }
 0x925   : > { %3593 = vmatpush.msra.mxu0 %v12057_v61 }
 0x926   : > { %10033 = vmatmul.msk.f32.vlgmr.msrb.gmra.mxu2 %vm611_vm2, %v12381_v6 }
 0x927   : > { %3594 = vmatpush.msra.mxu0 %v12063_v32 }
 0x929   : > { %3595 = vmatpush.msra.mxu0 %v12071_v7 }
 0x92b   : > { %3596 = vmatpush.msra.mxu0 %v12077_v39 }
 0x92c   : > { %10029 = vmatmul.msk.f32.gmra.mxu0 %vm611_vm2, %v12373_v35 }
 0x92e   : > { %10034 = vmatmul.msk.f32.gmra.mxu2 %vm611_vm2, %v12387_v8 }
 0x934   : > { %10038 = vmatmul.msk.f32.vlgmr.msrb.gmra.mxu0 %vm611_vm2, %v12381_v6 }
 0x93c   : > { %10039 = vmatmul.msk.f32.gmra.mxu0 %vm611_vm2, %v12387_v8 }
 0x981   : > { %v3084_v19 = vpop.f32.mrf.mxu0  ;;  %v3107_v25 = vpop.f32.mrf.mxu1 }
 0x986   : > { %v3061_v2 = vpop.f32.mrf.mxu3 }
 0x987   : > { %10015 = vmatmul.msk.f32.vlgmr.msra.gmra.mxu3 %vm654_vm3, %v3061_v2  ;;  %10020 = vmatmul.msk.f32.vlgmr.msra.gmra.mxu1 %vm654_vm3, %v3061_v2 }
 0x988   : > { %3386 = vmatpush.msra.mxu3 %v14868_v11  ;;  %3436 = vmatpush.msra.mxu1 %v14869_v52 }
 0x989   : > { %v3087_v22 = vpop.f32.mrf.mxu0  ;;  %v3110_v28 = vpop.f32.mrf.mxu1 }
 0x98a   : > { %3387 = vmatpush.msra.mxu3 %v14870_v34  ;;  %3437 = vmatpush.msra.mxu1 %v14871_v13 }
 0x98c   : > { %3388 = vmatpush.msra.mxu3 %v14872_v14  ;;  %3438 = vmatpush.msra.mxu1 %v14873_v15 }
 0x98e   : > { %v3064_v16 = vpop.f32.mrf.mxu3  ;;  %3389 = vmatpush.msra.mxu3 %v14874_v17  ;;  %3439 = vmatpush.msra.mxu1 %v14875_v18 }
 0x98f   : > { %10016 = vmatmul.msk.f32.gmra.mxu3 %vm654_vm3, %v3064_v16  ;;  %10021 = vmatmul.msk.f32.gmra.mxu1 %vm654_vm3, %v3064_v16 }
 0x991   : > { %v3192_v38 = vpop.f32.mrf.mxu0 }
 0x992   : > { %v3198_v60 = vadd.f32 %v12194_v46, %v3192_v38  ;;  %v14884_v38 = vld [vmem:[#allocation24_spill] sm:$0xff] }
 0x997   : > { %10025 = vmatmul.msk.f32.vlgmr.msrb.gmra.mxu3 %vm654_vm3, %v3084_v19  ;;  %10030 = vmatmul.msk.f32.vlgmr.msrb.gmra.mxu1 %vm654_vm3, %v3084_v19 }
 0x998   : > { %10048 = vmatpush.msk.msrb.mxu3 %vm618_vm1, %v14876_v21 }
 0x999   : > { %v3195_v54 = vpop.f32.mrf.mxu0 }
 0x99a   : > { %v3199_v40 = vadd.f32 %v12194_v46, %v3195_v54  ;;  %v14885_v54 = vld [vmem:[#allocation25_spill] sm:$0xff] }
 0x99f   : > { %10026 = vmatmul.msk.f32.gmra.mxu3 %vm654_vm3, %v3087_v22  ;;  %10031 = vmatmul.msk.f32.gmra.mxu1 %vm654_vm3, %v3087_v22 }
 0x9a1   : > { %v3304_v61 = vpop.f32.mrf.mxu0 }
 0x9a7   : > { %10035 = vmatmul.msk.f32.vlgmr.msra.gmra.mxu3 %vm654_vm3, %v3107_v25  ;;  %10040 = vmatmul.msk.f32.vlgmr.msra.gmra.mxu1 %vm654_vm3, %v3107_v25 }
 0x9a8   : > { %3672 = vmatpush.msra.mxu3 %v14877_v26  ;;  %v12428_v26 = vld [vmem:[%s14685_s1] sm:$0xff] }
 0x9a9   : > { %v3307_v7 = vpop.f32.mrf.mxu0 }
 0x9aa   : > { %3673 = vmatpush.msra.mxu3 %v14878_v27  ;;  %v12435_v27 = vld [vmem:[%s14685_s1 + $0x10] sm:$0xff] }
 0x9ac   : > { %3674 = vmatpush.msra.mxu3 %v14879_v30  ;;  %v14882_v30 = vld [vmem:[#allocation22_spill] sm:$0xff] }
 0x9ae   : > { %3675 = vmatpush.msra.mxu3 %v14880_v36  ;;  %v14883_v36 = vld [vmem:[#allocation23_spill] sm:$0xff] }
 0x9af   : > { %10036 = vmatmul.msk.f32.gmra.mxu3 %vm654_vm3, %v3110_v28  ;;  %10041 = vmatmul.msk.f32.gmra.mxu1 %vm654_vm3, %v3110_v28  ;;  %v14881_v28 = vld [vmem:[#allocation21_spill] sm:$0xff] }
 0x9b1   : > { %v3416_v53 = vpop.f32.mrf.mxu0 }
 0x9b7   : > { %10049 = vmatmul.msk.f32.vlgmr.msrb.gmra.mxu3 %vm611_vm2, %v2992_v23 }
 0x9b9   : > { %v3419_v45 = vpop.f32.mrf.mxu0 }
 0x9bf   : > { %10050 = vmatmul.msk.f32.gmra.mxu3 %vm611_vm2, %v2995_v24 }
 0xa04   : > { %v3217_v55 = vpop.f32.mrf.mxu1 }
 0xa05   : > { %v3223_v4 = vadd.f32 %v3217_v55, %v3198_v60  ;;  %v12449_v55 = vld [vmem:[%s14685_s1 + $0x8] sm:$0xff] }
 0xa07   : > { %v3310_v42 = vadd.f32 %v3304_v61, %v3223_v4  ;;  %v12456_v61 = vld [vmem:[%s14685_s1 + $0x18] sm:$0xff] }
 0xa0c   : > { %v3220_v32 = vpop.f32.mrf.mxu1 }
 0xa0d   : > { %v3224_v43 = vadd.f32 %v3220_v32, %v3199_v40  ;;  %v14886_v32 = vld [vmem:[#allocation26_spill] sm:$0xff] }
 0xa0f   : > { %v3311_v51 = vadd.f32 %v3307_v7, %v3224_v43  ;;  %v3136_v7 = vpop.f32.mrf.mxu2 }
 0xa14   : > { %v3329_v39 = vpop.f32.mrf.mxu1 }
 0xa15   : > { %v3335_v44 = vadd.f32 %v3329_v39, %v3310_v42 }
 0xa17   : > { %v3422_v0 = vadd.f32 %v3416_v53, %v3335_v44  ;;  %v3139_v39 = vpop.f32.mrf.mxu2 }
 0xa1c   : > { %v3332_v49 = vpop.f32.mrf.mxu1 }
 0xa1d   : > { %v3336_v58 = vadd.f32 %v3332_v49, %v3311_v51  ;;  %v3167_v51 = vpop.f32.mrf.mxu3 }
 0xa1f   : > { %v3423_v48 = vadd.f32 %v3419_v45, %v3336_v58  ;;  %v3248_v60 = vpop.f32.mrf.mxu2  ;;  %v14887_v45 = vld [vmem:[#allocation27_spill] sm:$0xff] }
 0xa24   : > { %v3441_v41 = vpop.f32.mrf.mxu1 }
 0xa25   : > { %v3447_v29 = vadd.f32 %v3441_v41, %v3422_v0 }
 0xa27   : > { %v10044_v1 = vmul.f32 -1.442695, %v3447_v29  ;;  %v3251_v4 = vpop.f32.mrf.mxu2  ;;  %v3170_v29 = vpop.f32.mrf.mxu3 }
 0xa29   : > { %10781 = vpow2.f32 %v10044_v1 }
 0xa2c   : > { %v3444_v10 = vpop.f32.mrf.mxu1 }
 0xa2d   : > { %v3448_v50 = vadd.f32 %v3444_v10, %v3423_v48  ;;  %v3143_v48 = vadd.f32 %v14887_v45, %v3139_v39  ;;  %v3142_v10 = vadd.f32 %v14887_v45, %v3136_v7 }
 0xa2f   : > { %v10782_v37 = vpop.eup %10781  ;;  %v10045_v57 = vmul.f32 -1.442695, %v3448_v50  ;;  %v3360_v49 = vpop.f32.mrf.mxu2 }
 0xa30   : > { %v3493_v12 = vadd.f32 1.0, %v10782_v37  ;;  %v3279_v58 = vpop.f32.mrf.mxu3  ;;  %v3174_v37 = vadd.f32 %v3170_v29, %v3143_v48 }
 0xa31   : > { %10783 = vpow2.f32 %v10045_v57  ;;  %v3173_v57 = vadd.f32 %v3167_v51, %v3142_v10 }
 0xa32   : > { %10785 = vrcp.f32 %v3493_v12  ;;  %vm3500_vm5 = vweird.f32 %v3493_v12  ;;  %v3506_v11 = vand.u32 2147483648, %v3493_v12  ;;  %v3504_v13 = vand.u32 2147483647, %v3493_v12 }
 0xa34   : > { %v3507_v17 = vor.u32 1.1754944e-38, %v3506_v11  ;;  %vm3505_vm11 = vcmp.eq.f32.partialorder %v3504_v13, 8.507059e+37  ;;  %v12504_v13 = vld [vmem:[%s14686_s2] sm:$0xf] }
 0xa37   : > { %v10784_v46 = vpop.eup %10783  ;;  %v3363_v40 = vpop.f32.mrf.mxu2 }
 0xa38   : > { %v10786_v3 = vpop.eup %10785  ;;  %v3494_v20 = vadd.f32 1.0, %v10784_v46  ;;  %v3282_v1 = vpop.f32.mrf.mxu3  ;;  %v3254_v46 = vadd.f32 %v3248_v60, %v3173_v57 }
 0xa39   : > { %v3496_v47 = vmul.f32 %v10786_v3, %v3493_v12  ;;  %vm3501_vm4 = vweird.f32 %v10786_v3  ;;  %v3255_v12 = vadd.f32 %v3251_v4, %v3174_v37 }
 0xa3a   : > { %10787 = vrcp.f32 %v3494_v20  ;;  %v3521_v2 = vand.u32 2147483648, %v3494_v20  ;;  %v3519_v34 = vand.u32 2147483647, %v3494_v20  ;;  %vm3502_vm7 = vmor %vm3500_vm5, %vm3501_vm4  ;;  %vm3515_vm8 = vweird.f32 %v3494_v20 }
 0xa3b   : > { %v3497_v5 = vsub.f32 1.0, %v3496_v47 }
 0xa3c   : > { %v3522_v16 = vor.u32 1.1754944e-38, %v3521_v2  ;;  %vm3520_vm10 = vcmp.eq.f32.partialorder %v3519_v34, 8.507059e+37  ;;  %v10068_v2 = vld [vmem:[%s11215_s15 + $0x48] sm:$0xff] }
 0xa3d   : > { %v3498_v33 = vmul.f32 %v10786_v3, %v3497_v5  ;;  %3791 = vmatpush.msrb.mxu3 %v10068_v2 }
 0xa3f   : > { %v3499_v24 = vadd.f32 %v10786_v3, %v3498_v33 }
 0xa40   : > { %v10788_v56 = vpop.eup %10787  ;;  %v3391_v50 = vpop.f32.mrf.mxu3 }
 0xa41   : > { %v3511_v9 = vmul.f32 %v10788_v56, %v3494_v20  ;;  %vm3516_vm6 = vweird.f32 %v10788_v56  ;;  %v3503_v15 = vsel %vm3502_vm7, %v10786_v3, %v3499_v24  ;;  %v3286_v3 = vadd.f32 %v3282_v1, %v3255_v12 }
 0xa42   : > { %vm3517_vm9 = vmor %vm3515_vm8, %vm3516_vm6  ;;  %v3508_v21 = vsel %vm3505_vm11, %v3507_v17, %v3503_v15  ;;  %v3285_v20 = vadd.f32 %v3279_v58, %v3254_v46  ;;  %v12511_v15 = vld [vmem:[%s14686_s2 + $0x4] sm:$0xf] }
 0xa43   : > { %v3512_v23 = vsub.f32 1.0, %v3511_v9  ;;  %v3525_v25 = vmul.f32 %v3508_v21, %v12317_v62  ;;  %v3367_v5 = vadd.f32 %v3363_v40, %v3286_v3 }
 0xa44   : > { %v3366_v33 = vadd.f32 %v3360_v49, %v3285_v20 }
 0xa45   : > { %v3513_v52 = vmul.f32 %v10788_v56, %v3512_v23 }
 0xa46   : > { %v3397_v9 = vadd.f32 %v3391_v50, %v3366_v33 }
 0xa47   : > { %v3514_v14 = vadd.f32 %v10788_v56, %v3513_v52  ;;  %v10067_v52 = vld [vmem:[%s11215_s15 + $0x40] sm:$0xff] }
 0xa48   : > { %v3394_v47 = vpop.f32.mrf.mxu3  ;;  %v10042_v24 = vmul.f32 -1.442695, %v3397_v9  ;;  %3792 = vmatpush.msrb.mxu3 %v10067_v52 }
 0xa49   : > { %v3518_v18 = vsel %vm3517_vm9, %v10788_v56, %v3514_v14  ;;  %v3398_v56 = vadd.f32 %v3394_v47, %v3367_v5 }
 0xa4a   : > { %v3523_v19 = vsel %vm3520_vm10, %v3522_v16, %v3518_v18 }
 0xa4b   : > { %v3526_v22 = vmul.f32 %v3523_v19, %v12315_v59  ;;  %v10043_v23 = vmul.f32 -1.442695, %v3398_v56 }
 0xa4d   : > { %3541 = vmatpush.msra.mxu2 %v3526_v22  ;;  %3620 = vmatpush.msrb.mxu1 %v3526_v22  ;;  %10789 = vpow2.f32 %v10043_v23 }
 0xa4e   : > { %3699 = vmatpush.msrb.mxu0 %v3526_v22  ;;  %10791 = vpow2.f32 %v10042_v24 }
 0xa4f   : > { %3542 = vmatpush.msra.mxu2 %v3525_v25  ;;  %3621 = vmatpush.msrb.mxu1 %v3525_v25 }
 0xa50   : > { %3700 = vmatpush.msrb.mxu0 %v3525_v25  ;;  %10046 = vmatmul.msk.f32.vlgmr.msra.gmra.mxu2 %vm451_vm0, %v12428_v26  ;;  %v3567_v11 = vpop.f32.mrf.mxu3 }
 0xa51   : > { %10053 = vmatmul.msk.f32.vlgmr.msrb.gmra.mxu1 %vm451_vm0, %v12435_v27  ;;  %10055 = vmatpush.msk.msrb.mxu2 %vm618_vm1, %v14881_v28  ;;  %v3573_v22 = vadd.f32 %v12290_v63, %v3567_v11 }
 0xa52   : > { %10062 = vmatpush.msk.msra.mxu1 %vm618_vm1, %v14882_v30 }
 0xa53   : > { %3751 = vmatpush.msra.mxu2 %v14883_v36  ;;  %v10790_v34 = vpop.eup %10789 }
 0xa54   : > { %3837 = vmatpush.msrb.mxu1 %v10068_v2  ;;  %v10792_v14 = vpop.eup %10791  ;;  %v3456_v16 = vadd.f32 1.0, %v10790_v34 }
 0xa55   : > { %3752 = vmatpush.msra.mxu2 %v14884_v38  ;;  %v3455_v17 = vadd.f32 1.0, %v10792_v14  ;;  %v12558_v14 = vld [vmem:[%s14689_s5 + $0x18] sm:$0xff] }
 0xa56   : > { %3838 = vmatpush.msrb.mxu1 %v10067_v52  ;;  %10793 = vrcp.f32 %v3456_v16  ;;  %v3483_v58 = vand.u32 2147483648, %v3456_v16  ;;  %vm3477_vm14 = vweird.f32 %v3456_v16 }
 0xa57   : > { %3753 = vmatpush.msra.mxu2 %v14885_v54  ;;  %10795 = vrcp.f32 %v3455_v17  ;;  %v3468_v45 = vand.u32 2147483648, %v3455_v17  ;;  %vm3462_vm4 = vweird.f32 %v3455_v17  ;;  %v3466_v10 = vand.u32 2147483647, %v3455_v17 }
 0xa58   : > { %10047 = vmatmul.msk.f32.gmra.mxu2 %vm451_vm0, %v12449_v55  ;;  %v3570_v18 = vpop.f32.mrf.mxu3  ;;  %v3484_v57 = vor.u32 1.1754944e-38, %v3483_v58  ;;  %v12737_v58 = vld [vmem:[%s14687_s3 + $0x58] sm:$0xff] }
 0xa59   : > { %10054 = vmatmul.msk.f32.gmra.mxu1 %vm451_vm0, %v12456_v61  ;;  %3754 = vmatpush.msra.mxu2 %v14886_v32  ;;  %v3574_v54 = vadd.f32 %v12290_v63, %v3570_v18  ;;  %v3469_v3 = vor.u32 1.1754944e-38, %v3468_v45  ;;  %vm3467_vm7 = vcmp.eq.f32.partialorder %v3466_v10, 8.507059e+37  ;;  %v12577_v18 = vld [vmem:[%s14689_s5 + $0x10] sm:$0xff]  ;;  %14888 = vst [vmem:[#allocation4_spill] sm:$0xff] %v12737_v58  ;;  %v12761_v45 = vld [vmem:[%s14687_s3 + $0x48] sm:$0xff] }
 0xa5a   : > { %14892 = vst [vmem:[#allocation8_spill] sm:$0xff] %v12761_v45 }
 0xa5c   : > { %v10794_v21 = vpop.eup %10793 }
 0xa5d   : > { %v10796_v28 = vpop.eup %10795  ;;  %v3473_v36 = vmul.f32 %v10794_v21, %v3456_v16  ;;  %vm3478_vm12 = vweird.f32 %v10794_v21 }
 0xa5e   : > { %v3458_v32 = vmul.f32 %v10796_v28, %v3455_v17  ;;  %vm3463_vm13 = vweird.f32 %v10796_v28  ;;  %vm3479_vm15 = vmor %vm3477_vm14, %vm3478_vm12  ;;  %v12571_v17 = vld [vmem:[%s14687_s3 + $0x10] sm:$0xff] }
 0xa5f   : > { %v3474_v60 = vsub.f32 1.0, %v3473_v36  ;;  %vm3464_vm5 = vmor %vm3462_vm4, %vm3463_vm13  ;;  %v12625_v36 = vld [vmem:[%s14687_s3 + $0x30] sm:$0xff] }
 0xa60   : > { %10056 = vmatmul.msk.f32.vlgmr.msrb.gmra.mxu2 %vm611_vm2, %v12365_v31  ;;  %v3459_v49 = vsub.f32 1.0, %v3458_v32  ;;  %v12643_v32 = vld [vmem:[%s14689_s5 + $0x28] sm:$0xff] }
 0xa61   : > { %10063 = vmatmul.msk.f32.vlgmr.msra.gmra.mxu1 %vm611_vm2, %v12381_v6 }
 0xa62   : > { %10081 = vmatpush.msk.msra.mxu1 %vm618_vm1, %v12504_v13 }
 0xa68   : > { %10057 = vmatmul.msk.f32.gmra.mxu2 %vm611_vm2, %v12373_v35  ;;  %v12476_v35 = vld [vmem:[%s14685_s1 + $0x20] sm:$0xff] }
 0xa69   : > { %10064 = vmatmul.msk.f32.gmra.mxu1 %vm611_vm2, %v12387_v8  ;;  %v12483_v8 = vld [vmem:[%s14685_s1 + $0x28] sm:$0xff] }
 0xa71   : > { %10073 = vmatmul.msk.f32.vlgmr.msrb.gmra.mxu1 %vm451_vm0, %v12476_v35 }
 0xa72   : > { %10091 = vmatpush.msk.msrb.mxu1 %vm618_vm1, %v12511_v15 }
 0xa79   : > { %10074 = vmatmul.msk.f32.gmra.mxu1 %vm451_vm0, %v12483_v8 }
 0xace   : > { %v3623_v42 = vpop.f32.mrf.mxu1 }
 0xacf   : > { %10058 = vmatmul.msk.f32.vlgmr.msra.gmra.mxu3 %vm654_vm3, %v3623_v42 }
 0xad3   : > { %v3544_v53 = vpop.f32.mrf.mxu2 }
 0xad4   : > { %10051 = vmatmul.msk.f32.vlgmr.msra.gmra.mxu0 %vm654_vm3, %v3544_v53 }
 0xad5   : > { %3814 = vmatpush.msra.mxu0 %v10068_v2 }
 0xad6   : > { %v3626_v31 = vpop.f32.mrf.mxu1 }
 0xad7   : > { %10059 = vmatmul.msk.f32.gmra.mxu3 %vm654_vm3, %v3626_v31  ;;  %3815 = vmatpush.msra.mxu0 %v10067_v52 }
 0xadb   : > { %v3547_v6 = vpop.f32.mrf.mxu2 }
 0xadc   : > { %10052 = vmatmul.msk.f32.gmra.mxu0 %vm654_vm3, %v3547_v6  ;;  %v3475_v6 = vmul.f32 %v10794_v21, %v3474_v60 }
 0xade   : > { %v3725_v4 = vpop.f32.mrf.mxu1 }
 0xadf   : > { %10069 = vmatmul.msk.f32.vlgmr.msrb.gmra.mxu3 %vm451_vm0, %v12428_v26 }
 0xae3   : > { %v3646_v19 = vpop.f32.mrf.mxu2 }
 0xae4   : > { %10060 = vmatmul.msk.f32.vlgmr.msrb.gmra.mxu0 %vm451_vm0, %v12476_v35 }
 0xae6   : > { %v3728_v63 = vpop.f32.mrf.mxu1 }
 0xae7   : > { %10070 = vmatmul.msk.f32.gmra.mxu3 %vm451_vm0, %v12449_v55 }
 0xaeb   : > { %v3649_v38 = vpop.f32.mrf.mxu2 }
 0xaec   : > { %10061 = vmatmul.msk.f32.gmra.mxu0 %vm451_vm0, %v12483_v8 }
 0xaf4   : > { %10071 = vmatmul.msk.f32.vlgmr.msra.gmra.mxu0 %vm451_vm0, %v12435_v27 }
 0xafc   : > { %10072 = vmatmul.msk.f32.gmra.mxu0 %vm451_vm0, %v12456_v61 }
 0xb51   : > { %v3598_v44 = vpop.f32.mrf.mxu0 }
 0xb52   : > { %v3677_v25 = vpop.f32.mrf.mxu3  ;;  %v3604_v30 = vadd.f32 %v3598_v44, %v3573_v22  ;;  %v3476_v44 = vadd.f32 %v10794_v21, %v3475_v6  ;;  %v12601_v22 = vld [vmem:[%s14687_s3] sm:$0xff] }
 0xb54   : > { %v3652_v7 = vadd.f32 %v3646_v19, %v3604_v30  ;;  %v3480_v50 = vsel %vm3479_vm15, %v10794_v21, %v3476_v44  ;;  %v12583_v19 = vld [vmem:[%s14687_s3 + $0x8] sm:$0xff]  ;;  %v12619_v30 = vld [vmem:[%s14689_s5 + $0x38] sm:$0xff] }
 0xb55   : > { %v12589_v21 = vld [vmem:[%s14689_s5 + $0x8] sm:$0xff] }
 0xb56   : > { %v3683_v40 = vadd.f32 %v3677_v25, %v3652_v7  ;;  %v12607_v25 = vld [vmem:[%s14689_s5] sm:$0xff] }
 0xb57   : > { %v12649_v7 = vld [vmem:[%s14687_s3 + $0x20] sm:$0xff] }
 0xb58   : > { %v3731_v51 = vadd.f32 %v3725_v4, %v3683_v40  ;;  %v12667_v4 = vld [vmem:[%s14688_s4 + $0x8] sm:$0xf] }
 0xb59   : > { %v12487_v43 = vpop.f32.mrf.mxu0 }
 0xb5a   : > { %v3605_v39 = vadd.f32 %v12487_v43, %v3574_v54  ;;  %v3680_v53 = vpop.f32.mrf.mxu3  ;;  %v3481_v43 = vand.u32 2147483647, %v3456_v16  ;;  %v12564_v16 = vld [vmem:[%s14688_s4 + $0x4] sm:$0xf]  ;;  %v12637_v54 = vld [vmem:[%s14687_s3 + $0x28] sm:$0xff] }
 0xb5c   : > { %v3653_v42 = vadd.f32 %v3649_v38, %v3605_v39  ;;  %vm3482_vm6 = vcmp.eq.f32.partialorder %v3481_v43, 8.507059e+37  ;;  %v12631_v38 = vld [vmem:[%s14689_s5 + $0x30] sm:$0xff]  ;;  %v12655_v39 = vld [vmem:[%s14689_s5 + $0x20] sm:$0xff] }
 0xb5d   : > { %v3485_v20 = vsel %vm3482_vm6, %v3484_v57, %v3480_v50  ;;  %v12755_v43 = vld [vmem:[%s14689_s5 + $0x50] sm:$0xff]  ;;  %v12773_v50 = vld [vmem:[%s14687_s3 + $0x40] sm:$0xff] }
 0xb5e   : > { %v3767_v5 = vsub.f32 1.0, %v3485_v20  ;;  %14891 = vst [vmem:[#allocation7_spill] sm:$0xff] %v12755_v43 }
 0xb5f   : > { %14894 = vst [vmem:[#allocation15_spill] sm:$0xff] %v12773_v50 }
 0xb60   : > { %v3769_v24 = vmul.f32 %v3767_v5, %v12315_v59  ;;  %v12545_v59 = vld [vmem:[%s14688_s4] sm:$0xf] }
 0xb61   : > { %v3702_v0 = vpop.f32.mrf.mxu0 }
 0xb62   : > { %10065 = vmatmul.msk.f32.vlgmr.msra.gmra.mxu2 %vm654_vm3, %v3702_v0  ;;  %v3460_v0 = vmul.f32 %v10796_v28, %v3459_v49  ;;  %v12658_v60 = vpop.f32.mrf.mxu3  ;;  %v12674_v49 = vld [vmem:[%s14686_s2 + $0x8] sm:$0xf] }
 0xb63   : > { %10082 = vmatmul.msk.f32.vlgmr.msra.gmra.mxu1 %vm611_vm2, %v12658_v60 }
 0xb64   : > { %v3461_v1 = vadd.f32 %v10796_v28, %v3460_v0  ;;  %10101 = vmatpush.msk.msra.mxu1 %vm618_vm1, %v12674_v49  ;;  %v12707_v0 = vld [vmem:[%s14691_s7 + $0x8] sm:$0xff] }
 0xb66   : > { %v3465_v46 = vsel %vm3464_vm5, %v10796_v28, %v3461_v1  ;;  %v12613_v28 = vld [vmem:[%s14687_s3 + $0x38] sm:$0xff]  ;;  %v12749_v1 = vld [vmem:[%s14687_s3 + $0x50] sm:$0xff] }
 0xb67   : > { %v3470_v47 = vsel %vm3467_vm7, %v3469_v3, %v3465_v46  ;;  %14890 = vst [vmem:[#allocation6_spill] sm:$0xff] %v12749_v1 }
 0xb68   : > { %v3766_v56 = vsub.f32 1.0, %v3470_v47 }
 0xb69   : > { %v3705_v41 = vpop.f32.mrf.mxu0 }
 0xb6a   : > { %10066 = vmatmul.msk.f32.gmra.mxu2 %vm654_vm3, %v3705_v41  ;;  %v3684_v41 = vadd.f32 %v3680_v53, %v3653_v42  ;;  %v3768_v11 = vmul.f32 %v3766_v56, %v12317_v62  ;;  %v12552_v62 = vld [vmem:[%s14687_s3 + $0x18] sm:$0xff]  ;;  %v12678_v40 = vpop.f32.mrf.mxu3  ;;  %v12818_v56 = vld [vmem:[%s14691_s7 + $0x20] sm:$0xff] }
 0xb6b   : > { %10083 = vmatmul.msk.f32.gmra.mxu1 %vm611_vm2, %v12678_v40  ;;  %v12693_v53 = vld [vmem:[%s14691_s7 + $0x18] sm:$0xff]  ;;  %14900 = vst [vmem:[#allocation17_spill] sm:$0xff] %v12818_v56 }
 0xb6c   : > { %v3732_v48 = vadd.f32 %v3728_v63, %v3684_v41  ;;  %v12713_v41 = vld [vmem:[%s14691_s7] sm:$0xff]  ;;  %v12743_v63 = vld [vmem:[%s14689_s5 + $0x58] sm:$0xff] }
 0xb6d   : > { %14889 = vst [vmem:[#allocation5_spill] sm:$0xff] %v12743_v63 }
 0xb71   : > { %v12684_v42 = vpop.f32.mrf.mxu0 }
 0xb73   : > { %10092 = vmatmul.msk.f32.vlgmr.msrb.gmra.mxu1 %vm611_vm2, %v12684_v42 }
 0xb79   : > { %v12702_v6 = vpop.f32.mrf.mxu0 }
 0xb7b   : > { %10093 = vmatmul.msk.f32.gmra.mxu1 %vm611_vm2, %v12702_v6 }
 0xbe5   : > { %v3756_v31 = vpop.f32.mrf.mxu2 }
 0xbe6   : > { %v3762_v29 = vadd.f32 %v3756_v31, %v3731_v51  ;;  %v12699_v31 = vld [vmem:[%s14691_s7 + $0x10] sm:$0xff]  ;;  %v12720_v51 = vpop.f32.mrf.mxu1 }
 0xbe7   : > { %10102 = vmatmul.msk.f32.vlgmr.msra.gmra.mxu1 %vm611_vm2, %v12720_v51 }
 0xbe8   : > { %10797 = vtanh.f32 %v3762_v29 }
 0xbed   : > { %v3759_v37 = vpop.f32.mrf.mxu2 }
 0xbee   : > { %v3763_v12 = vadd.f32 %v3759_v37, %v3732_v48  ;;  %v10798_v33 = vpop.eup %10797  ;;  %v12726_v44 = vpop.f32.mrf.mxu1  ;;  %v12767_v48 = vld [vmem:[%s14689_s5 + $0x48] sm:$0xff]  ;;  %v12779_v37 = vld [vmem:[%s14689_s5 + $0x40] sm:$0xff] }
 0xbef   : > { %v3770_v23 = vmul.f32 %v10798_v33, %v3470_v47  ;;  %10103 = vmatmul.msk.f32.gmra.mxu1 %vm611_vm2, %v12726_v44  ;;  %14893 = vst [vmem:[#allocation10_spill] sm:$0xff] %v12767_v48  ;;  %v12806_v47 = vld [vmem:[%s14691_s7 + $0x30] sm:$0xff]  ;;  %v12812_v33 = vld [vmem:[%s14691_s7 + $0x28] sm:$0xff] }
 0xbf0   : > { %10799 = vtanh.f32 %v3763_v12  ;;  %14895 = vst [vmem:[#allocation18_spill] sm:$0xff] %v12779_v37  ;;  %v12789_v12 = vld [vmem:[%s14690_s6] sm:$0xf] }
 0xbf1   : > { %v12528_v34 = vadd.f32 %v3770_v23, %v3768_v11  ;;  %14896 = vst [vmem:[#allocation19_spill] sm:$0xff] %v12789_v12 }
 0xbf2   : > { %14898 = vst [vmem:[#allocation14_spill] sm:$0xff] %v12806_v47 }
 0xbf3   : > { %14899 = vst [vmem:[#allocation16_spill] sm:$0xff] %v12812_v33 }
 0xbf6   : > { %v10800_v9 = vpop.eup %10799 }
 0xbf7   : > { %v3771_v2 = vmul.f32 %v10800_v9, %v3485_v20  ;;  %v12800_v20 = vld [vmem:[%s14691_s7 + $0x38] sm:$0xff] }
 0xbf8   : > { %14897 = vst [vmem:[#allocation20_spill] sm:$0xff] %v12800_v20 }
 0xbf9   : > { %v12526_v52 = vadd.f32 %v3771_v2, %v3769_v24 }
 0xbfb   : > { %3860 = vmatpush.msrb.mxu2 %v12526_v52  ;;  %3883 = vmatpush.msra.mxu3 %v12526_v52 }
 0xbfc   : > { %3906 = vmatpush.msrb.mxu0 %v12526_v52 }
 0xbfd   : > { %3861 = vmatpush.msrb.mxu2 %v12528_v34  ;;  %3884 = vmatpush.msra.mxu3 %v12528_v34 }
 0xbfe   : > { %3907 = vmatpush.msrb.mxu0 %v12528_v34  ;;  %10075 = vmatmul.msk.f32.vlgmr.msrb.gmra.mxu2 %vm451_vm0, %v12428_v26 }
 0xbff   : > { %10077 = vmatmul.msk.f32.vlgmr.msra.gmra.mxu3 %vm451_vm0, %v12435_v27  ;;  %10079 = vmatmul.msk.f32.vlgmr.msrb.gmra.mxu0 %vm451_vm0, %v12476_v35 }
 0xc00   : > { %10086 = vmatpush.msk.msrb.mxu3 %vm618_vm1, %v12545_v59  ;;  %3964 = vmatpush.msra.mxu2 %v12552_v62 }
 0xc01   : > { %4014 = vmatpush.msra.mxu0 %v12558_v14 }
 0xc02   : > { %10096 = vmatpush.msk.msra.mxu3 %vm618_vm1, %v12564_v16  ;;  %3965 = vmatpush.msra.mxu2 %v12571_v17 }
 0xc03   : > { %4015 = vmatpush.msra.mxu0 %v12577_v18 }
 0xc04   : > { %3966 = vmatpush.msra.mxu2 %v12583_v19 }
 0xc05   : > { %4016 = vmatpush.msra.mxu0 %v12589_v21 }
 0xc06   : > { %10076 = vmatmul.msk.f32.gmra.mxu2 %vm451_vm0, %v12449_v55 }
 0xc07   : > { %10078 = vmatmul.msk.f32.gmra.mxu3 %vm451_vm0, %v12456_v61  ;;  %10080 = vmatmul.msk.f32.gmra.mxu0 %vm451_vm0, %v12483_v8 }
 0xc08   : > { %3967 = vmatpush.msra.mxu2 %v12601_v22  ;;  %4017 = vmatpush.msra.mxu0 %v12607_v25 }
 0xc0a   : > { %4076 = vmatpush.msrb.mxu2 %v12613_v28  ;;  %4126 = vmatpush.msrb.mxu0 %v12619_v30 }
 0xc0c   : > { %4077 = vmatpush.msrb.mxu2 %v12625_v36  ;;  %4127 = vmatpush.msrb.mxu0 %v12631_v38 }
 0xc0e   : > { %4078 = vmatpush.msrb.mxu2 %v12637_v54  ;;  %4128 = vmatpush.msrb.mxu0 %v12643_v32 }
 0xc0f   : > { %10087 = vmatmul.msk.f32.vlgmr.msrb.gmra.mxu3 %vm611_vm2, %v12658_v60 }
 0xc10   : > { %4079 = vmatpush.msrb.mxu2 %v12649_v7  ;;  %4129 = vmatpush.msrb.mxu0 %v12655_v39 }
 0xc11   : > { %10106 = vmatpush.msk.msrb.mxu3 %vm618_vm1, %v12667_v4 }
 0xc17   : > { %10088 = vmatmul.msk.f32.gmra.mxu3 %vm611_vm2, %v12678_v40 }
 0xc1f   : > { %10097 = vmatmul.msk.f32.vlgmr.msra.gmra.mxu3 %vm611_vm2, %v12684_v42 }
 0xc20   : > { %4395 = vmatpush.msra.mxu3 %v12693_v53 }
 0xc22   : > { %4396 = vmatpush.msra.mxu3 %v12699_v31 }
 0xc24   : > { %4397 = vmatpush.msra.mxu3 %v12707_v0 }
 0xc26   : > { %4398 = vmatpush.msra.mxu3 %v12713_v41 }
 0xc27   : > { %10098 = vmatmul.msk.f32.gmra.mxu3 %vm611_vm2, %v12702_v6 }
 0xc2f   : > { %10107 = vmatmul.msk.f32.vlgmr.msrb.gmra.mxu3 %vm611_vm2, %v12720_v51 }
 0xc37   : > { %10108 = vmatmul.msk.f32.gmra.mxu3 %vm611_vm2, %v12726_v44 }
 0xc7c   : > { %v3909_v3 = vpop.f32.mrf.mxu0 }
 0xc81   : > { %v3863_v29 = vpop.f32.mrf.mxu2 }
 0xc82   : > { %10084 = vmatmul.msk.f32.vlgmr.msra.gmra.mxu2 %vm654_vm3, %v3863_v29  ;;  %10089 = vmatmul.msk.f32.vlgmr.msra.gmra.mxu0 %vm654_vm3, %v3863_v29  ;;  %v3886_v57 = vpop.f32.mrf.mxu3 }
 0xc83   : > { %4188 = vmatpush.msra.mxu2 %v12737_v58  ;;  %4238 = vmatpush.msra.mxu0 %v12743_v63 }
 0xc84   : > { %v3912_v5 = vpop.f32.mrf.mxu0 }
 0xc85   : > { %4189 = vmatpush.msra.mxu2 %v12749_v1  ;;  %4239 = vmatpush.msra.mxu0 %v12755_v43 }
 0xc87   : > { %4190 = vmatpush.msra.mxu2 %v12761_v45  ;;  %4240 = vmatpush.msra.mxu0 %v12767_v48 }
 0xc89   : > { %v3866_v10 = vpop.f32.mrf.mxu2  ;;  %4191 = vmatpush.msra.mxu2 %v12773_v50  ;;  %4241 = vmatpush.msra.mxu0 %v12779_v37 }
 0xc8a   : > { %10085 = vmatmul.msk.f32.gmra.mxu2 %vm654_vm3, %v3866_v10  ;;  %10090 = vmatmul.msk.f32.gmra.mxu0 %vm654_vm3, %v3866_v10  ;;  %v3889_v46 = vpop.f32.mrf.mxu3 }
 0xc92   : > { %10094 = vmatmul.msk.f32.vlgmr.msrb.gmra.mxu2 %vm654_vm3, %v3886_v57  ;;  %10099 = vmatmul.msk.f32.vlgmr.msrb.gmra.mxu0 %vm654_vm3, %v3886_v57  ;;  %v3994_v9 = vpop.f32.mrf.mxu3  ;;  %v12830_v57 = vld [vmem:[%s14693_s9] ss:$0 sm:$0xff] }
 0xc93   : > { %10117 = vmatpush.msk.msrb.mxu2 %vm618_vm1, %v12789_v12 }
 0xc9a   : > { %10095 = vmatmul.msk.f32.gmra.mxu2 %vm654_vm3, %v3889_v46  ;;  %10100 = vmatmul.msk.f32.gmra.mxu0 %vm654_vm3, %v3889_v46  ;;  %v3997_v23 = vpop.f32.mrf.mxu3  ;;  %v4000_v46 = vadd.f32 %v12830_v57, %v3994_v9 }
 0xca2   : > { %10104 = vmatmul.msk.f32.vlgmr.msra.gmra.mxu2 %vm654_vm3, %v3909_v3  ;;  %10109 = vmatmul.msk.f32.vlgmr.msra.gmra.mxu0 %vm654_vm3, %v3909_v3  ;;  %v4106_v2 = vpop.f32.mrf.mxu3 }
 0xca3   : > { %4474 = vmatpush.msra.mxu2 %v12800_v20 }
 0xca5   : > { %4475 = vmatpush.msra.mxu2 %v12806_v47 }
 0xca7   : > { %4476 = vmatpush.msra.mxu2 %v12812_v33 }
 0xca9   : > { %4477 = vmatpush.msra.mxu2 %v12818_v56 }
 0xcaa   : > { %10105 = vmatmul.msk.f32.gmra.mxu2 %vm654_vm3, %v3912_v5  ;;  %10110 = vmatmul.msk.f32.gmra.mxu0 %vm654_vm3, %v3912_v5  ;;  %v4109_v29 = vpop.f32.mrf.mxu3 }
 0xcb2   : > { %10118 = vmatmul.msk.f32.vlgmr.msrb.gmra.mxu2 %vm611_vm2, %v12658_v60  ;;  %v4001_v60 = vadd.f32 %v12830_v57, %v3997_v23 }
 0xcba   : > { %10119 = vmatmul.msk.f32.gmra.mxu2 %vm611_vm2, %v12678_v40  ;;  %v4218_v40 = vpop.f32.mrf.mxu3 }
 0xcc2   : > { %v4221_v43 = vpop.f32.mrf.mxu3 }
 0xcff   : > { %v4019_v24 = vpop.f32.mrf.mxu0 }
 0xd00   : > { %v4025_v3 = vadd.f32 %v4019_v24, %v4000_v46 }
 0xd02   : > { %v4112_v56 = vadd.f32 %v4106_v2, %v4025_v3 }
 0xd07   : > { %v4022_v11 = vpop.f32.mrf.mxu0 }
 0xd08   : > { %v4026_v47 = vadd.f32 %v4022_v11, %v4001_v60 }
 0xd0a   : > { %v4113_v37 = vadd.f32 %v4109_v29, %v4026_v47 }
 0xd0f   : > { %v4131_v10 = vpop.f32.mrf.mxu0 }
 0xd10   : > { %v4137_v33 = vadd.f32 %v4131_v10, %v4112_v56 }
 0xd12   : > { %v4224_v20 = vadd.f32 %v4218_v40, %v4137_v33 }
 0xd17   : > { %v4134_v5 = vpop.f32.mrf.mxu0 }
 0xd18   : > { %v4138_v48 = vadd.f32 %v4134_v5, %v4113_v37 }
 0xd1a   : > { %v4225_v1 = vadd.f32 %v4221_v43, %v4138_v48 }
 0xd1f   : > { %v4243_v12 = vpop.f32.mrf.mxu0 }
 0xd20   : > { %v4249_v50 = vadd.f32 %v4243_v12, %v4224_v20 }
 0xd22   : > { %v10113_v45 = vmul.f32 -1.442695, %v4249_v50 }
 0xd24   : > { %10801 = vpow2.f32 %v10113_v45 }
 0xd27   : > { %v4246_v63 = vpop.f32.mrf.mxu0 }
 0xd28   : > { %v4250_v58 = vadd.f32 %v4246_v63, %v4225_v1 }
 0xd2a   : > { %v10802_v9 = vpop.eup %10801  ;;  %v10114_v24 = vmul.f32 -1.442695, %v4250_v58 }
 0xd2b   : > { %v4295_v46 = vadd.f32 1.0, %v10802_v9 }
 0xd2c   : > { %10803 = vpow2.f32 %v10114_v24 }
 0xd2d   : > { %10805 = vrcp.f32 %v4295_v46  ;;  %vm4302_vm9 = vweird.f32 %v4295_v46  ;;  %v4308_v63 = vand.u32 2147483648, %v4295_v46  ;;  %v4306_v45 = vand.u32 2147483647, %v4295_v46 }
 0xd2f   : > { %v4309_v3 = vor.u32 1.1754944e-38, %v4308_v63  ;;  %vm4307_vm15 = vcmp.eq.f32.partialorder %v4306_v45, 8.507059e+37 }
 0xd32   : > { %v10804_v23 = vpop.eup %10803 }
 0xd33   : > { %v10806_v2 = vpop.eup %10805  ;;  %v4296_v56 = vadd.f32 1.0, %v10804_v23  ;;  %v12850_v23 = vld [vmem:[%s14690_s6 + $0x8] sm:$0xf] }
 0xd34   : > { %v4298_v11 = vmul.f32 %v10806_v2, %v4295_v46  ;;  %vm4303_vm8 = vweird.f32 %v10806_v2  ;;  %v12843_v46 = vld [vmem:[%s14690_s6 + $0x4] sm:$0xf]  ;;  %14902 = vst [vmem:[#allocation22_spill] sm:$0xff] %v12850_v23 }
 0xd35   : > { %10807 = vrcp.f32 %v4296_v56  ;;  %v4323_v43 = vand.u32 2147483648, %v4296_v56  ;;  %v4321_v58 = vand.u32 2147483647, %v4296_v56  ;;  %vm4304_vm11 = vmor %vm4302_vm9, %vm4303_vm8  ;;  %vm4317_vm12 = vweird.f32 %v4296_v56  ;;  %14901 = vst [vmem:[#allocation21_spill] sm:$0xff] %v12843_v46 }
 0xd36   : > { %v4299_v33 = vsub.f32 1.0, %v4298_v11  ;;  %v12869_v11 = vld [vmem:[%s14691_s7 + $0x48] sm:$0xff] }
 0xd37   : > { %v4324_v10 = vor.u32 1.1754944e-38, %v4323_v43  ;;  %vm4322_vm14 = vcmp.eq.f32.partialorder %v4321_v58, 8.507059e+37  ;;  %14905 = vst [vmem:[#allocation25_spill] sm:$0xff] %v12869_v11 }
 0xd38   : > { %v4300_v47 = vmul.f32 %v10806_v2, %v4299_v33  ;;  %v12879_v33 = vld [vmem:[%s14691_s7 + $0x40] sm:$0xff] }
 0xd39   : > { %14906 = vst [vmem:[#allocation26_spill] sm:$0xff] %v12879_v33 }
 0xd3a   : > { %v4301_v20 = vadd.f32 %v10806_v2, %v4300_v47  ;;  %v3938_v47 = vpop.f32.mrf.mxu1 }
 0xd3b   : > { %v10808_v12 = vpop.eup %10807 }
 0xd3c   : > { %v4313_v37 = vmul.f32 %v10808_v12, %v4296_v56  ;;  %vm4318_vm10 = vweird.f32 %v10808_v12  ;;  %v4305_v29 = vsel %vm4304_vm11, %v10806_v2, %v4301_v20  ;;  %v12857_v2 = vld [vmem:[%s14691_s7 + $0x58] sm:$0xff]  ;;  %v12863_v56 = vld [vmem:[%s14691_s7 + $0x50] sm:$0xff] }
 0xd3d   : > { %vm4319_vm13 = vmor %vm4317_vm12, %vm4318_vm10  ;;  %v4310_v40 = vsel %vm4307_vm15, %v4309_v3, %v4305_v29  ;;  %14903 = vst [vmem:[#allocation23_spill] sm:$0xff] %v12857_v2 }
 0xd3e   : > { %v4314_v50 = vsub.f32 1.0, %v4313_v37  ;;  %v4327_v24 = vmul.f32 %v4310_v40, %v12528_v34  ;;  %14904 = vst [vmem:[#allocation24_spill] sm:$0xff] %v12863_v56 }
 0xd40   : > { %v4315_v1 = vmul.f32 %v10808_v12, %v4314_v50 }
 0xd42   : > { %v4316_v48 = vadd.f32 %v10808_v12, %v4315_v1 }
 0xd44   : > { %v4320_v5 = vsel %vm4319_vm13, %v10808_v12, %v4316_v48  ;;  %v3941_v12 = vpop.f32.mrf.mxu1  ;;  %v3969_v48 = vpop.f32.mrf.mxu2 }
 0xd45   : > { %v4325_v60 = vsel %vm4322_vm14, %v4324_v10, %v4320_v5  ;;  %v12905_v5 = vld [vmem:[%s14692_s8] ss:$0 sm:$0xff] }
 0xd46   : > { %v4328_v9 = vmul.f32 %v4325_v60, %v12526_v52  ;;  %v3945_v60 = vadd.f32 %v12905_v5, %v3941_v12  ;;  %v10137_v12 = vld [vmem:[%s11215_s15 + $0x58] sm:$0xff] }
 0xd47   : > { %4593 = vmatpush.msrb.mxu2 %v10137_v12 }
 0xd48   : > { %4343 = vmatpush.msrb.mxu1 %v4328_v9  ;;  %4422 = vmatpush.msrb.mxu0 %v4328_v9 }
 0xd49   : > { %4501 = vmatpush.msrb.mxu3 %v4328_v9  ;;  %v3944_v9 = vadd.f32 %v12905_v5, %v3938_v47 }
 0xd4a   : > { %4344 = vmatpush.msrb.mxu1 %v4327_v24  ;;  %4423 = vmatpush.msrb.mxu0 %v4327_v24 }
 0xd4b   : > { %4502 = vmatpush.msrb.mxu3 %v4327_v24  ;;  %10115 = vmatmul.msk.f32.vlgmr.msrb.gmra.mxu1 %vm451_vm0, %v12428_v26 }
 0xd4c   : > { %10122 = vmatmul.msk.f32.vlgmr.msrb.gmra.mxu0 %vm451_vm0, %v12435_v27  ;;  %10124 = vmatpush.msk.msra.mxu1 %vm618_vm1, %v12843_v46  ;;  %v4050_v37 = vpop.f32.mrf.mxu1  ;;  %v3972_v29 = vpop.f32.mrf.mxu2 }
 0xd4d   : > { %10131 = vmatpush.msk.msra.mxu0 %vm618_vm1, %v12850_v23  ;;  %v3976_v24 = vadd.f32 %v3972_v29, %v3945_v60  ;;  %v10136_v29 = vld [vmem:[%s11215_s15 + $0x50] sm:$0xff] }
 0xd4e   : > { %4553 = vmatpush.msrb.mxu1 %v12857_v2  ;;  %4594 = vmatpush.msrb.mxu2 %v10136_v29 }
 0xd4f   : > { %4639 = vmatpush.msrb.mxu0 %v10137_v12 }
 0xd50   : > { %4554 = vmatpush.msrb.mxu1 %v12863_v56 }
 0xd51   : > { %4640 = vmatpush.msrb.mxu0 %v10136_v29 }
 0xd52   : > { %4555 = vmatpush.msrb.mxu1 %v12869_v11 }
 0xd53   : > { %10116 = vmatmul.msk.f32.gmra.mxu1 %vm451_vm0, %v12449_v55 }
 0xd54   : > { %10123 = vmatmul.msk.f32.gmra.mxu0 %vm451_vm0, %v12456_v61  ;;  %4556 = vmatpush.msrb.mxu1 %v12879_v33  ;;  %v4053_v50 = vpop.f32.mrf.mxu1  ;;  %v4081_v10 = vpop.f32.mrf.mxu2 }
 0xd5b   : > { %10125 = vmatmul.msk.f32.vlgmr.msra.gmra.mxu1 %vm611_vm2, %v12684_v42 }
 0xd5c   : > { %10132 = vmatmul.msk.f32.vlgmr.msra.gmra.mxu0 %vm611_vm2, %v12720_v51  ;;  %v4162_v20 = vpop.f32.mrf.mxu1  ;;  %v4084_v3 = vpop.f32.mrf.mxu2 }
 0xd5d   : > { %10150 = vmatpush.msk.msra.mxu0 %vm618_vm1, %v12504_v13 }
 0xd63   : > { %10126 = vmatmul.msk.f32.gmra.mxu1 %vm611_vm2, %v12702_v6 }
 0xd64   : > { %10133 = vmatmul.msk.f32.gmra.mxu0 %vm611_vm2, %v12726_v44  ;;  %v4165_v43 = vpop.f32.mrf.mxu1  ;;  %v4193_v40 = vpop.f32.mrf.mxu2 }
 0xd6c   : > { %10142 = vmatmul.msk.f32.vlgmr.msrb.gmra.mxu0 %vm451_vm0, %v12476_v35 }
 0xd6d   : > { %10160 = vmatpush.msk.msrb.mxu0 %vm618_vm1, %v12511_v15  ;;  %v12930_v15 = vld [vmem:[%s14694_s10] ss:$0 sm:$0xff] }
 0xd6e   : > { %14907 = vst [vmem:[#allocation27_spill] sm:$0xff] %v12930_v15 }
 0xd74   : > { %10143 = vmatmul.msk.f32.gmra.mxu0 %vm451_vm0, %v12483_v8 }
 0xdc8   : > { %v4346_v63 = vpop.f32.mrf.mxu1 }
 0xdc9   : > { %v4425_v1 = vpop.f32.mrf.mxu0  ;;  %10120 = vmatmul.msk.f32.vlgmr.msra.gmra.mxu3 %vm654_vm3, %v4346_v63  ;;  %v3975_v63 = vadd.f32 %v3969_v48, %v3944_v9 }
 0xdca   : > { %10127 = vmatmul.msk.f32.vlgmr.msra.gmra.mxu2 %vm654_vm3, %v4425_v1  ;;  %v4057_v1 = vadd.f32 %v4053_v50, %v3976_v24  ;;  %4616 = vmatpush.msra.mxu3 %v10137_v12 }
 0xdcc   : > { %4617 = vmatpush.msra.mxu3 %v10136_v29 }
 0xdd0   : > { %v4349_v42 = vpop.f32.mrf.mxu1 }
 0xdd1   : > { %v4428_v51 = vpop.f32.mrf.mxu0  ;;  %10121 = vmatmul.msk.f32.gmra.mxu3 %vm654_vm3, %v4349_v42  ;;  %v4056_v42 = vadd.f32 %v4050_v37, %v3975_v63 }
 0xdd2   : > { %10128 = vmatmul.msk.f32.gmra.mxu2 %vm654_vm3, %v4428_v51  ;;  %v4088_v51 = vadd.f32 %v4084_v3, %v4057_v1 }
 0xdd4   : > { %v4169_v33 = vadd.f32 %v4165_v43, %v4088_v51 }
 0xdd9   : > { %10129 = vmatmul.msk.f32.vlgmr.msrb.gmra.mxu3 %vm451_vm0, %v12476_v35  ;;  %v4527_v63 = vpop.f32.mrf.mxu0 }
 0xdda   : > { %10138 = vmatmul.msk.f32.vlgmr.msrb.gmra.mxu2 %vm451_vm0, %v12428_v26 }
 0xde1   : > { %10130 = vmatmul.msk.f32.gmra.mxu3 %vm451_vm0, %v12483_v8 }
 0xde2   : > { %10139 = vmatmul.msk.f32.gmra.mxu2 %vm451_vm0, %v12449_v55 }
 0xde9   : > { %10140 = vmatmul.msk.f32.vlgmr.msra.gmra.mxu3 %vm451_vm0, %v12435_v27 }
 0xdf1   : > { %10141 = vmatmul.msk.f32.gmra.mxu3 %vm451_vm0, %v12456_v61 }
 0xe4c   : > { %v4400_v6 = vpop.f32.mrf.mxu3 }
 0xe54   : > { %v12898_v44 = vpop.f32.mrf.mxu3 }
 0xe5c   : > { %v4504_v58 = vpop.f32.mrf.mxu3 }
 0xe5d   : > { %10134 = vmatmul.msk.f32.vlgmr.msrb.gmra.mxu1 %vm654_vm3, %v4504_v58  ;;  %v4087_v58 = vadd.f32 %v4081_v10, %v4056_v42 }
 0xe5f   : > { %v4168_v11 = vadd.f32 %v4162_v20, %v4087_v58 }
 0xe61   : > { %v4199_v2 = vadd.f32 %v4193_v40, %v4168_v11 }
 0xe63   : > { %v10111_v46 = vmul.f32 -1.442695, %v4199_v2 }
 0xe64   : > { %v4507_v45 = vpop.f32.mrf.mxu3 }
 0xe65   : > { %10135 = vmatmul.msk.f32.gmra.mxu1 %vm654_vm3, %v4507_v45  ;;  %v4196_v45 = vpop.f32.mrf.mxu2 }
 0xe66   : > { %v4200_v56 = vadd.f32 %v4196_v45, %v4169_v33  ;;  %v4448_v33 = vpop.f32.mrf.mxu1 }
 0xe68   : > { %v10112_v23 = vmul.f32 -1.442695, %v4200_v56 }
 0xe6a   : > { %10809 = vpow2.f32 %v10112_v23 }
 0xe6b   : > { %10811 = vpow2.f32 %v10111_v46 }
 0xe6d   : > { %v4369_v47 = vpop.f32.mrf.mxu2 }
 0xe6e   : > { %v4375_v37 = vadd.f32 %v12930_v15, %v4369_v47  ;;  %v4451_v10 = vpop.f32.mrf.mxu1 }
 0xe70   : > { %v10810_v11 = vpop.eup %10809  ;;  %v4406_v43 = vadd.f32 %v4400_v6, %v4375_v37 }
 0xe71   : > { %v10812_v46 = vpop.eup %10811  ;;  %v4258_v23 = vadd.f32 1.0, %v10810_v11 }
 0xe72   : > { %v4257_v2 = vadd.f32 1.0, %v10812_v46  ;;  %v4454_v40 = vadd.f32 %v4448_v33, %v4406_v43 }
 0xe73   : > { %10813 = vrcp.f32 %v4258_v23  ;;  %v4285_v37 = vand.u32 2147483648, %v4258_v23  ;;  %vm4279_vm6 = vweird.f32 %v4258_v23 }
 0xe74   : > { %10815 = vrcp.f32 %v4257_v2  ;;  %v4270_v33 = vand.u32 2147483648, %v4257_v2  ;;  %vm4264_vm8 = vweird.f32 %v4257_v2 }
 0xe75   : > { %v4372_v56 = vpop.f32.mrf.mxu2 }
 0xe76   : > { %v4376_v3 = vadd.f32 %v12930_v15, %v4372_v56  ;;  %v4530_v56 = vpop.f32.mrf.mxu0 }
 0xe78   : > { %v4407_v9 = vadd.f32 %v12898_v44, %v4376_v3  ;;  %v4283_v44 = vand.u32 2147483647, %v4258_v23  ;;  %v4286_v3 = vor.u32 1.1754944e-38, %v4285_v37 }
 0xe79   : > { %v10814_v13 = vpop.eup %10813 }
 0xe7a   : > { %v10816_v20 = vpop.eup %10815  ;;  %v4275_v48 = vmul.f32 %v10814_v13, %v4258_v23  ;;  %v4455_v51 = vadd.f32 %v4451_v10, %v4407_v9  ;;  %vm4280_vm4 = vweird.f32 %v10814_v13  ;;  %vm4284_vm10 = vcmp.eq.f32.partialorder %v4283_v44, 8.507059e+37 }
 0xe7b   : > { %v4260_v60 = vmul.f32 %v10816_v20, %v4257_v2  ;;  %vm4265_vm5 = vweird.f32 %v10816_v20  ;;  %vm4281_vm7 = vmor %vm4279_vm6, %vm4280_vm4  ;;  %v4271_v9 = vor.u32 1.1754944e-38, %v4270_v33 }
 0xe7c   : > { %v4276_v24 = vsub.f32 1.0, %v4275_v48  ;;  %vm4266_vm9 = vmor %vm4264_vm8, %vm4265_vm5 }
 0xe7d   : > { %v4479_v50 = vpop.f32.mrf.mxu2  ;;  %v4261_v1 = vsub.f32 1.0, %v4260_v60 }
 0xe7e   : > { %v4485_v42 = vadd.f32 %v4479_v50, %v4454_v40  ;;  %v4277_v12 = vmul.f32 %v10814_v13, %v4276_v24  ;;  %v4268_v50 = vand.u32 2147483647, %v4257_v2 }
 0xe7f   : > { %v4262_v47 = vmul.f32 %v10816_v20, %v4261_v1 }
 0xe80   : > { %v4533_v11 = vadd.f32 %v4527_v63, %v4485_v42  ;;  %v4278_v6 = vadd.f32 %v10814_v13, %v4277_v12  ;;  %vm4269_vm11 = vcmp.eq.f32.partialorder %v4268_v50, 8.507059e+37 }
 0xe81   : > { %v4263_v15 = vadd.f32 %v10816_v20, %v4262_v47 }
 0xe82   : > { %v4282_v48 = vsel %vm4281_vm7, %v10814_v13, %v4278_v6 }
 0xe83   : > { %v4267_v40 = vsel %vm4266_vm9, %v10816_v20, %v4263_v15  ;;  %v4287_v24 = vsel %vm4284_vm10, %v4286_v3, %v4282_v48 }
 0xe84   : > { %v4272_v63 = vsel %vm4269_vm11, %v4271_v9, %v4267_v40  ;;  %v4569_v1 = vsub.f32 1.0, %v4287_v24 }
 0xe85   : > { %v4482_v58 = vpop.f32.mrf.mxu2  ;;  %v4568_v42 = vsub.f32 1.0, %v4272_v63 }
 0xe86   : > { %v4486_v29 = vadd.f32 %v4482_v58, %v4455_v51  ;;  %v4571_v2 = vmul.f32 %v4569_v1, %v12526_v52 }
 0xe88   : > { %v4534_v43 = vadd.f32 %v4530_v56, %v4486_v29 }
 0xeda   : > { %v4558_v45 = vpop.f32.mrf.mxu1 }
 0xedb   : > { %v4564_v46 = vadd.f32 %v4558_v45, %v4533_v11  ;;  %v4570_v45 = vmul.f32 %v4568_v42, %v12528_v34  ;;  %v14908_v34 = vld [vmem:[#allocation4_spill] sm:$0xff] }
 0xedd   : > { %10817 = vtanh.f32 %v4564_v46 }
 0xee2   : > { %v4561_v10 = vpop.f32.mrf.mxu1 }
 0xee3   : > { %v4565_v60 = vadd.f32 %v4561_v10, %v4534_v43  ;;  %v10818_v23 = vpop.eup %10817 }
 0xee4   : > { %v4572_v58 = vmul.f32 %v10818_v23, %v4272_v63 }
 0xee5   : > { %10819 = vtanh.f32 %v4565_v60 }
 0xee6   : > { %v12939_v47 = vadd.f32 %v4572_v58, %v4570_v45 }
 0xeeb   : > { %v10820_v51 = vpop.eup %10819 }
 0xeec   : > { %v4573_v13 = vmul.f32 %v10820_v51, %v4287_v24 }
 0xeee   : > { %v12937_v12 = vadd.f32 %v4573_v13, %v4571_v2 }
 0xef0   : > { %4662 = vmatpush.msra.mxu1 %v12937_v12  ;;  %4685 = vmatpush.msra.mxu2 %v12937_v12 }
 0xef1   : > { %4708 = vmatpush.msrb.mxu3 %v12937_v12 }
 0xef2   : > { %4663 = vmatpush.msra.mxu1 %v12939_v47  ;;  %4686 = vmatpush.msra.mxu2 %v12939_v47 }
 0xef3   : > { %4709 = vmatpush.msrb.mxu3 %v12939_v47  ;;  %10144 = vmatmul.msk.f32.vlgmr.msra.gmra.mxu1 %vm451_vm0, %v12428_v26  ;;  %v4596_v26 = vpop.f32.mrf.mxu2 }
 0xef4   : > { %10146 = vmatmul.msk.f32.vlgmr.msra.gmra.mxu2 %vm451_vm0, %v12435_v27  ;;  %10148 = vmatmul.msk.f32.vlgmr.msrb.gmra.mxu3 %vm451_vm0, %v12476_v35  ;;  %v13003_v35 = vpop.f32.mrf.mxu0 }
 0xef5   : > { %10155 = vmatpush.msk.msrb.mxu2 %vm618_vm1, %v12545_v59  ;;  %4766 = vmatpush.msrb.mxu1 %v12552_v62  ;;  %v14909_v59 = vld [vmem:[#allocation5_spill] sm:$0xff]  ;;  %v14910_v62 = vld [vmem:[#allocation6_spill] sm:$0xff] }
 0xef6   : > { %4816 = vmatpush.msra.mxu3 %v12558_v14  ;;  %10151 = vmatmul.msk.f32.vlgmr.msra.gmra.mxu0 %vm611_vm2, %v4596_v26  ;;  %v14911_v14 = vld [vmem:[#allocation7_spill] sm:$0xff] }
 0xef7   : > { %10165 = vmatpush.msk.msra.mxu2 %vm618_vm1, %v12564_v16  ;;  %4767 = vmatpush.msrb.mxu1 %v12571_v17  ;;  %v14912_v16 = vld [vmem:[#allocation8_spill] sm:$0xff]  ;;  %v14913_v17 = vld [vmem:[#allocation10_spill] sm:$0xff] }
 0xef8   : > { %4817 = vmatpush.msra.mxu3 %v12577_v18  ;;  %10170 = vmatpush.msk.msra.mxu0 %vm618_vm1, %v12674_v49 }
 0xef9   : > { %4768 = vmatpush.msrb.mxu1 %v12583_v19  ;;  %v14914_v19 = vld [vmem:[#allocation15_spill] sm:$0xff] }
 0xefa   : > { %4818 = vmatpush.msra.mxu3 %v12589_v21  ;;  %v14915_v21 = vld [vmem:[#allocation18_spill] sm:$0xff] }
 0xefb   : > { %10145 = vmatmul.msk.f32.gmra.mxu1 %vm451_vm0, %v12449_v55  ;;  %v4599_v27 = vpop.f32.mrf.mxu2  ;;  %v12987_v55 = vpop.f32.mrf.mxu3 }
 0xefc   : > { %10147 = vmatmul.msk.f32.gmra.mxu2 %vm451_vm0, %v12456_v61  ;;  %10149 = vmatmul.msk.f32.gmra.mxu3 %vm451_vm0, %v12483_v8  ;;  %v13009_v8 = vpop.f32.mrf.mxu0 }
 0xefd   : > { %4769 = vmatpush.msrb.mxu1 %v12601_v22  ;;  %4819 = vmatpush.msra.mxu3 %v12607_v25  ;;  %v14916_v25 = vld [vmem:[#allocation19_spill] sm:$0xff] }
 0xefe   : > { %10152 = vmatmul.msk.f32.gmra.mxu0 %vm611_vm2, %v4599_v27 }
 0xeff   : > { %4878 = vmatpush.msra.mxu1 %v12613_v28  ;;  %4928 = vmatpush.msrb.mxu3 %v12619_v30 }
 0xf01   : > { %4879 = vmatpush.msra.mxu1 %v12625_v36  ;;  %4929 = vmatpush.msrb.mxu3 %v12631_v38  ;;  %v14917_v36 = vld [vmem:[#allocation20_spill] sm:$0xff]  ;;  %v14918_v38 = vld [vmem:[#allocation14_spill] sm:$0xff] }
 0xf03   : > { %4880 = vmatpush.msra.mxu1 %v12637_v54  ;;  %4930 = vmatpush.msrb.mxu3 %v12643_v32  ;;  %v12995_v61 = vpop.f32.mrf.mxu3  ;;  %v14919_v32 = vld [vmem:[#allocation16_spill] sm:$0xff] }
 0xf04   : > { %10156 = vmatmul.msk.f32.vlgmr.msrb.gmra.mxu2 %vm611_vm2, %v4596_v26 }
 0xf05   : > { %4881 = vmatpush.msra.mxu1 %v12649_v7  ;;  %4931 = vmatpush.msrb.mxu3 %v12655_v39  ;;  %v14920_v7 = vld [vmem:[#allocation17_spill] sm:$0xff] }
 0xf06   : > { %10175 = vmatpush.msk.msrb.mxu2 %vm618_vm1, %v12667_v4  ;;  %10161 = vmatmul.msk.f32.vlgmr.msrb.gmra.mxu0 %vm611_vm2, %v12987_v55 }
 0xf0c   : > { %10157 = vmatmul.msk.f32.gmra.mxu2 %vm611_vm2, %v4599_v27 }
 0xf0e   : > { %10162 = vmatmul.msk.f32.gmra.mxu0 %vm611_vm2, %v12995_v61 }
 0xf14   : > { %10166 = vmatmul.msk.f32.vlgmr.msra.gmra.mxu2 %vm611_vm2, %v12987_v55 }
 0xf15   : > { %5197 = vmatpush.msra.mxu2 %v12693_v53 }
 0xf16   : > { %10171 = vmatmul.msk.f32.vlgmr.msra.gmra.mxu0 %vm611_vm2, %v13003_v35 }
 0xf17   : > { %5198 = vmatpush.msra.mxu2 %v12699_v31 }
 0xf19   : > { %5199 = vmatpush.msra.mxu2 %v12707_v0 }
 0xf1b   : > { %5200 = vmatpush.msra.mxu2 %v12713_v41 }
 0xf1c   : > { %10167 = vmatmul.msk.f32.gmra.mxu2 %vm611_vm2, %v12995_v61 }
 0xf1e   : > { %10172 = vmatmul.msk.f32.gmra.mxu0 %vm611_vm2, %v13009_v8 }
 0xf24   : > { %10176 = vmatmul.msk.f32.vlgmr.msrb.gmra.mxu2 %vm611_vm2, %v13003_v35 }
 0xf2c   : > { %10177 = vmatmul.msk.f32.gmra.mxu2 %vm611_vm2, %v13009_v8 }
 0xf70   : > { %v4665_v52 = vpop.f32.mrf.mxu1 }
 0xf71   : > { %10153 = vmatmul.msk.f32.vlgmr.msrb.gmra.mxu1 %vm654_vm3, %v4665_v52  ;;  %10158 = vmatmul.msk.f32.vlgmr.msra.gmra.mxu3 %vm654_vm3, %v4665_v52 }
 0xf72   : > { %4990 = vmatpush.msrb.mxu1 %v14908_v34  ;;  %5040 = vmatpush.msra.mxu3 %v14909_v59 }
 0xf74   : > { %4991 = vmatpush.msrb.mxu1 %v14910_v62  ;;  %5041 = vmatpush.msra.mxu3 %v14911_v14 }
 0xf76   : > { %4992 = vmatpush.msrb.mxu1 %v14912_v16  ;;  %5042 = vmatpush.msra.mxu3 %v14913_v17 }
 0xf77   : > { %v4688_v22 = vpop.f32.mrf.mxu2  ;;  %v4711_v30 = vpop.f32.mrf.mxu3 }
 0xf78   : > { %v4668_v18 = vpop.f32.mrf.mxu1  ;;  %4993 = vmatpush.msrb.mxu1 %v14914_v19  ;;  %5043 = vmatpush.msra.mxu3 %v14915_v21 }
 0xf79   : > { %10154 = vmatmul.msk.f32.gmra.mxu1 %vm654_vm3, %v4668_v18  ;;  %10159 = vmatmul.msk.f32.gmra.mxu3 %vm654_vm3, %v4668_v18 }
 0xf7f   : > { %v4691_v28 = vpop.f32.mrf.mxu2  ;;  %v4714_v54 = vpop.f32.mrf.mxu3 }
 0xf81   : > { %10163 = vmatmul.msk.f32.vlgmr.msra.gmra.mxu1 %vm654_vm3, %v4688_v22  ;;  %10168 = vmatmul.msk.f32.vlgmr.msrb.gmra.mxu3 %vm654_vm3, %v4688_v22 }
 0xf82   : > { %10186 = vmatpush.msk.msra.mxu1 %vm618_vm1, %v14916_v25 }
 0xf87   : > { %v4796_v39 = vpop.f32.mrf.mxu2 }
 0xf88   : > { %v4802_v15 = vadd.f32 %v12830_v57, %v4796_v39  ;;  %v14924_v39 = vld [vmem:[#allocation24_spill] sm:$0xff] }
 0xf89   : > { %10164 = vmatmul.msk.f32.gmra.mxu1 %vm654_vm3, %v4691_v28  ;;  %10169 = vmatmul.msk.f32.gmra.mxu3 %vm654_vm3, %v4691_v28 }
 0xf8f   : > { %v4799_v4 = vpop.f32.mrf.mxu2 }
 0xf90   : > { %v4803_v11 = vadd.f32 %v12830_v57, %v4799_v4  ;;  %v14925_v4 = vld [vmem:[#allocation25_spill] sm:$0xff] }
 0xf91   : > { %10173 = vmatmul.msk.f32.vlgmr.msrb.gmra.mxu1 %vm654_vm3, %v4711_v30  ;;  %10178 = vmatmul.msk.f32.vlgmr.msra.gmra.mxu3 %vm654_vm3, %v4711_v30 }
 0xf92   : > { %5276 = vmatpush.msrb.mxu1 %v14917_v36  ;;  %v13050_v36 = vld [vmem:[%s14685_s1] sm:$0xff] }
 0xf94   : > { %5277 = vmatpush.msrb.mxu1 %v14918_v38  ;;  %v13057_v38 = vld [vmem:[%s14685_s1 + $0x10] sm:$0xff] }
 0xf96   : > { %5278 = vmatpush.msrb.mxu1 %v14919_v32  ;;  %v14922_v32 = vld [vmem:[#allocation22_spill] sm:$0xff] }
 0xf97   : > { %v4908_v53 = vpop.f32.mrf.mxu2 }
 0xf98   : > { %5279 = vmatpush.msrb.mxu1 %v14920_v7  ;;  %v14923_v7 = vld [vmem:[#allocation23_spill] sm:$0xff] }
 0xf99   : > { %10174 = vmatmul.msk.f32.gmra.mxu1 %vm654_vm3, %v4714_v54  ;;  %10179 = vmatmul.msk.f32.gmra.mxu3 %vm654_vm3, %v4714_v54  ;;  %v14921_v54 = vld [vmem:[#allocation21_spill] sm:$0xff] }
 0xf9f   : > { %v4911_v0 = vpop.f32.mrf.mxu2 }
 0xfa1   : > { %10187 = vmatmul.msk.f32.vlgmr.msra.gmra.mxu1 %vm611_vm2, %v4596_v26 }
 0xfa7   : > { %v5020_v46 = vpop.f32.mrf.mxu2 }
 0xfa9   : > { %10188 = vmatmul.msk.f32.gmra.mxu1 %vm611_vm2, %v4599_v27 }
 0xfaf   : > { %v5023_v3 = vpop.f32.mrf.mxu2 }
 0xff4   : > { %v4821_v49 = vpop.f32.mrf.mxu3 }
 0xff5   : > { %v4827_v20 = vadd.f32 %v4821_v49, %v4802_v15  ;;  %v13071_v49 = vld [vmem:[%s14685_s1 + $0x8] sm:$0xff] }
 0xff7   : > { %v4914_v6 = vadd.f32 %v4908_v53, %v4827_v20  ;;  %v13078_v53 = vld [vmem:[%s14685_s1 + $0x18] sm:$0xff] }
 0xffc   : > { %v4824_v31 = vpop.f32.mrf.mxu3 }
 0xffd   : > { %v4828_v56 = vadd.f32 %v4824_v31, %v4803_v11  ;;  %v14926_v31 = vld [vmem:[#allocation26_spill] sm:$0xff] }
 0xfff   : > { %v4915_v43 = vadd.f32 %v4911_v0, %v4828_v56  ;;  %v4740_v0 = vpop.f32.mrf.mxu0 }
0x1004   : > { %v4933_v41 = vpop.f32.mrf.mxu3 }
0x1005   : > { %v4939_v37 = vadd.f32 %v4933_v41, %v4914_v6 }
0x1007   : > { %v5026_v44 = vadd.f32 %v5020_v46, %v4939_v37  ;;  %v4743_v41 = vpop.f32.mrf.mxu0 }
0x100c   : > { %v4936_v29 = vpop.f32.mrf.mxu3 }
0x100d   : > { %v4940_v48 = vadd.f32 %v4936_v29, %v4915_v43  ;;  %v4771_v43 = vpop.f32.mrf.mxu1 }
0x100f   : > { %v5027_v60 = vadd.f32 %v5023_v3, %v4940_v48  ;;  %v4852_v15 = vpop.f32.mrf.mxu0  ;;  %v4747_v3 = vadd.f32 %v12905_v5, %v4743_v41 }
0x1014   : > { %v5045_v33 = vpop.f32.mrf.mxu3 }
0x1015   : > { %v5051_v50 = vadd.f32 %v5045_v33, %v5026_v44 }
0x1017   : > { %v10182_v10 = vmul.f32 -1.442695, %v5051_v50  ;;  %v4855_v20 = vpop.f32.mrf.mxu0  ;;  %v4774_v50 = vpop.f32.mrf.mxu1 }
0x1019   : > { %10821 = vpow2.f32 %v10182_v10 }
0x101c   : > { %v5048_v40 = vpop.f32.mrf.mxu3 }
0x101d   : > { %v5052_v9 = vadd.f32 %v5048_v40, %v5027_v60  ;;  %v4746_v60 = vadd.f32 %v12905_v5, %v4740_v0 }
0x101f   : > { %v10822_v24 = vpop.eup %10821  ;;  %v10183_v63 = vmul.f32 -1.442695, %v5052_v9  ;;  %v4964_v29 = vpop.f32.mrf.mxu0  ;;  %v4778_v9 = vadd.f32 %v4774_v50, %v4747_v3 }
0x1020   : > { %v5097_v1 = vadd.f32 1.0, %v10822_v24  ;;  %v4883_v48 = vpop.f32.mrf.mxu1  ;;  %v4777_v24 = vadd.f32 %v4771_v43, %v4746_v60 }
0x1021   : > { %10823 = vpow2.f32 %v10183_v63  ;;  %v4859_v63 = vadd.f32 %v4855_v20, %v4778_v9 }
0x1022   : > { %10825 = vrcp.f32 %v5097_v1  ;;  %vm5104_vm13 = vweird.f32 %v5097_v1  ;;  %v5110_v34 = vand.u32 2147483648, %v5097_v1  ;;  %v5108_v14 = vand.u32 2147483647, %v5097_v1 }
0x1024   : > { %v5111_v19 = vor.u32 1.1754944e-38, %v5110_v34  ;;  %vm5109_vm7 = vcmp.eq.f32.partialorder %v5108_v14, 8.507059e+37  ;;  %v13133_v14 = vld [vmem:[%s14686_s2 + $0x4] sm:$0xf] }
0x1027   : > { %v10824_v57 = vpop.eup %10823  ;;  %v4967_v11 = vpop.f32.mrf.mxu0 }
0x1028   : > { %v10826_v23 = vpop.eup %10825  ;;  %v5098_v42 = vadd.f32 1.0, %v10824_v57  ;;  %v4886_v10 = vpop.f32.mrf.mxu1 }
0x1029   : > { %v5100_v51 = vmul.f32 %v10826_v23, %v5097_v1  ;;  %vm5105_vm12 = vweird.f32 %v10826_v23  ;;  %v4858_v1 = vadd.f32 %v4852_v15, %v4777_v24  ;;  %v4890_v57 = vadd.f32 %v4886_v10, %v4859_v63 }
0x102a   : > { %10827 = vrcp.f32 %v5098_v42  ;;  %v5125_v52 = vand.u32 2147483648, %v5098_v42  ;;  %v5123_v62 = vand.u32 2147483647, %v5098_v42  ;;  %vm5106_vm15 = vmor %vm5104_vm13, %vm5105_vm12  ;;  %vm5119_vm4 = vweird.f32 %v5098_v42 }
0x102b   : > { %v5101_v58 = vsub.f32 1.0, %v5100_v51  ;;  %v4971_v51 = vadd.f32 %v4967_v11, %v4890_v57 }
0x102c   : > { %v5126_v18 = vor.u32 1.1754944e-38, %v5125_v52  ;;  %vm5124_vm6 = vcmp.eq.f32.partialorder %v5123_v62, 8.507059e+37  ;;  %v10205_v52 = vld [vmem:[%s11215_s15 + $0x60] sm:$0xff] }
0x102d   : > { %v5102_v2 = vmul.f32 %v10826_v23, %v5101_v58 }
0x102f   : > { %v5103_v27 = vadd.f32 %v10826_v23, %v5102_v2 }
0x1030   : > { %v10828_v13 = vpop.eup %10827  ;;  %v4995_v40 = vpop.f32.mrf.mxu1 }
0x1031   : > { %v5115_v45 = vmul.f32 %v10828_v13, %v5098_v42  ;;  %vm5120_vm14 = vweird.f32 %v10828_v13  ;;  %v5107_v17 = vsel %vm5106_vm15, %v10826_v23, %v5103_v27  ;;  %v4889_v23 = vadd.f32 %v4883_v48, %v4858_v1  ;;  %v10206_v27 = vld [vmem:[%s11215_s15 + $0x68] sm:$0xff] }
0x1032   : > { %vm5121_vm5 = vmor %vm5119_vm4, %vm5120_vm14  ;;  %v5112_v25 = vsel %vm5109_vm7, %v5111_v19, %v5107_v17  ;;  %5395 = vmatpush.msra.mxu1 %v10206_v27 }
0x1033   : > { %v5116_v26 = vsub.f32 1.0, %v5115_v45  ;;  %v5129_v30 = vmul.f32 %v5112_v25, %v12939_v47  ;;  %v4970_v58 = vadd.f32 %v4964_v29, %v4889_v23 }
0x1034   : > { %5396 = vmatpush.msra.mxu1 %v10205_v52 }
0x1035   : > { %v5117_v59 = vmul.f32 %v10828_v13, %v5116_v26 }
0x1037   : > { %v5118_v16 = vadd.f32 %v10828_v13, %v5117_v59  ;;  %v13126_v59 = vld [vmem:[%s14686_s2] sm:$0xf] }
0x1038   : > { %v4998_v42 = vpop.f32.mrf.mxu1 }
0x1039   : > { %v5122_v21 = vsel %vm5121_vm5, %v10828_v13, %v5118_v16  ;;  %v5002_v2 = vadd.f32 %v4998_v42, %v4971_v51  ;;  %v5001_v13 = vadd.f32 %v4995_v40, %v4970_v58 }
0x103a   : > { %v5127_v22 = vsel %vm5124_vm6, %v5126_v18, %v5122_v21 }
0x103b   : > { %v5130_v28 = vmul.f32 %v5127_v22, %v12937_v12  ;;  %v10181_v45 = vmul.f32 -1.442695, %v5002_v2  ;;  %v10180_v26 = vmul.f32 -1.442695, %v5001_v13  ;;  %v14927_v22 = vld [vmem:[#allocation27_spill] sm:$0xff] }
0x103d   : > { %5145 = vmatpush.msrb.mxu0 %v5130_v28  ;;  %5224 = vmatpush.msrb.mxu3 %v5130_v28  ;;  %10829 = vpow2.f32 %v10181_v45 }
0x103e   : > { %5303 = vmatpush.msrb.mxu2 %v5130_v28  ;;  %10831 = vpow2.f32 %v10180_v26 }
0x103f   : > { %5146 = vmatpush.msrb.mxu0 %v5129_v30  ;;  %5225 = vmatpush.msrb.mxu3 %v5129_v30 }
0x1040   : > { %5304 = vmatpush.msrb.mxu2 %v5129_v30  ;;  %10184 = vmatmul.msk.f32.vlgmr.msrb.gmra.mxu0 %vm451_vm0, %v13050_v36  ;;  %v5171_v5 = vpop.f32.mrf.mxu1 }
0x1041   : > { %10191 = vmatmul.msk.f32.vlgmr.msrb.gmra.mxu3 %vm451_vm0, %v13057_v38  ;;  %10193 = vmatpush.msk.msra.mxu0 %vm618_vm1, %v14921_v54  ;;  %v5177_v25 = vadd.f32 %v14927_v22, %v5171_v5 }
0x1042   : > { %10200 = vmatpush.msk.msra.mxu3 %vm618_vm1, %v14922_v32 }
0x1043   : > { %5355 = vmatpush.msrb.mxu0 %v14923_v7  ;;  %v10830_v34 = vpop.eup %10829 }
0x1044   : > { %5441 = vmatpush.msrb.mxu3 %v10206_v27  ;;  %v10832_v62 = vpop.eup %10831  ;;  %v5060_v16 = vadd.f32 1.0, %v10830_v34 }
0x1045   : > { %5356 = vmatpush.msrb.mxu0 %v14924_v39  ;;  %v5059_v17 = vadd.f32 1.0, %v10832_v62 }
0x1046   : > { %5442 = vmatpush.msrb.mxu3 %v10205_v52  ;;  %10833 = vrcp.f32 %v5060_v16  ;;  %v5087_v50 = vand.u32 2147483648, %v5060_v16  ;;  %vm5081_vm10 = vweird.f32 %v5060_v16 }
0x1047   : > { %5357 = vmatpush.msrb.mxu0 %v14925_v4  ;;  %10835 = vrcp.f32 %v5059_v17  ;;  %v5072_v3 = vand.u32 2147483648, %v5059_v17  ;;  %vm5066_vm12 = vweird.f32 %v5059_v17  ;;  %v5070_v40 = vand.u32 2147483647, %v5059_v17 }
0x1048   : > { %10185 = vmatmul.msk.f32.gmra.mxu0 %vm451_vm0, %v13071_v49  ;;  %v5174_v18 = vpop.f32.mrf.mxu1  ;;  %v5088_v63 = vor.u32 1.1754944e-38, %v5087_v50  ;;  %v13359_v50 = vld [vmem:[%s14687_s3 + $0x58] sm:$0xff] }
0x1049   : > { %10192 = vmatmul.msk.f32.gmra.mxu3 %vm451_vm0, %v13078_v53  ;;  %5358 = vmatpush.msrb.mxu0 %v14926_v31  ;;  %v5178_v39 = vadd.f32 %v14927_v22, %v5174_v18  ;;  %v5073_v23 = vor.u32 1.1754944e-38, %v5072_v3  ;;  %vm5071_vm15 = vcmp.eq.f32.partialorder %v5070_v40, 8.507059e+37  ;;  %v13193_v18 = vld [vmem:[%s14687_s3 + $0x10] sm:$0xff]  ;;  %v13211_v22 = vld [vmem:[%s14689_s5 + $0x8] sm:$0xff]  ;;  %14928 = vst [vmem:[#allocation4_spill] sm:$0xff] %v13359_v50 }
0x104a   : > { %v13383_v3 = vld [vmem:[%s14687_s3 + $0x48] sm:$0xff] }
0x104b   : > { %14932 = vst [vmem:[#allocation8_spill] sm:$0xff] %v13383_v3 }
0x104c   : > { %v10834_v21 = vpop.eup %10833 }
0x104d   : > { %v10836_v30 = vpop.eup %10835  ;;  %v5077_v32 = vmul.f32 %v10834_v21, %v5060_v16  ;;  %vm5082_vm8 = vweird.f32 %v10834_v21 }
0x104e   : > { %v5062_v4 = vmul.f32 %v10836_v30, %v5059_v17  ;;  %vm5067_vm9 = vweird.f32 %v10836_v30  ;;  %vm5083_vm11 = vmor %vm5081_vm10, %vm5082_vm8  ;;  %v13186_v17 = vld [vmem:[%s14688_s4 + $0x4] sm:$0xf] }
0x104f   : > { %v5078_v41 = vsub.f32 1.0, %v5077_v32  ;;  %vm5068_vm13 = vmor %vm5066_vm12, %vm5067_vm9  ;;  %v13247_v32 = vld [vmem:[%s14687_s3 + $0x30] sm:$0xff] }
0x1050   : > { %10194 = vmatmul.msk.f32.vlgmr.msra.gmra.mxu0 %vm611_vm2, %v12987_v55  ;;  %v5063_v20 = vsub.f32 1.0, %v5062_v4  ;;  %v13265_v4 = vld [vmem:[%s14689_s5 + $0x28] sm:$0xff] }
0x1051   : > { %10201 = vmatmul.msk.f32.vlgmr.msra.gmra.mxu3 %vm611_vm2, %v13003_v35 }
0x1052   : > { %10219 = vmatpush.msk.msra.mxu3 %vm618_vm1, %v13126_v59 }
0x1058   : > { %10195 = vmatmul.msk.f32.gmra.mxu0 %vm611_vm2, %v12995_v61  ;;  %v13098_v61 = vld [vmem:[%s14685_s1 + $0x20] sm:$0xff] }
0x1059   : > { %10202 = vmatmul.msk.f32.gmra.mxu3 %vm611_vm2, %v13009_v8  ;;  %v13105_v8 = vld [vmem:[%s14685_s1 + $0x28] sm:$0xff] }
0x1061   : > { %10211 = vmatmul.msk.f32.vlgmr.msrb.gmra.mxu3 %vm451_vm0, %v13098_v61 }
0x1062   : > { %10229 = vmatpush.msk.msrb.mxu3 %vm618_vm1, %v13133_v14 }
0x1069   : > { %10212 = vmatmul.msk.f32.gmra.mxu3 %vm451_vm0, %v13105_v8 }
0x10bd   : > { %v5148_v6 = vpop.f32.mrf.mxu0 }
0x10be   : > { %10189 = vmatmul.msk.f32.vlgmr.msra.gmra.mxu2 %vm654_vm3, %v5148_v6 }
0x10bf   : > { %5418 = vmatpush.msra.mxu2 %v10206_v27 }
0x10c1   : > { %5419 = vmatpush.msra.mxu2 %v10205_v52 }
0x10c4   : > { %v5227_v46 = vpop.f32.mrf.mxu3 }
0x10c5   : > { %v5151_v55 = vpop.f32.mrf.mxu0  ;;  %10196 = vmatmul.msk.f32.vlgmr.msrb.gmra.mxu1 %vm654_vm3, %v5227_v46 }
0x10c6   : > { %10190 = vmatmul.msk.f32.gmra.mxu2 %vm654_vm3, %v5151_v55  ;;  %v5079_v55 = vmul.f32 %v10834_v21, %v5078_v41 }
0x10cc   : > { %v5230_v35 = vpop.f32.mrf.mxu3 }
0x10cd   : > { %10197 = vmatmul.msk.f32.gmra.mxu1 %vm654_vm3, %v5230_v35  ;;  %v5250_v19 = vpop.f32.mrf.mxu0  ;;  %v5064_v35 = vmul.f32 %v10836_v30, %v5063_v20  ;;  %v13296_v20 = vld [vmem:[%s14688_s4 + $0x8] sm:$0xf] }
0x10ce   : > { %10198 = vmatmul.msk.f32.vlgmr.msrb.gmra.mxu2 %vm451_vm0, %v13098_v61 }
0x10cf   : > { %v5065_v10 = vadd.f32 %v10836_v30, %v5064_v35  ;;  %v13329_v35 = vld [vmem:[%s14691_s7 + $0x8] sm:$0xff] }
0x10d1   : > { %v5069_v57 = vsel %vm5068_vm13, %v10836_v30, %v5065_v10  ;;  %v13235_v30 = vld [vmem:[%s14687_s3 + $0x38] sm:$0xff]  ;;  %v13371_v10 = vld [vmem:[%s14687_s3 + $0x50] sm:$0xff] }
0x10d2   : > { %v5074_v51 = vsel %vm5071_vm15, %v5073_v23, %v5069_v57  ;;  %14930 = vst [vmem:[#allocation6_spill] sm:$0xff] %v13371_v10 }
0x10d3   : > { %v5370_v13 = vsub.f32 1.0, %v5074_v51 }
0x10d4   : > { %v5329_v15 = vpop.f32.mrf.mxu3 }
0x10d5   : > { %10207 = vmatmul.msk.f32.vlgmr.msra.gmra.mxu1 %vm451_vm0, %v13050_v36  ;;  %v5253_v7 = vpop.f32.mrf.mxu0  ;;  %v5372_v52 = vmul.f32 %v5370_v13, %v12939_v47  ;;  %v13174_v47 = vld [vmem:[%s14687_s3 + $0x18] sm:$0xff]  ;;  %v13440_v13 = vld [vmem:[%s14691_s7 + $0x20] sm:$0xff] }
0x10d6   : > { %10199 = vmatmul.msk.f32.gmra.mxu2 %vm451_vm0, %v13105_v8  ;;  %14940 = vst [vmem:[#allocation17_spill] sm:$0xff] %v13440_v13 }
0x10dc   : > { %v5332_v48 = vpop.f32.mrf.mxu3 }
0x10dd   : > { %10208 = vmatmul.msk.f32.gmra.mxu1 %vm451_vm0, %v13071_v49 }
0x10de   : > { %10209 = vmatmul.msk.f32.vlgmr.msra.gmra.mxu2 %vm451_vm0, %v13057_v38 }
0x10e6   : > { %10210 = vmatmul.msk.f32.gmra.mxu2 %vm451_vm0, %v13078_v53 }
0x1141   : > { %v5202_v37 = vpop.f32.mrf.mxu2 }
0x1142   : > { %v5281_v28 = vpop.f32.mrf.mxu1  ;;  %v5208_v54 = vadd.f32 %v5202_v37, %v5177_v25  ;;  %v5080_v37 = vadd.f32 %v10834_v21, %v5079_v55  ;;  %v13223_v25 = vld [vmem:[%s14687_s3] sm:$0xff] }
0x1144   : > { %v5256_v31 = vadd.f32 %v5250_v19, %v5208_v54  ;;  %v5084_v9 = vsel %vm5083_vm11, %v10834_v21, %v5080_v37  ;;  %v13199_v19 = vld [vmem:[%s14689_s5 + $0x10] sm:$0xff]  ;;  %v13205_v21 = vld [vmem:[%s14687_s3 + $0x8] sm:$0xff]  ;;  %v13241_v54 = vld [vmem:[%s14689_s5 + $0x38] sm:$0xff] }
0x1146   : > { %v5287_v29 = vadd.f32 %v5281_v28, %v5256_v31  ;;  %v13229_v28 = vld [vmem:[%s14689_s5] sm:$0xff] }
0x1147   : > { %v13271_v31 = vld [vmem:[%s14687_s3 + $0x20] sm:$0xff] }
0x1149   : > { %v13109_v56 = vpop.f32.mrf.mxu2 }
0x114a   : > { %v5209_v0 = vadd.f32 %v13109_v56, %v5178_v39  ;;  %v5284_v6 = vpop.f32.mrf.mxu1  ;;  %v5085_v56 = vand.u32 2147483647, %v5060_v16  ;;  %v13180_v16 = vld [vmem:[%s14689_s5 + $0x18] sm:$0xff]  ;;  %v13259_v39 = vld [vmem:[%s14687_s3 + $0x28] sm:$0xff] }
0x114c   : > { %v5257_v11 = vadd.f32 %v5253_v7, %v5209_v0  ;;  %vm5086_vm14 = vcmp.eq.f32.partialorder %v5085_v56, 8.507059e+37  ;;  %v13253_v7 = vld [vmem:[%s14689_s5 + $0x30] sm:$0xff]  ;;  %v13277_v0 = vld [vmem:[%s14689_s5 + $0x20] sm:$0xff] }
0x114d   : > { %v5089_v42 = vsel %vm5086_vm14, %v5088_v63, %v5084_v9  ;;  %v13377_v56 = vld [vmem:[%s14689_s5 + $0x50] sm:$0xff]  ;;  %v13395_v9 = vld [vmem:[%s14687_s3 + $0x40] sm:$0xff] }
0x114e   : > { %v5371_v58 = vsub.f32 1.0, %v5089_v42  ;;  %14931 = vst [vmem:[#allocation7_spill] sm:$0xff] %v13377_v56 }
0x114f   : > { %14934 = vst [vmem:[#allocation15_spill] sm:$0xff] %v13395_v9 }
0x1150   : > { %v5373_v27 = vmul.f32 %v5371_v58, %v12937_v12  ;;  %v13167_v12 = vld [vmem:[%s14688_s4] sm:$0xf] }
0x1151   : > { %v5306_v44 = vpop.f32.mrf.mxu2 }
0x1152   : > { %10203 = vmatmul.msk.f32.vlgmr.msrb.gmra.mxu0 %vm654_vm3, %v5306_v44  ;;  %v5288_v44 = vadd.f32 %v5284_v6, %v5257_v11  ;;  %v13280_v41 = vpop.f32.mrf.mxu1  ;;  %v13315_v6 = vld [vmem:[%s14691_s7 + $0x18] sm:$0xff] }
0x1153   : > { %10220 = vmatmul.msk.f32.vlgmr.msra.gmra.mxu3 %vm611_vm2, %v13280_v41 }
0x1154   : > { %v5336_v60 = vadd.f32 %v5332_v48, %v5288_v44  ;;  %v13335_v44 = vld [vmem:[%s14691_s7] sm:$0xff]  ;;  %v13365_v48 = vld [vmem:[%s14689_s5 + $0x58] sm:$0xff] }
0x1155   : > { %14929 = vst [vmem:[#allocation5_spill] sm:$0xff] %v13365_v48 }
0x1159   : > { %v5309_v33 = vpop.f32.mrf.mxu2 }
0x115a   : > { %10204 = vmatmul.msk.f32.gmra.mxu0 %vm654_vm3, %v5309_v33  ;;  %v5335_v33 = vadd.f32 %v5329_v15, %v5287_v29  ;;  %v13289_v15 = vld [vmem:[%s14686_s2 + $0x8] sm:$0xf]  ;;  %v13300_v29 = vpop.f32.mrf.mxu1 }
0x115b   : > { %10239 = vmatpush.msk.msra.mxu3 %vm618_vm1, %v13289_v15 }
0x115c   : > { %10221 = vmatmul.msk.f32.gmra.mxu3 %vm611_vm2, %v13300_v29 }
0x1161   : > { %v13306_v11 = vpop.f32.mrf.mxu2 }
0x1164   : > { %10230 = vmatmul.msk.f32.vlgmr.msrb.gmra.mxu3 %vm611_vm2, %v13306_v11 }
0x1169   : > { %v13324_v55 = vpop.f32.mrf.mxu2 }
0x116c   : > { %10231 = vmatmul.msk.f32.gmra.mxu3 %vm611_vm2, %v13324_v55 }
0x11cf   : > { %v5360_v46 = vpop.f32.mrf.mxu0 }
0x11d0   : > { %v5366_v43 = vadd.f32 %v5360_v46, %v5335_v33  ;;  %v13321_v46 = vld [vmem:[%s14691_s7 + $0x10] sm:$0xff]  ;;  %v13342_v33 = vpop.f32.mrf.mxu3 }
0x11d1   : > { %10240 = vmatmul.msk.f32.vlgmr.msra.gmra.mxu3 %vm611_vm2, %v13342_v33 }
0x11d2   : > { %10837 = vtanh.f32 %v5366_v43 }
0x11d7   : > { %v5363_v24 = vpop.f32.mrf.mxu0 }
0x11d8   : > { %v5367_v1 = vadd.f32 %v5363_v24, %v5336_v60  ;;  %v10838_v2 = vpop.eup %10837  ;;  %v13348_v37 = vpop.f32.mrf.mxu3  ;;  %v13389_v60 = vld [vmem:[%s14689_s5 + $0x48] sm:$0xff]  ;;  %v13401_v24 = vld [vmem:[%s14689_s5 + $0x40] sm:$0xff] }
0x11d9   : > { %v5374_v26 = vmul.f32 %v10838_v2, %v5074_v51  ;;  %10241 = vmatmul.msk.f32.gmra.mxu3 %vm611_vm2, %v13348_v37  ;;  %14933 = vst [vmem:[#allocation10_spill] sm:$0xff] %v13389_v60  ;;  %v13428_v51 = vld [vmem:[%s14691_s7 + $0x30] sm:$0xff]  ;;  %v13434_v2 = vld [vmem:[%s14691_s7 + $0x28] sm:$0xff] }
0x11da   : > { %10839 = vtanh.f32 %v5367_v1  ;;  %14935 = vst [vmem:[#allocation18_spill] sm:$0xff] %v13401_v24  ;;  %v13411_v1 = vld [vmem:[%s14690_s6] sm:$0xf] }
0x11db   : > { %v13150_v62 = vadd.f32 %v5374_v26, %v5372_v52  ;;  %14936 = vst [vmem:[#allocation19_spill] sm:$0xff] %v13411_v1 }
0x11dc   : > { %14938 = vst [vmem:[#allocation14_spill] sm:$0xff] %v13428_v51 }
0x11dd   : > { %14939 = vst [vmem:[#allocation16_spill] sm:$0xff] %v13434_v2 }
0x11e0   : > { %v10840_v45 = vpop.eup %10839 }
0x11e1   : > { %v5375_v5 = vmul.f32 %v10840_v45, %v5089_v42  ;;  %v13422_v42 = vld [vmem:[%s14691_s7 + $0x38] sm:$0xff] }
0x11e2   : > { %14937 = vst [vmem:[#allocation20_spill] sm:$0xff] %v13422_v42 }
0x11e3   : > { %v13148_v34 = vadd.f32 %v5375_v5, %v5373_v27 }
0x11e5   : > { %5464 = vmatpush.msra.mxu0 %v13148_v34  ;;  %5487 = vmatpush.msrb.mxu1 %v13148_v34 }
0x11e6   : > { %5510 = vmatpush.msrb.mxu2 %v13148_v34 }
0x11e7   : > { %5465 = vmatpush.msra.mxu0 %v13150_v62  ;;  %5488 = vmatpush.msrb.mxu1 %v13150_v62 }
0x11e8   : > { %5511 = vmatpush.msrb.mxu2 %v13150_v62  ;;  %10213 = vmatmul.msk.f32.vlgmr.msra.gmra.mxu0 %vm451_vm0, %v13050_v36 }
0x11e9   : > { %10215 = vmatmul.msk.f32.vlgmr.msrb.gmra.mxu1 %vm451_vm0, %v13057_v38  ;;  %10217 = vmatmul.msk.f32.vlgmr.msrb.gmra.mxu2 %vm451_vm0, %v13098_v61 }
0x11ea   : > { %10224 = vmatpush.msk.msra.mxu1 %vm618_vm1, %v13167_v12  ;;  %5568 = vmatpush.msrb.mxu0 %v13174_v47 }
0x11eb   : > { %5618 = vmatpush.msra.mxu2 %v13180_v16 }
0x11ec   : > { %10234 = vmatpush.msk.msrb.mxu1 %vm618_vm1, %v13186_v17  ;;  %5569 = vmatpush.msrb.mxu0 %v13193_v18 }
0x11ed   : > { %5619 = vmatpush.msra.mxu2 %v13199_v19 }
0x11ee   : > { %5570 = vmatpush.msrb.mxu0 %v13205_v21 }
0x11ef   : > { %5620 = vmatpush.msra.mxu2 %v13211_v22 }
0x11f0   : > { %10214 = vmatmul.msk.f32.gmra.mxu0 %vm451_vm0, %v13071_v49 }
0x11f1   : > { %10216 = vmatmul.msk.f32.gmra.mxu1 %vm451_vm0, %v13078_v53  ;;  %10218 = vmatmul.msk.f32.gmra.mxu2 %vm451_vm0, %v13105_v8 }
0x11f2   : > { %5571 = vmatpush.msrb.mxu0 %v13223_v25  ;;  %5621 = vmatpush.msra.mxu2 %v13229_v28 }
0x11f4   : > { %5680 = vmatpush.msra.mxu0 %v13235_v30  ;;  %5730 = vmatpush.msrb.mxu2 %v13241_v54 }
0x11f6   : > { %5681 = vmatpush.msra.mxu0 %v13247_v32  ;;  %5731 = vmatpush.msrb.mxu2 %v13253_v7 }
0x11f8   : > { %5682 = vmatpush.msra.mxu0 %v13259_v39  ;;  %5732 = vmatpush.msrb.mxu2 %v13265_v4 }
0x11f9   : > { %10225 = vmatmul.msk.f32.vlgmr.msra.gmra.mxu1 %vm611_vm2, %v13280_v41 }
0x11fa   : > { %5683 = vmatpush.msra.mxu0 %v13271_v31  ;;  %5733 = vmatpush.msrb.mxu2 %v13277_v0 }
0x11fb   : > { %10244 = vmatpush.msk.msra.mxu1 %vm618_vm1, %v13296_v20 }
0x1201   : > { %10226 = vmatmul.msk.f32.gmra.mxu1 %vm611_vm2, %v13300_v29 }
0x1209   : > { %10235 = vmatmul.msk.f32.vlgmr.msrb.gmra.mxu1 %vm611_vm2, %v13306_v11 }
0x120a   : > { %5999 = vmatpush.msrb.mxu1 %v13315_v6 }
0x120c   : > { %6000 = vmatpush.msrb.mxu1 %v13321_v46 }
0x120e   : > { %6001 = vmatpush.msrb.mxu1 %v13329_v35 }
0x1210   : > { %6002 = vmatpush.msrb.mxu1 %v13335_v44 }
0x1211   : > { %10236 = vmatmul.msk.f32.gmra.mxu1 %vm611_vm2, %v13324_v55 }
0x1219   : > { %10245 = vmatmul.msk.f32.vlgmr.msra.gmra.mxu1 %vm611_vm2, %v13342_v33 }
0x1221   : > { %10246 = vmatmul.msk.f32.gmra.mxu1 %vm611_vm2, %v13348_v37 }
0x1265   : > { %v5467_v43 = vpop.f32.mrf.mxu0 }
0x1266   : > { %10222 = vmatmul.msk.f32.vlgmr.msrb.gmra.mxu0 %vm654_vm3, %v5467_v43  ;;  %10227 = vmatmul.msk.f32.vlgmr.msra.gmra.mxu2 %vm654_vm3, %v5467_v43  ;;  %v5490_v63 = vpop.f32.mrf.mxu1 }
0x1267   : > { %5792 = vmatpush.msrb.mxu0 %v13359_v50  ;;  %5842 = vmatpush.msra.mxu2 %v13365_v48 }
0x1269   : > { %5793 = vmatpush.msrb.mxu0 %v13371_v10  ;;  %5843 = vmatpush.msra.mxu2 %v13377_v56 }
0x126b   : > { %5794 = vmatpush.msrb.mxu0 %v13383_v3  ;;  %5844 = vmatpush.msra.mxu2 %v13389_v60 }
0x126c   : > { %v5513_v23 = vpop.f32.mrf.mxu2 }
0x126d   : > { %v5470_v40 = vpop.f32.mrf.mxu0  ;;  %5795 = vmatpush.msrb.mxu0 %v13395_v9  ;;  %5845 = vmatpush.msra.mxu2 %v13401_v24 }
0x126e   : > { %10223 = vmatmul.msk.f32.gmra.mxu0 %vm654_vm3, %v5470_v40  ;;  %10228 = vmatmul.msk.f32.gmra.mxu2 %vm654_vm3, %v5470_v40  ;;  %v5493_v57 = vpop.f32.mrf.mxu1 }
0x1274   : > { %v5516_v58 = vpop.f32.mrf.mxu2 }
0x1276   : > { %10232 = vmatmul.msk.f32.vlgmr.msra.gmra.mxu0 %vm654_vm3, %v5490_v63  ;;  %10237 = vmatmul.msk.f32.vlgmr.msrb.gmra.mxu2 %vm654_vm3, %v5490_v63  ;;  %v5598_v45 = vpop.f32.mrf.mxu1  ;;  %v13452_v63 = vld [vmem:[%s14693_s9] ss:$0 sm:$0xff] }
0x1277   : > { %10255 = vmatpush.msk.msra.mxu0 %vm618_vm1, %v13411_v1 }
0x127e   : > { %10233 = vmatmul.msk.f32.gmra.mxu0 %vm654_vm3, %v5493_v57  ;;  %10238 = vmatmul.msk.f32.gmra.mxu2 %vm654_vm3, %v5493_v57  ;;  %v5601_v26 = vpop.f32.mrf.mxu1  ;;  %v5604_v57 = vadd.f32 %v13452_v63, %v5598_v45 }
0x1286   : > { %10242 = vmatmul.msk.f32.vlgmr.msrb.gmra.mxu0 %vm654_vm3, %v5513_v23  ;;  %10247 = vmatmul.msk.f32.vlgmr.msra.gmra.mxu2 %vm654_vm3, %v5513_v23  ;;  %v5710_v5 = vpop.f32.mrf.mxu1 }
0x1287   : > { %6078 = vmatpush.msrb.mxu0 %v13422_v42 }
0x1289   : > { %6079 = vmatpush.msrb.mxu0 %v13428_v51 }
0x128b   : > { %6080 = vmatpush.msrb.mxu0 %v13434_v2 }
0x128d   : > { %6081 = vmatpush.msrb.mxu0 %v13440_v13 }
0x128e   : > { %10243 = vmatmul.msk.f32.gmra.mxu0 %vm654_vm3, %v5516_v58  ;;  %10248 = vmatmul.msk.f32.gmra.mxu2 %vm654_vm3, %v5516_v58  ;;  %v5713_v43 = vpop.f32.mrf.mxu1 }
0x1296   : > { %10256 = vmatmul.msk.f32.vlgmr.msra.gmra.mxu0 %vm611_vm2, %v13280_v41  ;;  %v5822_v13 = vpop.f32.mrf.mxu1 }
0x129e   : > { %10257 = vmatmul.msk.f32.gmra.mxu0 %vm611_vm2, %v13300_v29  ;;  %v5605_v29 = vadd.f32 %v13452_v63, %v5601_v26  ;;  %v5825_v56 = vpop.f32.mrf.mxu1 }
0x12e9   : > { %v5623_v27 = vpop.f32.mrf.mxu2 }
0x12ea   : > { %v5629_v23 = vadd.f32 %v5623_v27, %v5604_v57 }
0x12ec   : > { %v5716_v41 = vadd.f32 %v5710_v5, %v5629_v23 }
0x12f1   : > { %v5626_v52 = vpop.f32.mrf.mxu2 }
0x12f2   : > { %v5630_v51 = vadd.f32 %v5626_v52, %v5605_v29 }
0x12f4   : > { %v5717_v24 = vadd.f32 %v5713_v43, %v5630_v51 }
0x12f9   : > { %v5735_v40 = vpop.f32.mrf.mxu2 }
0x12fa   : > { %v5741_v2 = vadd.f32 %v5735_v40, %v5716_v41 }
0x12fc   : > { %v5828_v42 = vadd.f32 %v5822_v13, %v5741_v2 }
0x1301   : > { %v5738_v58 = vpop.f32.mrf.mxu2 }
0x1302   : > { %v5742_v60 = vadd.f32 %v5738_v58, %v5717_v24 }
0x1304   : > { %v5829_v10 = vadd.f32 %v5825_v56, %v5742_v60 }
0x1309   : > { %v5847_v1 = vpop.f32.mrf.mxu2 }
0x130a   : > { %v5853_v9 = vadd.f32 %v5847_v1, %v5828_v42 }
0x130c   : > { %v10251_v3 = vmul.f32 -1.442695, %v5853_v9 }
0x130e   : > { %10841 = vpow2.f32 %v10251_v3 }
0x1311   : > { %v5850_v48 = vpop.f32.mrf.mxu2 }
0x1312   : > { %v5854_v50 = vadd.f32 %v5850_v48, %v5829_v10 }
0x1314   : > { %v10842_v45 = vpop.eup %10841  ;;  %v10252_v27 = vmul.f32 -1.442695, %v5854_v50 }
0x1315   : > { %v5899_v57 = vadd.f32 1.0, %v10842_v45 }
0x1316   : > { %10843 = vpow2.f32 %v10252_v27 }
0x1317   : > { %10845 = vrcp.f32 %v5899_v57  ;;  %vm5906_vm5 = vweird.f32 %v5899_v57  ;;  %v5912_v48 = vand.u32 2147483648, %v5899_v57  ;;  %v5910_v3 = vand.u32 2147483647, %v5899_v57 }
0x1319   : > { %v5913_v23 = vor.u32 1.1754944e-38, %v5912_v48  ;;  %vm5911_vm11 = vcmp.eq.f32.partialorder %v5910_v3, 8.507059e+37 }
0x131c   : > { %v10844_v5 = vpop.eup %10843 }
0x131d   : > { %v10846_v26 = vpop.eup %10845  ;;  %v5900_v40 = vadd.f32 1.0, %v10844_v5  ;;  %v13472_v5 = vld [vmem:[%s14690_s6 + $0x8] sm:$0xf] }
0x131e   : > { %v5902_v52 = vmul.f32 %v10846_v26, %v5899_v57  ;;  %vm5907_vm4 = vweird.f32 %v10846_v26  ;;  %v13465_v57 = vld [vmem:[%s14690_s6 + $0x4] sm:$0xf]  ;;  %14942 = vst [vmem:[#allocation22_spill] sm:$0xff] %v13472_v5 }
0x131f   : > { %10847 = vrcp.f32 %v5900_v40  ;;  %v5927_v56 = vand.u32 2147483648, %v5900_v40  ;;  %v5925_v50 = vand.u32 2147483647, %v5900_v40  ;;  %vm5908_vm7 = vmor %vm5906_vm5, %vm5907_vm4  ;;  %vm5921_vm8 = vweird.f32 %v5900_v40  ;;  %14941 = vst [vmem:[#allocation21_spill] sm:$0xff] %v13465_v57 }
0x1320   : > { %v5903_v2 = vsub.f32 1.0, %v5902_v52  ;;  %v13491_v52 = vld [vmem:[%s14691_s7 + $0x48] sm:$0xff] }
0x1321   : > { %v5928_v43 = vor.u32 1.1754944e-38, %v5927_v56  ;;  %vm5926_vm10 = vcmp.eq.f32.partialorder %v5925_v50, 8.507059e+37  ;;  %14945 = vst [vmem:[#allocation25_spill] sm:$0xff] %v13491_v52 }
0x1322   : > { %v5904_v51 = vmul.f32 %v10846_v26, %v5903_v2  ;;  %v13501_v2 = vld [vmem:[%s14691_s7 + $0x40] sm:$0xff] }
0x1323   : > { %14946 = vst [vmem:[#allocation26_spill] sm:$0xff] %v13501_v2 }
0x1324   : > { %v5905_v42 = vadd.f32 %v10846_v26, %v5904_v51  ;;  %v5542_v51 = vpop.f32.mrf.mxu3 }
0x1325   : > { %v10848_v1 = vpop.eup %10847 }
0x1326   : > { %v5917_v24 = vmul.f32 %v10848_v1, %v5900_v40  ;;  %vm5922_vm6 = vweird.f32 %v10848_v1  ;;  %v5909_v13 = vsel %vm5908_vm7, %v10846_v26, %v5905_v42  ;;  %v13479_v26 = vld [vmem:[%s14691_s7 + $0x58] sm:$0xff]  ;;  %v13485_v40 = vld [vmem:[%s14691_s7 + $0x50] sm:$0xff] }
0x1327   : > { %vm5923_vm9 = vmor %vm5921_vm8, %vm5922_vm6  ;;  %v5914_v29 = vsel %vm5911_vm11, %v5913_v23, %v5909_v13  ;;  %14943 = vst [vmem:[#allocation23_spill] sm:$0xff] %v13479_v26 }
0x1328   : > { %v5918_v9 = vsub.f32 1.0, %v5917_v24  ;;  %v5931_v27 = vmul.f32 %v5914_v29, %v13150_v62  ;;  %14944 = vst [vmem:[#allocation24_spill] sm:$0xff] %v13485_v40 }
0x132a   : > { %v5919_v10 = vmul.f32 %v10848_v1, %v5918_v9 }
0x132c   : > { %v5920_v60 = vadd.f32 %v10848_v1, %v5919_v10 }
0x132e   : > { %v5924_v58 = vsel %vm5923_vm9, %v10848_v1, %v5920_v60  ;;  %v5545_v1 = vpop.f32.mrf.mxu3  ;;  %v5573_v60 = vpop.f32.mrf.mxu0 }
0x132f   : > { %v5929_v41 = vsel %vm5926_vm10, %v5928_v43, %v5924_v58  ;;  %v13527_v58 = vld [vmem:[%s14692_s8] ss:$0 sm:$0xff] }
0x1330   : > { %v5932_v45 = vmul.f32 %v5929_v41, %v13148_v34  ;;  %14947 = vst [vmem:[#allocation27_spill] sm:$0xff] %v13527_v58  ;;  %v5549_v41 = vadd.f32 %v13527_v58, %v5545_v1  ;;  %v5548_v29 = vadd.f32 %v13527_v58, %v5542_v51 }
0x1332   : > { %5947 = vmatpush.msrb.mxu3 %v5932_v45  ;;  %6026 = vmatpush.msrb.mxu2 %v5932_v45 }
0x1333   : > { %6105 = vmatpush.msra.mxu1 %v5932_v45 }
0x1334   : > { %5948 = vmatpush.msrb.mxu3 %v5931_v27  ;;  %6027 = vmatpush.msrb.mxu2 %v5931_v27 }
0x1335   : > { %6106 = vmatpush.msra.mxu1 %v5931_v27  ;;  %10253 = vmatmul.msk.f32.vlgmr.msrb.gmra.mxu3 %vm451_vm0, %v13050_v36 }
0x1336   : > { %10260 = vmatmul.msk.f32.vlgmr.msrb.gmra.mxu2 %vm451_vm0, %v13057_v38  ;;  %10262 = vmatpush.msk.msra.mxu3 %vm618_vm1, %v13465_v57  ;;  %v5654_v24 = vpop.f32.mrf.mxu3  ;;  %v5576_v13 = vpop.f32.mrf.mxu0 }
0x1337   : > { %10269 = vmatpush.msk.msra.mxu2 %vm618_vm1, %v13472_v5  ;;  %v5580_v27 = vadd.f32 %v5576_v13, %v5549_v41 }
0x1338   : > { %6157 = vmatpush.msrb.mxu3 %v13479_v26 }
0x133a   : > { %6158 = vmatpush.msrb.mxu3 %v13485_v40 }
0x133c   : > { %6159 = vmatpush.msrb.mxu3 %v13491_v52 }
0x133d   : > { %10254 = vmatmul.msk.f32.gmra.mxu3 %vm451_vm0, %v13071_v49 }
0x133e   : > { %10261 = vmatmul.msk.f32.gmra.mxu2 %vm451_vm0, %v13078_v53  ;;  %6160 = vmatpush.msrb.mxu3 %v13501_v2  ;;  %v5657_v9 = vpop.f32.mrf.mxu3  ;;  %v5685_v43 = vpop.f32.mrf.mxu0 }
0x1345   : > { %10263 = vmatmul.msk.f32.vlgmr.msra.gmra.mxu3 %vm611_vm2, %v13306_v11 }
0x1346   : > { %10270 = vmatmul.msk.f32.vlgmr.msra.gmra.mxu2 %vm611_vm2, %v13342_v33  ;;  %v5766_v42 = vpop.f32.mrf.mxu3  ;;  %v5688_v23 = vpop.f32.mrf.mxu0 }
0x134d   : > { %10264 = vmatmul.msk.f32.gmra.mxu3 %vm611_vm2, %v13324_v55 }
0x134e   : > { %10271 = vmatmul.msk.f32.gmra.mxu2 %vm611_vm2, %v13348_v37  ;;  %v5769_v56 = vpop.f32.mrf.mxu3  ;;  %v5797_v45 = vpop.f32.mrf.mxu0 }
0x13b8   : > { %v5950_v48 = vpop.f32.mrf.mxu3 }
0x13b9   : > { %v6029_v10 = vpop.f32.mrf.mxu2  ;;  %10258 = vmatmul.msk.f32.vlgmr.msrb.gmra.mxu1 %vm654_vm3, %v5950_v48  ;;  %v5579_v48 = vadd.f32 %v5573_v60, %v5548_v29 }
0x13ba   : > { %10265 = vmatmul.msk.f32.vlgmr.msrb.gmra.mxu0 %vm654_vm3, %v6029_v10  ;;  %v5661_v10 = vadd.f32 %v5657_v9, %v5580_v27 }
0x13c0   : > { %v5953_v11 = vpop.f32.mrf.mxu3 }
0x13c1   : > { %v6032_v33 = vpop.f32.mrf.mxu2  ;;  %10259 = vmatmul.msk.f32.gmra.mxu1 %vm654_vm3, %v5953_v11  ;;  %v5660_v11 = vadd.f32 %v5654_v24, %v5579_v48 }
0x13c2   : > { %10266 = vmatmul.msk.f32.gmra.mxu0 %vm654_vm3, %v6032_v33  ;;  %v5692_v33 = vadd.f32 %v5688_v23, %v5661_v10 }
0x13c4   : > { %v5773_v2 = vadd.f32 %v5769_v56, %v5692_v33 }
0x13c8   : > { %v6052_v60 = vpop.f32.mrf.mxu3 }
0x13c9   : > { %10267 = vmatmul.msk.f32.vlgmr.msra.gmra.mxu1 %vm451_vm0, %v13098_v61 }
0x13d0   : > { %v6055_v23 = vpop.f32.mrf.mxu3 }
0x13d1   : > { %10268 = vmatmul.msk.f32.gmra.mxu1 %vm451_vm0, %v13105_v8 }
0x1436   : > { %v6004_v55 = vpop.f32.mrf.mxu1 }
0x143e   : > { %v13520_v37 = vpop.f32.mrf.mxu1 }
0x1446   : > { %v6108_v50 = vpop.f32.mrf.mxu1 }
0x1447   : > { %10272 = vmatmul.msk.f32.vlgmr.msrb.gmra.mxu3 %vm654_vm3, %v6108_v50  ;;  %v5691_v50 = vadd.f32 %v5685_v43, %v5660_v11  ;;  %v10275_v43 = vld [vmem:[%s11215_s15 + $0x78] sm:$0xff] }
0x1448   : > { %6197 = vmatpush.msra.mxu0 %v10275_v43  ;;  %6220 = vmatpush.msrb.mxu1 %v10275_v43 }
0x1449   : > { %v5772_v52 = vadd.f32 %v5766_v42, %v5691_v50  ;;  %6243 = vmatpush.msrb.mxu2 %v10275_v43 }
0x144b   : > { %v5803_v26 = vadd.f32 %v5797_v45, %v5772_v52  ;;  %v10274_v52 = vld [vmem:[%s11215_s15 + $0x70] sm:$0xff] }
0x144c   : > { %6198 = vmatpush.msra.mxu0 %v10274_v52  ;;  %6221 = vmatpush.msrb.mxu1 %v10274_v52 }
0x144d   : > { %v10249_v57 = vmul.f32 -1.442695, %v5803_v26  ;;  %10276 = vmatmul.msk.f32.vlgmr.msra.gmra.mxu0 %vm451_vm0, %v13050_v36  ;;  %10278 = vmatmul.msk.f32.vlgmr.msrb.gmra.mxu1 %vm451_vm0, %v13057_v38 }
0x144e   : > { %v6111_v3 = vpop.f32.mrf.mxu1  ;;  %6244 = vmatpush.msrb.mxu2 %v10274_v52 }
0x144f   : > { %10273 = vmatmul.msk.f32.gmra.mxu3 %vm654_vm3, %v6111_v3  ;;  %v5800_v3 = vpop.f32.mrf.mxu0  ;;  %10280 = vmatmul.msk.f32.vlgmr.msrb.gmra.mxu2 %vm451_vm0, %v13098_v61 }
0x1450   : > { %v5804_v40 = vadd.f32 %v5800_v3, %v5773_v2  ;;  %10288 = vmatpush.msk.msra.mxu2 %vm618_vm1, %v13126_v59 }
0x1452   : > { %v10250_v5 = vmul.f32 -1.442695, %v5804_v40  ;;  %10298 = vmatpush.msk.msrb.mxu2 %vm618_vm1, %v13133_v14  ;;  %v6131_v14 = vpop.f32.mrf.mxu2 }
0x1454   : > { %10849 = vpow2.f32 %v10250_v5  ;;  %v13548_v5 = vld [vmem:[%s14694_s10] ss:$0 sm:$0xff] }
0x1455   : > { %10851 = vpow2.f32 %v10249_v57  ;;  %10277 = vmatmul.msk.f32.gmra.mxu0 %vm451_vm0, %v13071_v49  ;;  %10279 = vmatmul.msk.f32.gmra.mxu1 %vm451_vm0, %v13078_v53 }
0x1457   : > { %v5973_v1 = vpop.f32.mrf.mxu0  ;;  %10281 = vmatmul.msk.f32.gmra.mxu2 %vm451_vm0, %v13105_v8 }
0x1458   : > { %v5979_v26 = vadd.f32 %v13548_v5, %v5973_v1 }
0x145a   : > { %v10850_v51 = vpop.eup %10849  ;;  %v6010_v42 = vadd.f32 %v6004_v55, %v5979_v26 }
0x145b   : > { %v10852_v58 = vpop.eup %10851  ;;  %v13531_v13 = vadd.f32 1.0, %v10850_v51 }
0x145c   : > { %v13533_v9 = vadd.f32 1.0, %v10852_v58  ;;  %v6058_v59 = vadd.f32 %v6052_v60, %v6010_v42 }
0x145d   : > { %10853 = vrcp.f32 %v13531_v13  ;;  %v5889_v60 = vand.u32 2147483648, %v13531_v13  ;;  %vm5883_vm14 = vweird.f32 %v13531_v13  ;;  %v5887_v52 = vand.u32 2147483647, %v13531_v13 }
0x145e   : > { %10855 = vrcp.f32 %v13533_v9  ;;  %v5874_v26 = vand.u32 2147483648, %v13533_v9  ;;  %vm5868_vm4 = vweird.f32 %v13533_v9  ;;  %v5872_v42 = vand.u32 2147483647, %v13533_v9 }
0x145f   : > { %v5976_v24 = vpop.f32.mrf.mxu0  ;;  %vm5888_vm6 = vcmp.eq.f32.partialorder %v5887_v52, 8.507059e+37 }
0x1460   : > { %v5980_v58 = vadd.f32 %v13548_v5, %v5976_v24  ;;  %vm5873_vm7 = vcmp.eq.f32.partialorder %v5872_v42, 8.507059e+37 }
0x1462   : > { %v6011_v29 = vadd.f32 %v13520_v37, %v5980_v58  ;;  %v6134_v37 = vpop.f32.mrf.mxu2  ;;  %v5890_v58 = vor.u32 1.1754944e-38, %v5889_v60 }
0x1463   : > { %v10854_v57 = vpop.eup %10853 }
0x1464   : > { %v10856_v2 = vpop.eup %10855  ;;  %v5879_v56 = vmul.f32 %v10854_v57, %v13531_v13  ;;  %v6059_v48 = vadd.f32 %v6055_v23, %v6011_v29  ;;  %vm5884_vm12 = vweird.f32 %v10854_v57  ;;  %v5875_v29 = vor.u32 1.1754944e-38, %v5874_v26 }
0x1465   : > { %v5864_v41 = vmul.f32 %v10856_v2, %v13533_v9  ;;  %vm5869_vm13 = vweird.f32 %v10856_v2  ;;  %vm5885_vm15 = vmor %vm5883_vm14, %vm5884_vm12 }
0x1466   : > { %v5880_v45 = vsub.f32 1.0, %v5879_v56  ;;  %vm5870_vm5 = vmor %vm5868_vm4, %vm5869_vm13 }
0x1467   : > { %v6083_v40 = vpop.f32.mrf.mxu0  ;;  %v5865_v55 = vsub.f32 1.0, %v5864_v41 }
0x1468   : > { %v6089_v27 = vadd.f32 %v6083_v40, %v6058_v59  ;;  %v5881_v33 = vmul.f32 %v10854_v57, %v5880_v45 }
0x1469   : > { %v5866_v50 = vmul.f32 %v10856_v2, %v5865_v55 }
0x146a   : > { %v6137_v1 = vadd.f32 %v6131_v14, %v6089_v27  ;;  %v5882_v51 = vadd.f32 %v10854_v57, %v5881_v33 }
0x146b   : > { %v5867_v43 = vadd.f32 %v10856_v2, %v5866_v50 }
0x146c   : > { %v5886_v56 = vsel %vm5885_vm15, %v10854_v57, %v5882_v51 }
0x146d   : > { %v5871_v59 = vsel %vm5870_vm5, %v10856_v2, %v5867_v43  ;;  %v5891_v45 = vsel %vm5888_vm6, %v5890_v58, %v5886_v56 }
0x146e   : > { %v5876_v13 = vsel %vm5873_vm7, %v5875_v29, %v5871_v59  ;;  %v6173_v14 = vsub.f32 1.0, %v5891_v45 }
0x146f   : > { %v6086_v10 = vpop.f32.mrf.mxu0  ;;  %v6172_v27 = vsub.f32 1.0, %v5876_v13 }
0x1470   : > { %v6090_v3 = vadd.f32 %v6086_v10, %v6059_v48  ;;  %v6175_v9 = vmul.f32 %v6173_v14, %v13148_v34 }
0x1472   : > { %v6138_v40 = vadd.f32 %v6134_v37, %v6090_v3 }
0x14ca   : > { %v6162_v11 = vpop.f32.mrf.mxu3 }
0x14cb   : > { %v6168_v24 = vadd.f32 %v6162_v11, %v6137_v1  ;;  %v6174_v11 = vmul.f32 %v6172_v27, %v13150_v62  ;;  %v14948_v62 = vld [vmem:[#allocation4_spill] sm:$0xff] }
0x14cd   : > { %10857 = vtanh.f32 %v6168_v24 }
0x14d2   : > { %v6165_v23 = vpop.f32.mrf.mxu3 }
0x14d3   : > { %v6169_v41 = vadd.f32 %v6165_v23, %v6138_v40  ;;  %v10858_v55 = vpop.eup %10857 }
0x14d4   : > { %v6176_v10 = vmul.f32 %v10858_v55, %v5876_v13 }
0x14d5   : > { %10859 = vtanh.f32 %v6169_v41 }
0x14d6   : > { %v13575_v50 = vadd.f32 %v6176_v10, %v6174_v11 }
0x14db   : > { %v10860_v48 = vpop.eup %10859 }
0x14dc   : > { %v6177_v57 = vmul.f32 %v10860_v48, %v5891_v45 }
0x14de   : > { %v13573_v33 = vadd.f32 %v6177_v57, %v6175_v9 }
0x14e0   : > { %6266 = vmatpush.msra.mxu3 %v13573_v33  ;;  %6289 = vmatpush.msrb.mxu0 %v13573_v33 }
0x14e1   : > { %6312 = vmatpush.msra.mxu1 %v13573_v33 }
0x14e2   : > { %6267 = vmatpush.msra.mxu3 %v13575_v50  ;;  %6290 = vmatpush.msrb.mxu0 %v13575_v50 }
0x14e3   : > { %6313 = vmatpush.msra.mxu1 %v13575_v50  ;;  %10282 = vmatmul.msk.f32.vlgmr.msra.gmra.mxu3 %vm451_vm0, %v13050_v36  ;;  %v6200_v36 = vpop.f32.mrf.mxu0 }
0x14e4   : > { %10284 = vmatmul.msk.f32.vlgmr.msrb.gmra.mxu0 %vm451_vm0, %v13057_v38  ;;  %10286 = vmatmul.msk.f32.vlgmr.msra.gmra.mxu1 %vm451_vm0, %v13098_v61  ;;  %v13639_v61 = vpop.f32.mrf.mxu2 }
0x14e5   : > { %10293 = vmatpush.msk.msra.mxu0 %vm618_vm1, %v13167_v12  ;;  %6370 = vmatpush.msrb.mxu3 %v13174_v47  ;;  %v14949_v12 = vld [vmem:[#allocation5_spill] sm:$0xff]  ;;  %v14950_v47 = vld [vmem:[#allocation6_spill] sm:$0xff] }
0x14e6   : > { %6420 = vmatpush.msrb.mxu1 %v13180_v16  ;;  %10289 = vmatmul.msk.f32.vlgmr.msra.gmra.mxu2 %vm611_vm2, %v6200_v36  ;;  %v14951_v16 = vld [vmem:[#allocation7_spill] sm:$0xff] }
0x14e7   : > { %10303 = vmatpush.msk.msrb.mxu0 %vm618_vm1, %v13186_v17  ;;  %6371 = vmatpush.msrb.mxu3 %v13193_v18  ;;  %v14952_v17 = vld [vmem:[#allocation8_spill] sm:$0xff]  ;;  %v14953_v18 = vld [vmem:[#allocation10_spill] sm:$0xff] }
0x14e8   : > { %6421 = vmatpush.msrb.mxu1 %v13199_v19  ;;  %10308 = vmatpush.msk.msra.mxu2 %vm618_vm1, %v13289_v15 }
0x14e9   : > { %6372 = vmatpush.msrb.mxu3 %v13205_v21  ;;  %v14954_v21 = vld [vmem:[#allocation15_spill] sm:$0xff] }
0x14ea   : > { %6422 = vmatpush.msrb.mxu1 %v13211_v22  ;;  %v14955_v22 = vld [vmem:[#allocation18_spill] sm:$0xff] }
0x14eb   : > { %10283 = vmatmul.msk.f32.gmra.mxu3 %vm451_vm0, %v13071_v49  ;;  %v6203_v38 = vpop.f32.mrf.mxu0  ;;  %v13623_v49 = vpop.f32.mrf.mxu1 }
0x14ec   : > { %10285 = vmatmul.msk.f32.gmra.mxu0 %vm451_vm0, %v13078_v53  ;;  %10287 = vmatmul.msk.f32.gmra.mxu1 %vm451_vm0, %v13105_v8  ;;  %v13645_v8 = vpop.f32.mrf.mxu2 }
0x14ed   : > { %6373 = vmatpush.msrb.mxu3 %v13223_v25  ;;  %6423 = vmatpush.msrb.mxu1 %v13229_v28  ;;  %v14956_v28 = vld [vmem:[#allocation19_spill] sm:$0xff] }
0x14ee   : > { %10290 = vmatmul.msk.f32.gmra.mxu2 %vm611_vm2, %v6203_v38 }
0x14ef   : > { %6482 = vmatpush.msra.mxu3 %v13235_v30  ;;  %6532 = vmatpush.msra.mxu1 %v13241_v54 }
0x14f1   : > { %6483 = vmatpush.msra.mxu3 %v13247_v32  ;;  %6533 = vmatpush.msra.mxu1 %v13253_v7  ;;  %v14957_v32 = vld [vmem:[#allocation20_spill] sm:$0xff]  ;;  %v14958_v7 = vld [vmem:[#allocation14_spill] sm:$0xff] }
0x14f3   : > { %6484 = vmatpush.msra.mxu3 %v13259_v39  ;;  %6534 = vmatpush.msra.mxu1 %v13265_v4  ;;  %v13631_v53 = vpop.f32.mrf.mxu1  ;;  %v14959_v4 = vld [vmem:[#allocation16_spill] sm:$0xff] }
0x14f4   : > { %10294 = vmatmul.msk.f32.vlgmr.msra.gmra.mxu0 %vm611_vm2, %v6200_v36 }
0x14f5   : > { %6485 = vmatpush.msra.mxu3 %v13271_v31  ;;  %6535 = vmatpush.msra.mxu1 %v13277_v0  ;;  %v14960_v31 = vld [vmem:[#allocation17_spill] sm:$0xff] }
0x14f6   : > { %10313 = vmatpush.msk.msra.mxu0 %vm618_vm1, %v13296_v20  ;;  %10299 = vmatmul.msk.f32.vlgmr.msrb.gmra.mxu2 %vm611_vm2, %v13623_v49 }
0x14fc   : > { %10295 = vmatmul.msk.f32.gmra.mxu0 %vm611_vm2, %v6203_v38 }
0x14fe   : > { %10300 = vmatmul.msk.f32.gmra.mxu2 %vm611_vm2, %v13631_v53 }
0x1504   : > { %10304 = vmatmul.msk.f32.vlgmr.msrb.gmra.mxu0 %vm611_vm2, %v13623_v49 }
0x1505   : > { %6801 = vmatpush.msrb.mxu0 %v13315_v6 }
0x1506   : > { %10309 = vmatmul.msk.f32.vlgmr.msra.gmra.mxu2 %vm611_vm2, %v13639_v61 }
0x1507   : > { %6802 = vmatpush.msrb.mxu0 %v13321_v46 }
0x1509   : > { %6803 = vmatpush.msrb.mxu0 %v13329_v35 }
0x150b   : > { %6804 = vmatpush.msrb.mxu0 %v13335_v44 }
0x150c   : > { %10305 = vmatmul.msk.f32.gmra.mxu0 %vm611_vm2, %v13631_v53 }
0x150e   : > { %10310 = vmatmul.msk.f32.gmra.mxu2 %vm611_vm2, %v13645_v8 }
0x1514   : > { %10314 = vmatmul.msk.f32.vlgmr.msra.gmra.mxu0 %vm611_vm2, %v13639_v61 }
0x151c   : > { %10315 = vmatmul.msk.f32.gmra.mxu0 %vm611_vm2, %v13645_v8 }
0x1561   : > { %v6292_v25 = vpop.f32.mrf.mxu0  ;;  %v6315_v54 = vpop.f32.mrf.mxu1 }
0x1566   : > { %v6269_v34 = vpop.f32.mrf.mxu3 }
0x1567   : > { %10291 = vmatmul.msk.f32.vlgmr.msrb.gmra.mxu3 %vm654_vm3, %v6269_v34  ;;  %10296 = vmatmul.msk.f32.vlgmr.msrb.gmra.mxu1 %vm654_vm3, %v6269_v34 }
0x1568   : > { %6594 = vmatpush.msrb.mxu3 %v14948_v62  ;;  %6644 = vmatpush.msrb.mxu1 %v14949_v12 }
0x1569   : > { %v6295_v30 = vpop.f32.mrf.mxu0  ;;  %v6318_v39 = vpop.f32.mrf.mxu1 }
0x156a   : > { %6595 = vmatpush.msrb.mxu3 %v14950_v47  ;;  %6645 = vmatpush.msrb.mxu1 %v14951_v16 }
0x156c   : > { %6596 = vmatpush.msrb.mxu3 %v14952_v17  ;;  %6646 = vmatpush.msrb.mxu1 %v14953_v18 }
0x156e   : > { %v6272_v19 = vpop.f32.mrf.mxu3  ;;  %6597 = vmatpush.msrb.mxu3 %v14954_v21  ;;  %6647 = vmatpush.msrb.mxu1 %v14955_v22 }
0x156f   : > { %10292 = vmatmul.msk.f32.gmra.mxu3 %vm654_vm3, %v6272_v19  ;;  %10297 = vmatmul.msk.f32.gmra.mxu1 %vm654_vm3, %v6272_v19 }
0x1571   : > { %v6400_v0 = vpop.f32.mrf.mxu0 }
0x1572   : > { %v6406_v2 = vadd.f32 %v13452_v63, %v6400_v0  ;;  %v14964_v0 = vld [vmem:[#allocation24_spill] sm:$0xff] }
0x1577   : > { %10301 = vmatmul.msk.f32.vlgmr.msra.gmra.mxu3 %vm654_vm3, %v6292_v25  ;;  %10306 = vmatmul.msk.f32.vlgmr.msra.gmra.mxu1 %vm654_vm3, %v6292_v25 }
0x1578   : > { %10324 = vmatpush.msk.msra.mxu3 %vm618_vm1, %v14956_v28 }
0x1579   : > { %v6403_v15 = vpop.f32.mrf.mxu0 }
0x157a   : > { %v6407_v51 = vadd.f32 %v13452_v63, %v6403_v15  ;;  %v14965_v15 = vld [vmem:[#allocation25_spill] sm:$0xff] }
0x157f   : > { %10302 = vmatmul.msk.f32.gmra.mxu3 %vm654_vm3, %v6295_v30  ;;  %10307 = vmatmul.msk.f32.gmra.mxu1 %vm654_vm3, %v6295_v30 }
0x1581   : > { %v6512_v6 = vpop.f32.mrf.mxu0 }
0x1587   : > { %10311 = vmatmul.msk.f32.vlgmr.msrb.gmra.mxu3 %vm654_vm3, %v6315_v54  ;;  %10316 = vmatmul.msk.f32.vlgmr.msrb.gmra.mxu1 %vm654_vm3, %v6315_v54 }
0x1588   : > { %6880 = vmatpush.msrb.mxu3 %v14957_v32  ;;  %v13686_v32 = vld [vmem:[%s14685_s1] sm:$0xff] }
0x1589   : > { %v6515_v35 = vpop.f32.mrf.mxu0 }
0x158a   : > { %6881 = vmatpush.msrb.mxu3 %v14958_v7  ;;  %v13693_v7 = vld [vmem:[%s14685_s1 + $0x10] sm:$0xff] }
0x158c   : > { %6882 = vmatpush.msrb.mxu3 %v14959_v4  ;;  %v14962_v4 = vld [vmem:[#allocation22_spill] sm:$0xff] }
0x158e   : > { %6883 = vmatpush.msrb.mxu3 %v14960_v31  ;;  %v14963_v31 = vld [vmem:[#allocation23_spill] sm:$0xff] }
0x158f   : > { %10312 = vmatmul.msk.f32.gmra.mxu3 %vm654_vm3, %v6318_v39  ;;  %10317 = vmatmul.msk.f32.gmra.mxu1 %vm654_vm3, %v6318_v39  ;;  %v14961_v39 = vld [vmem:[#allocation21_spill] sm:$0xff] }
0x1591   : > { %v6624_v60 = vpop.f32.mrf.mxu0 }
0x1597   : > { %10325 = vmatmul.msk.f32.vlgmr.msra.gmra.mxu3 %vm611_vm2, %v6200_v36 }
0x1599   : > { %v6627_v58 = vpop.f32.mrf.mxu0 }
0x159f   : > { %10326 = vmatmul.msk.f32.gmra.mxu3 %vm611_vm2, %v6203_v38 }
0x15e4   : > { %v6425_v20 = vpop.f32.mrf.mxu1 }
0x15e5   : > { %v6431_v3 = vadd.f32 %v6425_v20, %v6406_v2  ;;  %v13707_v20 = vld [vmem:[%s14685_s1 + $0x8] sm:$0xff] }
0x15e7   : > { %v6518_v24 = vadd.f32 %v6512_v6, %v6431_v3  ;;  %v13714_v6 = vld [vmem:[%s14685_s1 + $0x18] sm:$0xff] }
0x15ec   : > { %v6428_v46 = vpop.f32.mrf.mxu1 }
0x15ed   : > { %v6432_v43 = vadd.f32 %v6428_v46, %v6407_v51  ;;  %v14966_v46 = vld [vmem:[#allocation26_spill] sm:$0xff] }
0x15ef   : > { %v6519_v40 = vadd.f32 %v6515_v35, %v6432_v43  ;;  %v6344_v35 = vpop.f32.mrf.mxu2 }
0x15f4   : > { %v6537_v44 = vpop.f32.mrf.mxu1 }
0x15f5   : > { %v6543_v37 = vadd.f32 %v6537_v44, %v6518_v24 }
0x15f7   : > { %v6630_v52 = vadd.f32 %v6624_v60, %v6543_v37  ;;  %v6347_v44 = vpop.f32.mrf.mxu2  ;;  %v10351_v37 = vld [vmem:[%s14686_s2 + $0xc] sm:$0xf] }
0x15fc   : > { %v6540_v1 = vpop.f32.mrf.mxu1 }
0x15fd   : > { %v6544_v56 = vadd.f32 %v6540_v1, %v6519_v40 }
0x15ff   : > { %v6631_v41 = vadd.f32 %v6627_v58, %v6544_v56  ;;  %v6456_v2 = vpop.f32.mrf.mxu2  ;;  %v10391_v56 = vld [vmem:[%s14686_s2 + $0x14] sm:$0xf]  ;;  %v14968_v58 = vld [vmem:[#allocation3_spill] sm:$0xff] }
0x1604   : > { %v6649_v26 = vpop.f32.mrf.mxu1 }
0x1605   : > { %v6655_v42 = vadd.f32 %v6649_v26, %v6630_v52  ;;  %v10371_v26 = vld [vmem:[%s14686_s2 + $0x10] sm:$0xf] }
0x1607   : > { %v10320_v23 = vmul.f32 -1.442695, %v6655_v42  ;;  %v6459_v3 = vpop.f32.mrf.mxu2 }
0x1609   : > { %10861 = vpow2.f32 %v10320_v23  ;;  %v14967_v23 = vld [vmem:[#allocation2_spill] sm:$0xff] }
0x160c   : > { %v6652_v59 = vpop.f32.mrf.mxu1 }
0x160d   : > { %v6656_v29 = vadd.f32 %v6652_v59, %v6631_v41  ;;  %v14969_v41 = vld [vmem:[#allocation9_spill] sm:$0xff]  ;;  %v6375_v59 = vpop.f32.mrf.mxu3 }
0x160f   : > { %v10862_v45 = vpop.eup %10861  ;;  %v10321_v13 = vmul.f32 -1.442695, %v6656_v29  ;;  %v6568_v1 = vpop.f32.mrf.mxu2  ;;  %v14970_v29 = vld [vmem:[#allocation11_spill] sm:$0xff] }
0x1610   : > { %v6701_v14 = vadd.f32 1.0, %v10862_v45  ;;  %v14971_v45 = vld [vmem:[#allocation12_spill] sm:$0xff] }
0x1611   : > { %10863 = vpow2.f32 %v10321_v13 }
0x1612   : > { %10865 = vrcp.f32 %v6701_v14  ;;  %vm6708_vm9 = vweird.f32 %v6701_v14  ;;  %v6714_v62 = vand.u32 2147483648, %v6701_v14  ;;  %v6712_v16 = vand.u32 2147483647, %v6701_v14 }
0x1614   : > { %v6715_v21 = vor.u32 1.1754944e-38, %v6714_v62  ;;  %vm6713_vm15 = vcmp.eq.f32.partialorder %v6712_v16, 8.507059e+37 }
0x1615   : > { %v6378_v13 = vpop.f32.mrf.mxu3 }
0x1617   : > { %v10864_v63 = vpop.eup %10863  ;;  %v6571_v51 = vpop.f32.mrf.mxu2 }
0x1618   : > { %v10866_v55 = vpop.eup %10865  ;;  %v6702_v27 = vadd.f32 1.0, %v10864_v63 }
0x1619   : > { %v6704_v48 = vmul.f32 %v10866_v55, %v6701_v14  ;;  %vm6709_vm8 = vweird.f32 %v10866_v55  ;;  %v14972_v14 = vld [vmem:[#allocation13_spill] sm:$0xff] }
0x161a   : > { %10867 = vrcp.f32 %v6702_v27  ;;  %v6729_v34 = vand.u32 2147483648, %v6702_v27  ;;  %v6727_v47 = vand.u32 2147483647, %v6702_v27  ;;  %vm6710_vm11 = vmor %vm6708_vm9, %vm6709_vm8  ;;  %vm6723_vm12 = vweird.f32 %v6702_v27 }
0x161b   : > { %v6705_v10 = vsub.f32 1.0, %v6704_v48 }
0x161c   : > { %v6730_v19 = vor.u32 1.1754944e-38, %v6729_v34  ;;  %vm6728_vm14 = vcmp.eq.f32.partialorder %v6727_v47, 8.507059e+37 }
0x161d   : > { %v6706_v9 = vmul.f32 %v10866_v55, %v6705_v10  ;;  %v6487_v63 = vpop.f32.mrf.mxu3 }
0x161f   : > { %v6707_v38 = vadd.f32 %v10866_v55, %v6706_v9 }
0x1620   : > { %v10868_v57 = vpop.eup %10867 }
0x1621   : > { %v6719_v11 = vmul.f32 %v10868_v57, %v6702_v27  ;;  %vm6724_vm10 = vweird.f32 %v10868_v57  ;;  %v6711_v18 = vsel %vm6710_vm11, %v10866_v55, %v6707_v38  ;;  %v14973_v27 = vld [vmem:[#allocation27_spill] sm:$0xff] }
0x1622   : > { %vm6725_vm13 = vmor %vm6723_vm12, %vm6724_vm10  ;;  %v6716_v28 = vsel %vm6713_vm15, %v6715_v21, %v6711_v18  ;;  %v6351_v48 = vadd.f32 %v14973_v27, %v6347_v44  ;;  %v6350_v10 = vadd.f32 %v14973_v27, %v6344_v35 }
0x1623   : > { %v6720_v36 = vsub.f32 1.0, %v6719_v11  ;;  %v6733_v54 = vmul.f32 %v6716_v28, %v13575_v50 }
0x1624   : > { %v6381_v11 = vadd.f32 %v6375_v59, %v6350_v10 }
0x1625   : > { %v6721_v12 = vmul.f32 %v10868_v57, %v6720_v36  ;;  %v6490_v55 = vpop.f32.mrf.mxu3 }
0x1626   : > { %v6462_v38 = vadd.f32 %v6456_v2, %v6381_v11 }
0x1627   : > { %v6722_v17 = vadd.f32 %v10868_v57, %v6721_v12 }
0x1628   : > { %v6493_v62 = vadd.f32 %v6487_v63, %v6462_v38 }
0x1629   : > { %v6726_v22 = vsel %vm6725_vm13, %v10868_v57, %v6722_v17  ;;  %v6382_v57 = vadd.f32 %v6378_v13, %v6351_v48 }
0x162a   : > { %v6731_v25 = vsel %vm6728_vm14, %v6730_v19, %v6726_v22  ;;  %v6574_v16 = vadd.f32 %v6568_v1, %v6493_v62 }
0x162b   : > { %v6734_v30 = vmul.f32 %v6731_v25, %v13573_v33  ;;  %v6463_v36 = vadd.f32 %v6459_v3, %v6382_v57 }
0x162d   : > { %6749 = vmatpush.msrb.mxu2 %v6734_v30  ;;  %6828 = vmatpush.msra.mxu1 %v6734_v30  ;;  %v6599_v9 = vpop.f32.mrf.mxu3  ;;  %v6494_v34 = vadd.f32 %v6490_v55, %v6463_v36 }
0x162e   : > { %6907 = vmatpush.msra.mxu0 %v6734_v30  ;;  %v6605_v18 = vadd.f32 %v6599_v9, %v6574_v16 }
0x162f   : > { %6750 = vmatpush.msrb.mxu2 %v6733_v54  ;;  %6829 = vmatpush.msra.mxu1 %v6733_v54  ;;  %v6575_v47 = vadd.f32 %v6571_v51, %v6494_v34 }
0x1630   : > { %6908 = vmatpush.msra.mxu0 %v6733_v54  ;;  %10322 = vmatmul.msk.f32.vlgmr.msrb.gmra.mxu2 %vm451_vm0, %v13686_v32  ;;  %v10318_v21 = vmul.f32 -1.442695, %v6605_v18 }
0x1631   : > { %10329 = vmatmul.msk.f32.vlgmr.msra.gmra.mxu1 %vm451_vm0, %v13693_v7  ;;  %10331 = vmatpush.msk.msra.mxu2 %vm618_vm1, %v14961_v39 }
0x1632   : > { %10338 = vmatpush.msk.msrb.mxu1 %vm618_vm1, %v14962_v4 }
0x1633   : > { %6959 = vmatpush.msrb.mxu2 %v14963_v31 }
0x1635   : > { %6960 = vmatpush.msrb.mxu2 %v14964_v0  ;;  %v6602_v12 = vpop.f32.mrf.mxu3 }
0x1636   : > { %v6606_v17 = vadd.f32 %v6602_v12, %v6575_v47 }
0x1637   : > { %6961 = vmatpush.msrb.mxu2 %v14965_v15 }
0x1638   : > { %10323 = vmatmul.msk.f32.gmra.mxu2 %vm451_vm0, %v13707_v20  ;;  %v10319_v19 = vmul.f32 -1.442695, %v6606_v17 }
0x1639   : > { %10330 = vmatmul.msk.f32.gmra.mxu1 %vm451_vm0, %v13714_v6  ;;  %6962 = vmatpush.msrb.mxu2 %v14966_v46 }
0x163a   : > { %10869 = vpow2.f32 %v10319_v19 }
0x163b   : > { %10871 = vpow2.f32 %v10318_v21 }
0x163d   : > { %v6775_v22 = vpop.f32.mrf.mxu3 }
0x163e   : > { %v6781_v0 = vadd.f32 %v13548_v5, %v6775_v22 }
0x1640   : > { %10332 = vmatmul.msk.f32.vlgmr.msra.gmra.mxu2 %vm611_vm2, %v13623_v49  ;;  %v10870_v25 = vpop.eup %10869 }
0x1641   : > { %10339 = vmatmul.msk.f32.vlgmr.msrb.gmra.mxu1 %vm611_vm2, %v13639_v61  ;;  %10352 = vmatpush.msk.msra.mxu2 %vm618_vm1, %v10351_v37  ;;  %v10872_v28 = vpop.eup %10871  ;;  %v6664_v30 = vadd.f32 1.0, %v10870_v25 }
0x1642   : > { %v6663_v54 = vadd.f32 1.0, %v10872_v28 }
0x1643   : > { %10873 = vrcp.f32 %v6664_v30  ;;  %v6691_v27 = vand.u32 2147483648, %v6664_v30  ;;  %vm6685_vm6 = vweird.f32 %v6664_v30 }
0x1644   : > { %10875 = vrcp.f32 %v6663_v54  ;;  %v6676_v10 = vand.u32 2147483648, %v6663_v54  ;;  %vm6670_vm8 = vweird.f32 %v6663_v54  ;;  %v6674_v57 = vand.u32 2147483647, %v6663_v54 }
0x1645   : > { %v6778_v39 = vpop.f32.mrf.mxu3  ;;  %v6692_v38 = vor.u32 1.1754944e-38, %v6691_v27  ;;  %v13963_v27 = vld [vmem:[%s14689_s5 + $0xa0] sm:$0xff] }
0x1646   : > { %v6782_v3 = vadd.f32 %v13548_v5, %v6778_v39  ;;  %v6677_v12 = vor.u32 1.1754944e-38, %v6676_v10  ;;  %vm6675_vm11 = vcmp.eq.f32.partialorder %v6674_v57, 8.507059e+37 }
0x1648   : > { %10333 = vmatmul.msk.f32.gmra.mxu2 %vm611_vm2, %v13631_v53  ;;  %v13734_v53 = vld [vmem:[%s14685_s1 + $0x20] sm:$0xff] }
0x1649   : > { %10340 = vmatmul.msk.f32.gmra.mxu1 %vm611_vm2, %v13645_v8  ;;  %v13741_v8 = vld [vmem:[%s14685_s1 + $0x28] sm:$0xff]  ;;  %v10874_v31 = vpop.eup %10873 }
0x164a   : > { %v10876_v46 = vpop.eup %10875  ;;  %v6681_v44 = vmul.f32 %v10874_v31, %v6664_v30  ;;  %vm6686_vm4 = vweird.f32 %v10874_v31 }
0x164b   : > { %v6666_v1 = vmul.f32 %v10876_v46, %v6663_v54  ;;  %vm6671_vm5 = vweird.f32 %v10876_v46  ;;  %vm6687_vm7 = vmor %vm6685_vm6, %vm6686_vm4 }
0x164c   : > { %vm6672_vm9 = vmor %vm6670_vm8, %vm6671_vm5 }
0x16ae   : > { %v6831_v24 = vpop.f32.mrf.mxu1 }
0x16af   : > { %10334 = vmatmul.msk.f32.vlgmr.msrb.gmra.mxu3 %vm654_vm3, %v6831_v24 }
0x16b3   : > { %v6752_v60 = vpop.f32.mrf.mxu2 }
0x16b4   : > { %10327 = vmatmul.msk.f32.vlgmr.msrb.gmra.mxu0 %vm654_vm3, %v6752_v60  ;;  %v6682_v60 = vsub.f32 1.0, %v6681_v44  ;;  %v13853_v44 = vld [vmem:[%s14689_s5 + $0x68] sm:$0xff] }
0x16b6   : > { %v6834_v49 = vpop.f32.mrf.mxu1 }
0x16b7   : > { %10335 = vmatmul.msk.f32.gmra.mxu3 %vm654_vm3, %v6834_v49 }
0x16bb   : > { %v6755_v61 = vpop.f32.mrf.mxu2 }
0x16bc   : > { %10328 = vmatmul.msk.f32.gmra.mxu0 %vm654_vm3, %v6755_v61  ;;  %v6667_v61 = vsub.f32 1.0, %v6666_v1  ;;  %v13874_v1 = vld [vmem:[%s14687_s3 + $0x98] sm:$0xff] }
0x16be   : > { %v6933_v49 = vpop.f32.mrf.mxu1  ;;  %v6668_v59 = vmul.f32 %v10876_v46, %v6667_v61  ;;  %v13903_v61 = vld [vmem:[%s14689_s5 + $0x88] sm:$0xff] }
0x16c0   : > { %v6669_v5 = vadd.f32 %v10876_v46, %v6668_v59  ;;  %v13934_v59 = vld [vmem:[%s14687_s3 + $0xb0] sm:$0xff] }
0x16c2   : > { %v6673_v62 = vsel %vm6672_vm9, %v10876_v46, %v6669_v5  ;;  %v13843_v46 = vld [vmem:[%s14689_s5 + $0x70] sm:$0xff] }
0x16c3   : > { %v6854_v4 = vpop.f32.mrf.mxu2  ;;  %v6678_v16 = vsel %vm6675_vm11, %v6677_v12, %v6673_v62  ;;  %v10710_v12 = vld [vmem:[%s14693_s9 + $0x1] ss:$0 sm:$0xff] }
0x16c4   : > { %10336 = vmatmul.msk.f32.vlgmr.msra.gmra.mxu0 %vm451_vm0, %v13734_v53  ;;  %v6974_v19 = vsub.f32 1.0, %v6678_v16 }
0x16c6   : > { %v6936_v48 = vpop.f32.mrf.mxu1 }
0x16cb   : > { %v6857_v2 = vpop.f32.mrf.mxu2 }
0x16cc   : > { %10337 = vmatmul.msk.f32.gmra.mxu0 %vm451_vm0, %v13741_v8 }
0x1731   : > { %v6806_v43 = vpop.f32.mrf.mxu0 }
0x1732   : > { %v6885_v15 = vpop.f32.mrf.mxu3  ;;  %v6812_v35 = vadd.f32 %v6806_v43, %v6781_v0  ;;  %v13831_v0 = vld [vmem:[%s14689_s5 + $0x78] sm:$0xff] }
0x1734   : > { %v6860_v51 = vadd.f32 %v6854_v4, %v6812_v35  ;;  %v10401_v4 = vld [vmem:[%s14688_s4 + $0x14] sm:$0xf]  ;;  %v13848_v35 = vld [vmem:[%s14687_s3 + $0x68] sm:$0xff] }
0x1736   : > { %v6891_v37 = vadd.f32 %v6885_v15, %v6860_v51  ;;  %v13838_v15 = vld [vmem:[%s14687_s3 + $0x70] sm:$0xff]  ;;  %v13879_v51 = vld [vmem:[%s14689_s5 + $0x98] sm:$0xff] }
0x1738   : > { %v6939_v63 = vadd.f32 %v6933_v49, %v6891_v37  ;;  %v13896_v49 = vld [vmem:[%s14687_s3 + $0x88] sm:$0xff]  ;;  %v13908_v37 = vld [vmem:[%s14687_s3 + $0x80] sm:$0xff] }
0x1739   : > { %v6809_v52 = vpop.f32.mrf.mxu0 }
0x173a   : > { %v6813_v24 = vadd.f32 %v6809_v52, %v6782_v3  ;;  %v6689_v52 = vand.u32 2147483647, %v6664_v30  ;;  %v6976_v30 = vmul.f32 %v6974_v19, %v13575_v50  ;;  %v10381_v50 = vld [vmem:[%s14688_s4 + $0x10] sm:$0xf]  ;;  %v13867_v3 = vld [vmem:[%s14689_s5 + $0x60] sm:$0xff] }
0x173c   : > { %vm6690_vm10 = vcmp.eq.f32.partialorder %v6689_v52, 8.507059e+37  ;;  %v10418_v52 = vld [vmem:[%s14690_s6 + $0xc] sm:$0xf] }
0x1741   : > { %v6910_v40 = vpop.f32.mrf.mxu0 }
0x1742   : > { %10341 = vmatmul.msk.f32.vlgmr.msrb.gmra.mxu2 %vm654_vm3, %v6910_v40  ;;  %v6888_v40 = vpop.f32.mrf.mxu3 }
0x1743   : > { %10372 = vmatpush.msk.msrb.mxu2 %vm618_vm1, %v10371_v26  ;;  %v6861_v26 = vadd.f32 %v6857_v2, %v6813_v24  ;;  %v13862_v2 = vld [vmem:[%s14687_s3 + $0x60] sm:$0xff]  ;;  %v13886_v24 = vld [vmem:[%s14687_s3 + $0x90] sm:$0xff] }
0x1745   : > { %v6892_v13 = vadd.f32 %v6888_v40, %v6861_v26  ;;  %v13913_v26 = vld [vmem:[%s14689_s5 + $0x80] sm:$0xff]  ;;  %v13922_v40 = vld [vmem:[%s14687_s3 + $0xb8] sm:$0xff] }
0x1747   : > { %v6940_v9 = vadd.f32 %v6936_v48, %v6892_v13  ;;  %v13939_v13 = vld [vmem:[%s14689_s5 + $0xb0] sm:$0xff] }
0x1749   : > { %v6913_v42 = vpop.f32.mrf.mxu0 }
0x174a   : > { %10342 = vmatmul.msk.f32.gmra.mxu2 %vm654_vm3, %v6913_v42 }
0x1752   : > { %10353 = vmatmul.msk.f32.vlgmr.msra.gmra.mxu2 %vm611_vm2, %v14967_v23 }
0x1753   : > { %10392 = vmatpush.msk.msra.mxu2 %vm618_vm1, %v10391_v56  ;;  %v6683_v56 = vmul.f32 %v10874_v31, %v6682_v60  ;;  %v13891_v60 = vld [vmem:[%s14689_s5 + $0x90] sm:$0xff] }
0x1755   : > { %v6684_v55 = vadd.f32 %v10874_v31, %v6683_v56 }
0x1757   : > { %v6688_v11 = vsel %vm6687_vm7, %v10874_v31, %v6684_v55  ;;  %v13826_v31 = vld [vmem:[%s14687_s3 + $0x78] sm:$0xff]  ;;  %v13951_v55 = vld [vmem:[%s14689_s5 + $0xa8] sm:$0xff] }
0x1758   : > { %v6693_v47 = vsel %vm6690_vm10, %v6692_v38, %v6688_v11 }
0x1759   : > { %v6975_v17 = vsub.f32 1.0, %v6693_v47 }
0x175a   : > { %10354 = vmatmul.msk.f32.gmra.mxu2 %vm611_vm2, %v14968_v58 }
0x175b   : > { %v6977_v25 = vmul.f32 %v6975_v17, %v13573_v33  ;;  %v10361_v33 = vld [vmem:[%s14688_s4 + $0xc] sm:$0xf] }
0x1762   : > { %10373 = vmatmul.msk.f32.vlgmr.msrb.gmra.mxu2 %vm611_vm2, %v14969_v41 }
0x176a   : > { %10374 = vmatmul.msk.f32.gmra.mxu2 %vm611_vm2, %v14970_v29 }
0x1772   : > { %10393 = vmatmul.msk.f32.vlgmr.msra.gmra.mxu2 %vm611_vm2, %v14971_v45 }
0x177a   : > { %10394 = vmatmul.msk.f32.gmra.mxu2 %vm611_vm2, %v14972_v14 }
0x17c5   : > { %v6964_v42 = vpop.f32.mrf.mxu2 }
0x17c6   : > { %v6970_v43 = vadd.f32 %v6964_v42, %v6939_v63  ;;  %v13927_v42 = vld [vmem:[%s14689_s5 + $0xb8] sm:$0xff]  ;;  %v13946_v63 = vld [vmem:[%s14687_s3 + $0xa8] sm:$0xff] }
0x17c8   : > { %10877 = vtanh.f32 %v6970_v43  ;;  %v13958_v43 = vld [vmem:[%s14687_s3 + $0xa0] sm:$0xff] }
0x17cd   : > { %v6967_v36 = vpop.f32.mrf.mxu2 }
0x17ce   : > { %v6971_v34 = vadd.f32 %v6967_v36, %v6940_v9  ;;  %v10878_v18 = vpop.eup %10877 }
0x17cf   : > { %v6978_v22 = vmul.f32 %v10878_v18, %v6678_v16 }
0x17d0   : > { %10879 = vtanh.f32 %v6971_v34 }
0x17d1   : > { %v13779_v39 = vadd.f32 %v6978_v22, %v6976_v30 }
0x17d6   : > { %v10880_v21 = vpop.eup %10879 }
0x17d7   : > { %v6979_v28 = vmul.f32 %v10880_v21, %v6693_v47 }
0x17d9   : > { %v13777_v54 = vadd.f32 %v6979_v28, %v6977_v25 }
0x17db   : > { %6996 = vmatpush.msra.mxu3 %v13777_v54  ;;  %7019 = vmatpush.msrb.mxu0 %v13777_v54 }
0x17dc   : > { %7042 = vmatpush.msra.mxu1 %v13777_v54 }
0x17dd   : > { %6997 = vmatpush.msra.mxu3 %v13779_v39  ;;  %7020 = vmatpush.msrb.mxu0 %v13779_v39 }
0x17de   : > { %7043 = vmatpush.msra.mxu1 %v13779_v39  ;;  %10343 = vmatmul.msk.f32.vlgmr.msra.gmra.mxu3 %vm451_vm0, %v13686_v32 }
0x17df   : > { %10345 = vmatmul.msk.f32.vlgmr.msrb.gmra.mxu0 %vm451_vm0, %v13693_v7  ;;  %10347 = vmatmul.msk.f32.vlgmr.msra.gmra.mxu1 %vm451_vm0, %v13734_v53 }
0x17e0   : > { %10362 = vmatpush.msk.msra.mxu0 %vm618_vm1, %v10361_v33  ;;  %7115 = vmatpush.msrb.mxu3 %v13826_v31 }
0x17e1   : > { %7178 = vmatpush.msrb.mxu1 %v13831_v0 }
0x17e2   : > { %10382 = vmatpush.msk.msrb.mxu0 %vm618_vm1, %v10381_v50  ;;  %7116 = vmatpush.msrb.mxu3 %v13838_v15 }
0x17e3   : > { %7179 = vmatpush.msrb.mxu1 %v13843_v46 }
0x17e4   : > { %7117 = vmatpush.msrb.mxu3 %v13848_v35 }
0x17e5   : > { %7180 = vmatpush.msrb.mxu1 %v13853_v44 }
0x17e6   : > { %10344 = vmatmul.msk.f32.gmra.mxu3 %vm451_vm0, %v13707_v20 }
0x17e7   : > { %10346 = vmatmul.msk.f32.gmra.mxu0 %vm451_vm0, %v13714_v6  ;;  %10348 = vmatmul.msk.f32.gmra.mxu1 %vm451_vm0, %v13741_v8 }
0x17e8   : > { %7118 = vmatpush.msrb.mxu3 %v13862_v2  ;;  %7181 = vmatpush.msrb.mxu1 %v13867_v3 }
0x17ea   : > { %7248 = vmatpush.msra.mxu3 %v13874_v1  ;;  %7308 = vmatpush.msra.mxu1 %v13879_v51 }
0x17ec   : > { %7249 = vmatpush.msra.mxu3 %v13886_v24  ;;  %7309 = vmatpush.msra.mxu1 %v13891_v60 }
0x17ee   : > { %7250 = vmatpush.msra.mxu3 %v13896_v49  ;;  %7310 = vmatpush.msra.mxu1 %v13903_v61 }
0x17ef   : > { %10363 = vmatmul.msk.f32.vlgmr.msra.gmra.mxu0 %vm611_vm2, %v14967_v23 }
0x17f0   : > { %10402 = vmatpush.msk.msra.mxu0 %vm618_vm1, %v10401_v4  ;;  %7251 = vmatpush.msra.mxu3 %v13908_v37  ;;  %v13993_v4 = vld [vmem:[%s14691_s7 + $0x78] sm:$0xff] }
0x17f1   : > { %7311 = vmatpush.msra.mxu1 %v13913_v26 }
0x17f7   : > { %10364 = vmatmul.msk.f32.gmra.mxu0 %vm611_vm2, %v14968_v58 }
0x17ff   : > { %10383 = vmatmul.msk.f32.vlgmr.msrb.gmra.mxu0 %vm611_vm2, %v14969_v41 }
0x1800   : > { %7610 = vmatpush.msrb.mxu0 %v13993_v4 }
0x1807   : > { %10384 = vmatmul.msk.f32.gmra.mxu0 %vm611_vm2, %v14970_v29 }
0x180f   : > { %10403 = vmatmul.msk.f32.vlgmr.msra.gmra.mxu0 %vm611_vm2, %v14971_v45 }
0x1817   : > { %10404 = vmatmul.msk.f32.gmra.mxu0 %vm611_vm2, %v14972_v14 }
0x185c   : > { %v7022_v5 = vpop.f32.mrf.mxu0  ;;  %v7045_v9 = vpop.f32.mrf.mxu1 }
0x1861   : > { %v6999_v56 = vpop.f32.mrf.mxu3 }
0x1862   : > { %10359 = vmatmul.msk.f32.vlgmr.msrb.gmra.mxu3 %vm654_vm3, %v6999_v56  ;;  %10369 = vmatmul.msk.f32.vlgmr.msrb.gmra.mxu1 %vm654_vm3, %v6999_v56 }
0x1863   : > { %7378 = vmatpush.msrb.mxu3 %v13922_v40  ;;  %7438 = vmatpush.msrb.mxu1 %v13927_v42 }
0x1864   : > { %v7025_v10 = vpop.f32.mrf.mxu0  ;;  %v7048_v57 = vpop.f32.mrf.mxu1 }
0x1865   : > { %7379 = vmatpush.msrb.mxu3 %v13934_v59  ;;  %7439 = vmatpush.msrb.mxu1 %v13939_v13 }
0x1867   : > { %7380 = vmatpush.msrb.mxu3 %v13946_v63  ;;  %7440 = vmatpush.msrb.mxu1 %v13951_v55 }
0x1869   : > { %v7002_v48 = vpop.f32.mrf.mxu3  ;;  %7381 = vmatpush.msrb.mxu3 %v13958_v43  ;;  %7441 = vmatpush.msrb.mxu1 %v13963_v27 }
0x186a   : > { %10360 = vmatmul.msk.f32.gmra.mxu3 %vm654_vm3, %v7002_v48  ;;  %10370 = vmatmul.msk.f32.gmra.mxu1 %vm654_vm3, %v7002_v48 }
0x186c   : > { %v7150_v11 = vpop.f32.mrf.mxu0 }
0x186d   : > { %v7159_v17 = vadd.f32 %v10710_v12, %v7150_v11 }
0x1872   : > { %10379 = vmatmul.msk.f32.vlgmr.msra.gmra.mxu3 %vm654_vm3, %v7022_v5  ;;  %10389 = vmatmul.msk.f32.vlgmr.msra.gmra.mxu1 %vm654_vm3, %v7022_v5  ;;  %v13999_v5 = vld [vmem:[%s14691_s7 + $0x70] sm:$0xff] }
0x1873   : > { %10419 = vmatpush.msk.msra.mxu3 %vm618_vm1, %v10418_v52  ;;  %14974 = vst [vmem:[#allocation4_spill] sm:$0xff] %v13999_v5  ;;  %7611 = vmatpush.msrb.mxu0 %v13999_v5  ;;  %v14005_v52 = vld [vmem:[%s14691_s7 + $0x68] sm:$0xff] }
0x1874   : > { %v7153_v36 = vpop.f32.mrf.mxu0  ;;  %14975 = vst [vmem:[#allocation5_spill] sm:$0xff] %v14005_v52 }
0x1875   : > { %v7160_v22 = vadd.f32 %v10710_v12, %v7153_v36  ;;  %7612 = vmatpush.msrb.mxu0 %v14005_v52 }
0x187a   : > { %10380 = vmatmul.msk.f32.gmra.mxu3 %vm654_vm3, %v7025_v10  ;;  %10390 = vmatmul.msk.f32.gmra.mxu1 %vm654_vm3, %v7025_v10 }
0x187c   : > { %v7283_v34 = vpop.f32.mrf.mxu0 }
0x1882   : > { %10399 = vmatmul.msk.f32.vlgmr.msrb.gmra.mxu3 %vm654_vm3, %v7045_v9  ;;  %10409 = vmatmul.msk.f32.vlgmr.msrb.gmra.mxu1 %vm654_vm3, %v7045_v9  ;;  %v14010_v9 = vld [vmem:[%s14691_s7 + $0x60] sm:$0xff] }
0x1883   : > { %14976 = vst [vmem:[#allocation6_spill] sm:$0xff] %v14010_v9  ;;  %7613 = vmatpush.msrb.mxu0 %v14010_v9 }
0x1884   : > { %v7286_v16 = vpop.f32.mrf.mxu0 }
0x188a   : > { %10400 = vmatmul.msk.f32.gmra.mxu3 %vm654_vm3, %v7048_v57  ;;  %10410 = vmatmul.msk.f32.gmra.mxu1 %vm654_vm3, %v7048_v57 }
0x188c   : > { %v7413_v25 = vpop.f32.mrf.mxu0 }
0x1892   : > { %10420 = vmatmul.msk.f32.vlgmr.msra.gmra.mxu3 %vm611_vm2, %v14967_v23 }
0x1894   : > { %v7416_v10 = vpop.f32.mrf.mxu0 }
0x189a   : > { %10421 = vmatmul.msk.f32.gmra.mxu3 %vm611_vm2, %v14968_v58 }
0x18df   : > { %v7183_v38 = vpop.f32.mrf.mxu1 }
0x18e0   : > { %v7189_v18 = vadd.f32 %v7183_v38, %v7159_v17 }
0x18e2   : > { %v7289_v21 = vadd.f32 %v7283_v34, %v7189_v18 }
0x18e7   : > { %v7186_v62 = vpop.f32.mrf.mxu1 }
0x18e8   : > { %v7190_v28 = vadd.f32 %v7186_v62, %v7160_v22 }
0x18ea   : > { %v7290_v33 = vadd.f32 %v7286_v16, %v7190_v28 }
0x18ef   : > { %v7313_v47 = vpop.f32.mrf.mxu1 }
0x18f0   : > { %v7319_v23 = vadd.f32 %v7313_v47, %v7289_v21 }
0x18f2   : > { %v7419_v58 = vadd.f32 %v7413_v25, %v7319_v23 }
0x18f7   : > { %v7316_v19 = vpop.f32.mrf.mxu1 }
0x18f8   : > { %v7320_v56 = vadd.f32 %v7316_v19, %v7290_v33 }
0x18fa   : > { %v7420_v57 = vadd.f32 %v7416_v10, %v7320_v56 }
0x18ff   : > { %v7443_v30 = vpop.f32.mrf.mxu1 }
0x1900   : > { %v7449_v50 = vadd.f32 %v7443_v30, %v7419_v58 }
0x1902   : > { %v10413_v48 = vmul.f32 -1.442695, %v7449_v50 }
0x1904   : > { %10881 = vpow2.f32 %v10413_v48 }
0x1907   : > { %v7446_v11 = vpop.f32.mrf.mxu1 }
0x1908   : > { %v7450_v36 = vadd.f32 %v7446_v11, %v7420_v57 }
0x190a   : > { %v10882_v38 = vpop.eup %10881  ;;  %v10414_v34 = vmul.f32 -1.442695, %v7450_v36  ;;  %v14017_v36 = vld [vmem:[%s14691_s7 + $0x98] sm:$0xff] }
0x190b   : > { %v7495_v62 = vadd.f32 1.0, %v10882_v38  ;;  %14977 = vst [vmem:[#allocation7_spill] sm:$0xff] %v14017_v36  ;;  %7699 = vmatpush.msrb.mxu3 %v14017_v36 }
0x190c   : > { %10883 = vpow2.f32 %v10414_v34 }
0x190d   : > { %10885 = vrcp.f32 %v7495_v62  ;;  %vm7502_vm13 = vweird.f32 %v7495_v62  ;;  %v7508_v58 = vand.u32 2147483648, %v7495_v62  ;;  %v7506_v50 = vand.u32 2147483647, %v7495_v62 }
0x190f   : > { %v7509_v57 = vor.u32 1.1754944e-38, %v7508_v58  ;;  %vm7507_vm7 = vcmp.eq.f32.partialorder %v7506_v50, 8.507059e+37  ;;  %v14087_v50 = vld [vmem:[%s14691_s7 + $0xa8] sm:$0xff] }
0x1910   : > { %14983 = vst [vmem:[#allocation20_spill] sm:$0xff] %v14087_v50 }
0x1912   : > { %v10884_v12 = vpop.eup %10883 }
0x1913   : > { %v10886_v47 = vpop.eup %10885  ;;  %v7496_v16 = vadd.f32 1.0, %v10884_v12 }
0x1914   : > { %v7498_v17 = vmul.f32 %v10886_v47, %v7495_v62  ;;  %vm7503_vm12 = vweird.f32 %v10886_v47 }
0x1915   : > { %10887 = vrcp.f32 %v7496_v16  ;;  %v7523_v28 = vand.u32 2147483648, %v7496_v16  ;;  %v7521_v33 = vand.u32 2147483647, %v7496_v16  ;;  %vm7504_vm15 = vmor %vm7502_vm13, %vm7503_vm12  ;;  %vm7517_vm4 = vweird.f32 %v7496_v16 }
0x1916   : > { %v7499_v18 = vsub.f32 1.0, %v7498_v17  ;;  %v7081_v17 = vpop.f32.mrf.mxu2 }
0x1917   : > { %v7524_v10 = vor.u32 1.1754944e-38, %v7523_v28  ;;  %vm7522_vm6 = vcmp.eq.f32.partialorder %v7521_v33, 8.507059e+37  ;;  %v14081_v33 = vld [vmem:[%s14691_s7 + $0xb0] sm:$0xff] }
0x1918   : > { %v7500_v19 = vmul.f32 %v10886_v47, %v7499_v18  ;;  %14982 = vst [vmem:[#allocation19_spill] sm:$0xff] %v14081_v33 }
0x191a   : > { %v7501_v25 = vadd.f32 %v10886_v47, %v7500_v19 }
0x191b   : > { %v10888_v21 = vpop.eup %10887 }
0x191c   : > { %v7513_v22 = vmul.f32 %v10888_v21, %v7496_v16  ;;  %vm7518_vm14 = vweird.f32 %v10888_v21  ;;  %v7505_v48 = vsel %vm7504_vm15, %v10886_v47, %v7501_v25  ;;  %v10430_v47 = vld [vmem:[%s14690_s6 + $0x10] sm:$0xf]  ;;  %v10442_v16 = vld [vmem:[%s14690_s6 + $0x14] sm:$0xf] }
0x191d   : > { %vm7519_vm5 = vmor %vm7517_vm4, %vm7518_vm14  ;;  %v7510_v34 = vsel %vm7507_vm7, %v7509_v57, %v7505_v48 }
0x191e   : > { %v7514_v23 = vsub.f32 1.0, %v7513_v22  ;;  %v7527_v12 = vmul.f32 %v7510_v34, %v13779_v39  ;;  %v7084_v18 = vpop.f32.mrf.mxu2 }
0x1920   : > { %v7515_v30 = vmul.f32 %v10888_v21, %v7514_v23 }
0x1922   : > { %v7516_v56 = vadd.f32 %v10888_v21, %v7515_v30  ;;  %v14075_v30 = vld [vmem:[%s14691_s7 + $0xb8] sm:$0xff] }
0x1923   : > { %14981 = vst [vmem:[#allocation18_spill] sm:$0xff] %v14075_v30 }
0x1924   : > { %v7520_v11 = vsel %vm7519_vm5, %v10888_v21, %v7516_v56  ;;  %v14049_v21 = vld [vmem:[%s14691_s7 + $0x90] sm:$0xff]  ;;  %v14093_v56 = vld [vmem:[%s14691_s7 + $0xa0] sm:$0xff] }
0x1925   : > { %v7525_v38 = vsel %vm7522_vm6, %v7524_v10, %v7520_v11  ;;  %14978 = vst [vmem:[#allocation8_spill] sm:$0xff] %v14049_v21  ;;  %7700 = vmatpush.msrb.mxu3 %v14049_v21 }
0x1926   : > { %v7528_v62 = vmul.f32 %v7525_v38, %v13777_v54  ;;  %v7217_v19 = vpop.f32.mrf.mxu2  ;;  %14984 = vst [vmem:[#allocation14_spill] sm:$0xff] %v14093_v56  ;;  %v7120_v38 = vpop.f32.mrf.mxu3 }
0x1928   : > { %7545 = vmatpush.msrb.mxu2 %v7528_v62  ;;  %7637 = vmatpush.msra.mxu1 %v7528_v62 }
0x1929   : > { %7726 = vmatpush.msra.mxu0 %v7528_v62 }
0x192a   : > { %7546 = vmatpush.msrb.mxu2 %v7527_v12  ;;  %7638 = vmatpush.msra.mxu1 %v7527_v12 }
0x192b   : > { %7727 = vmatpush.msra.mxu0 %v7527_v12  ;;  %10416 = vmatmul.msk.f32.vlgmr.msrb.gmra.mxu2 %vm451_vm0, %v13686_v32  ;;  %v10709_v12 = vld [vmem:[%s14692_s8 + $0x1] ss:$0 sm:$0xff] }
0x192c   : > { %10428 = vmatmul.msk.f32.vlgmr.msra.gmra.mxu1 %vm451_vm0, %v13693_v7  ;;  %10431 = vmatpush.msk.msra.mxu2 %vm618_vm1, %v10430_v47 }
0x192d   : > { %10443 = vmatpush.msk.msrb.mxu1 %vm618_vm1, %v10442_v16  ;;  %v7090_v16 = vadd.f32 %v10709_v12, %v7081_v17 }
0x192e   : > { %7788 = vmatpush.msrb.mxu2 %v14075_v30  ;;  %v7123_v34 = vpop.f32.mrf.mxu3 }
0x1930   : > { %7789 = vmatpush.msrb.mxu2 %v14081_v33 }
0x1932   : > { %7790 = vmatpush.msrb.mxu2 %v14087_v50 }
0x1933   : > { %10417 = vmatmul.msk.f32.gmra.mxu2 %vm451_vm0, %v13707_v20 }
0x1934   : > { %10429 = vmatmul.msk.f32.gmra.mxu1 %vm451_vm0, %v13714_v6  ;;  %7791 = vmatpush.msrb.mxu2 %v14093_v56 }
0x1936   : > { %v7253_v62 = vpop.f32.mrf.mxu3 }
0x193b   : > { %10432 = vmatmul.msk.f32.vlgmr.msra.gmra.mxu2 %vm611_vm2, %v14969_v41  ;;  %v14055_v41 = vld [vmem:[%s14691_s7 + $0x88] sm:$0xff] }
0x193c   : > { %10444 = vmatmul.msk.f32.vlgmr.msrb.gmra.mxu1 %vm611_vm2, %v14971_v45  ;;  %14979 = vst [vmem:[#allocation10_spill] sm:$0xff] %v14055_v41  ;;  %7701 = vmatpush.msrb.mxu3 %v14055_v41  ;;  %v7220_v45 = vpop.f32.mrf.mxu2 }
0x193e   : > { %v7256_v47 = vpop.f32.mrf.mxu3 }
0x1943   : > { %10433 = vmatmul.msk.f32.gmra.mxu2 %vm611_vm2, %v14970_v29  ;;  %v14060_v29 = vld [vmem:[%s14691_s7 + $0x80] sm:$0xff] }
0x1944   : > { %10445 = vmatmul.msk.f32.gmra.mxu1 %vm611_vm2, %v14972_v14  ;;  %14980 = vst [vmem:[#allocation15_spill] sm:$0xff] %v14060_v29  ;;  %7702 = vmatpush.msrb.mxu3 %v14060_v29  ;;  %v7347_v14 = vpop.f32.mrf.mxu2 }
0x1946   : > { %v7383_v56 = vpop.f32.mrf.mxu3 }
0x194c   : > { %v7350_v22 = vpop.f32.mrf.mxu2 }
0x194e   : > { %v7386_v41 = vpop.f32.mrf.mxu3 }
0x1956   : > { %v7576_v17 = vpop.f32.mrf.mxu3 }
0x19a9   : > { %v7640_v23 = vpop.f32.mrf.mxu1 }
0x19aa   : > { %10438 = vmatmul.msk.f32.vlgmr.msrb.gmra.mxu3 %vm654_vm3, %v7640_v23  ;;  %v7126_v23 = vadd.f32 %v7120_v38, %v7090_v16 }
0x19ae   : > { %v7548_v25 = vpop.f32.mrf.mxu2 }
0x19af   : > { %10426 = vmatmul.msk.f32.vlgmr.msrb.gmra.mxu0 %vm654_vm3, %v7548_v25  ;;  %v7223_v25 = vadd.f32 %v7217_v19, %v7126_v23 }
0x19b1   : > { %v7643_v28 = vpop.f32.mrf.mxu1 }
0x19b2   : > { %10439 = vmatmul.msk.f32.gmra.mxu3 %vm654_vm3, %v7643_v28  ;;  %v7091_v28 = vadd.f32 %v10709_v12, %v7084_v18  ;;  %v14104_v18 = vld [vmem:[%s14695_s11 + $0x18] sm:$0xff] }
0x19b3   : > { %7837 = vmatpush.msra.mxu3 %v14104_v18 }
0x19b4   : > { %v7127_v50 = vadd.f32 %v7123_v34, %v7091_v28 }
0x19b6   : > { %v7551_v58 = vpop.f32.mrf.mxu2 }
0x19b7   : > { %10427 = vmatmul.msk.f32.gmra.mxu0 %vm654_vm3, %v7551_v58  ;;  %v7259_v58 = vadd.f32 %v7253_v62, %v7223_v25 }
0x19b9   : > { %v7353_v33 = vadd.f32 %v7347_v14, %v7259_v58  ;;  %v7757_v58 = vpop.f32.mrf.mxu1 }
0x19bb   : > { %v7389_v30 = vadd.f32 %v7383_v56, %v7353_v33 }
0x19be   : > { %v7668_v14 = vpop.f32.mrf.mxu2 }
0x19bf   : > { %10440 = vmatmul.msk.f32.vlgmr.msra.gmra.mxu0 %vm451_vm0, %v13734_v53 }
0x19c6   : > { %v7671_v12 = vpop.f32.mrf.mxu2 }
0x19c7   : > { %10441 = vmatmul.msk.f32.gmra.mxu0 %vm451_vm0, %v13741_v8 }
0x1a2c   : > { %v7615_v48 = vpop.f32.mrf.mxu0 }
0x1a34   : > { %v7618_v10 = vpop.f32.mrf.mxu0 }
0x1a3c   : > { %v7729_v57 = vpop.f32.mrf.mxu0 }
0x1a3d   : > { %10450 = vmatmul.msk.f32.vlgmr.msrb.gmra.mxu2 %vm654_vm3, %v7729_v57  ;;  %v7224_v57 = vadd.f32 %v7220_v45, %v7127_v50  ;;  %v7579_v45 = vpop.f32.mrf.mxu3 }
0x1a3f   : > { %v7260_v29 = vadd.f32 %v7256_v47, %v7224_v57 }
0x1a41   : > { %v7354_v21 = vadd.f32 %v7350_v22, %v7260_v29  ;;  %v14110_v29 = vld [vmem:[%s14695_s11 + $0x10] sm:$0xff] }
0x1a42   : > { %7838 = vmatpush.msra.mxu3 %v14110_v29 }
0x1a43   : > { %v7390_v36 = vadd.f32 %v7386_v41, %v7354_v21  ;;  %v10711_v21 = vld [vmem:[%s14694_s10 + $0x1] ss:$0 sm:$0xff] }
0x1a44   : > { %v7732_v11 = vpop.f32.mrf.mxu0  ;;  %v14125_v41 = vld [vmem:[%s14695_s11] sm:$0xff]  ;;  %v7586_v16 = vadd.f32 %v10711_v21, %v7579_v45 }
0x1a45   : > { %10451 = vmatmul.msk.f32.gmra.mxu2 %vm654_vm3, %v7732_v11  ;;  %v10411_v11 = vmul.f32 -1.442695, %v7389_v30  ;;  %v10412_v9 = vmul.f32 -1.442695, %v7390_v36  ;;  %14986 = vst [vmem:[#allocation17_spill] sm:$0xff] %v14125_v41  ;;  %v7585_v30 = vadd.f32 %v10711_v21, %v7576_v17  ;;  %v7704_v38 = vpop.f32.mrf.mxu3 }
0x1a46   : > { %v7622_v25 = vadd.f32 %v7618_v10, %v7586_v16 }
0x1a47   : > { %10889 = vpow2.f32 %v10411_v11  ;;  %v7621_v33 = vadd.f32 %v7615_v48, %v7585_v30 }
0x1a48   : > { %10891 = vpow2.f32 %v10412_v9 }
0x1a49   : > { %v7674_v34 = vadd.f32 %v7668_v14, %v7621_v33 }
0x1a4b   : > { %v7710_v23 = vadd.f32 %v7704_v38, %v7674_v34  ;;  %v7760_v38 = vpop.f32.mrf.mxu1 }
0x1a4d   : > { %v10890_v52 = vpop.eup %10889  ;;  %v7763_v48 = vadd.f32 %v7757_v58, %v7710_v23  ;;  %v7707_v17 = vpop.f32.mrf.mxu3 }
0x1a4e   : > { %v7457_v5 = vadd.f32 1.0, %v10890_v52  ;;  %v10892_v19 = vpop.eup %10891  ;;  %v14116_v52 = vld [vmem:[%s14695_s11 + $0x8] sm:$0xff] }
0x1a4f   : > { %v7458_v36 = vadd.f32 1.0, %v10892_v19  ;;  %14985 = vst [vmem:[#allocation16_spill] sm:$0xff] %v14116_v52  ;;  %7839 = vmatpush.msra.mxu3 %v14116_v52 }
0x1a50   : > { %10893 = vrcp.f32 %v7457_v5  ;;  %v7470_v11 = vand.u32 2147483648, %v7457_v5  ;;  %vm7464_vm9 = vweird.f32 %v7457_v5  ;;  %v7468_v19 = vand.u32 2147483647, %v7457_v5 }
0x1a51   : > { %7840 = vmatpush.msra.mxu3 %v14125_v41  ;;  %10895 = vrcp.f32 %v7458_v36  ;;  %v7675_v41 = vadd.f32 %v7671_v12, %v7622_v25  ;;  %vm7479_vm13 = vweird.f32 %v7458_v36 }
0x1a52   : > { %v7471_v33 = vor.u32 1.1754944e-38, %v7470_v11  ;;  %vm7469_vm11 = vcmp.eq.f32.partialorder %v7468_v19, 8.507059e+37 }
0x1a53   : > { %v7711_v21 = vadd.f32 %v7707_v17, %v7675_v41 }
0x1a56   : > { %v10894_v9 = vpop.eup %10893 }
0x1a57   : > { %v7460_v22 = vmul.f32 %v10894_v9, %v7457_v5  ;;  %v10896_v56 = vpop.eup %10895  ;;  %vm7465_vm8 = vweird.f32 %v10894_v9  ;;  %v7483_v5 = vand.u32 2147483647, %v7458_v36 }
0x1a58   : > { %v7475_v62 = vmul.f32 %v10896_v56, %v7458_v36  ;;  %vm7466_vm10 = vmor %vm7464_vm9, %vm7465_vm8  ;;  %vm7480_vm12 = vweird.f32 %v10896_v56 }
0x1a59   : > { %v7461_v50 = vsub.f32 1.0, %v7460_v22  ;;  %vm7481_vm14 = vmor %vm7479_vm13, %vm7480_vm12  ;;  %vm7484_vm15 = vcmp.eq.f32.partialorder %v7483_v5, 8.507059e+37 }
0x1a5a   : > { %v7476_v28 = vsub.f32 1.0, %v7475_v62  ;;  %v7764_v62 = vadd.f32 %v7760_v38, %v7711_v21 }
0x1a5b   : > { %v7462_v47 = vmul.f32 %v10894_v9, %v7461_v50  ;;  %v7485_v50 = vand.u32 2147483648, %v7458_v36 }
0x1a5c   : > { %v7477_v14 = vmul.f32 %v10896_v56, %v7476_v28 }
0x1a5d   : > { %v7463_v57 = vadd.f32 %v10894_v9, %v7462_v47  ;;  %v7486_v16 = vor.u32 1.1754944e-38, %v7485_v50  ;;  %v14295_v50 = vld [vmem:[%s14692_s8 + $0x1] ss:$0 sm:$0xff] }
0x1a5e   : > { %v7478_v10 = vadd.f32 %v10896_v56, %v7477_v14 }
0x1a5f   : > { %v7467_v22 = vsel %vm7466_vm10, %v10894_v9, %v7463_v57 }
0x1a60   : > { %v7472_v45 = vsel %vm7469_vm11, %v7471_v33, %v7467_v22  ;;  %v7482_v12 = vsel %vm7481_vm14, %v10896_v56, %v7478_v10 }
0x1a61   : > { %v7803_v34 = vsub.f32 1.0, %v7472_v45  ;;  %v7487_v41 = vsel %vm7484_vm15, %v7486_v16, %v7482_v12 }
0x1a62   : > { %v7804_v58 = vsub.f32 1.0, %v7487_v41 }
0x1a63   : > { %v7805_v25 = vmul.f32 %v7803_v34, %v13779_v39 }
0x1a64   : > { %v7806_v57 = vmul.f32 %v7804_v58, %v13777_v54  ;;  %v10712_v54 = vld [vmem:[%s14696_s12] ss:$0 sm:$0xff] }
0x1ac0   : > { %v7793_v30 = vpop.f32.mrf.mxu2 }
0x1ac1   : > { %v7799_v52 = vadd.f32 %v7793_v30, %v7763_v48 }
0x1ac3   : > { %10897 = vtanh.f32 %v7799_v52 }
0x1ac8   : > { %v7796_v47 = vpop.f32.mrf.mxu2 }
0x1ac9   : > { %v10898_v9 = vpop.eup %10897  ;;  %v7800_v23 = vadd.f32 %v7796_v47, %v7764_v62 }
0x1aca   : > { %v7807_v28 = vmul.f32 %v10898_v9, %v7472_v45 }
0x1acb   : > { %10899 = vtanh.f32 %v7800_v23 }
0x1acc   : > { %v14129_v52 = vadd.f32 %v7807_v28, %v7805_v25 }
0x1ace   : > { %10452 = vmatmul.msk.f32.vlgmr.msra.gmra.mxu3 %vm654_vm3, %v14129_v52 }
0x1ad1   : > { %v10900_v36 = vpop.eup %10899 }
0x1ad2   : > { %v7808_v56 = vmul.f32 %v10900_v36, %v7487_v41 }
0x1ad4   : > { %v14134_v11 = vadd.f32 %v7808_v56, %v7806_v57 }
0x1ad6   : > { %10453 = vmatmul.msk.f32.gmra.mxu3 %vm654_vm3, %v14134_v11 }
0x1ad7   : > { %7933 = vmatpush.msrb.mxu3 %v14134_v11 }
0x1ad9   : > { %7934 = vmatpush.msrb.mxu3 %v14129_v52 }
0x1adb   : > { %8050 = vmatpush.msra.mxu3 %v13826_v31 }
0x1add   : > { %8051 = vmatpush.msra.mxu3 %v13838_v15 }
0x1ade   : > { %10460 = vmatmul.msk.f32.vlgmr.msrb.gmra.mxu3 %vm451_vm0, %v13686_v32 }
0x1adf   : > { %8052 = vmatpush.msra.mxu3 %v13848_v35 }
0x1ae1   : > { %8053 = vmatpush.msra.mxu3 %v13862_v2  ;;  %v10478_v2 = vld [vmem:[%s14688_s4 + $0xc] sm:$0xf] }
0x1ae3   : > { %8181 = vmatpush.msrb.mxu3 %v13874_v1 }
0x1ae5   : > { %8182 = vmatpush.msrb.mxu3 %v13886_v24 }
0x1ae6   : > { %10461 = vmatmul.msk.f32.gmra.mxu3 %vm451_vm0, %v13707_v20 }
0x1ae7   : > { %8183 = vmatpush.msrb.mxu3 %v13896_v49  ;;  %v14988_v49 = vld [vmem:[#allocation5_spill] sm:$0xff] }
0x1ae9   : > { %8184 = vmatpush.msrb.mxu3 %v13908_v37  ;;  %v14989_v37 = vld [vmem:[#allocation6_spill] sm:$0xff] }
0x1b51   : > { %v7842_v39 = vpop.f32.mrf.mxu3 }
0x1b52   : > { %v7843_v31 = vadd.f32 %v10712_v54, %v7842_v39 }
0x1b54   : > { %7848 = vst.msk [vmem:[%s14159_s28] sm:$0xff] %vm611_vm2, %v7843_v31 }
0x1b59   : > { %v7845_v15 = vpop.f32.mrf.mxu3 }
0x1b5a   : > { %v7846_v35 = vadd.f32 %v10712_v54, %v7845_v15 }
0x1b5c   : > { %7849 = vst.msk [vmem:[%s14159_s28 + $0x8] sm:$0xff] %vm611_vm2, %v7846_v35  ;;  %7864 = vmatpush.msrb.mxu0 %v7846_v35  ;;  %7887 = vmatpush.msra.mxu1 %v7846_v35 }
0x1b5d   : > { %7910 = vmatpush.msra.mxu2 %v7846_v35 }
0x1b5e   : > { %7865 = vmatpush.msrb.mxu0 %v7843_v31  ;;  %7888 = vmatpush.msra.mxu1 %v7843_v31 }
0x1b5f   : > { %7911 = vmatpush.msra.mxu2 %v7843_v31  ;;  %10454 = vmatmul.msk.f32.vlgmr.msrb.gmra.mxu0 %vm451_vm0, %v13686_v32 }
0x1b60   : > { %7956 = vmatpush.msra.mxu0 %v14134_v11  ;;  %7979 = vmatpush.msrb.mxu1 %v14134_v11 }
0x1b61   : > { %10456 = vmatmul.msk.f32.vlgmr.msra.gmra.mxu1 %vm451_vm0, %v13693_v7  ;;  %10458 = vmatmul.msk.f32.vlgmr.msra.gmra.mxu2 %vm451_vm0, %v13734_v53  ;;  %v7936_v32 = vpop.f32.mrf.mxu3 }
0x1b62   : > { %7957 = vmatpush.msra.mxu0 %v14129_v52  ;;  %7980 = vmatpush.msrb.mxu1 %v14129_v52 }
0x1b63   : > { %10476 = vmatmul.msk.f32.vlgmr.msra.gmra.mxu3 %vm654_vm3, %v7936_v32 }
0x1b64   : > { %8111 = vmatpush.msra.mxu1 %v13831_v0  ;;  %10479 = vmatpush.msk.msrb.mxu0 %vm618_vm1, %v10478_v2  ;;  %v10508_v0 = vld [vmem:[%s14686_s2 + $0x14] sm:$0xf] }
0x1b65   : > { %8309 = vmatpush.msra.mxu3 %v13922_v40 }
0x1b66   : > { %8112 = vmatpush.msra.mxu1 %v13843_v46 }
0x1b67   : > { %10455 = vmatmul.msk.f32.gmra.mxu0 %vm451_vm0, %v13707_v20  ;;  %8310 = vmatpush.msra.mxu3 %v13934_v59  ;;  %v14991_v59 = vld [vmem:[#allocation8_spill] sm:$0xff] }
0x1b68   : > { %8113 = vmatpush.msra.mxu1 %v13853_v44 }
0x1b69   : > { %10457 = vmatmul.msk.f32.gmra.mxu1 %vm451_vm0, %v13714_v6  ;;  %10459 = vmatmul.msk.f32.gmra.mxu2 %vm451_vm0, %v13741_v8  ;;  %v7939_v20 = vpop.f32.mrf.mxu3 }
0x1b6a   : > { %8114 = vmatpush.msra.mxu1 %v13867_v3  ;;  %8311 = vmatpush.msra.mxu3 %v13946_v63 }
0x1b6b   : > { %10477 = vmatmul.msk.f32.gmra.mxu3 %vm654_vm3, %v7939_v20 }
0x1b6c   : > { %8312 = vmatpush.msra.mxu3 %v13958_v43  ;;  %v14993_v43 = vld [vmem:[#allocation15_spill] sm:$0xff] }
0x1b6f   : > { %10462 = vmatmul.msk.f32.vlgmr.msra.gmra.mxu0 %vm451_vm0, %v13693_v7  ;;  %v10468_v7 = vld [vmem:[%s14686_s2 + $0xc] sm:$0xf] }
0x1b70   : > { %10469 = vmatpush.msk.msrb.mxu2 %vm618_vm1, %v10468_v7 }
0x1b71   : > { %10464 = vmatmul.msk.f32.vlgmr.msrb.gmra.mxu1 %vm451_vm0, %v13734_v53  ;;  %v10488_v53 = vld [vmem:[%s14686_s2 + $0x10] sm:$0xf] }
0x1b72   : > { %8239 = vmatpush.msrb.mxu1 %v13879_v51  ;;  %10489 = vmatpush.msk.msra.mxu2 %vm618_vm1, %v10488_v53  ;;  %v10535_v51 = vld [vmem:[%s14690_s6 + $0xc] sm:$0xf] }
0x1b74   : > { %8240 = vmatpush.msrb.mxu1 %v13891_v60  ;;  %v14987_v60 = vld [vmem:[#allocation4_spill] sm:$0xff] }
0x1b76   : > { %8241 = vmatpush.msrb.mxu1 %v13903_v61 }
0x1b77   : > { %10463 = vmatmul.msk.f32.gmra.mxu0 %vm451_vm0, %v13714_v6  ;;  %v10498_v6 = vld [vmem:[%s14688_s4 + $0x10] sm:$0xf] }
0x1b78   : > { %8242 = vmatpush.msrb.mxu1 %v13913_v26  ;;  %10499 = vmatpush.msk.msra.mxu0 %vm618_vm1, %v10498_v6 }
0x1b79   : > { %10465 = vmatmul.msk.f32.gmra.mxu1 %vm451_vm0, %v13741_v8  ;;  %v10518_v8 = vld [vmem:[%s14688_s4 + $0x14] sm:$0xf] }
0x1b81   : > { %10486 = vmatmul.msk.f32.vlgmr.msra.gmra.mxu1 %vm654_vm3, %v7936_v32 }
0x1b82   : > { %8367 = vmatpush.msra.mxu1 %v13927_v42  ;;  %v14990_v42 = vld [vmem:[#allocation7_spill] sm:$0xff] }
0x1b84   : > { %8368 = vmatpush.msra.mxu1 %v13939_v13 }
0x1b86   : > { %8369 = vmatpush.msra.mxu1 %v13951_v55  ;;  %v14992_v55 = vld [vmem:[#allocation10_spill] sm:$0xff] }
0x1b88   : > { %8370 = vmatpush.msra.mxu1 %v13963_v27  ;;  %v14994_v27 = vld [vmem:[#allocation16_spill] sm:$0xff] }
0x1b89   : > { %10487 = vmatmul.msk.f32.gmra.mxu1 %vm654_vm3, %v7939_v20 }
0x1bdc   : > { %v7867_v46 = vpop.f32.mrf.mxu0 }
0x1bdd   : > { %10470 = vmatmul.msk.f32.vlgmr.msrb.gmra.mxu2 %vm611_vm2, %v7867_v46  ;;  %10480 = vmatmul.msk.f32.vlgmr.msrb.gmra.mxu0 %vm611_vm2, %v7867_v46 }
0x1bde   : > { %10519 = vmatpush.msk.msrb.mxu0 %vm618_vm1, %v10518_v8  ;;  %10509 = vmatpush.msk.msrb.mxu2 %vm618_vm1, %v10508_v0  ;;  %v14235_v3 = vpop.f32.mrf.mxu1 }
0x1be4   : > { %v7870_v44 = vpop.f32.mrf.mxu0  ;;  %v14261_v26 = vpop.f32.mrf.mxu2 }
0x1be5   : > { %10471 = vmatmul.msk.f32.gmra.mxu2 %vm611_vm2, %v7870_v44  ;;  %10481 = vmatmul.msk.f32.gmra.mxu0 %vm611_vm2, %v7870_v44 }
0x1be6   : > { %v14248_v24 = vpop.f32.mrf.mxu1  ;;  %v8055_v33 = vpop.f32.mrf.mxu3 }
0x1bec   : > { %v7959_v1 = vpop.f32.mrf.mxu0  ;;  %v14271_v13 = vpop.f32.mrf.mxu2 }
0x1bed   : > { %10490 = vmatmul.msk.f32.vlgmr.msra.gmra.mxu2 %vm611_vm2, %v14235_v3  ;;  %10496 = vmatmul.msk.f32.vlgmr.msrb.gmra.mxu3 %vm654_vm3, %v7959_v1 }
0x1bee   : > { %10500 = vmatmul.msk.f32.vlgmr.msra.gmra.mxu0 %vm611_vm2, %v14235_v3  ;;  %10506 = vmatmul.msk.f32.vlgmr.msrb.gmra.mxu1 %vm654_vm3, %v7959_v1  ;;  %v7982_v40 = vpop.f32.mrf.mxu1  ;;  %v14297_v62 = vpop.f32.mrf.mxu3 }
0x1bef   : > { %10536 = vmatpush.msk.msrb.mxu3 %vm618_vm1, %v10535_v51  ;;  %8536 = vmatpush.msra.mxu0 %v13993_v4  ;;  %v14995_v4 = vld [vmem:[#allocation17_spill] sm:$0xff] }
0x1bf1   : > { %8537 = vmatpush.msra.mxu0 %v14987_v60 }
0x1bf3   : > { %8538 = vmatpush.msra.mxu0 %v14988_v49 }
0x1bf4   : > { %v7962_v61 = vpop.f32.mrf.mxu0 }
0x1bf5   : > { %10491 = vmatmul.msk.f32.gmra.mxu2 %vm611_vm2, %v14248_v24  ;;  %10497 = vmatmul.msk.f32.gmra.mxu3 %vm654_vm3, %v7962_v61 }
0x1bf6   : > { %10501 = vmatmul.msk.f32.gmra.mxu0 %vm611_vm2, %v14248_v24  ;;  %10507 = vmatmul.msk.f32.gmra.mxu1 %vm654_vm3, %v7962_v61  ;;  %v7985_v63 = vpop.f32.mrf.mxu1 }
0x1bf7   : > { %8539 = vmatpush.msra.mxu0 %v14989_v37 }
0x1bfd   : > { %10510 = vmatmul.msk.f32.vlgmr.msrb.gmra.mxu2 %vm611_vm2, %v14261_v26  ;;  %10516 = vmatmul.msk.f32.vlgmr.msra.gmra.mxu3 %vm654_vm3, %v7982_v40 }
0x1bfe   : > { %10520 = vmatmul.msk.f32.vlgmr.msrb.gmra.mxu0 %vm611_vm2, %v14261_v26  ;;  %10526 = vmatmul.msk.f32.vlgmr.msra.gmra.mxu1 %vm654_vm3, %v7982_v40  ;;  %v8116_v19 = vpop.f32.mrf.mxu1 }
0x1bff   : > { %8623 = vmatpush.msra.mxu3 %v14990_v42 }
0x1c01   : > { %8624 = vmatpush.msra.mxu3 %v14991_v59 }
0x1c03   : > { %8625 = vmatpush.msra.mxu3 %v14992_v55 }
0x1c05   : > { %10511 = vmatmul.msk.f32.gmra.mxu2 %vm611_vm2, %v14271_v13  ;;  %10517 = vmatmul.msk.f32.gmra.mxu3 %vm654_vm3, %v7985_v63 }
0x1c06   : > { %10521 = vmatmul.msk.f32.gmra.mxu0 %vm611_vm2, %v14271_v13  ;;  %10527 = vmatmul.msk.f32.gmra.mxu1 %vm654_vm3, %v7985_v63  ;;  %v8119_v22 = vpop.f32.mrf.mxu1 }
0x1c07   : > { %8626 = vmatpush.msra.mxu3 %v14993_v43 }
0x1c0d   : > { %10537 = vmatmul.msk.f32.vlgmr.msrb.gmra.mxu3 %vm611_vm2, %v7867_v46 }
0x1c0e   : > { %8759 = vmatpush.msrb.mxu3 %v14104_v18  ;;  %v10713_v18 = vld [vmem:[%s14693_s9 + $0x1] ss:$0 sm:$0xff] }
0x1c10   : > { %8760 = vmatpush.msrb.mxu3 %v14110_v29 }
0x1c12   : > { %8761 = vmatpush.msrb.mxu3 %v14994_v27 }
0x1c14   : > { %8762 = vmatpush.msrb.mxu3 %v14995_v4 }
0x1c15   : > { %10538 = vmatmul.msk.f32.gmra.mxu3 %vm611_vm2, %v7870_v44 }
0x1c5a   : > { %v8084_v48 = vpop.f32.mrf.mxu0 }
0x1c5b   : > { %v8093_v29 = vadd.f32 %v10713_v18, %v8084_v48 }
0x1c5d   : > { %v8122_v5 = vadd.f32 %v8116_v19, %v8093_v29  ;;  %v10547_v29 = vld [vmem:[%s14690_s6 + $0x10] sm:$0xf] }
0x1c60   : > { %v8017_v17 = vpop.f32.mrf.mxu2 }
0x1c61   : > { %v8026_v12 = vadd.f32 %v14295_v50, %v8017_v17 }
0x1c62   : > { %v8087_v30 = vpop.f32.mrf.mxu0 }
0x1c63   : > { %v8094_v9 = vadd.f32 %v10713_v18, %v8087_v30  ;;  %v8061_v23 = vadd.f32 %v8055_v33, %v8026_v12  ;;  %v14997_v12 = vld [vmem:[#allocation19_spill] sm:$0xff] }
0x1c65   : > { %v8123_v36 = vadd.f32 %v8119_v22, %v8094_v9  ;;  %v14334_v9 = vld [vmem:[%s14685_s1 + $0x8] sm:$0xff] }
0x1c68   : > { %v14287_v14 = vpop.f32.mrf.mxu2 }
0x1c6b   : > { %v8215_v21 = vpop.f32.mrf.mxu0  ;;  %v8244_v45 = vpop.f32.mrf.mxu1 }
0x1c6c   : > { %v8221_v47 = vadd.f32 %v8215_v21, %v8122_v5  ;;  %v14996_v5 = vld [vmem:[#allocation18_spill] sm:$0xff] }
0x1c6e   : > { %v8250_v25 = vadd.f32 %v8244_v45, %v8221_v47  ;;  %v14998_v47 = vld [vmem:[#allocation20_spill] sm:$0xff] }
0x1c70   : > { %v8151_v10 = vpop.f32.mrf.mxu2  ;;  %v8186_v56 = vpop.f32.mrf.mxu3 }
0x1c71   : > { %v8157_v28 = vadd.f32 %v8151_v10, %v8061_v23  ;;  %v10559_v10 = vld [vmem:[%s14690_s6 + $0x14] sm:$0xf]  ;;  %v14341_v23 = vld [vmem:[%s14685_s1 + $0x18] sm:$0xff] }
0x1c73   : > { %v8218_v38 = vpop.f32.mrf.mxu0  ;;  %v8247_v34 = vpop.f32.mrf.mxu1  ;;  %v8192_v31 = vadd.f32 %v8186_v56, %v8157_v28 }
0x1c74   : > { %v8222_v54 = vadd.f32 %v8218_v38, %v8123_v36  ;;  %v14315_v38 = vld [vmem:[%s14685_s1] sm:$0xff] }
0x1c76   : > { %v8251_v32 = vadd.f32 %v8247_v34, %v8222_v54  ;;  %v14322_v34 = vld [vmem:[%s14685_s1 + $0x10] sm:$0xff] }
0x1c78   : > { %v14300_v16 = vpop.f32.mrf.mxu2 }
0x1c7b   : > { %v8343_v41 = vpop.f32.mrf.mxu0  ;;  %v8372_v58 = vpop.f32.mrf.mxu1 }
0x1c7c   : > { %v8349_v57 = vadd.f32 %v8343_v41, %v8250_v25  ;;  %v14999_v25 = vld [vmem:[#allocation14_spill] sm:$0xff] }
0x1c7e   : > { %v8378_v39 = vadd.f32 %v8372_v58, %v8349_v57 }
0x1c80   : > { %v10530_v15 = vmul.f32 -1.442695, %v8378_v39  ;;  %v8279_v35 = vpop.f32.mrf.mxu2  ;;  %v8189_v39 = vpop.f32.mrf.mxu3 }
0x1c81   : > { %v14302_v2 = vadd.f32 %v8279_v35, %v8192_v31  ;;  %v8027_v31 = vadd.f32 %v14295_v50, %v14287_v14 }
0x1c82   : > { %10901 = vpow2.f32 %v10530_v15 }
0x1c83   : > { %v8346_v7 = vpop.f32.mrf.mxu0  ;;  %v8375_v20 = vpop.f32.mrf.mxu1  ;;  %v8062_v15 = vadd.f32 %v14297_v62, %v8027_v31 }
0x1c84   : > { %v8350_v6 = vadd.f32 %v8346_v7, %v8251_v32 }
0x1c85   : > { %v8158_v32 = vadd.f32 %v14300_v16, %v8062_v15  ;;  %v10715_v16 = vld [vmem:[%s14694_s10 + $0x1] ss:$0 sm:$0xff] }
0x1c86   : > { %v8379_v53 = vadd.f32 %v8375_v20, %v8350_v6 }
0x1c87   : > { %v8193_v20 = vadd.f32 %v8189_v39, %v8158_v32 }
0x1c88   : > { %v10902_v8 = vpop.eup %10901  ;;  %v10531_v0 = vmul.f32 -1.442695, %v8379_v53  ;;  %v8282_v28 = vpop.f32.mrf.mxu2 }
0x1c89   : > { %v8424_v46 = vadd.f32 1.0, %v10902_v8  ;;  %v8314_v35 = vpop.f32.mrf.mxu3  ;;  %v8286_v53 = vadd.f32 %v8282_v28, %v8193_v20 }
0x1c8a   : > { %10903 = vpow2.f32 %v10531_v0  ;;  %v8320_v7 = vadd.f32 %v8314_v35, %v14302_v2 }
0x1c8b   : > { %10905 = vrcp.f32 %v8424_v46  ;;  %vm8431_vm5 = vweird.f32 %v8424_v46  ;;  %v8437_v55 = vand.u32 2147483648, %v8424_v46  ;;  %v8435_v4 = vand.u32 2147483647, %v8424_v46 }
0x1c8c   : > { %v10528_v6 = vmul.f32 -1.442695, %v8320_v7 }
0x1c8d   : > { %v8438_v22 = vor.u32 1.1754944e-38, %v8437_v55  ;;  %vm8436_vm11 = vcmp.eq.f32.partialorder %v8435_v4, 8.507059e+37 }
0x1c90   : > { %v10904_v44 = vpop.eup %10903 }
0x1c91   : > { %v10906_v1 = vpop.eup %10905  ;;  %v8425_v51 = vadd.f32 1.0, %v10904_v44  ;;  %v8317_v8 = vpop.f32.mrf.mxu3 }
0x1c92   : > { %v8427_v60 = vmul.f32 %v10906_v1, %v8424_v46  ;;  %vm8432_vm4 = vweird.f32 %v10906_v1  ;;  %v8321_v0 = vadd.f32 %v8317_v8, %v8286_v53 }
0x1c93   : > { %10907 = vrcp.f32 %v8425_v51  ;;  %v8452_v63 = vand.u32 2147483648, %v8425_v51  ;;  %v8450_v27 = vand.u32 2147483647, %v8425_v51  ;;  %vm8433_vm7 = vmor %vm8431_vm5, %vm8432_vm4  ;;  %vm8446_vm8 = vweird.f32 %v8425_v51 }
0x1c94   : > { %v8428_v49 = vsub.f32 1.0, %v8427_v60  ;;  %10909 = vpow2.f32 %v10528_v6  ;;  %v10529_v46 = vmul.f32 -1.442695, %v8321_v0 }
0x1c95   : > { %v8453_v17 = vor.u32 1.1754944e-38, %v8452_v63  ;;  %vm8451_vm10 = vcmp.eq.f32.partialorder %v8450_v27, 8.507059e+37 }
0x1c96   : > { %v8429_v61 = vmul.f32 %v10906_v1, %v8428_v49  ;;  %10911 = vpow2.f32 %v10529_v46 }
0x1c98   : > { %v8430_v59 = vadd.f32 %v10906_v1, %v8429_v61 }
0x1c99   : > { %v10908_v37 = vpop.eup %10907 }
0x1c9a   : > { %v8442_v40 = vmul.f32 %v10908_v37, %v8425_v51  ;;  %vm8447_vm6 = vweird.f32 %v10908_v37  ;;  %v8434_v48 = vsel %vm8433_vm7, %v10906_v1, %v8430_v59  ;;  %v10910_v44 = vpop.eup %10909  ;;  %v8503_v51 = vpop.f32.mrf.mxu3 }
0x1c9b   : > { %vm8448_vm9 = vmor %vm8446_vm8, %vm8447_vm6  ;;  %v8439_v21 = vsel %vm8436_vm11, %v8438_v22, %v8434_v48  ;;  %v8386_v1 = vadd.f32 1.0, %v10910_v44  ;;  %v8512_v61 = vadd.f32 %v10715_v16, %v8503_v51 }
0x1c9c   : > { %v8443_v42 = vsub.f32 1.0, %v8442_v40  ;;  %v8456_v18 = vmul.f32 %v8439_v21, %v14129_v52  ;;  %v10912_v14 = vpop.eup %10911 }
0x1c9d   : > { %10913 = vrcp.f32 %v8386_v1  ;;  %v8387_v50 = vadd.f32 1.0, %v10912_v14  ;;  %vm8393_vm13 = vweird.f32 %v8386_v1  ;;  %v8397_v21 = vand.u32 2147483647, %v8386_v1  ;;  %v10594_v14 = vld [vmem:[%s14687_s3 + $0x78] sm:$0xff] }
0x1c9e   : > { %v8444_v43 = vmul.f32 %v10908_v37, %v8443_v42 }
0x1c9f   : > { %10915 = vrcp.f32 %v8387_v50  ;;  %vm8398_vm15 = vcmp.eq.f32.partialorder %v8397_v21, 8.507059e+37  ;;  %vm8408_vm5 = vweird.f32 %v8387_v50  ;;  %v10634_v21 = vld [vmem:[%s14687_s3 + $0xb8] sm:$0xff] }
0x1ca0   : > { %v8445_v19 = vadd.f32 %v10908_v37, %v8444_v43 }
0x1ca2   : > { %v8449_v30 = vsel %vm8448_vm9, %v10908_v37, %v8445_v19  ;;  %v8506_v2 = vpop.f32.mrf.mxu3 }
0x1ca3   : > { %v8454_v33 = vsel %vm8451_vm10, %v8453_v17, %v8449_v30  ;;  %v10914_v62 = vpop.eup %10913  ;;  %v8513_v4 = vadd.f32 %v10715_v16, %v8506_v2  ;;  %v10604_v16 = vld [vmem:[%s14689_s5 + $0x78] sm:$0xff]  ;;  %v10592_v2 = vld [vmem:[%s14687_s3 + $0x68] sm:$0xff] }
0x1ca4   : > { %v8457_v45 = vmul.f32 %v8454_v33, %v14134_v11  ;;  %v8389_v49 = vmul.f32 %v10914_v62, %v8386_v1  ;;  %vm8394_vm12 = vweird.f32 %v10914_v62  ;;  %v8399_v33 = vand.u32 2147483648, %v8386_v1 }
0x1ca5   : > { %v10916_v42 = vpop.eup %10915  ;;  %vm8395_vm14 = vmor %vm8393_vm13, %vm8394_vm12 }
0x1ca6   : > { %8473 = vmatpush.msra.mxu2 %v8457_v45  ;;  %8563 = vmatpush.msrb.mxu1 %v8457_v45  ;;  %v8390_v40 = vsub.f32 1.0, %v8389_v49  ;;  %v8404_v55 = vmul.f32 %v10916_v42, %v8387_v50  ;;  %vm8409_vm4 = vweird.f32 %v10916_v42  ;;  %v10603_v49 = vld [vmem:[%s14689_s5 + $0x70] sm:$0xff] }
0x1ca7   : > { %8650 = vmatpush.msrb.mxu0 %v8457_v45  ;;  %vm8410_vm6 = vmor %vm8408_vm5, %vm8409_vm4 }
0x1ca8   : > { %8474 = vmatpush.msra.mxu2 %v8456_v18  ;;  %8564 = vmatpush.msrb.mxu1 %v8456_v18  ;;  %v8391_v27 = vmul.f32 %v10914_v62, %v8390_v40  ;;  %v8405_v17 = vsub.f32 1.0, %v8404_v55  ;;  %v10591_v40 = vld [vmem:[%s14687_s3 + $0x60] sm:$0xff]  ;;  %v10614_v55 = vld [vmem:[%s14687_s3 + $0x98] sm:$0xff] }
0x1ca9   : > { %8651 = vmatpush.msrb.mxu0 %v8456_v18  ;;  %10533 = vmatmul.msk.f32.vlgmr.msra.gmra.mxu2 %vm451_vm0, %v14315_v38 }
0x1caa   : > { %10545 = vmatmul.msk.f32.vlgmr.msrb.gmra.mxu1 %vm451_vm0, %v14322_v34  ;;  %10548 = vmatpush.msk.msrb.mxu2 %vm618_vm1, %v10547_v29  ;;  %v8392_v30 = vadd.f32 %v10914_v62, %v8391_v27  ;;  %v10613_v27 = vld [vmem:[%s14687_s3 + $0x90] sm:$0xff] }
0x1cab   : > { %10560 = vmatpush.msk.msra.mxu1 %vm618_vm1, %v10559_v10 }
0x1cac   : > { %8710 = vmatpush.msra.mxu2 %v14996_v5  ;;  %v8396_v10 = vsel %vm8395_vm14, %v10914_v62, %v8392_v30  ;;  %v10593_v62 = vld [vmem:[%s14687_s3 + $0x70] sm:$0xff]  ;;  %v10622_v30 = vld [vmem:[%s14689_s5 + $0x88] sm:$0xff] }
0x1cae   : > { %8711 = vmatpush.msra.mxu2 %v14997_v12  ;;  %v8406_v12 = vmul.f32 %v10916_v42, %v8405_v17  ;;  %v10607_v17 = vld [vmem:[%s14686_s2 + $0x10] sm:$0xf] }
0x1cb0   : > { %8712 = vmatpush.msra.mxu2 %v14998_v47  ;;  %v8400_v47 = vor.u32 1.1754944e-38, %v8399_v33  ;;  %v10621_v33 = vld [vmem:[%s14689_s5 + $0x80] sm:$0xff] }
0x1cb1   : > { %10534 = vmatmul.msk.f32.gmra.mxu2 %vm451_vm0, %v14334_v9 }
0x1cb2   : > { %10546 = vmatmul.msk.f32.gmra.mxu1 %vm451_vm0, %v14341_v23  ;;  %8713 = vmatpush.msra.mxu2 %v14999_v25 }
0x1cb9   : > { %10549 = vmatmul.msk.f32.vlgmr.msrb.gmra.mxu2 %vm611_vm2, %v14235_v3 }
0x1cba   : > { %10561 = vmatmul.msk.f32.vlgmr.msra.gmra.mxu1 %vm611_vm2, %v14261_v26  ;;  %v14368_v26 = vld [vmem:[%s14685_s1 + $0x28] sm:$0xff] }
0x1cc1   : > { %10550 = vmatmul.msk.f32.gmra.mxu2 %vm611_vm2, %v14248_v24  ;;  %v14361_v24 = vld [vmem:[%s14685_s1 + $0x20] sm:$0xff] }
0x1cc2   : > { %10562 = vmatmul.msk.f32.gmra.mxu1 %vm611_vm2, %v14271_v13 }
0x1d27   : > { %v8566_v41 = vpop.f32.mrf.mxu1 }
0x1d28   : > { %10555 = vmatmul.msk.f32.vlgmr.msra.gmra.mxu3 %vm654_vm3, %v8566_v41  ;;  %v8401_v41 = vsel %vm8398_vm15, %v8400_v47, %v8396_v10  ;;  %v10632_v10 = vld [vmem:[%s14687_s3 + $0xa8] sm:$0xff]  ;;  %v10627_v47 = vld [vmem:[%s14686_s2 + $0x14] sm:$0xf] }
0x1d2c   : > { %v8476_v58 = vpop.f32.mrf.mxu2 }
0x1d2d   : > { %10543 = vmatmul.msk.f32.vlgmr.msra.gmra.mxu0 %vm654_vm3, %v8476_v58  ;;  %v8407_v58 = vadd.f32 %v10916_v42, %v8406_v12  ;;  %v10637_v12 = vld [vmem:[%s14688_s4 + $0x14] sm:$0xf] }
0x1d2f   : > { %v8569_v36 = vpop.f32.mrf.mxu1 }
0x1d30   : > { %10556 = vmatmul.msk.f32.gmra.mxu3 %vm654_vm3, %v8569_v36  ;;  %v8414_v36 = vand.u32 2147483648, %v8387_v50 }
0x1d32   : > { %v8415_v15 = vor.u32 1.1754944e-38, %v8414_v36 }
0x1d34   : > { %v8479_v3 = vpop.f32.mrf.mxu2 }
0x1d35   : > { %10544 = vmatmul.msk.f32.gmra.mxu0 %vm654_vm3, %v8479_v3 }
0x1d37   : > { %v8680_v22 = vpop.f32.mrf.mxu1 }
0x1d3c   : > { %v8593_v60 = vpop.f32.mrf.mxu2 }
0x1d3d   : > { %10557 = vmatmul.msk.f32.vlgmr.msrb.gmra.mxu0 %vm451_vm0, %v14361_v24 }
0x1d3f   : > { %v8683_v3 = vpop.f32.mrf.mxu1 }
0x1d44   : > { %v8596_v43 = vpop.f32.mrf.mxu2 }
0x1d45   : > { %10558 = vmatmul.msk.f32.gmra.mxu0 %vm451_vm0, %v14368_v26 }
0x1daa   : > { %v8541_v13 = vpop.f32.mrf.mxu0 }
0x1dab   : > { %v8547_v37 = vadd.f32 %v8541_v13, %v8512_v61  ;;  %v8628_v59 = vpop.f32.mrf.mxu3  ;;  %v8725_v13 = vsub.f32 1.0, %v8401_v41 }
0x1dad   : > { %v8599_v63 = vadd.f32 %v8593_v60, %v8547_v37  ;;  %v8727_v32 = vmul.f32 %v8725_v13, %v14129_v52  ;;  %v10716_v52 = vld [vmem:[%s14696_s12] ss:$0 sm:$0xff]  ;;  %v10597_v60 = vld [vmem:[%s14688_s4 + $0xc] sm:$0xf] }
0x1dae   : > { %v10587_v37 = vld [vmem:[%s14686_s2 + $0xc] sm:$0xf] }
0x1daf   : > { %v8634_v19 = vadd.f32 %v8628_v59, %v8599_v63  ;;  %v10601_v59 = vld [vmem:[%s14689_s5 + $0x60] sm:$0xff]  ;;  %v10654_v13 = vld [vmem:[%s14690_s6 + $0xc] sm:$0xf] }
0x1db1   : > { %v8686_v18 = vadd.f32 %v8680_v22, %v8634_v19  ;;  %v10623_v19 = vld [vmem:[%s14689_s5 + $0x90] sm:$0xff]  ;;  %v10611_v22 = vld [vmem:[%s14687_s3 + $0x80] sm:$0xff] }
0x1db2   : > { %v8544_v57 = vpop.f32.mrf.mxu0 }
0x1db3   : > { %v8548_v48 = vadd.f32 %v8544_v57, %v8513_v4  ;;  %v8631_v29 = vpop.f32.mrf.mxu3  ;;  %v8412_v57 = vand.u32 2147483647, %v8387_v50  ;;  %v10617_v4 = vld [vmem:[%s14688_s4 + $0x10] sm:$0xf] }
0x1db5   : > { %v8600_v45 = vadd.f32 %v8596_v43, %v8548_v48  ;;  %vm8413_vm7 = vcmp.eq.f32.partialorder %v8412_v57, 8.507059e+37  ;;  %v10624_v43 = vld [vmem:[%s14689_s5 + $0x98] sm:$0xff]  ;;  %v10612_v48 = vld [vmem:[%s14687_s3 + $0x88] sm:$0xff] }
0x1db7   : > { %v8635_v28 = vadd.f32 %v8631_v29, %v8600_v45  ;;  %v10633_v45 = vld [vmem:[%s14687_s3 + $0xb0] sm:$0xff] }
0x1db8   : > { %v10643_v29 = vld [vmem:[%s14689_s5 + $0xb0] sm:$0xff] }
0x1dba   : > { %v8653_v56 = vpop.f32.mrf.mxu0 }
0x1dbb   : > { %10567 = vmatmul.msk.f32.vlgmr.msra.gmra.mxu2 %vm654_vm3, %v8653_v56  ;;  %v8687_v56 = vadd.f32 %v8683_v3, %v8635_v28  ;;  %v10631_v28 = vld [vmem:[%s14687_s3 + $0xa0] sm:$0xff] }
0x1dc2   : > { %v8656_v54 = vpop.f32.mrf.mxu0 }
0x1dc3   : > { %10568 = vmatmul.msk.f32.gmra.mxu2 %vm654_vm3, %v8656_v54  ;;  %v8411_v54 = vsel %vm8410_vm6, %v10916_v42, %v8407_v58  ;;  %v10602_v42 = vld [vmem:[%s14689_s5 + $0x68] sm:$0xff] }
0x1dc4   : > { %v8416_v20 = vsel %vm8413_vm7, %v8415_v15, %v8411_v54 }
0x1dc5   : > { %v8726_v53 = vsub.f32 1.0, %v8416_v20 }
0x1dc7   : > { %v8728_v0 = vmul.f32 %v8726_v53, %v14134_v11 }
0x1e3e   : > { %v8715_v5 = vpop.f32.mrf.mxu2 }
0x1e3f   : > { %v8721_v25 = vadd.f32 %v8715_v5, %v8686_v18  ;;  %v10644_v18 = vld [vmem:[%s14689_s5 + $0xb8] sm:$0xff]  ;;  %v10642_v5 = vld [vmem:[%s14689_s5 + $0xa8] sm:$0xff] }
0x1e41   : > { %10917 = vtanh.f32 %v8721_v25 }
0x1e46   : > { %v8718_v39 = vpop.f32.mrf.mxu2 }
0x1e47   : > { %v10918_v31 = vpop.eup %10917  ;;  %v8722_v35 = vadd.f32 %v8718_v39, %v8687_v56 }
0x1e48   : > { %v8729_v7 = vmul.f32 %v10918_v31, %v8401_v41  ;;  %v10641_v41 = vld [vmem:[%s14689_s5 + $0xa0] sm:$0xff] }
0x1e49   : > { %10919 = vtanh.f32 %v8722_v35 }
0x1e4a   : > { %v14383_v6 = vadd.f32 %v8729_v7, %v8727_v32 }
0x1e4c   : > { %10569 = vmatmul.msk.f32.vlgmr.msrb.gmra.mxu3 %vm654_vm3, %v14383_v6 }
0x1e4f   : > { %v10920_v8 = vpop.eup %10919 }
0x1e50   : > { %v8730_v46 = vmul.f32 %v10920_v8, %v8416_v20  ;;  %v10718_v8 = vld [vmem:[%s14692_s8 + $0x1] ss:$0 sm:$0xff] }
0x1e52   : > { %v14388_v44 = vadd.f32 %v8730_v46, %v8728_v0 }
0x1e54   : > { %10570 = vmatmul.msk.f32.gmra.mxu3 %vm654_vm3, %v14388_v44 }
0x1e55   : > { %8856 = vmatpush.msra.mxu3 %v14388_v44 }
0x1e57   : > { %8857 = vmatpush.msra.mxu3 %v14383_v6 }
0x1e59   : > { %8973 = vmatpush.msrb.mxu3 %v10594_v14 }
0x1e5b   : > { %8974 = vmatpush.msrb.mxu3 %v10593_v62 }
0x1e5c   : > { %10579 = vmatmul.msk.f32.vlgmr.msra.gmra.mxu3 %vm451_vm0, %v14315_v38 }
0x1e5d   : > { %8975 = vmatpush.msrb.mxu3 %v10592_v2 }
0x1e5f   : > { %8976 = vmatpush.msrb.mxu3 %v10591_v40 }
0x1e61   : > { %9104 = vmatpush.msra.mxu3 %v10614_v55 }
0x1e63   : > { %9105 = vmatpush.msra.mxu3 %v10613_v27 }
0x1e64   : > { %10580 = vmatmul.msk.f32.gmra.mxu3 %vm451_vm0, %v14334_v9 }
0x1e65   : > { %9106 = vmatpush.msra.mxu3 %v10612_v48 }
0x1e67   : > { %9107 = vmatpush.msra.mxu3 %v10611_v22 }
0x1ecf   : > { %v8764_v11 = vpop.f32.mrf.mxu3 }
0x1ed0   : > { %v8765_v1 = vadd.f32 %v10716_v52, %v8764_v11 }
0x1ed2   : > { %10571 = vst.msk [vmem:[%s14159_s28 + $0x10] sm:$0xff] %vm611_vm2, %v8765_v1 }
0x1ed7   : > { %v8767_v51 = vpop.f32.mrf.mxu3 }
0x1ed8   : > { %v8768_v50 = vadd.f32 %v10716_v52, %v8767_v51  ;;  %v10717_v51 = vld [vmem:[%s14693_s9 + $0x1] ss:$0 sm:$0xff] }
0x1eda   : > { %10572 = vst.msk [vmem:[%s14159_s28 + $0x18] sm:$0xff] %vm611_vm2, %v8768_v50  ;;  %8787 = vmatpush.msra.mxu0 %v8768_v50  ;;  %8810 = vmatpush.msrb.mxu1 %v8768_v50 }
0x1edb   : > { %8833 = vmatpush.msrb.mxu2 %v8768_v50 }
0x1edc   : > { %8788 = vmatpush.msra.mxu0 %v8765_v1  ;;  %8811 = vmatpush.msrb.mxu1 %v8765_v1 }
0x1edd   : > { %8834 = vmatpush.msrb.mxu2 %v8765_v1  ;;  %10573 = vmatmul.msk.f32.vlgmr.msra.gmra.mxu0 %vm451_vm0, %v14315_v38 }
0x1ede   : > { %8879 = vmatpush.msrb.mxu0 %v14388_v44  ;;  %8902 = vmatpush.msra.mxu1 %v14388_v44 }
0x1edf   : > { %10575 = vmatmul.msk.f32.vlgmr.msrb.gmra.mxu1 %vm451_vm0, %v14322_v34  ;;  %10577 = vmatmul.msk.f32.vlgmr.msrb.gmra.mxu2 %vm451_vm0, %v14361_v24  ;;  %v8859_v61 = vpop.f32.mrf.mxu3 }
0x1ee0   : > { %8880 = vmatpush.msrb.mxu0 %v14383_v6  ;;  %8903 = vmatpush.msra.mxu1 %v14383_v6 }
0x1ee1   : > { %10588 = vmatpush.msk.msra.mxu2 %vm618_vm1, %v10587_v37  ;;  %10595 = vmatmul.msk.f32.vlgmr.msrb.gmra.mxu3 %vm654_vm3, %v8859_v61 }
0x1ee2   : > { %9034 = vmatpush.msrb.mxu1 %v10604_v16  ;;  %10598 = vmatpush.msk.msra.mxu0 %vm618_vm1, %v10597_v60 }
0x1ee3   : > { %10608 = vmatpush.msk.msrb.mxu2 %vm618_vm1, %v10607_v17  ;;  %9232 = vmatpush.msrb.mxu3 %v10634_v21 }
0x1ee4   : > { %9035 = vmatpush.msrb.mxu1 %v10603_v49 }
0x1ee5   : > { %10574 = vmatmul.msk.f32.gmra.mxu0 %vm451_vm0, %v14334_v9  ;;  %9233 = vmatpush.msrb.mxu3 %v10633_v45 }
0x1ee6   : > { %9036 = vmatpush.msrb.mxu1 %v10602_v42 }
0x1ee7   : > { %10576 = vmatmul.msk.f32.gmra.mxu1 %vm451_vm0, %v14341_v23  ;;  %10578 = vmatmul.msk.f32.gmra.mxu2 %vm451_vm0, %v14368_v26  ;;  %v8862_v63 = vpop.f32.mrf.mxu3 }
0x1ee8   : > { %9037 = vmatpush.msrb.mxu1 %v10601_v59  ;;  %9234 = vmatpush.msrb.mxu3 %v10632_v10 }
0x1ee9   : > { %10596 = vmatmul.msk.f32.gmra.mxu3 %vm654_vm3, %v8862_v63 }
0x1eea   : > { %9235 = vmatpush.msrb.mxu3 %v10631_v28 }
0x1eed   : > { %10581 = vmatmul.msk.f32.vlgmr.msrb.gmra.mxu0 %vm451_vm0, %v14322_v34 }
0x1eee   : > { %10618 = vmatpush.msk.msrb.mxu0 %vm618_vm1, %v10617_v4 }
0x1eef   : > { %10583 = vmatmul.msk.f32.vlgmr.msra.gmra.mxu1 %vm451_vm0, %v14361_v24 }
0x1ef0   : > { %9162 = vmatpush.msra.mxu1 %v10624_v43 }
0x1ef2   : > { %9163 = vmatpush.msra.mxu1 %v10623_v19 }
0x1ef4   : > { %9164 = vmatpush.msra.mxu1 %v10622_v30 }
0x1ef5   : > { %10582 = vmatmul.msk.f32.gmra.mxu0 %vm451_vm0, %v14341_v23 }
0x1ef6   : > { %9165 = vmatpush.msra.mxu1 %v10621_v33  ;;  %v10661_v33 = vld [vmem:[%s14691_s7 + $0x78] sm:$0xff] }
0x1ef7   : > { %10584 = vmatmul.msk.f32.gmra.mxu1 %vm451_vm0, %v14368_v26 }
0x1eff   : > { %10605 = vmatmul.msk.f32.vlgmr.msrb.gmra.mxu1 %vm654_vm3, %v8859_v61 }
0x1f00   : > { %9290 = vmatpush.msrb.mxu1 %v10644_v18 }
0x1f02   : > { %9291 = vmatpush.msrb.mxu1 %v10643_v29  ;;  %v10660_v29 = vld [vmem:[%s14691_s7 + $0x70] sm:$0xff] }
0x1f04   : > { %9292 = vmatpush.msrb.mxu1 %v10642_v5  ;;  %v10659_v5 = vld [vmem:[%s14691_s7 + $0x68] sm:$0xff] }
0x1f06   : > { %9293 = vmatpush.msrb.mxu1 %v10641_v41 }
0x1f07   : > { %10606 = vmatmul.msk.f32.gmra.mxu1 %vm654_vm3, %v8862_v63 }
0x1f5a   : > { %v8790_v25 = vpop.f32.mrf.mxu0 }
0x1f5b   : > { %10589 = vmatmul.msk.f32.vlgmr.msra.gmra.mxu2 %vm611_vm2, %v8790_v25  ;;  %10599 = vmatmul.msk.f32.vlgmr.msra.gmra.mxu0 %vm611_vm2, %v8790_v25 }
0x1f5c   : > { %10638 = vmatpush.msk.msra.mxu0 %vm618_vm1, %v10637_v12  ;;  %10628 = vmatpush.msk.msra.mxu2 %vm618_vm1, %v10627_v47  ;;  %v14531_v36 = vpop.f32.mrf.mxu1  ;;  %v10658_v47 = vld [vmem:[%s14691_s7 + $0x60] sm:$0xff] }
0x1f62   : > { %v8793_v58 = vpop.f32.mrf.mxu0  ;;  %v14553_v54 = vpop.f32.mrf.mxu2 }
0x1f63   : > { %10590 = vmatmul.msk.f32.gmra.mxu2 %vm611_vm2, %v8793_v58  ;;  %10600 = vmatmul.msk.f32.gmra.mxu0 %vm611_vm2, %v8793_v58 }
0x1f64   : > { %v14544_v57 = vpop.f32.mrf.mxu1  ;;  %v8978_v46 = vpop.f32.mrf.mxu3 }
0x1f6a   : > { %v8882_v3 = vpop.f32.mrf.mxu0  ;;  %v14561_v31 = vpop.f32.mrf.mxu2 }
0x1f6b   : > { %10609 = vmatmul.msk.f32.vlgmr.msrb.gmra.mxu2 %vm611_vm2, %v14531_v36  ;;  %10615 = vmatmul.msk.f32.vlgmr.msra.gmra.mxu3 %vm654_vm3, %v8882_v3 }
0x1f6c   : > { %10619 = vmatmul.msk.f32.vlgmr.msrb.gmra.mxu0 %vm611_vm2, %v14531_v36  ;;  %10625 = vmatmul.msk.f32.vlgmr.msra.gmra.mxu1 %vm654_vm3, %v8882_v3  ;;  %v8905_v39 = vpop.f32.mrf.mxu1  ;;  %v8981_v37 = vpop.f32.mrf.mxu3 }
0x1f6d   : > { %10655 = vmatpush.msk.msra.mxu3 %vm618_vm1, %v10654_v13  ;;  %9459 = vmatpush.msrb.mxu0 %v10661_v33 }
0x1f6f   : > { %9460 = vmatpush.msrb.mxu0 %v10660_v29 }
0x1f71   : > { %9461 = vmatpush.msrb.mxu0 %v10659_v5 }
0x1f72   : > { %v8885_v56 = vpop.f32.mrf.mxu0 }
0x1f73   : > { %10610 = vmatmul.msk.f32.gmra.mxu2 %vm611_vm2, %v14544_v57  ;;  %10616 = vmatmul.msk.f32.gmra.mxu3 %vm654_vm3, %v8885_v56 }
0x1f74   : > { %10620 = vmatmul.msk.f32.gmra.mxu0 %vm611_vm2, %v14544_v57  ;;  %10626 = vmatmul.msk.f32.gmra.mxu1 %vm654_vm3, %v8885_v56  ;;  %v8908_v15 = vpop.f32.mrf.mxu1 }
0x1f75   : > { %9462 = vmatpush.msrb.mxu0 %v10658_v47 }
0x1f7b   : > { %10629 = vmatmul.msk.f32.vlgmr.msra.gmra.mxu2 %vm611_vm2, %v14553_v54  ;;  %10635 = vmatmul.msk.f32.vlgmr.msrb.gmra.mxu3 %vm654_vm3, %v8905_v39 }
0x1f7c   : > { %10639 = vmatmul.msk.f32.vlgmr.msra.gmra.mxu0 %vm611_vm2, %v14553_v54  ;;  %10645 = vmatmul.msk.f32.vlgmr.msrb.gmra.mxu1 %vm654_vm3, %v8905_v39  ;;  %v9039_v35 = vpop.f32.mrf.mxu1 }
0x1f83   : > { %10630 = vmatmul.msk.f32.gmra.mxu2 %vm611_vm2, %v14561_v31  ;;  %10636 = vmatmul.msk.f32.gmra.mxu3 %vm654_vm3, %v8908_v15 }
0x1f84   : > { %10640 = vmatmul.msk.f32.gmra.mxu0 %vm611_vm2, %v14561_v31  ;;  %10646 = vmatmul.msk.f32.gmra.mxu1 %vm654_vm3, %v8908_v15  ;;  %v9042_v20 = vpop.f32.mrf.mxu1 }
0x1f8b   : > { %10656 = vmatmul.msk.f32.vlgmr.msra.gmra.mxu3 %vm611_vm2, %v8790_v25 }
0x1f93   : > { %10657 = vmatmul.msk.f32.gmra.mxu3 %vm611_vm2, %v8793_v58 }
0x1fd8   : > { %v9007_v32 = vpop.f32.mrf.mxu0 }
0x1fd9   : > { %v9016_v50 = vadd.f32 %v10717_v51, %v9007_v32 }
0x1fdb   : > { %v9045_v61 = vadd.f32 %v9039_v35, %v9016_v50 }
0x1fde   : > { %v8940_v7 = vpop.f32.mrf.mxu2 }
0x1fdf   : > { %v8949_v52 = vadd.f32 %v10718_v8, %v8940_v7 }
0x1fe0   : > { %v9010_v53 = vpop.f32.mrf.mxu0 }
0x1fe1   : > { %v8984_v14 = vadd.f32 %v8978_v46, %v8949_v52  ;;  %v9017_v59 = vadd.f32 %v10717_v51, %v9010_v53 }
0x1fe3   : > { %v9046_v19 = vadd.f32 %v9042_v20, %v9017_v59  ;;  %v10666_v59 = vld [vmem:[%s14690_s6 + $0x10] sm:$0xf] }
0x1fe6   : > { %v8943_v0 = vpop.f32.mrf.mxu2 }
0x1fe7   : > { %v8950_v2 = vadd.f32 %v10718_v8, %v8943_v0 }
0x1fe9   : > { %v9138_v11 = vpop.f32.mrf.mxu0  ;;  %v9167_v1 = vpop.f32.mrf.mxu1  ;;  %v8985_v42 = vadd.f32 %v8981_v37, %v8950_v2 }
0x1fea   : > { %v9144_v40 = vadd.f32 %v9138_v11, %v9045_v61 }
0x1fec   : > { %v9173_v43 = vadd.f32 %v9167_v1, %v9144_v40 }
0x1fee   : > { %v9074_v62 = vpop.f32.mrf.mxu2  ;;  %v9109_v17 = vpop.f32.mrf.mxu3 }
0x1fef   : > { %v9080_v16 = vadd.f32 %v9074_v62, %v8984_v14 }
0x1ff1   : > { %v9141_v60 = vpop.f32.mrf.mxu0  ;;  %v9170_v49 = vpop.f32.mrf.mxu1  ;;  %v9115_v21 = vadd.f32 %v9109_v17, %v9080_v16 }
0x1ff2   : > { %v9145_v22 = vadd.f32 %v9141_v60, %v9046_v19 }
0x1ff4   : > { %v9174_v12 = vadd.f32 %v9170_v49, %v9145_v22  ;;  %v10673_v49 = vld [vmem:[%s14691_s7 + $0x98] sm:$0xff] }
0x1ff5   : > { %9546 = vmatpush.msrb.mxu3 %v10673_v49 }
0x1ff6   : > { %v9077_v63 = vpop.f32.mrf.mxu2  ;;  %v9112_v22 = vpop.f32.mrf.mxu3 }
0x1ff7   : > { %v14577_v55 = vadd.f32 %v9077_v63, %v8985_v42  ;;  %v10678_v63 = vld [vmem:[%s14690_s6 + $0x14] sm:$0xf] }
0x1ff9   : > { %v9266_v27 = vpop.f32.mrf.mxu0  ;;  %v9295_v4 = vpop.f32.mrf.mxu1 }
0x1ffa   : > { %v9272_v48 = vadd.f32 %v9266_v27, %v9173_v43  ;;  %v10685_v43 = vld [vmem:[%s14691_s7 + $0xb8] sm:$0xff]  ;;  %v10684_v27 = vld [vmem:[%s14691_s7 + $0xb0] sm:$0xff] }
0x1ffc   : > { %v9301_v30 = vadd.f32 %v9295_v4, %v9272_v48  ;;  %v10683_v4 = vld [vmem:[%s14691_s7 + $0xa8] sm:$0xff] }
0x1ffe   : > { %v10649_v45 = vmul.f32 -1.442695, %v9301_v30  ;;  %v9202_v18 = vpop.f32.mrf.mxu2  ;;  %v9237_v30 = vpop.f32.mrf.mxu3 }
0x1fff   : > { %v14585_v10 = vadd.f32 %v9202_v18, %v9115_v21  ;;  %v9116_v21 = vadd.f32 %v9112_v22, %v14577_v55  ;;  %v9658_v55 = vld [vmem:[%s14695_s11 + $0x10] sm:$0xff] }
0x2000   : > { %10921 = vpow2.f32 %v10649_v45 }
0x2001   : > { %v9269_v25 = vpop.f32.mrf.mxu0  ;;  %v9298_v28 = vpop.f32.mrf.mxu1  ;;  %v9243_v33 = vadd.f32 %v9237_v30, %v14585_v10 }
0x2002   : > { %v9273_v41 = vadd.f32 %v9269_v25, %v9174_v12 }
0x2003   : > { %v10647_v45 = vmul.f32 -1.442695, %v9243_v33 }
0x2004   : > { %v9302_v58 = vadd.f32 %v9298_v28, %v9273_v41  ;;  %v9659_v41 = vld [vmem:[%s14695_s11 + $0x18] sm:$0xff] }
0x2006   : > { %v10922_v3 = vpop.eup %10921  ;;  %v10650_v13 = vmul.f32 -1.442695, %v9302_v58  ;;  %v9240_v29 = vpop.f32.mrf.mxu3 }
0x2007   : > { %v9347_v56 = vadd.f32 1.0, %v10922_v3  ;;  %v9657_v3 = vld [vmem:[%s14695_s11 + $0x8] sm:$0xff] }
0x2008   : > { %10923 = vpow2.f32 %v10650_v13 }
0x2009   : > { %10925 = vrcp.f32 %v9347_v56  ;;  %vm9354_vm9 = vweird.f32 %v9347_v56  ;;  %v9360_v11 = vand.u32 2147483648, %v9347_v56  ;;  %v9358_v14 = vand.u32 2147483647, %v9347_v56 }
0x200b   : > { %v9361_v2 = vor.u32 1.1754944e-38, %v9360_v11  ;;  %vm9359_vm15 = vcmp.eq.f32.partialorder %v9358_v14, 8.507059e+37 }
0x200e   : > { %v10924_v39 = vpop.eup %10923  ;;  %v9426_v28 = vpop.f32.mrf.mxu3 }
0x200f   : > { %v10926_v15 = vpop.eup %10925  ;;  %v9348_v35 = vadd.f32 1.0, %v10924_v39  ;;  %v9656_v39 = vld [vmem:[%s14695_s11] sm:$0xff] }
0x2010   : > { %v9350_v32 = vmul.f32 %v10926_v15, %v9347_v56  ;;  %vm9355_vm8 = vweird.f32 %v10926_v15  ;;  %v10719_v56 = vld [vmem:[%s14694_s10 + $0x1] ss:$0 sm:$0xff] }
0x2011   : > { %10927 = vrcp.f32 %v9348_v35  ;;  %v9375_v52 = vand.u32 2147483648, %v9348_v35  ;;  %v9373_v51 = vand.u32 2147483647, %v9348_v35  ;;  %vm9356_vm11 = vmor %vm9354_vm9, %vm9355_vm8  ;;  %vm9369_vm12 = vweird.f32 %v9348_v35 }
0x2012   : > { %v9351_v7 = vsub.f32 1.0, %v9350_v32  ;;  %10929 = vpow2.f32 %v10647_v45 }
0x2013   : > { %v9376_v16 = vor.u32 1.1754944e-38, %v9375_v52  ;;  %vm9374_vm14 = vcmp.eq.f32.partialorder %v9373_v51, 8.507059e+37 }
0x2014   : > { %v9352_v20 = vmul.f32 %v10926_v15, %v9351_v7  ;;  %v9435_v7 = vadd.f32 %v10719_v56, %v9426_v28 }
0x2016   : > { %v9353_v46 = vadd.f32 %v10926_v15, %v9352_v20 }
0x2017   : > { %v10928_v53 = vpop.eup %10927 }
0x2018   : > { %v9365_v8 = vmul.f32 %v10928_v53, %v9348_v35  ;;  %vm9370_vm10 = vweird.f32 %v10928_v53  ;;  %v9357_v62 = vsel %vm9356_vm11, %v10926_v15, %v9353_v46  ;;  %v10930_v47 = vpop.eup %10929  ;;  %v9429_v15 = vpop.f32.mrf.mxu3 }
0x2019   : > { %vm9371_vm13 = vmor %vm9369_vm12, %vm9370_vm10  ;;  %v9362_v37 = vsel %vm9359_vm15, %v9361_v2, %v9357_v62  ;;  %v9309_v25 = vadd.f32 1.0, %v10930_v47  ;;  %v9436_v51 = vadd.f32 %v10719_v56, %v9429_v15 }
0x201a   : > { %v9366_v0 = vsub.f32 1.0, %v9365_v8  ;;  %v9379_v42 = vmul.f32 %v9362_v37, %v14383_v6 }
0x201b   : > { %v9320_v49 = vand.u32 2147483647, %v9309_v25 }
0x201c   : > { %v9367_v1 = vmul.f32 %v10928_v53, %v9366_v0 }
0x201d   : > { %vm9321_vm5 = vcmp.eq.f32.partialorder %v9320_v49, 8.507059e+37 }
0x201e   : > { %v9368_v50 = vadd.f32 %v10928_v53, %v9367_v1 }
0x2020   : > { %v9372_v60 = vsel %vm9371_vm13, %v10928_v53, %v9368_v50 }
0x2021   : > { %v9377_v61 = vsel %vm9374_vm14, %v9376_v16, %v9372_v60  ;;  %v9322_v60 = vand.u32 2147483648, %v9309_v25 }
0x2022   : > { %v9380_v40 = vmul.f32 %v9377_v61, %v14388_v44 }
0x2024   : > { %9396 = vmatpush.msrb.mxu2 %v9380_v40  ;;  %9486 = vmatpush.msra.mxu1 %v9380_v40 }
0x2025   : > { %9573 = vmatpush.msra.mxu0 %v9380_v40 }
0x2026   : > { %9397 = vmatpush.msrb.mxu2 %v9379_v42  ;;  %9487 = vmatpush.msra.mxu1 %v9379_v42 }
0x2027   : > { %9574 = vmatpush.msra.mxu0 %v9379_v42  ;;  %10652 = vmatmul.msk.f32.vlgmr.msrb.gmra.mxu2 %vm451_vm0, %v14315_v38  ;;  %v10672_v38 = vld [vmem:[%s14691_s7 + $0x90] sm:$0xff] }
0x2028   : > { %10664 = vmatmul.msk.f32.vlgmr.msra.gmra.mxu1 %vm451_vm0, %v14322_v34  ;;  %10667 = vmatpush.msk.msra.mxu2 %vm618_vm1, %v10666_v59  ;;  %v10671_v34 = vld [vmem:[%s14691_s7 + $0x88] sm:$0xff] }
0x2029   : > { %10679 = vmatpush.msk.msrb.mxu1 %vm618_vm1, %v10678_v63  ;;  %9547 = vmatpush.msrb.mxu3 %v10672_v38  ;;  %vm9316_vm1 = vweird.f32 %v9309_v25  ;;  %v9323_v38 = vor.u32 1.1754944e-38, %v9322_v60 }
0x202a   : > { %9633 = vmatpush.msrb.mxu2 %v10685_v43 }
0x202b   : > { %9548 = vmatpush.msrb.mxu3 %v10671_v34 }
0x202c   : > { %9634 = vmatpush.msrb.mxu2 %v10684_v27 }
0x202e   : > { %9635 = vmatpush.msrb.mxu2 %v10683_v4 }
0x202f   : > { %10653 = vmatmul.msk.f32.gmra.mxu2 %vm451_vm0, %v14334_v9  ;;  %v10670_v9 = vld [vmem:[%s14691_s7 + $0x80] sm:$0xff] }
0x2030   : > { %10665 = vmatmul.msk.f32.gmra.mxu1 %vm451_vm0, %v14341_v23  ;;  %9549 = vmatpush.msrb.mxu3 %v10670_v9  ;;  %v9205_v23 = vpop.f32.mrf.mxu2 }
0x2031   : > { %v9209_v18 = vadd.f32 %v9205_v23, %v9116_v21 }
0x2032   : > { %9682 = vmatpush.msra.mxu3 %v9659_v41 }
0x2033   : > { %v9244_v5 = vadd.f32 %v9240_v29, %v9209_v18 }
0x2034   : > { %9683 = vmatpush.msra.mxu3 %v9658_v55 }
0x2035   : > { %v10648_v12 = vmul.f32 -1.442695, %v9244_v5 }
0x2036   : > { %9684 = vmatpush.msra.mxu3 %v9657_v3 }
0x2037   : > { %10668 = vmatmul.msk.f32.vlgmr.msra.gmra.mxu2 %vm611_vm2, %v14531_v36  ;;  %10931 = vpow2.f32 %v10648_v12 }
0x2038   : > { %10680 = vmatmul.msk.f32.vlgmr.msrb.gmra.mxu1 %vm611_vm2, %v14553_v54  ;;  %10933 = vrcp.f32 %v9309_v25  ;;  %9685 = vmatpush.msra.mxu3 %v9656_v39 }
0x203d   : > { %v10932_v58 = vpop.eup %10931 }
0x203e   : > { %v9310_v10 = vadd.f32 1.0, %v10932_v58  ;;  %v10934_v13 = vpop.eup %10933 }
0x203f   : > { %10669 = vmatmul.msk.f32.gmra.mxu2 %vm611_vm2, %v14544_v57  ;;  %v9312_v32 = vmul.f32 %v10934_v13, %v9309_v25 }
0x2040   : > { %10681 = vmatmul.msk.f32.gmra.mxu1 %vm611_vm2, %v14561_v31  ;;  %10935 = vrcp.f32 %v9310_v10  ;;  %vm9331_vm7 = vweird.f32 %v9310_v10  ;;  %v9335_v43 = vand.u32 2147483647, %v9310_v10 }
0x2041   : > { %v9313_v53 = vsub.f32 1.0, %v9312_v32 }
0x2042   : > { %vm9336_vm9 = vcmp.eq.f32.partialorder %v9335_v43, 8.507059e+37 }
0x2043   : > { %v9314_v1 = vmul.f32 %v10934_v13, %v9313_v53 }
0x2045   : > { %v9315_v2 = vadd.f32 %v10934_v13, %v9314_v1 }
0x2046   : > { %v10936_v8 = vpop.eup %10935 }
0x2047   : > { %v9327_v52 = vmul.f32 %v10936_v8, %v9310_v10  ;;  %vm9332_vm6 = vweird.f32 %v10936_v8 }
0x2048   : > { %vm9333_vm8 = vmor %vm9331_vm7, %vm9332_vm6 }
0x2049   : > { %v9328_v62 = vsub.f32 1.0, %v9327_v52 }
0x204b   : > { %v9329_v63 = vmul.f32 %v10936_v8, %v9328_v62 }
0x20a5   : > { %v9489_v36 = vpop.f32.mrf.mxu1 }
0x20a6   : > { %10674 = vmatmul.msk.f32.vlgmr.msrb.gmra.mxu3 %vm654_vm3, %v9489_v36  ;;  %v9330_v36 = vadd.f32 %v10936_v8, %v9329_v63 }
0x20a8   : > { %v9334_v4 = vsel %vm9333_vm8, %v10936_v8, %v9330_v36 }
0x20aa   : > { %v9399_v57 = vpop.f32.mrf.mxu2 }
0x20ab   : > { %10662 = vmatmul.msk.f32.vlgmr.msrb.gmra.mxu0 %vm654_vm3, %v9399_v57  ;;  %v9337_v57 = vand.u32 2147483648, %v9310_v10 }
0x20ad   : > { %v9492_v54 = vpop.f32.mrf.mxu1 }
0x20ae   : > { %10675 = vmatmul.msk.f32.gmra.mxu3 %vm654_vm3, %v9492_v54 }
0x20b2   : > { %v9402_v31 = vpop.f32.mrf.mxu2 }
0x20b3   : > { %10663 = vmatmul.msk.f32.gmra.mxu0 %vm654_vm3, %v9402_v31 }
0x20b5   : > { %v9603_v16 = vpop.f32.mrf.mxu1 }
0x20ba   : > { %v9516_v35 = vpop.f32.mrf.mxu2 }
0x20bb   : > { %10676 = vmatmul.msk.f32.vlgmr.msra.gmra.mxu0 %vm451_vm0, %v14361_v24  ;;  %v10682_v24 = vld [vmem:[%s14691_s7 + $0xa0] sm:$0xff] }
0x20bc   : > { %9636 = vmatpush.msrb.mxu2 %v10682_v24 }
0x20bd   : > { %v9606_v54 = vpop.f32.mrf.mxu1 }
0x20c2   : > { %v9519_v11 = vpop.f32.mrf.mxu2 }
0x20c3   : > { %10677 = vmatmul.msk.f32.gmra.mxu0 %vm451_vm0, %v14368_v26  ;;  %vm9317_vm0 = vweird.f32 %v10934_v13 }
0x20c4   : > { %vm9318_vm4 = vmor %vm9316_vm1, %vm9317_vm0 }
0x20c5   : > { %v9319_v42 = vsel %vm9318_vm4, %v10934_v13, %v9315_v2 }
0x20c6   : > { %v9324_v23 = vsel %vm9321_vm5, %v9323_v38, %v9319_v42 }
0x20c7   : > { %v9648_v31 = vsub.f32 1.0, %v9324_v23 }
0x2128   : > { %v9464_v26 = vpop.f32.mrf.mxu0 }
0x2129   : > { %v9470_v20 = vadd.f32 %v9464_v26, %v9435_v7  ;;  %v9551_v0 = vpop.f32.mrf.mxu3 }
0x212b   : > { %v9522_v46 = vadd.f32 %v9516_v35, %v9470_v20 }
0x212d   : > { %v9557_v14 = vadd.f32 %v9551_v0, %v9522_v46 }
0x212f   : > { %v9609_v37 = vadd.f32 %v9603_v16, %v9557_v14 }
0x2130   : > { %v9467_v19 = vpop.f32.mrf.mxu0 }
0x2131   : > { %v9471_v50 = vadd.f32 %v9467_v19, %v9436_v51  ;;  %v9554_v40 = vpop.f32.mrf.mxu3  ;;  %v9338_v19 = vor.u32 1.1754944e-38, %v9337_v57 }
0x2133   : > { %v9523_v61 = vadd.f32 %v9519_v11, %v9471_v50  ;;  %v9339_v30 = vsel %vm9336_vm9, %v9338_v19, %v9334_v4 }
0x2134   : > { %v9649_v21 = vsub.f32 1.0, %v9339_v30 }
0x2135   : > { %v9558_v9 = vadd.f32 %v9554_v40, %v9523_v61 }
0x2136   : > { %v9651_v29 = vmul.f32 %v9649_v21, %v14388_v44 }
0x2137   : > { %v9610_v27 = vadd.f32 %v9606_v54, %v9558_v9 }
0x2138   : > { %v9576_v48 = vpop.f32.mrf.mxu0 }
0x2139   : > { %10686 = vmatmul.msk.f32.vlgmr.msrb.gmra.mxu2 %vm654_vm3, %v9576_v48 }
0x2140   : > { %v9579_v17 = vpop.f32.mrf.mxu0 }
0x2141   : > { %10687 = vmatmul.msk.f32.gmra.mxu2 %vm654_vm3, %v9579_v17  ;;  %v9650_v17 = vmul.f32 %v9648_v31, %v14383_v6  ;;  %v10720_v6 = vld [vmem:[%s14696_s12] ss:$0 sm:$0xff] }
0x21bc   : > { %v9638_v59 = vpop.f32.mrf.mxu2 }
0x21bd   : > { %v9644_v34 = vadd.f32 %v9638_v59, %v9609_v37 }
0x21bf   : > { %10937 = vtanh.f32 %v9644_v34 }
0x21c4   : > { %v9641_v24 = vpop.f32.mrf.mxu2 }
0x21c5   : > { %v10938_v26 = vpop.eup %10937  ;;  %v9645_v48 = vadd.f32 %v9641_v24, %v9610_v27 }
0x21c6   : > { %v9652_v22 = vmul.f32 %v10938_v26, %v9324_v23 }
0x21c7   : > { %10939 = vtanh.f32 %v9645_v48 }
0x21c8   : > { %v9654_v33 = vadd.f32 %v9652_v22, %v9650_v17 }
0x21ca   : > { %10688 = vmatmul.msk.f32.vlgmr.msra.gmra.mxu3 %vm654_vm3, %v9654_v33 }
0x21cd   : > { %v10940_v45 = vpop.eup %10939 }
0x21ce   : > { %v9653_v18 = vmul.f32 %v10940_v45, %v9339_v30 }
0x21d0   : > { %v9655_v5 = vadd.f32 %v9653_v18, %v9651_v29 }
0x21d2   : > { %10689 = vmatmul.msk.f32.gmra.mxu3 %vm654_vm3, %v9655_v5 }
0x224d   : > { %v9687_v12 = vpop.f32.mrf.mxu3 }
0x224e   : > { %v9688_v47 = vadd.f32 %v10720_v6, %v9687_v12 }
0x2250   : > { %10690 = vst.msk [vmem:[%s14159_s28 + $0x20] sm:$0xff] %vm611_vm2, %v9688_v47 }
0x2255   : > { %v9690_v25 = vpop.f32.mrf.mxu3 }
0x2256   : > { %v9691_v28 = vadd.f32 %v10720_v6, %v9690_v25 }
0x2258   : > { %10691 = vst.msk [vmem:[%s14159_s28 + $0x28] sm:$0xff] %vm611_vm2, %v9691_v28 }
0x2259 PF: > { %s23_s25 = sadd.s32 1, %s11121_s25  }
0x225a   : > { %p20_p4 = scmp.ge.s32.totalorder %s23_s25, 4  }
0x225c   :  { %22 = sbr.rel (!%p20_p4) target bundleno = 1 (0x1), region = 146 }

</bundles_post_ra>
